<compile_context>
chip_gen: v7x
topology: tpu7x:2x2x1
jax: 0.10.0
libtpu: 0.0.40
codegen_flags: <defaults>
</compile_context>

<pallas_src>
import functools

import jax
import jax.numpy as jnp
from jax.experimental import pallas as pl
from jax.experimental.pallas import tpu as pltpu


# ----------------------------------------------------------------------------
# Pallas kernels
# ----------------------------------------------------------------------------

def _qconv3x3_kernel(*refs, H, W, Cin, Cout_t, relu, mode):
    """Same-padding 3x3 conv for one NHWC image, Cout-tiled over grid axis 1.

    Prologue (only at Cout-tile index j == 0): build the width-im2col slab
    ((H+2)*W, 3*Cin) bf16 in VMEM.  mode selects the prologue transform:
      "convert": pixelwise dense map (ConvertToQuaternions) + ReLU
      "affine" : per-channel folded-BatchNorm affine
      "plain"  : none
    Main: 3 MXU matmuls (one per dy) with K = 3*Cin, f32 accumulation kept as a
    value; bias + ReLU fused into the lane-dense output store; per-channel
    sum / sum-of-squares emitted for the following QBatchNorm.
    """
    if mode == "convert":
        x_ref, cw_ref, cb_ref, w_ref, b_ref, o_ref, st_ref, slab_ref = refs
    elif mode == "affine":
        x_ref, s_ref, t_ref, w_ref, b_ref, o_ref, st_ref, slab_ref = refs
    else:  # "plain"
        x_ref, w_ref, b_ref, o_ref, st_ref, slab_ref = refs
    HW = H * W

    @pl.when(pl.program_id(1) == 0)
    def _build_slab():
        if mode == "convert":
            xr = x_ref[0].reshape(HW, -1).astype(jnp.bfloat16)
            z = jnp.dot(xr, cw_ref[...], preferred_element_type=jnp.float32)
            xin = jnp.maximum(z + cb_ref[...], 0.0)                   # (HW, Cin) f32
        elif mode == "affine":
            xin = (x_ref[0].reshape(HW, Cin).astype(jnp.float32)
                   * s_ref[...] + t_ref[...])
        else:
            xin = x_ref[0].reshape(HW, Cin).astype(jnp.float32)

        # Column (width) halo via rolled + masked copies (XLU roll, no
        # unaligned sublane slices); wrap-around rows are exactly the masked ones.
        col = jax.lax.broadcasted_iota(jnp.int32, (HW, 1), 0) % W
        left = jnp.where(col == 0, 0.0, pltpu.roll(xin, 1, axis=0))
        right = jnp.where(col == W - 1, 0.0, pltpu.roll(xin, HW - 1, axis=0))

        # Zero ONLY the 2*W height-halo rows (interior is fully overwritten).
        zero_rows = jnp.zeros((W, 3 * Cin), jnp.bfloat16)
        slab_ref[pl.ds(0, W), :] = zero_rows
        slab_ref[pl.ds(W + HW, W), :] = zero_rows
        slab_ref[pl.ds(W, HW), :] = jnp.concatenate(
            [left, xin, right], axis=1).astype(jnp.bfloat16)

    # 3 matmuls with K = 3*Cin; sublane offsets dy*W are 8-aligned.
    acc = None
    for dy in range(3):
        d = jnp.dot(slab_ref[pl.ds(dy * W, HW), :], w_ref[dy],
                    preferred_element_type=jnp.float32)
        acc = d if acc is None else acc + d

    acc = acc + b_ref[...]                                            # (1, Cout_t)
    if relu:
        acc = jnp.maximum(acc, 0.0)
    o_ref[...] = acc.reshape(1, H, W, Cout_t).astype(o_ref.dtype)
    # BatchNorm batch statistics emitted from the epilogue (no HBM re-read).
    st_ref[0] = jnp.concatenate(
        [jnp.sum(acc, axis=0, keepdims=True),
         jnp.sum(acc * acc, axis=0, keepdims=True)], axis=0)


def pallas_qconv3x3(x, w, b, *, mode="plain", scale=None, shift=None,
                    conv_w=None, conv_b=None, relu=True, tile_cout=128):
    """x: (B,H,W,Cx); w: (3,3,Cin,Cout); b: (Cout,).

    mode="convert": conv_w (Cx, Cin) / conv_b (Cin,) pixelwise map fused into
    the prologue (Cx is the raw input channel count).
    mode="affine": scale/shift (Cin,) folded BatchNorm affine in the prologue.
    Returns (out (B,H,W,Cout) bf16, stats (B,2,Cout) f32 [sum, sum-of-squares]).
    """
    B, H, W, Cx = x.shape
    _, _, Cin, Cout = w.shape
    assert W % 8 == 0 and Cin % 128 == 0 and Cout % 128 == 0
    TC = min(tile_cout, Cout)
    assert Cout % TC == 0
    nj = Cout // TC

    wr = w.reshape(3, 3 * Cin, Cout).astype(jnp.bfloat16)   # [dy, dx*Cin+ci, co]
    br = b.reshape(1, Cout).astype(jnp.float32)

    x_spec = pl.BlockSpec((1, H, W, Cx), lambda bb, j: (bb, 0, 0, 0))
    w_spec = pl.BlockSpec((3, 3 * Cin, TC), lambda bb, j: (0, 0, j))
    b_spec = pl.BlockSpec((1, TC), lambda bb, j: (0, j))

    if mode == "convert":
        assert conv_w.shape == (Cx, Cin)
        extra = [conv_w.astype(jnp.bfloat16),
                 conv_b.reshape(1, Cin).astype(jnp.float32)]
        extra_specs = [pl.BlockSpec((Cx, Cin), lambda bb, j: (0, 0)),
                       pl.BlockSpec((1, Cin), lambda bb, j: (0, 0))]
    elif mode == "affine":
        extra = [scale.reshape(1, Cin).astype(jnp.float32),
                 shift.reshape(1, Cin).astype(jnp.float32)]
        extra_specs = [pl.BlockSpec((1, Cin), lambda bb, j: (0, 0)),
                       pl.BlockSpec((1, Cin), lambda bb, j: (0, 0))]
    else:
        extra, extra_specs = [], []

    kern = functools.partial(_qconv3x3_kernel, H=H, W=W, Cin=Cin, Cout_t=TC,
                             relu=relu, mode=mode)
    out, stats = pl.pallas_call(
        kern,
        out_shape=(jax.ShapeDtypeStruct((B, H, W, Cout), jnp.bfloat16),
                   jax.ShapeDtypeStruct((B, 2, Cout), jnp.float32)),
        grid=(B, nj),
        in_specs=[x_spec] + extra_specs + [w_spec, b_spec],
        out_specs=(pl.BlockSpec((1, H, W, TC), lambda bb, j: (bb, 0, 0, j)),
                   pl.BlockSpec((1, 2, TC), lambda bb, j: (bb, 0, j))),
        scratch_shapes=[pltpu.VMEM(((H + 2) * W, 3 * Cin), jnp.bfloat16)],
        compiler_params=pltpu.CompilerParams(
            dimension_semantics=("parallel", "arbitrary")),
    )(x.astype(jnp.bfloat16), *extra, wr, br)
    return out, stats


def _head_kernel(h_ref, s_ref, t_ref, w1_ref, b1_ref, w2_ref, b2_ref, o_ref):
    """Fused head: (BN4-apply * attention gate) -> global max-pool
    -> QLinear -> ReLU -> QLinear (real output block, lane-padded)."""
    B, Hh, Wh, C = h_ref.shape
    x = (h_ref[...].reshape(B, Hh * Wh, C).astype(jnp.float32)
         * s_ref[...] + t_ref[...])                                   # (B, HW, C)
    g = jnp.max(x, axis=1)                                            # (B, C)
    z = jnp.dot(g.astype(jnp.bfloat16), w1_ref[...],
                preferred_element_type=jnp.float32)
    z = jnp.maximum(z + b1_ref[...], 0.0).astype(jnp.bfloat16)
    o = jnp.dot(z, w2_ref[...], preferred_element_type=jnp.float32) + b2_ref[...]
    o_ref[...] = o.astype(o_ref.dtype)


def pallas_head(h, scale, shift, w1, b1, w2, b2):
    """h: (B,H,W,C) bf16; scale/shift: (B,1,C) f32 (BN4 affine * gate);
    w1: (C, C5r); w2: (C5r, Npad) with Npad a multiple of 128."""
    B = h.shape[0]
    N = w2.shape[1]
    return pl.pallas_call(
        _head_kernel,
        out_shape=jax.ShapeDtypeStruct((B, N), jnp.float32),
        in_specs=[pl.BlockSpec(memory_space=pltpu.MemorySpace.VMEM)] * 7,
        out_specs=pl.BlockSpec(memory_space=pltpu.MemorySpace.VMEM),
    )(h.astype(jnp.bfloat16),
      scale.astype(jnp.float32), shift.astype(jnp.float32),
      w1.astype(jnp.bfloat16), b1.reshape(1, -1).astype(jnp.float32),
      w2.astype(jnp.bfloat16), b2.reshape(1, -1).astype(jnp.float32))


# ----------------------------------------------------------------------------
# Quaternion helpers + thin JAX glue (bf16, XLA-fused)
# ----------------------------------------------------------------------------

def quaternion_block_weight(wr, wi, wj, wk):
    """Real block matrix realising the Hamilton product, x/y in [r|i|j|k] order."""
    row_r = jnp.concatenate([wr,  wi,  wj,  wk], axis=-1)
    row_i = jnp.concatenate([-wi, wr,  wk, -wj], axis=-1)
    row_j = jnp.concatenate([-wj, -wk, wr,  wi], axis=-1)
    row_k = jnp.concatenate([-wk,  wj, -wi, wr], axis=-1)
    return jnp.concatenate([row_r, row_i, row_j, row_k], axis=-2)


def qbn_from_stats(stats, p, n_pix, eps=1e-5):
    """Fold QBatchNorm (batch stats, component-pooled variance, real gamma,
    quaternion beta) into a per-real-channel affine, using the per-image
    sum / sum-of-squares emitted by the conv kernel epilogues."""
    ssum = jnp.sum(stats[:, 0, :], axis=0)                     # (C4,)
    ssq = jnp.sum(stats[:, 1, :], axis=0)
    C4 = ssum.shape[0]
    C = C4 // 4
    mu = (ssum / n_pix).reshape(4, C)
    ex2 = (ssq / n_pix).reshape(4, C)
    var = jnp.maximum(jnp.mean(ex2 - mu * mu, axis=0), 0.0)    # (C,)
    inv = p["gamma"] / jnp.sqrt(var + eps)                     # (C,)
    scale = jnp.broadcast_to(inv[None, :], (4, C)).reshape(C4)
    shift = (p["beta"] - mu * inv[None, :]).reshape(C4)
    return scale, shift


def qattention_gate(h, scale, shift, p):
    """SE-style gate over quaternion channels of the BatchNorm'd activation.
    Returns the gate expanded to real channels (B, 4*C); the affine is fused
    into the reduction, nothing full-size is materialised in f32."""
    B, H, W, C4 = h.shape
    C = C4 // 4
    xb = h.astype(jnp.float32) * scale + shift
    xq = xb.reshape(B, H, W, 4, C)
    mag = jnp.sqrt(jnp.sum(xq * xq, axis=3) + 1e-12)           # (B, H, W, C)
    s = mag.mean(axis=(1, 2))                                  # (B, C)
    hdn = jax.nn.relu(s @ p["w1"] + p["b1"])
    gate = jax.nn.sigmoid(hdn @ p["w2"] + p["b2"])             # (B, C)
    return jnp.tile(gate, (1, 4))                              # (B, 4*C)


def qmaxpool2x2(x):
    B, H, W, C = x.shape
    return x.reshape(B, H // 2, 2, W // 2, 2, C).max(axis=(2, 4))


# ----------------------------------------------------------------------------
# Parameter init (deterministic, synthetic, channel-padded for lane density)
# ----------------------------------------------------------------------------

def _pad_q(c):
    """Pad quaternion channel count so the real channel dim (4*c) is a multiple of 128."""
    return ((max(int(c), 1) + 31) // 32) * 32


def init_params(key, *, width, n_classes, upsampling_factor, channel_factor):
    C0 = int(upsampling_factor * width)
    C1 = int(16 * channel_factor)
    C2 = int(32 * channel_factor)
    C3 = int(64 * channel_factor)
    C4 = int(128 * channel_factor)
    C5 = int(64 * channel_factor)
    C0p, C1p, C2p, C3p, C4p, C5p = map(_pad_q, (C0, C1, C2, C3, C4, C5))
    keys = jax.random.split(key, 10)

    def pad_comp(wc, cin_p, cout_p):
        pads = [(0, 0)] * (wc.ndim - 2) + [(0, cin_p - wc.shape[-2]),
                                           (0, cout_p - wc.shape[-1])]
        return jnp.pad(wc, pads)

    def qconv_p(k, Cin, Cout, Cinp, Coutp, ksz=3):
        ks = jax.random.split(k, 4)
        sc = 1.0 / jnp.sqrt(4.0 * Cin * ksz * ksz)
        comps = [pad_comp(sc * jax.random.normal(kk, (ksz, ksz, Cin, Cout),
                                                 jnp.float32), Cinp, Coutp)
                 for kk in ks]
        return {"w": quaternion_block_weight(*comps).astype(jnp.bfloat16),
                "b": jnp.zeros((4 * Coutp,), jnp.float32)}

    def qlinear_p(k, Cin, Cout, Cinp, Coutp):
        ks = jax.random.split(k, 4)
        sc = 1.0 / jnp.sqrt(4.0 * Cin)
        comps = [pad_comp(sc * jax.random.normal(kk, (Cin, Cout), jnp.float32),
                          Cinp, Coutp) for kk in ks]
        return {"w": quaternion_block_weight(*comps).astype(jnp.bfloat16),
                "b": jnp.zeros((4 * Coutp,), jnp.float32)}

    def qbn_p(Cp):
        return {"gamma": jnp.ones((Cp,), jnp.float32),
                "beta": jnp.zeros((4, Cp), jnp.float32)}

    def att_p(k, C, Cp):
        Ch = max(C // 4, 1)
        k1, k2 = jax.random.split(k)
        w1 = (1.0 / jnp.sqrt(float(C))) * jax.random.normal(k1, (C, Ch), jnp.float32)
        w2 = (1.0 / jnp.sqrt(float(Ch))) * jax.random.normal(k2, (Ch, C), jnp.float32)
        return {"w1": jnp.pad(w1, ((0, Cp - C), (0, 0))),
                "b1": jnp.zeros((Ch,), jnp.float32),
                "w2": jnp.pad(w2, ((0, 0), (0, Cp - C))),
                "b2": jnp.zeros((Cp,), jnp.float32)}

    # TODO(synk): ConvertToQuaternions (isotrope / upsample_factor semantics) is not
    # defined in the provided source; modelled as a learned pixelwise dense map from
    # `width` real channels to C0 quaternion channels, fused into conv1's prologue.
    wc = (1.0 / jnp.sqrt(float(width))) * jax.random.normal(
        keys[0], (width, 4, C0), jnp.float32)
    wc = jnp.pad(wc, ((0, 0), (0, 0), (0, C0p - C0))).reshape(width, 4 * C0p)
    convert = {"w": wc.astype(jnp.bfloat16), "b": jnp.zeros((4 * C0p,), jnp.float32)}

    # Classifier: fc2 sliced to the real-output block (module returns out[:, :, 0]),
    # lane-padded to 128 columns for a dense store inside the head kernel.
    fc2_full = qlinear_p(keys[8], C5, n_classes, C5p, n_classes)
    npad = ((n_classes + 127) // 128) * 128
    fc2 = {"w_pad": jnp.pad(fc2_full["w"][:, :n_classes],
                            ((0, 0), (0, npad - n_classes))),
           "b_pad": jnp.pad(fc2_full["b"][:n_classes], (0, npad - n_classes))}

    return {
        "convert": convert,
        "conv1": qconv_p(keys[1], C0, C1, C0p, C1p), "bn1": qbn_p(C1p),
        "conv2": qconv_p(keys[2], C1, C2, C1p, C2p), "bn2": qbn_p(C2p),
        "att1": att_p(keys[3], C2, C2p),
        "conv3": qconv_p(keys[4], C2, C3, C2p, C3p), "bn3": qbn_p(C3p),
        "conv4": qconv_p(keys[5], C3, C4, C3p, C4p), "bn4": qbn_p(C4p),
        "att2": att_p(keys[6], C4, C4p),
        "fc1": qlinear_p(keys[7], C4, C5, C4p, C5p),
        "fc2": fc2,
    }


# ----------------------------------------------------------------------------
# Full forward pass (mirrors QNetSpatial.forward; dropout = identity / inference)
# ----------------------------------------------------------------------------

def qnet_spatial_forward(params, x_nchw, *, n_classes):
    B, _, H, W = x_nchw.shape
    x = jnp.transpose(x_nchw, (0, 2, 3, 1))                     # NCHW -> NHWC

    # conv1: ConvertToQuaternions + ReLU fused into prologue; conv + ReLU; BN1 stats.
    h1, st1 = pallas_qconv3x3(x, params["conv1"]["w"], params["conv1"]["b"],
                              mode="convert",
                              conv_w=params["convert"]["w"],
                              conv_b=params["convert"]["b"])
    s1, t1 = qbn_from_stats(st1, params["bn1"], B * H * W)

    # conv2 with BN1 folded into its prologue; BN2 stats from epilogue.
    h2, st2 = pallas_qconv3x3(h1, params["conv2"]["w"], params["conv2"]["b"],
                              mode="affine", scale=s1, shift=t1)
    s2, t2 = qbn_from_stats(st2, params["bn2"], B * H * W)

    # BN2 apply * channel-attention gate + 2x2 max-pool (bf16 XLA-fused glue;
    # pool cannot be fused into a conv epilogue: BN2 needs whole-batch stats).
    g2 = qattention_gate(h2, s2, t2, params["att1"])            # (B, C4)
    sg = (s2[None, :] * g2)[:, None, None, :]
    tg = (t2[None, :] * g2)[:, None, None, :]
    y = (h2.astype(jnp.float32) * sg + tg).astype(jnp.bfloat16)
    y = qmaxpool2x2(y)                                          # (B, H/2, W/2, C)

    # conv3 (no prologue affine); BN3 stats.
    h3, st3 = pallas_qconv3x3(y, params["conv3"]["w"], params["conv3"]["b"],
                              mode="plain")
    s3, t3 = qbn_from_stats(st3, params["bn3"], B * (H // 2) * (W // 2))

    # conv4 with BN3 folded; BN4 stats. Cout=256 -> 2 Cout tiles for pipelining.
    h4, st4 = pallas_qconv3x3(h3, params["conv4"]["w"], params["conv4"]["b"],
                              mode="affine", scale=s3, shift=t3)
    s4, t4 = qbn_from_stats(st4, params["bn4"], B * (H // 2) * (W // 2))

    # head: BN4-apply * gate + global max-pool + QLinear -> ReLU -> QLinear,
    # all fused in one Pallas kernel (real output block, lane-padded to 128).
    g4 = qattention_gate(h4, s4, t4, params["att2"])            # (B, C4)
    sh = (s4[None, :] * g4)[:, None, :]
    th = (t4[None, :] * g4)[:, None, :]
    out = pallas_head(h4, sh, th, params["fc1"]["w"], params["fc1"]["b"],
                      params["fc2"]["w_pad"], params["fc2"]["b_pad"])
    return out[:, :n_classes]                                   # (B, n_classes)


# ----------------------------------------------------------------------------
# Main
# ----------------------------------------------------------------------------

if __name__ == "__main__":
    width = 8
    n_classes = 2
    upsampling_factor = 1.0
    channel_factor = 0.5

    key = jax.random.PRNGKey(0)
    kp, kx = jax.random.split(key)
    params = init_params(kp, width=width, n_classes=n_classes,
                         upsampling_factor=upsampling_factor,
                         channel_factor=channel_factor)
    x = jax.random.normal(kx, (2, width, 16, 16), jnp.float32)  # NCHW, like PyTorch

    fwd = jax.jit(functools.partial(qnet_spatial_forward, n_classes=n_classes))
    out = jax.block_until_ready(fwd(params, x))
    assert out.shape == (2, n_classes), out.shape
    assert bool(jnp.all(jnp.isfinite(out)))
    print("KERNEL_OK")
</pallas_src>

<mosaic_0001>
module attributes {stable_mosaic.version = 11 : i64} {
  func.func @_qconv3x3_kernel(%arg0: i32, %arg1: i32, %arg2: memref<1x16x16x8xbf16, #tpu.memory_space<vmem>>, %arg3: memref<8x128xbf16, #tpu.memory_space<vmem>>, %arg4: memref<1x128xf32, #tpu.memory_space<vmem>>, %arg5: memref<3x384x128xbf16, #tpu.memory_space<vmem>>, %arg6: memref<1x128xf32, #tpu.memory_space<vmem>>, %arg7: memref<1x16x16x128xbf16, #tpu.memory_space<vmem>>, %arg8: memref<1x2x128xf32, #tpu.memory_space<vmem>>, %arg9: memref<288x384xbf16, #tpu.memory_space<vmem>>) attributes {dimension_semantics = [#tpu.dimension_semantics<parallel>, #tpu.dimension_semantics<arbitrary>], iteration_bounds = array<i64: 2, 1>, scalar_prefetch = 0 : i64, scratch_operands = 1 : i64, tpu.core_type = #tpu.core_type<tc>, window_params = [{transform_indices = @transform_0, window_bounds = array<i64: 1, 16, 16, 8>}, {pipeline_mode = #tpu.pipeline_mode<synchronous>, transform_indices = @transform_1, window_bounds = array<i64: 8, 128>}, {pipeline_mode = #tpu.pipeline_mode<synchronous>, transform_indices = @transform_2, window_bounds = array<i64: 1, 128>}, {transform_indices = @transform_3, window_bounds = array<i64: 3, 384, 128>}, {transform_indices = @transform_4, window_bounds = array<i64: 1, 128>}, {transform_indices = @transform_5, window_bounds = array<i64: 1, 16, 16, 128>}, {transform_indices = @transform_6, window_bounds = array<i64: 1, 2, 128>}]} {
    %c0_i32 = arith.constant 0 : i32
    %0 = arith.cmpi eq, %arg1, %c0_i32 : i32
    %1 = arith.extui %0 : i1 to i32
    %c0_i32_0 = arith.constant 0 : i32
    %2 = arith.cmpi ne, %1, %c0_i32_0 : i32
    scf.if %2 {
      %c0_25 = arith.constant 0 : index
      %c0_26 = arith.constant 0 : index
      %c0_27 = arith.constant 0 : index
      %c0_28 = arith.constant 0 : index
      %34 = vector.load %arg2[%c0_25, %c0_26, %c0_27, %c0_28] : memref<1x16x16x8xbf16, #tpu.memory_space<vmem>>, vector<1x16x16x8xbf16>
      %35 = vector.shape_cast %34 : vector<1x16x16x8xbf16> to vector<16x16x8xbf16>
      %36 = vector.shape_cast %35 : vector<16x16x8xbf16> to vector<256x8xbf16>
      %c0_29 = arith.constant 0 : index
      %c0_30 = arith.constant 0 : index
      %37 = vector.load %arg3[%c0_29, %c0_30] : memref<8x128xbf16, #tpu.memory_space<vmem>>, vector<8x128xbf16>
      %cst_31 = arith.constant dense<0.000000e+00> : vector<256x128xf32>
      %38 = tpu.matmul %36, %37, %cst_31 {dimension_numbers = #tpu.dot_dimension_numbers<[1], [0], [0], [1], [0, 0, 1, 1], [], []>} : vector<256x8xbf16>, vector<8x128xbf16>, vector<256x128xf32> -> vector<256x128xf32>
      %c0_32 = arith.constant 0 : index
      %c0_33 = arith.constant 0 : index
      %39 = vector.load %arg4[%c0_32, %c0_33] : memref<1x128xf32, #tpu.memory_space<vmem>>, vector<1x128xf32>
      %40 = vector.broadcast %39 : vector<1x128xf32> to vector<256x128xf32>
      %41 = arith.addf %38, %40 : vector<256x128xf32>
      %cst_34 = arith.constant 0.000000e+00 : f32
      %42 = vector.broadcast %cst_34 : f32 to vector<256x128xf32>
      %43 = arith.maximumf %41, %42 : vector<256x128xf32>
      %44 = tpu.iota {dimensions = array<i32: 0>} : vector<256x1xi32>
      %c16_i32 = arith.constant 16 : i32
      %c0_i32_35 = arith.constant 0 : i32
      %45 = arith.cmpi eq, %c16_i32, %c0_i32_35 : i32
      %c1_i32 = arith.constant 1 : i32
      %46 = arith.select %45, %c1_i32, %c16_i32 : i32
      %47 = vector.broadcast %46 : i32 to vector<256x1xi32>
      %48 = arith.remsi %44, %47 : vector<256x1xi32>
      %c0_i32_36 = arith.constant 0 : i32
      %49 = vector.broadcast %c0_i32_36 : i32 to vector<256x1xi32>
      %50 = arith.cmpi ne, %48, %49 : vector<256x1xi32>
      %c0_i32_37 = arith.constant 0 : i32
      %51 = vector.broadcast %c0_i32_37 : i32 to vector<256x1xi32>
      %52 = arith.cmpi slt, %48, %51 : vector<256x1xi32>
      %c0_i32_38 = arith.constant 0 : i32
      %53 = arith.cmpi slt, %46, %c0_i32_38 : i32
      %54 = vector.broadcast %53 : i1 to vector<256x1xi1>
      %55 = vector.broadcast %54 : vector<256x1xi1> to vector<256x1xi1>
      %56 = arith.xori %52, %55 : vector<256x1xi1>
      %57 = arith.andi %56, %50 : vector<256x1xi1>
      %58 = vector.broadcast %46 : i32 to vector<256x1xi32>
      %59 = arith.addi %48, %58 : vector<256x1xi32>
      %60 = arith.select %57, %59, %48 : vector<256x1xi1>, vector<256x1xi32>
      %c0_i32_39 = arith.constant 0 : i32
      %61 = vector.broadcast %c0_i32_39 : i32 to vector<256x1xi32>
      %62 = arith.cmpi eq, %60, %61 : vector<256x1xi32>
      %c1_i32_40 = arith.constant 1 : i32
      %63 = tpu.dynamic_rotate %43 by %c1_i32_40 dim 0 : vector<256x128xf32>, i32 -> vector<256x128xf32>
      %cst_41 = arith.constant 0.000000e+00 : f32
      %64 = vector.shape_cast %62 : vector<256x1xi1> to vector<256x1xi1>
      %65 = vector.broadcast %64 : vector<256x1xi1> to vector<256x128xi1>
      %66 = vector.broadcast %cst_41 : f32 to vector<256x128xf32>
      %67 = arith.select %65, %66, %63 : vector<256x128xi1>, vector<256x128xf32>
      %c15_i32 = arith.constant 15 : i32
      %68 = vector.broadcast %c15_i32 : i32 to vector<256x1xi32>
      %69 = arith.cmpi eq, %60, %68 : vector<256x1xi32>
      %c255_i32 = arith.constant 255 : i32
      %70 = tpu.dynamic_rotate %43 by %c255_i32 dim 0 : vector<256x128xf32>, i32 -> vector<256x128xf32>
      %cst_42 = arith.constant 0.000000e+00 : f32
      %71 = vector.shape_cast %69 : vector<256x1xi1> to vector<256x1xi1>
      %72 = vector.broadcast %71 : vector<256x1xi1> to vector<256x128xi1>
      %73 = vector.broadcast %cst_42 : f32 to vector<256x128xf32>
      %74 = arith.select %72, %73, %70 : vector<256x128xi1>, vector<256x128xf32>
      %cst_43 = arith.constant 0.000000e+00 : bf16
      %75 = vector.broadcast %cst_43 : bf16 to vector<16x384xbf16>
      %c0_44 = arith.constant 0 : index
      %c0_45 = arith.constant 0 : index
      %76 = vector.load %arg9[%c0_44, %c0_45] : memref<288x384xbf16, #tpu.memory_space<vmem>>, vector<16x384xbf16>
      tpu.vector_store %arg9[%c0_44, %c0_45], %75 {strides = array<i32>} : memref<288x384xbf16, #tpu.memory_space<vmem>>, vector<16x384xbf16>,
      %c272 = arith.constant 272 : index
      %c0_46 = arith.constant 0 : index
      %77 = vector.load %arg9[%c272, %c0_46] : memref<288x384xbf16, #tpu.memory_space<vmem>>, vector<16x384xbf16>
      tpu.vector_store %arg9[%c272, %c0_46], %75 {strides = array<i32>} : memref<288x384xbf16, #tpu.memory_space<vmem>>, vector<16x384xbf16>,
      %78 = tpu.concatenate %67, %43, %74 in 1 : vector<256x128xf32>, vector<256x128xf32>, vector<256x128xf32> -> vector<256x384xf32>
      %79 = arith.truncf %78 : vector<256x384xf32> to vector<256x384xbf16>
      %c16_47 = arith.constant 16 : index
      %c0_48 = arith.constant 0 : index
      %80 = vector.load %arg9[%c16_47, %c0_48] : memref<288x384xbf16, #tpu.memory_space<vmem>>, vector<256x384xbf16>
      tpu.vector_store %arg9[%c16_47, %c0_48], %79 {strides = array<i32>} : memref<288x384xbf16, #tpu.memory_space<vmem>>, vector<256x384xbf16>,
    } else {
    }
    %c0 = arith.constant 0 : index
    %c0_1 = arith.constant 0 : index
    %3 = vector.load %arg9[%c0, %c0_1] : memref<288x384xbf16, #tpu.memory_space<vmem>>, vector<256x384xbf16>
    %c0_2 = arith.constant 0 : index
    %c0_3 = arith.constant 0 : index
    %c0_4 = arith.constant 0 : index
    %4 = vector.load %arg5[%c0_2, %c0_3, %c0_4] : memref<3x384x128xbf16, #tpu.memory_space<vmem>>, vector<1x384x128xbf16>
    %5 = vector.shape_cast %4 : vector<1x384x128xbf16> to vector<384x128xbf16>
    %cst = arith.constant dense<0.000000e+00> : vector<256x128xf32>
    %6 = tpu.matmul %3, %5, %cst {dimension_numbers = #tpu.dot_dimension_numbers<[1], [0], [0], [1], [0, 0, 1, 1], [], []>} : vector<256x384xbf16>, vector<384x128xbf16>, vector<256x128xf32> -> vector<256x128xf32>
    %c16 = arith.constant 16 : index
    %c0_5 = arith.constant 0 : index
    %7 = vector.load %arg9[%c16, %c0_5] : memref<288x384xbf16, #tpu.memory_space<vmem>>, vector<256x384xbf16>
    %c1 = arith.constant 1 : index
    %c0_6 = arith.constant 0 : index
    %c0_7 = arith.constant 0 : index
    %8 = vector.load %arg5[%c1, %c0_6, %c0_7] : memref<3x384x128xbf16, #tpu.memory_space<vmem>>, vector<1x384x128xbf16>
    %9 = vector.shape_cast %8 : vector<1x384x128xbf16> to vector<384x128xbf16>
    %cst_8 = arith.constant dense<0.000000e+00> : vector<256x128xf32>
    %10 = tpu.matmul %7, %9, %cst_8 {dimension_numbers = #tpu.dot_dimension_numbers<[1], [0], [0], [1], [0, 0, 1, 1], [], []>} : vector<256x384xbf16>, vector<384x128xbf16>, vector<256x128xf32> -> vector<256x128xf32>
    %11 = arith.addf %6, %10 : vector<256x128xf32>
    %c32 = arith.constant 32 : index
    %c0_9 = arith.constant 0 : index
    %12 = vector.load %arg9[%c32, %c0_9] : memref<288x384xbf16, #tpu.memory_space<vmem>>, vector<256x384xbf16>
    %c2 = arith.constant 2 : index
    %c0_10 = arith.constant 0 : index
    %c0_11 = arith.constant 0 : index
    %13 = vector.load %arg5[%c2, %c0_10, %c0_11] : memref<3x384x128xbf16, #tpu.memory_space<vmem>>, vector<1x384x128xbf16>
    %14 = vector.shape_cast %13 : vector<1x384x128xbf16> to vector<384x128xbf16>
    %cst_12 = arith.constant dense<0.000000e+00> : vector<256x128xf32>
    %15 = tpu.matmul %12, %14, %cst_12 {dimension_numbers = #tpu.dot_dimension_numbers<[1], [0], [0], [1], [0, 0, 1, 1], [], []>} : vector<256x384xbf16>, vector<384x128xbf16>, vector<256x128xf32> -> vector<256x128xf32>
    %16 = arith.addf %11, %15 : vector<256x128xf32>
    %c0_13 = arith.constant 0 : index
    %c0_14 = arith.constant 0 : index
    %17 = vector.load %arg6[%c0_13, %c0_14] : memref<1x128xf32, #tpu.memory_space<vmem>>, vector<1x128xf32>
    %18 = vector.broadcast %17 : vector<1x128xf32> to vector<256x128xf32>
    %19 = arith.addf %16, %18 : vector<256x128xf32>
    %cst_15 = arith.constant 0.000000e+00 : f32
    %20 = vector.broadcast %cst_15 : f32 to vector<256x128xf32>
    %21 = arith.maximumf %19, %20 : vector<256x128xf32>
    %22 = vector.shape_cast %21 : vector<256x128xf32> to vector<1x16x16x128xf32>
    %23 = arith.truncf %22 : vector<1x16x16x128xf32> to vector<1x16x16x128xbf16>
    %c0_16 = arith.constant 0 : index
    %c0_17 = arith.constant 0 : index
    %c0_18 = arith.constant 0 : index
    %c0_19 = arith.constant 0 : index
    %24 = vector.load %arg7[%c0_16, %c0_17, %c0_18, %c0_19] : memref<1x16x16x128xbf16, #tpu.memory_space<vmem>>, vector<1x16x16x128xbf16>
    tpu.vector_store %arg7[%c0_16, %c0_17, %c0_18, %c0_19], %23 {strides = array<i32>} : memref<1x16x16x128xbf16, #tpu.memory_space<vmem>>, vector<1x16x16x128xbf16>,
    %cst_20 = arith.constant dense<0.000000e+00> : vector<128xf32>
    %25 = vector.multi_reduction <add>, %21, %cst_20 [0] : vector<256x128xf32> to vector<128xf32>
    %26 = vector.shape_cast %25 : vector<128xf32> to vector<1x128xf32>
    %27 = arith.mulf %21, %21 : vector<256x128xf32>
    %cst_21 = arith.constant dense<0.000000e+00> : vector<128xf32>
    %28 = vector.multi_reduction <add>, %27, %cst_21 [0] : vector<256x128xf32> to vector<128xf32>
    %29 = vector.shape_cast %28 : vector<128xf32> to vector<1x128xf32>
    %30 = tpu.concatenate %26, %29 in 0 : vector<1x128xf32>, vector<1x128xf32> -> vector<2x128xf32>
    %c0_22 = arith.constant 0 : index
    %c0_23 = arith.constant 0 : index
    %c0_24 = arith.constant 0 : index
    %31 = vector.load %arg8[%c0_22, %c0_23, %c0_24] : memref<1x2x128xf32, #tpu.memory_space<vmem>>, vector<1x2x128xf32>
    %32 = vector.shape_cast %31 : vector<1x2x128xf32> to vector<2x128xf32>
    %33 = vector.shape_cast %30 : vector<2x128xf32> to vector<1x2x128xf32>
    tpu.vector_store %arg8[%c0_22, %c0_23, %c0_24], %33 {strides = array<i32>} : memref<1x2x128xf32, #tpu.memory_space<vmem>>, vector<1x2x128xf32>,
    return
  }
  func.func @transform_0(%arg0: i32, %arg1: i32) -> (i32, i32, i32, i32) {
    %c0_i32 = arith.constant 0 : i32
    %c0_i32_0 = arith.constant 0 : i32
    %c0_i32_1 = arith.constant 0 : i32
    %c0_i32_2 = arith.constant 0 : i32
    return %arg0, %c0_i32, %c0_i32_0, %c0_i32_1 : i32, i32, i32, i32
  }
  func.func @transform_1(%arg0: i32, %arg1: i32) -> (i32, i32) {
    %c0_i32 = arith.constant 0 : i32
    %c0_i32_0 = arith.constant 0 : i32
    %c0_i32_1 = arith.constant 0 : i32
    return %c0_i32, %c0_i32_0 : i32, i32
  }
  func.func @transform_2(%arg0: i32, %arg1: i32) -> (i32, i32) {
    %c0_i32 = arith.constant 0 : i32
    %c0_i32_0 = arith.constant 0 : i32
    %c0_i32_1 = arith.constant 0 : i32
    return %c0_i32, %c0_i32_0 : i32, i32
  }
  func.func @transform_3(%arg0: i32, %arg1: i32) -> (i32, i32, i32) {
    %c0_i32 = arith.constant 0 : i32
    %c0_i32_0 = arith.constant 0 : i32
    %c0_i32_1 = arith.constant 0 : i32
    return %c0_i32, %c0_i32_0, %arg1 : i32, i32, i32
  }
  func.func @transform_4(%arg0: i32, %arg1: i32) -> (i32, i32) {
    %c0_i32 = arith.constant 0 : i32
    %c0_i32_0 = arith.constant 0 : i32
    return %c0_i32, %arg1 : i32, i32
  }
  func.func @transform_5(%arg0: i32, %arg1: i32) -> (i32, i32, i32, i32) {
    %c0_i32 = arith.constant 0 : i32
    %c0_i32_0 = arith.constant 0 : i32
    %c0_i32_1 = arith.constant 0 : i32
    return %arg0, %c0_i32, %c0_i32_0, %arg1 : i32, i32, i32, i32
  }
  func.func @transform_6(%arg0: i32, %arg1: i32) -> (i32, i32, i32) {
    %c0_i32 = arith.constant 0 : i32
    %c0_i32_0 = arith.constant 0 : i32
    return %arg0, %c0_i32, %arg1 : i32, i32, i32
  }
}

module attributes {stable_mosaic.version = 11 : i64} {
  func.func @_qconv3x3_kernel(%arg0: i32, %arg1: i32, %arg2: memref<1x16x16x128xbf16, #tpu.memory_space<vmem>>, %arg3: memref<1x128xf32, #tpu.memory_space<vmem>>, %arg4: memref<1x128xf32, #tpu.memory_space<vmem>>, %arg5: memref<3x384x128xbf16, #tpu.memory_space<vmem>>, %arg6: memref<1x128xf32, #tpu.memory_space<vmem>>, %arg7: memref<1x16x16x128xbf16, #tpu.memory_space<vmem>>, %arg8: memref<1x2x128xf32, #tpu.memory_space<vmem>>, %arg9: memref<288x384xbf16, #tpu.memory_space<vmem>>) attributes {dimension_semantics = [#tpu.dimension_semantics<parallel>, #tpu.dimension_semantics<arbitrary>], iteration_bounds = array<i64: 2, 1>, scalar_prefetch = 0 : i64, scratch_operands = 1 : i64, tpu.core_type = #tpu.core_type<tc>, window_params = [{transform_indices = @transform_0, window_bounds = array<i64: 1, 16, 16, 128>}, {pipeline_mode = #tpu.pipeline_mode<synchronous>, transform_indices = @transform_1, window_bounds = array<i64: 1, 128>}, {pipeline_mode = #tpu.pipeline_mode<synchronous>, transform_indices = @transform_2, window_bounds = array<i64: 1, 128>}, {transform_indices = @transform_3, window_bounds = array<i64: 3, 384, 128>}, {transform_indices = @transform_4, window_bounds = array<i64: 1, 128>}, {transform_indices = @transform_5, window_bounds = array<i64: 1, 16, 16, 128>}, {transform_indices = @transform_6, window_bounds = array<i64: 1, 2, 128>}]} {
    %c0_i32 = arith.constant 0 : i32
    %0 = arith.cmpi eq, %arg1, %c0_i32 : i32
    %1 = arith.extui %0 : i1 to i32
    %c0_i32_0 = arith.constant 0 : i32
    %2 = arith.cmpi ne, %1, %c0_i32_0 : i32
    scf.if %2 {
      %c0_25 = arith.constant 0 : index
      %c0_26 = arith.constant 0 : index
      %c0_27 = arith.constant 0 : index
      %c0_28 = arith.constant 0 : index
      %34 = vector.load %arg2[%c0_25, %c0_26, %c0_27, %c0_28] : memref<1x16x16x128xbf16, #tpu.memory_space<vmem>>, vector<1x16x16x128xbf16>
      %35 = vector.shape_cast %34 : vector<1x16x16x128xbf16> to vector<16x16x128xbf16>
      %36 = vector.shape_cast %35 : vector<16x16x128xbf16> to vector<256x128xbf16>
      %37 = arith.extf %36 : vector<256x128xbf16> to vector<256x128xf32>
      %c0_29 = arith.constant 0 : index
      %c0_30 = arith.constant 0 : index
      %38 = vector.load %arg3[%c0_29, %c0_30] : memref<1x128xf32, #tpu.memory_space<vmem>>, vector<1x128xf32>
      %39 = vector.broadcast %38 : vector<1x128xf32> to vector<256x128xf32>
      %40 = arith.mulf %37, %39 : vector<256x128xf32>
      %c0_31 = arith.constant 0 : index
      %c0_32 = arith.constant 0 : index
      %41 = vector.load %arg4[%c0_31, %c0_32] : memref<1x128xf32, #tpu.memory_space<vmem>>, vector<1x128xf32>
      %42 = vector.broadcast %41 : vector<1x128xf32> to vector<256x128xf32>
      %43 = arith.addf %40, %42 : vector<256x128xf32>
      %44 = tpu.iota {dimensions = array<i32: 0>} : vector<256x1xi32>
      %c16_i32 = arith.constant 16 : i32
      %c0_i32_33 = arith.constant 0 : i32
      %45 = arith.cmpi eq, %c16_i32, %c0_i32_33 : i32
      %c1_i32 = arith.constant 1 : i32
      %46 = arith.select %45, %c1_i32, %c16_i32 : i32
      %47 = vector.broadcast %46 : i32 to vector<256x1xi32>
      %48 = arith.remsi %44, %47 : vector<256x1xi32>
      %c0_i32_34 = arith.constant 0 : i32
      %49 = vector.broadcast %c0_i32_34 : i32 to vector<256x1xi32>
      %50 = arith.cmpi ne, %48, %49 : vector<256x1xi32>
      %c0_i32_35 = arith.constant 0 : i32
      %51 = vector.broadcast %c0_i32_35 : i32 to vector<256x1xi32>
      %52 = arith.cmpi slt, %48, %51 : vector<256x1xi32>
      %c0_i32_36 = arith.constant 0 : i32
      %53 = arith.cmpi slt, %46, %c0_i32_36 : i32
      %54 = vector.broadcast %53 : i1 to vector<256x1xi1>
      %55 = vector.broadcast %54 : vector<256x1xi1> to vector<256x1xi1>
      %56 = arith.xori %52, %55 : vector<256x1xi1>
      %57 = arith.andi %56, %50 : vector<256x1xi1>
      %58 = vector.broadcast %46 : i32 to vector<256x1xi32>
      %59 = arith.addi %48, %58 : vector<256x1xi32>
      %60 = arith.select %57, %59, %48 : vector<256x1xi1>, vector<256x1xi32>
      %c0_i32_37 = arith.constant 0 : i32
      %61 = vector.broadcast %c0_i32_37 : i32 to vector<256x1xi32>
      %62 = arith.cmpi eq, %60, %61 : vector<256x1xi32>
      %c1_i32_38 = arith.constant 1 : i32
      %63 = tpu.dynamic_rotate %43 by %c1_i32_38 dim 0 : vector<256x128xf32>, i32 -> vector<256x128xf32>
      %cst_39 = arith.constant 0.000000e+00 : f32
      %64 = vector.shape_cast %62 : vector<256x1xi1> to vector<256x1xi1>
      %65 = vector.broadcast %64 : vector<256x1xi1> to vector<256x128xi1>
      %66 = vector.broadcast %cst_39 : f32 to vector<256x128xf32>
      %67 = arith.select %65, %66, %63 : vector<256x128xi1>, vector<256x128xf32>
      %c15_i32 = arith.constant 15 : i32
      %68 = vector.broadcast %c15_i32 : i32 to vector<256x1xi32>
      %69 = arith.cmpi eq, %60, %68 : vector<256x1xi32>
      %c255_i32 = arith.constant 255 : i32
      %70 = tpu.dynamic_rotate %43 by %c255_i32 dim 0 : vector<256x128xf32>, i32 -> vector<256x128xf32>
      %cst_40 = arith.constant 0.000000e+00 : f32
      %71 = vector.shape_cast %69 : vector<256x1xi1> to vector<256x1xi1>
      %72 = vector.broadcast %71 : vector<256x1xi1> to vector<256x128xi1>
      %73 = vector.broadcast %cst_40 : f32 to vector<256x128xf32>
      %74 = arith.select %72, %73, %70 : vector<256x128xi1>, vector<256x128xf32>
      %cst_41 = arith.constant 0.000000e+00 : bf16
      %75 = vector.broadcast %cst_41 : bf16 to vector<16x384xbf16>
      %c0_42 = arith.constant 0 : index
      %c0_43 = arith.constant 0 : index
      %76 = vector.load %arg9[%c0_42, %c0_43] : memref<288x384xbf16, #tpu.memory_space<vmem>>, vector<16x384xbf16>
      tpu.vector_store %arg9[%c0_42, %c0_43], %75 {strides = array<i32>} : memref<288x384xbf16, #tpu.memory_space<vmem>>, vector<16x384xbf16>,
      %c272 = arith.constant 272 : index
      %c0_44 = arith.constant 0 : index
      %77 = vector.load %arg9[%c272, %c0_44] : memref<288x384xbf16, #tpu.memory_space<vmem>>, vector<16x384xbf16>
      tpu.vector_store %arg9[%c272, %c0_44], %75 {strides = array<i32>} : memref<288x384xbf16, #tpu.memory_space<vmem>>, vector<16x384xbf16>,
      %78 = tpu.concatenate %67, %43, %74 in 1 : vector<256x128xf32>, vector<256x128xf32>, vector<256x128xf32> -> vector<256x384xf32>
      %79 = arith.truncf %78 : vector<256x384xf32> to vector<256x384xbf16>
      %c16_45 = arith.constant 16 : index
      %c0_46 = arith.constant 0 : index
      %80 = vector.load %arg9[%c16_45, %c0_46] : memref<288x384xbf16, #tpu.memory_space<vmem>>, vector<256x384xbf16>
      tpu.vector_store %arg9[%c16_45, %c0_46], %79 {strides = array<i32>} : memref<288x384xbf16, #tpu.memory_space<vmem>>, vector<256x384xbf16>,
    } else {
    }
    %c0 = arith.constant 0 : index
    %c0_1 = arith.constant 0 : index
    %3 = vector.load %arg9[%c0, %c0_1] : memref<288x384xbf16, #tpu.memory_space<vmem>>, vector<256x384xbf16>
    %c0_2 = arith.constant 0 : index
    %c0_3 = arith.constant 0 : index
    %c0_4 = arith.constant 0 : index
    %4 = vector.load %arg5[%c0_2, %c0_3, %c0_4] : memref<3x384x128xbf16, #tpu.memory_space<vmem>>, vector<1x384x128xbf16>
    %5 = vector.shape_cast %4 : vector<1x384x128xbf16> to vector<384x128xbf16>
    %cst = arith.constant dense<0.000000e+00> : vector<256x128xf32>
    %6 = tpu.matmul %3, %5, %cst {dimension_numbers = #tpu.dot_dimension_numbers<[1], [0], [0], [1], [0, 0, 1, 1], [], []>} : vector<256x384xbf16>, vector<384x128xbf16>, vector<256x128xf32> -> vector<256x128xf32>
    %c16 = arith.constant 16 : index
    %c0_5 = arith.constant 0 : index
    %7 = vector.load %arg9[%c16, %c0_5] : memref<288x384xbf16, #tpu.memory_space<vmem>>, vector<256x384xbf16>
    %c1 = arith.constant 1 : index
    %c0_6 = arith.constant 0 : index
    %c0_7 = arith.constant 0 : index
    %8 = vector.load %arg5[%c1, %c0_6, %c0_7] : memref<3x384x128xbf16, #tpu.memory_space<vmem>>, vector<1x384x128xbf16>
    %9 = vector.shape_cast %8 : vector<1x384x128xbf16> to vector<384x128xbf16>
    %cst_8 = arith.constant dense<0.000000e+00> : vector<256x128xf32>
    %10 = tpu.matmul %7, %9, %cst_8 {dimension_numbers = #tpu.dot_dimension_numbers<[1], [0], [0], [1], [0, 0, 1, 1], [], []>} : vector<256x384xbf16>, vector<384x128xbf16>, vector<256x128xf32> -> vector<256x128xf32>
    %11 = arith.addf %6, %10 : vector<256x128xf32>
    %c32 = arith.constant 32 : index
    %c0_9 = arith.constant 0 : index
    %12 = vector.load %arg9[%c32, %c0_9] : memref<288x384xbf16, #tpu.memory_space<vmem>>, vector<256x384xbf16>
    %c2 = arith.constant 2 : index
    %c0_10 = arith.constant 0 : index
    %c0_11 = arith.constant 0 : index
    %13 = vector.load %arg5[%c2, %c0_10, %c0_11] : memref<3x384x128xbf16, #tpu.memory_space<vmem>>, vector<1x384x128xbf16>
    %14 = vector.shape_cast %13 : vector<1x384x128xbf16> to vector<384x128xbf16>
    %cst_12 = arith.constant dense<0.000000e+00> : vector<256x128xf32>
    %15 = tpu.matmul %12, %14, %cst_12 {dimension_numbers = #tpu.dot_dimension_numbers<[1], [0], [0], [1], [0, 0, 1, 1], [], []>} : vector<256x384xbf16>, vector<384x128xbf16>, vector<256x128xf32> -> vector<256x128xf32>
    %16 = arith.addf %11, %15 : vector<256x128xf32>
    %c0_13 = arith.constant 0 : index
    %c0_14 = arith.constant 0 : index
    %17 = vector.load %arg6[%c0_13, %c0_14] : memref<1x128xf32, #tpu.memory_space<vmem>>, vector<1x128xf32>
    %18 = vector.broadcast %17 : vector<1x128xf32> to vector<256x128xf32>
    %19 = arith.addf %16, %18 : vector<256x128xf32>
    %cst_15 = arith.constant 0.000000e+00 : f32
    %20 = vector.broadcast %cst_15 : f32 to vector<256x128xf32>
    %21 = arith.maximumf %19, %20 : vector<256x128xf32>
    %22 = vector.shape_cast %21 : vector<256x128xf32> to vector<1x16x16x128xf32>
    %23 = arith.truncf %22 : vector<1x16x16x128xf32> to vector<1x16x16x128xbf16>
    %c0_16 = arith.constant 0 : index
    %c0_17 = arith.constant 0 : index
    %c0_18 = arith.constant 0 : index
    %c0_19 = arith.constant 0 : index
    %24 = vector.load %arg7[%c0_16, %c0_17, %c0_18, %c0_19] : memref<1x16x16x128xbf16, #tpu.memory_space<vmem>>, vector<1x16x16x128xbf16>
    tpu.vector_store %arg7[%c0_16, %c0_17, %c0_18, %c0_19], %23 {strides = array<i32>} : memref<1x16x16x128xbf16, #tpu.memory_space<vmem>>, vector<1x16x16x128xbf16>,
    %cst_20 = arith.constant dense<0.000000e+00> : vector<128xf32>
    %25 = vector.multi_reduction <add>, %21, %cst_20 [0] : vector<256x128xf32> to vector<128xf32>
    %26 = vector.shape_cast %25 : vector<128xf32> to vector<1x128xf32>
    %27 = arith.mulf %21, %21 : vector<256x128xf32>
    %cst_21 = arith.constant dense<0.000000e+00> : vector<128xf32>
    %28 = vector.multi_reduction <add>, %27, %cst_21 [0] : vector<256x128xf32> to vector<128xf32>
    %29 = vector.shape_cast %28 : vector<128xf32> to vector<1x128xf32>
    %30 = tpu.concatenate %26, %29 in 0 : vector<1x128xf32>, vector<1x128xf32> -> vector<2x128xf32>
    %c0_22 = arith.constant 0 : index
    %c0_23 = arith.constant 0 : index
    %c0_24 = arith.constant 0 : index
    %31 = vector.load %arg8[%c0_22, %c0_23, %c0_24] : memref<1x2x128xf32, #tpu.memory_space<vmem>>, vector<1x2x128xf32>
    %32 = vector.shape_cast %31 : vector<1x2x128xf32> to vector<2x128xf32>
    %33 = vector.shape_cast %30 : vector<2x128xf32> to vector<1x2x128xf32>
    tpu.vector_store %arg8[%c0_22, %c0_23, %c0_24], %33 {strides = array<i32>} : memref<1x2x128xf32, #tpu.memory_space<vmem>>, vector<1x2x128xf32>,
    return
  }
  func.func @transform_0(%arg0: i32, %arg1: i32) -> (i32, i32, i32, i32) {
    %c0_i32 = arith.constant 0 : i32
    %c0_i32_0 = arith.constant 0 : i32
    %c0_i32_1 = arith.constant 0 : i32
    %c0_i32_2 = arith.constant 0 : i32
    return %arg0, %c0_i32, %c0_i32_0, %c0_i32_1 : i32, i32, i32, i32
  }
  func.func @transform_1(%arg0: i32, %arg1: i32) -> (i32, i32) {
    %c0_i32 = arith.constant 0 : i32
    %c0_i32_0 = arith.constant 0 : i32
    %c0_i32_1 = arith.constant 0 : i32
    return %c0_i32, %c0_i32_0 : i32, i32
  }
  func.func @transform_2(%arg0: i32, %arg1: i32) -> (i32, i32) {
    %c0_i32 = arith.constant 0 : i32
    %c0_i32_0 = arith.constant 0 : i32
    %c0_i32_1 = arith.constant 0 : i32
    return %c0_i32, %c0_i32_0 : i32, i32
  }
  func.func @transform_3(%arg0: i32, %arg1: i32) -> (i32, i32, i32) {
    %c0_i32 = arith.constant 0 : i32
    %c0_i32_0 = arith.constant 0 : i32
    %c0_i32_1 = arith.constant 0 : i32
    return %c0_i32, %c0_i32_0, %arg1 : i32, i32, i32
  }
  func.func @transform_4(%arg0: i32, %arg1: i32) -> (i32, i32) {
    %c0_i32 = arith.constant 0 : i32
    %c0_i32_0 = arith.constant 0 : i32
    return %c0_i32, %arg1 : i32, i32
  }
  func.func @transform_5(%arg0: i32, %arg1: i32) -> (i32, i32, i32, i32) {
    %c0_i32 = arith.constant 0 : i32
    %c0_i32_0 = arith.constant 0 : i32
    %c0_i32_1 = arith.constant 0 : i32
    return %arg0, %c0_i32, %c0_i32_0, %arg1 : i32, i32, i32, i32
  }
  func.func @transform_6(%arg0: i32, %arg1: i32) -> (i32, i32, i32) {
    %c0_i32 = arith.constant 0 : i32
    %c0_i32_0 = arith.constant 0 : i32
    return %arg0, %c0_i32, %arg1 : i32, i32, i32
  }
}

module attributes {stable_mosaic.version = 11 : i64} {
  func.func @_qconv3x3_kernel(%arg0: i32, %arg1: i32, %arg2: memref<1x8x8x128xbf16, #tpu.memory_space<vmem>>, %arg3: memref<3x384x128xbf16, #tpu.memory_space<vmem>>, %arg4: memref<1x128xf32, #tpu.memory_space<vmem>>, %arg5: memref<1x8x8x128xbf16, #tpu.memory_space<vmem>>, %arg6: memref<1x2x128xf32, #tpu.memory_space<vmem>>, %arg7: memref<80x384xbf16, #tpu.memory_space<vmem>>) attributes {dimension_semantics = [#tpu.dimension_semantics<parallel>, #tpu.dimension_semantics<arbitrary>], iteration_bounds = array<i64: 2, 1>, scalar_prefetch = 0 : i64, scratch_operands = 1 : i64, tpu.core_type = #tpu.core_type<tc>, window_params = [{transform_indices = @transform_0, window_bounds = array<i64: 1, 8, 8, 128>}, {transform_indices = @transform_1, window_bounds = array<i64: 3, 384, 128>}, {transform_indices = @transform_2, window_bounds = array<i64: 1, 128>}, {transform_indices = @transform_3, window_bounds = array<i64: 1, 8, 8, 128>}, {transform_indices = @transform_4, window_bounds = array<i64: 1, 2, 128>}]} {
    %c0_i32 = arith.constant 0 : i32
    %0 = arith.cmpi eq, %arg1, %c0_i32 : i32
    %1 = arith.extui %0 : i1 to i32
    %c0_i32_0 = arith.constant 0 : i32
    %2 = arith.cmpi ne, %1, %c0_i32_0 : i32
    scf.if %2 {
      %c0_25 = arith.constant 0 : index
      %c0_26 = arith.constant 0 : index
      %c0_27 = arith.constant 0 : index
      %c0_28 = arith.constant 0 : index
      %34 = vector.load %arg2[%c0_25, %c0_26, %c0_27, %c0_28] : memref<1x8x8x128xbf16, #tpu.memory_space<vmem>>, vector<1x8x8x128xbf16>
      %35 = vector.shape_cast %34 : vector<1x8x8x128xbf16> to vector<8x8x128xbf16>
      %36 = vector.shape_cast %35 : vector<8x8x128xbf16> to vector<64x128xbf16>
      %37 = arith.extf %36 : vector<64x128xbf16> to vector<64x128xf32>
      %38 = tpu.iota {dimensions = array<i32: 0>} : vector<64x1xi32>
      %c8_i32 = arith.constant 8 : i32
      %c0_i32_29 = arith.constant 0 : i32
      %39 = arith.cmpi eq, %c8_i32, %c0_i32_29 : i32
      %c1_i32 = arith.constant 1 : i32
      %40 = arith.select %39, %c1_i32, %c8_i32 : i32
      %41 = vector.broadcast %40 : i32 to vector<64x1xi32>
      %42 = arith.remsi %38, %41 : vector<64x1xi32>
      %c0_i32_30 = arith.constant 0 : i32
      %43 = vector.broadcast %c0_i32_30 : i32 to vector<64x1xi32>
      %44 = arith.cmpi ne, %42, %43 : vector<64x1xi32>
      %c0_i32_31 = arith.constant 0 : i32
      %45 = vector.broadcast %c0_i32_31 : i32 to vector<64x1xi32>
      %46 = arith.cmpi slt, %42, %45 : vector<64x1xi32>
      %c0_i32_32 = arith.constant 0 : i32
      %47 = arith.cmpi slt, %40, %c0_i32_32 : i32
      %48 = vector.broadcast %47 : i1 to vector<64x1xi1>
      %49 = vector.broadcast %48 : vector<64x1xi1> to vector<64x1xi1>
      %50 = arith.xori %46, %49 : vector<64x1xi1>
      %51 = arith.andi %50, %44 : vector<64x1xi1>
      %52 = vector.broadcast %40 : i32 to vector<64x1xi32>
      %53 = arith.addi %42, %52 : vector<64x1xi32>
      %54 = arith.select %51, %53, %42 : vector<64x1xi1>, vector<64x1xi32>
      %c0_i32_33 = arith.constant 0 : i32
      %55 = vector.broadcast %c0_i32_33 : i32 to vector<64x1xi32>
      %56 = arith.cmpi eq, %54, %55 : vector<64x1xi32>
      %c1_i32_34 = arith.constant 1 : i32
      %57 = tpu.dynamic_rotate %37 by %c1_i32_34 dim 0 : vector<64x128xf32>, i32 -> vector<64x128xf32>
      %cst_35 = arith.constant 0.000000e+00 : f32
      %58 = vector.shape_cast %56 : vector<64x1xi1> to vector<64x1xi1>
      %59 = vector.broadcast %58 : vector<64x1xi1> to vector<64x128xi1>
      %60 = vector.broadcast %cst_35 : f32 to vector<64x128xf32>
      %61 = arith.select %59, %60, %57 : vector<64x128xi1>, vector<64x128xf32>
      %c7_i32 = arith.constant 7 : i32
      %62 = vector.broadcast %c7_i32 : i32 to vector<64x1xi32>
      %63 = arith.cmpi eq, %54, %62 : vector<64x1xi32>
      %c63_i32 = arith.constant 63 : i32
      %64 = tpu.dynamic_rotate %37 by %c63_i32 dim 0 : vector<64x128xf32>, i32 -> vector<64x128xf32>
      %cst_36 = arith.constant 0.000000e+00 : f32
      %65 = vector.shape_cast %63 : vector<64x1xi1> to vector<64x1xi1>
      %66 = vector.broadcast %65 : vector<64x1xi1> to vector<64x128xi1>
      %67 = vector.broadcast %cst_36 : f32 to vector<64x128xf32>
      %68 = arith.select %66, %67, %64 : vector<64x128xi1>, vector<64x128xf32>
      %cst_37 = arith.constant 0.000000e+00 : bf16
      %69 = vector.broadcast %cst_37 : bf16 to vector<8x384xbf16>
      %c0_38 = arith.constant 0 : index
      %c0_39 = arith.constant 0 : index
      %70 = vector.load %arg7[%c0_38, %c0_39] : memref<80x384xbf16, #tpu.memory_space<vmem>>, vector<8x384xbf16>
      tpu.vector_store %arg7[%c0_38, %c0_39], %69 {strides = array<i32>} : memref<80x384xbf16, #tpu.memory_space<vmem>>, vector<8x384xbf16>,
      %c72 = arith.constant 72 : index
      %c0_40 = arith.constant 0 : index
      %71 = vector.load %arg7[%c72, %c0_40] : memref<80x384xbf16, #tpu.memory_space<vmem>>, vector<8x384xbf16>
      tpu.vector_store %arg7[%c72, %c0_40], %69 {strides = array<i32>} : memref<80x384xbf16, #tpu.memory_space<vmem>>, vector<8x384xbf16>,
      %72 = tpu.concatenate %61, %37, %68 in 1 : vector<64x128xf32>, vector<64x128xf32>, vector<64x128xf32> -> vector<64x384xf32>
      %73 = arith.truncf %72 : vector<64x384xf32> to vector<64x384xbf16>
      %c8_41 = arith.constant 8 : index
      %c0_42 = arith.constant 0 : index
      %74 = vector.load %arg7[%c8_41, %c0_42] : memref<80x384xbf16, #tpu.memory_space<vmem>>, vector<64x384xbf16>
      tpu.vector_store %arg7[%c8_41, %c0_42], %73 {strides = array<i32>} : memref<80x384xbf16, #tpu.memory_space<vmem>>, vector<64x384xbf16>,
    } else {
    }
    %c0 = arith.constant 0 : index
    %c0_1 = arith.constant 0 : index
    %3 = vector.load %arg7[%c0, %c0_1] : memref<80x384xbf16, #tpu.memory_space<vmem>>, vector<64x384xbf16>
    %c0_2 = arith.constant 0 : index
    %c0_3 = arith.constant 0 : index
    %c0_4 = arith.constant 0 : index
    %4 = vector.load %arg3[%c0_2, %c0_3, %c0_4] : memref<3x384x128xbf16, #tpu.memory_space<vmem>>, vector<1x384x128xbf16>
    %5 = vector.shape_cast %4 : vector<1x384x128xbf16> to vector<384x128xbf16>
    %cst = arith.constant dense<0.000000e+00> : vector<64x128xf32>
    %6 = tpu.matmul %3, %5, %cst {dimension_numbers = #tpu.dot_dimension_numbers<[1], [0], [0], [1], [0, 0, 1, 1], [], []>} : vector<64x384xbf16>, vector<384x128xbf16>, vector<64x128xf32> -> vector<64x128xf32>
    %c8 = arith.constant 8 : index
    %c0_5 = arith.constant 0 : index
    %7 = vector.load %arg7[%c8, %c0_5] : memref<80x384xbf16, #tpu.memory_space<vmem>>, vector<64x384xbf16>
    %c1 = arith.constant 1 : index
    %c0_6 = arith.constant 0 : index
    %c0_7 = arith.constant 0 : index
    %8 = vector.load %arg3[%c1, %c0_6, %c0_7] : memref<3x384x128xbf16, #tpu.memory_space<vmem>>, vector<1x384x128xbf16>
    %9 = vector.shape_cast %8 : vector<1x384x128xbf16> to vector<384x128xbf16>
    %cst_8 = arith.constant dense<0.000000e+00> : vector<64x128xf32>
    %10 = tpu.matmul %7, %9, %cst_8 {dimension_numbers = #tpu.dot_dimension_numbers<[1], [0], [0], [1], [0, 0, 1, 1], [], []>} : vector<64x384xbf16>, vector<384x128xbf16>, vector<64x128xf32> -> vector<64x128xf32>
    %11 = arith.addf %6, %10 : vector<64x128xf32>
    %c16 = arith.constant 16 : index
    %c0_9 = arith.constant 0 : index
    %12 = vector.load %arg7[%c16, %c0_9] : memref<80x384xbf16, #tpu.memory_space<vmem>>, vector<64x384xbf16>
    %c2 = arith.constant 2 : index
    %c0_10 = arith.constant 0 : index
    %c0_11 = arith.constant 0 : index
    %13 = vector.load %arg3[%c2, %c0_10, %c0_11] : memref<3x384x128xbf16, #tpu.memory_space<vmem>>, vector<1x384x128xbf16>
    %14 = vector.shape_cast %13 : vector<1x384x128xbf16> to vector<384x128xbf16>
    %cst_12 = arith.constant dense<0.000000e+00> : vector<64x128xf32>
    %15 = tpu.matmul %12, %14, %cst_12 {dimension_numbers = #tpu.dot_dimension_numbers<[1], [0], [0], [1], [0, 0, 1, 1], [], []>} : vector<64x384xbf16>, vector<384x128xbf16>, vector<64x128xf32> -> vector<64x128xf32>
    %16 = arith.addf %11, %15 : vector<64x128xf32>
    %c0_13 = arith.constant 0 : index
    %c0_14 = arith.constant 0 : index
    %17 = vector.load %arg4[%c0_13, %c0_14] : memref<1x128xf32, #tpu.memory_space<vmem>>, vector<1x128xf32>
    %18 = vector.broadcast %17 : vector<1x128xf32> to vector<64x128xf32>
    %19 = arith.addf %16, %18 : vector<64x128xf32>
    %cst_15 = arith.constant 0.000000e+00 : f32
    %20 = vector.broadcast %cst_15 : f32 to vector<64x128xf32>
    %21 = arith.maximumf %19, %20 : vector<64x128xf32>
    %22 = vector.shape_cast %21 : vector<64x128xf32> to vector<1x8x8x128xf32>
    %23 = arith.truncf %22 : vector<1x8x8x128xf32> to vector<1x8x8x128xbf16>
    %c0_16 = arith.constant 0 : index
    %c0_17 = arith.constant 0 : index
    %c0_18 = arith.constant 0 : index
    %c0_19 = arith.constant 0 : index
    %24 = vector.load %arg5[%c0_16, %c0_17, %c0_18, %c0_19] : memref<1x8x8x128xbf16, #tpu.memory_space<vmem>>, vector<1x8x8x128xbf16>
    tpu.vector_store %arg5[%c0_16, %c0_17, %c0_18, %c0_19], %23 {strides = array<i32>} : memref<1x8x8x128xbf16, #tpu.memory_space<vmem>>, vector<1x8x8x128xbf16>,
    %cst_20 = arith.constant dense<0.000000e+00> : vector<128xf32>
    %25 = vector.multi_reduction <add>, %21, %cst_20 [0] : vector<64x128xf32> to vector<128xf32>
    %26 = vector.shape_cast %25 : vector<128xf32> to vector<1x128xf32>
    %27 = arith.mulf %21, %21 : vector<64x128xf32>
    %cst_21 = arith.constant dense<0.000000e+00> : vector<128xf32>
    %28 = vector.multi_reduction <add>, %27, %cst_21 [0] : vector<64x128xf32> to vector<128xf32>
    %29 = vector.shape_cast %28 : vector<128xf32> to vector<1x128xf32>
    %30 = tpu.concatenate %26, %29 in 0 : vector<1x128xf32>, vector<1x128xf32> -> vector<2x128xf32>
    %c0_22 = arith.constant 0 : index
    %c0_23 = arith.constant 0 : index
    %c0_24 = arith.constant 0 : index
    %31 = vector.load %arg6[%c0_22, %c0_23, %c0_24] : memref<1x2x128xf32, #tpu.memory_space<vmem>>, vector<1x2x128xf32>
    %32 = vector.shape_cast %31 : vector<1x2x128xf32> to vector<2x128xf32>
    %33 = vector.shape_cast %30 : vector<2x128xf32> to vector<1x2x128xf32>
    tpu.vector_store %arg6[%c0_22, %c0_23, %c0_24], %33 {strides = array<i32>} : memref<1x2x128xf32, #tpu.memory_space<vmem>>, vector<1x2x128xf32>,
    return
  }
  func.func @transform_0(%arg0: i32, %arg1: i32) -> (i32, i32, i32, i32) {
    %c0_i32 = arith.constant 0 : i32
    %c0_i32_0 = arith.constant 0 : i32
    %c0_i32_1 = arith.constant 0 : i32
    %c0_i32_2 = arith.constant 0 : i32
    return %arg0, %c0_i32, %c0_i32_0, %c0_i32_1 : i32, i32, i32, i32
  }
  func.func @transform_1(%arg0: i32, %arg1: i32) -> (i32, i32, i32) {
    %c0_i32 = arith.constant 0 : i32
    %c0_i32_0 = arith.constant 0 : i32
    %c0_i32_1 = arith.constant 0 : i32
    return %c0_i32, %c0_i32_0, %arg1 : i32, i32, i32
  }
  func.func @transform_2(%arg0: i32, %arg1: i32) -> (i32, i32) {
    %c0_i32 = arith.constant 0 : i32
    %c0_i32_0 = arith.constant 0 : i32
    return %c0_i32, %arg1 : i32, i32
  }
  func.func @transform_3(%arg0: i32, %arg1: i32) -> (i32, i32, i32, i32) {
    %c0_i32 = arith.constant 0 : i32
    %c0_i32_0 = arith.constant 0 : i32
    %c0_i32_1 = arith.constant 0 : i32
    return %arg0, %c0_i32, %c0_i32_0, %arg1 : i32, i32, i32, i32
  }
  func.func @transform_4(%arg0: i32, %arg1: i32) -> (i32, i32, i32) {
    %c0_i32 = arith.constant 0 : i32
    %c0_i32_0 = arith.constant 0 : i32
    return %arg0, %c0_i32, %arg1 : i32, i32, i32
  }
}

module attributes {stable_mosaic.version = 11 : i64} {
  func.func @_qconv3x3_kernel(%arg0: i32, %arg1: i32, %arg2: memref<1x8x8x128xbf16, #tpu.memory_space<vmem>>, %arg3: memref<1x128xf32, #tpu.memory_space<vmem>>, %arg4: memref<1x128xf32, #tpu.memory_space<vmem>>, %arg5: memref<3x384x128xbf16, #tpu.memory_space<vmem>>, %arg6: memref<1x128xf32, #tpu.memory_space<vmem>>, %arg7: memref<1x8x8x128xbf16, #tpu.memory_space<vmem>>, %arg8: memref<1x2x128xf32, #tpu.memory_space<vmem>>, %arg9: memref<80x384xbf16, #tpu.memory_space<vmem>>) attributes {dimension_semantics = [#tpu.dimension_semantics<parallel>, #tpu.dimension_semantics<arbitrary>], iteration_bounds = array<i64: 2, 2>, scalar_prefetch = 0 : i64, scratch_operands = 1 : i64, tpu.core_type = #tpu.core_type<tc>, window_params = [{transform_indices = @transform_0, window_bounds = array<i64: 1, 8, 8, 128>}, {pipeline_mode = #tpu.pipeline_mode<synchronous>, transform_indices = @transform_1, window_bounds = array<i64: 1, 128>}, {pipeline_mode = #tpu.pipeline_mode<synchronous>, transform_indices = @transform_2, window_bounds = array<i64: 1, 128>}, {transform_indices = @transform_3, window_bounds = array<i64: 3, 384, 128>}, {transform_indices = @transform_4, window_bounds = array<i64: 1, 128>}, {transform_indices = @transform_5, window_bounds = array<i64: 1, 8, 8, 128>}, {transform_indices = @transform_6, window_bounds = array<i64: 1, 2, 128>}]} {
    %c0_i32 = arith.constant 0 : i32
    %0 = arith.cmpi eq, %arg1, %c0_i32 : i32
    %1 = arith.extui %0 : i1 to i32
    %c0_i32_0 = arith.constant 0 : i32
    %2 = arith.cmpi ne, %1, %c0_i32_0 : i32
    scf.if %2 {
      %c0_25 = arith.constant 0 : index
      %c0_26 = arith.constant 0 : index
      %c0_27 = arith.constant 0 : index
      %c0_28 = arith.constant 0 : index
      %34 = vector.load %arg2[%c0_25, %c0_26, %c0_27, %c0_28] : memref<1x8x8x128xbf16, #tpu.memory_space<vmem>>, vector<1x8x8x128xbf16>
      %35 = vector.shape_cast %34 : vector<1x8x8x128xbf16> to vector<8x8x128xbf16>
      %36 = vector.shape_cast %35 : vector<8x8x128xbf16> to vector<64x128xbf16>
      %37 = arith.extf %36 : vector<64x128xbf16> to vector<64x128xf32>
      %c0_29 = arith.constant 0 : index
      %c0_30 = arith.constant 0 : index
      %38 = vector.load %arg3[%c0_29, %c0_30] : memref<1x128xf32, #tpu.memory_space<vmem>>, vector<1x128xf32>
      %39 = vector.broadcast %38 : vector<1x128xf32> to vector<64x128xf32>
      %40 = arith.mulf %37, %39 : vector<64x128xf32>
      %c0_31 = arith.constant 0 : index
      %c0_32 = arith.constant 0 : index
      %41 = vector.load %arg4[%c0_31, %c0_32] : memref<1x128xf32, #tpu.memory_space<vmem>>, vector<1x128xf32>
      %42 = vector.broadcast %41 : vector<1x128xf32> to vector<64x128xf32>
      %43 = arith.addf %40, %42 : vector<64x128xf32>
      %44 = tpu.iota {dimensions = array<i32: 0>} : vector<64x1xi32>
      %c8_i32 = arith.constant 8 : i32
      %c0_i32_33 = arith.constant 0 : i32
      %45 = arith.cmpi eq, %c8_i32, %c0_i32_33 : i32
      %c1_i32 = arith.constant 1 : i32
      %46 = arith.select %45, %c1_i32, %c8_i32 : i32
      %47 = vector.broadcast %46 : i32 to vector<64x1xi32>
      %48 = arith.remsi %44, %47 : vector<64x1xi32>
      %c0_i32_34 = arith.constant 0 : i32
      %49 = vector.broadcast %c0_i32_34 : i32 to vector<64x1xi32>
      %50 = arith.cmpi ne, %48, %49 : vector<64x1xi32>
      %c0_i32_35 = arith.constant 0 : i32
      %51 = vector.broadcast %c0_i32_35 : i32 to vector<64x1xi32>
      %52 = arith.cmpi slt, %48, %51 : vector<64x1xi32>
      %c0_i32_36 = arith.constant 0 : i32
      %53 = arith.cmpi slt, %46, %c0_i32_36 : i32
      %54 = vector.broadcast %53 : i1 to vector<64x1xi1>
      %55 = vector.broadcast %54 : vector<64x1xi1> to vector<64x1xi1>
      %56 = arith.xori %52, %55 : vector<64x1xi1>
      %57 = arith.andi %56, %50 : vector<64x1xi1>
      %58 = vector.broadcast %46 : i32 to vector<64x1xi32>
      %59 = arith.addi %48, %58 : vector<64x1xi32>
      %60 = arith.select %57, %59, %48 : vector<64x1xi1>, vector<64x1xi32>
      %c0_i32_37 = arith.constant 0 : i32
      %61 = vector.broadcast %c0_i32_37 : i32 to vector<64x1xi32>
      %62 = arith.cmpi eq, %60, %61 : vector<64x1xi32>
      %c1_i32_38 = arith.constant 1 : i32
      %63 = tpu.dynamic_rotate %43 by %c1_i32_38 dim 0 : vector<64x128xf32>, i32 -> vector<64x128xf32>
      %cst_39 = arith.constant 0.000000e+00 : f32
      %64 = vector.shape_cast %62 : vector<64x1xi1> to vector<64x1xi1>
      %65 = vector.broadcast %64 : vector<64x1xi1> to vector<64x128xi1>
      %66 = vector.broadcast %cst_39 : f32 to vector<64x128xf32>
      %67 = arith.select %65, %66, %63 : vector<64x128xi1>, vector<64x128xf32>
      %c7_i32 = arith.constant 7 : i32
      %68 = vector.broadcast %c7_i32 : i32 to vector<64x1xi32>
      %69 = arith.cmpi eq, %60, %68 : vector<64x1xi32>
      %c63_i32 = arith.constant 63 : i32
      %70 = tpu.dynamic_rotate %43 by %c63_i32 dim 0 : vector<64x128xf32>, i32 -> vector<64x128xf32>
      %cst_40 = arith.constant 0.000000e+00 : f32
      %71 = vector.shape_cast %69 : vector<64x1xi1> to vector<64x1xi1>
      %72 = vector.broadcast %71 : vector<64x1xi1> to vector<64x128xi1>
      %73 = vector.broadcast %cst_40 : f32 to vector<64x128xf32>
      %74 = arith.select %72, %73, %70 : vector<64x128xi1>, vector<64x128xf32>
      %cst_41 = arith.constant 0.000000e+00 : bf16
      %75 = vector.broadcast %cst_41 : bf16 to vector<8x384xbf16>
      %c0_42 = arith.constant 0 : index
      %c0_43 = arith.constant 0 : index
      %76 = vector.load %arg9[%c0_42, %c0_43] : memref<80x384xbf16, #tpu.memory_space<vmem>>, vector<8x384xbf16>
      tpu.vector_store %arg9[%c0_42, %c0_43], %75 {strides = array<i32>} : memref<80x384xbf16, #tpu.memory_space<vmem>>, vector<8x384xbf16>,
      %c72 = arith.constant 72 : index
      %c0_44 = arith.constant 0 : index
      %77 = vector.load %arg9[%c72, %c0_44] : memref<80x384xbf16, #tpu.memory_space<vmem>>, vector<8x384xbf16>
      tpu.vector_store %arg9[%c72, %c0_44], %75 {strides = array<i32>} : memref<80x384xbf16, #tpu.memory_space<vmem>>, vector<8x384xbf16>,
      %78 = tpu.concatenate %67, %43, %74 in 1 : vector<64x128xf32>, vector<64x128xf32>, vector<64x128xf32> -> vector<64x384xf32>
      %79 = arith.truncf %78 : vector<64x384xf32> to vector<64x384xbf16>
      %c8_45 = arith.constant 8 : index
      %c0_46 = arith.constant 0 : index
      %80 = vector.load %arg9[%c8_45, %c0_46] : memref<80x384xbf16, #tpu.memory_space<vmem>>, vector<64x384xbf16>
      tpu.vector_store %arg9[%c8_45, %c0_46], %79 {strides = array<i32>} : memref<80x384xbf16, #tpu.memory_space<vmem>>, vector<64x384xbf16>,
    } else {
    }
    %c0 = arith.constant 0 : index
    %c0_1 = arith.constant 0 : index
    %3 = vector.load %arg9[%c0, %c0_1] : memref<80x384xbf16, #tpu.memory_space<vmem>>, vector<64x384xbf16>
    %c0_2 = arith.constant 0 : index
    %c0_3 = arith.constant 0 : index
    %c0_4 = arith.constant 0 : index
    %4 = vector.load %arg5[%c0_2, %c0_3, %c0_4] : memref<3x384x128xbf16, #tpu.memory_space<vmem>>, vector<1x384x128xbf16>
    %5 = vector.shape_cast %4 : vector<1x384x128xbf16> to vector<384x128xbf16>
    %cst = arith.constant dense<0.000000e+00> : vector<64x128xf32>
    %6 = tpu.matmul %3, %5, %cst {dimension_numbers = #tpu.dot_dimension_numbers<[1], [0], [0], [1], [0, 0, 1, 1], [], []>} : vector<64x384xbf16>, vector<384x128xbf16>, vector<64x128xf32> -> vector<64x128xf32>
    %c8 = arith.constant 8 : index
    %c0_5 = arith.constant 0 : index
    %7 = vector.load %arg9[%c8, %c0_5] : memref<80x384xbf16, #tpu.memory_space<vmem>>, vector<64x384xbf16>
    %c1 = arith.constant 1 : index
    %c0_6 = arith.constant 0 : index
    %c0_7 = arith.constant 0 : index
    %8 = vector.load %arg5[%c1, %c0_6, %c0_7] : memref<3x384x128xbf16, #tpu.memory_space<vmem>>, vector<1x384x128xbf16>
    %9 = vector.shape_cast %8 : vector<1x384x128xbf16> to vector<384x128xbf16>
    %cst_8 = arith.constant dense<0.000000e+00> : vector<64x128xf32>
    %10 = tpu.matmul %7, %9, %cst_8 {dimension_numbers = #tpu.dot_dimension_numbers<[1], [0], [0], [1], [0, 0, 1, 1], [], []>} : vector<64x384xbf16>, vector<384x128xbf16>, vector<64x128xf32> -> vector<64x128xf32>
    %11 = arith.addf %6, %10 : vector<64x128xf32>
    %c16 = arith.constant 16 : index
    %c0_9 = arith.constant 0 : index
    %12 = vector.load %arg9[%c16, %c0_9] : memref<80x384xbf16, #tpu.memory_space<vmem>>, vector<64x384xbf16>
    %c2 = arith.constant 2 : index
    %c0_10 = arith.constant 0 : index
    %c0_11 = arith.constant 0 : index
    %13 = vector.load %arg5[%c2, %c0_10, %c0_11] : memref<3x384x128xbf16, #tpu.memory_space<vmem>>, vector<1x384x128xbf16>
    %14 = vector.shape_cast %13 : vector<1x384x128xbf16> to vector<384x128xbf16>
    %cst_12 = arith.constant dense<0.000000e+00> : vector<64x128xf32>
    %15 = tpu.matmul %12, %14, %cst_12 {dimension_numbers = #tpu.dot_dimension_numbers<[1], [0], [0], [1], [0, 0, 1, 1], [], []>} : vector<64x384xbf16>, vector<384x128xbf16>, vector<64x128xf32> -> vector<64x128xf32>
    %16 = arith.addf %11, %15 : vector<64x128xf32>
    %c0_13 = arith.constant 0 : index
    %c0_14 = arith.constant 0 : index
    %17 = vector.load %arg6[%c0_13, %c0_14] : memref<1x128xf32, #tpu.memory_space<vmem>>, vector<1x128xf32>
    %18 = vector.broadcast %17 : vector<1x128xf32> to vector<64x128xf32>
    %19 = arith.addf %16, %18 : vector<64x128xf32>
    %cst_15 = arith.constant 0.000000e+00 : f32
    %20 = vector.broadcast %cst_15 : f32 to vector<64x128xf32>
    %21 = arith.maximumf %19, %20 : vector<64x128xf32>
    %22 = vector.shape_cast %21 : vector<64x128xf32> to vector<1x8x8x128xf32>
    %23 = arith.truncf %22 : vector<1x8x8x128xf32> to vector<1x8x8x128xbf16>
    %c0_16 = arith.constant 0 : index
    %c0_17 = arith.constant 0 : index
    %c0_18 = arith.constant 0 : index
    %c0_19 = arith.constant 0 : index
    %24 = vector.load %arg7[%c0_16, %c0_17, %c0_18, %c0_19] : memref<1x8x8x128xbf16, #tpu.memory_space<vmem>>, vector<1x8x8x128xbf16>
    tpu.vector_store %arg7[%c0_16, %c0_17, %c0_18, %c0_19], %23 {strides = array<i32>} : memref<1x8x8x128xbf16, #tpu.memory_space<vmem>>, vector<1x8x8x128xbf16>,
    %cst_20 = arith.constant dense<0.000000e+00> : vector<128xf32>
    %25 = vector.multi_reduction <add>, %21, %cst_20 [0] : vector<64x128xf32> to vector<128xf32>
    %26 = vector.shape_cast %25 : vector<128xf32> to vector<1x128xf32>
    %27 = arith.mulf %21, %21 : vector<64x128xf32>
    %cst_21 = arith.constant dense<0.000000e+00> : vector<128xf32>
    %28 = vector.multi_reduction <add>, %27, %cst_21 [0] : vector<64x128xf32> to vector<128xf32>
    %29 = vector.shape_cast %28 : vector<128xf32> to vector<1x128xf32>
    %30 = tpu.concatenate %26, %29 in 0 : vector<1x128xf32>, vector<1x128xf32> -> vector<2x128xf32>
    %c0_22 = arith.constant 0 : index
    %c0_23 = arith.constant 0 : index
    %c0_24 = arith.constant 0 : index
    %31 = vector.load %arg8[%c0_22, %c0_23, %c0_24] : memref<1x2x128xf32, #tpu.memory_space<vmem>>, vector<1x2x128xf32>
    %32 = vector.shape_cast %31 : vector<1x2x128xf32> to vector<2x128xf32>
    %33 = vector.shape_cast %30 : vector<2x128xf32> to vector<1x2x128xf32>
    tpu.vector_store %arg8[%c0_22, %c0_23, %c0_24], %33 {strides = array<i32>} : memref<1x2x128xf32, #tpu.memory_space<vmem>>, vector<1x2x128xf32>,
    return
  }
  func.func @transform_0(%arg0: i32, %arg1: i32) -> (i32, i32, i32, i32) {
    %c0_i32 = arith.constant 0 : i32
    %c0_i32_0 = arith.constant 0 : i32
    %c0_i32_1 = arith.constant 0 : i32
    %c0_i32_2 = arith.constant 0 : i32
    return %arg0, %c0_i32, %c0_i32_0, %c0_i32_1 : i32, i32, i32, i32
  }
  func.func @transform_1(%arg0: i32, %arg1: i32) -> (i32, i32) {
    %c0_i32 = arith.constant 0 : i32
    %c0_i32_0 = arith.constant 0 : i32
    %c0_i32_1 = arith.constant 0 : i32
    return %c0_i32, %c0_i32_0 : i32, i32
  }
  func.func @transform_2(%arg0: i32, %arg1: i32) -> (i32, i32) {
    %c0_i32 = arith.constant 0 : i32
    %c0_i32_0 = arith.constant 0 : i32
    %c0_i32_1 = arith.constant 0 : i32
    return %c0_i32, %c0_i32_0 : i32, i32
  }
  func.func @transform_3(%arg0: i32, %arg1: i32) -> (i32, i32, i32) {
    %c0_i32 = arith.constant 0 : i32
    %c0_i32_0 = arith.constant 0 : i32
    %c0_i32_1 = arith.constant 0 : i32
    return %c0_i32, %c0_i32_0, %arg1 : i32, i32, i32
  }
  func.func @transform_4(%arg0: i32, %arg1: i32) -> (i32, i32) {
    %c0_i32 = arith.constant 0 : i32
    %c0_i32_0 = arith.constant 0 : i32
    return %c0_i32, %arg1 : i32, i32
  }
  func.func @transform_5(%arg0: i32, %arg1: i32) -> (i32, i32, i32, i32) {
    %c0_i32 = arith.constant 0 : i32
    %c0_i32_0 = arith.constant 0 : i32
    %c0_i32_1 = arith.constant 0 : i32
    return %arg0, %c0_i32, %c0_i32_0, %arg1 : i32, i32, i32, i32
  }
  func.func @transform_6(%arg0: i32, %arg1: i32) -> (i32, i32, i32) {
    %c0_i32 = arith.constant 0 : i32
    %c0_i32_0 = arith.constant 0 : i32
    return %arg0, %c0_i32, %arg1 : i32, i32, i32
  }
}

module attributes {stable_mosaic.version = 11 : i64} {
  func.func @_head_kernel(%arg0: memref<2x8x8x256xbf16, #tpu.memory_space<vmem>>, %arg1: memref<2x1x256xf32, #tpu.memory_space<vmem>>, %arg2: memref<2x1x256xf32, #tpu.memory_space<vmem>>, %arg3: memref<256x128xbf16, #tpu.memory_space<vmem>>, %arg4: memref<1x128xf32, #tpu.memory_space<vmem>>, %arg5: memref<128x128xbf16, #tpu.memory_space<vmem>>, %arg6: memref<1x128xf32, #tpu.memory_space<vmem>>, %arg7: memref<2x128xf32, #tpu.memory_space<vmem>>) attributes {dimension_semantics = [], scalar_prefetch = 0 : i64, scratch_operands = 0 : i64, tpu.core_type = #tpu.core_type<tc>} {
    %c0 = arith.constant 0 : index
    %c0_0 = arith.constant 0 : index
    %c0_1 = arith.constant 0 : index
    %c0_2 = arith.constant 0 : index
    %0 = vector.load %arg0[%c0, %c0_0, %c0_1, %c0_2] : memref<2x8x8x256xbf16, #tpu.memory_space<vmem>>, vector<2x8x8x256xbf16>
    %1 = vector.shape_cast %0 : vector<2x8x8x256xbf16> to vector<2x64x256xbf16>
    %2 = arith.extf %1 : vector<2x64x256xbf16> to vector<2x64x256xf32>
    %c0_3 = arith.constant 0 : index
    %c0_4 = arith.constant 0 : index
    %c0_5 = arith.constant 0 : index
    %3 = vector.load %arg1[%c0_3, %c0_4, %c0_5] : memref<2x1x256xf32, #tpu.memory_space<vmem>>, vector<2x1x256xf32>
    %4 = vector.broadcast %3 : vector<2x1x256xf32> to vector<2x64x256xf32>
    %5 = arith.mulf %2, %4 : vector<2x64x256xf32>
    %c0_6 = arith.constant 0 : index
    %c0_7 = arith.constant 0 : index
    %c0_8 = arith.constant 0 : index
    %6 = vector.load %arg2[%c0_6, %c0_7, %c0_8] : memref<2x1x256xf32, #tpu.memory_space<vmem>>, vector<2x1x256xf32>
    %7 = vector.broadcast %6 : vector<2x1x256xf32> to vector<2x64x256xf32>
    %8 = arith.addf %5, %7 : vector<2x64x256xf32>
    %cst = arith.constant dense<0xFF800000> : vector<2x256xf32>
    %9 = vector.multi_reduction <maximumf>, %8, %cst [1] : vector<2x64x256xf32> to vector<2x256xf32>
    %10 = arith.truncf %9 : vector<2x256xf32> to vector<2x256xbf16>
    %c0_9 = arith.constant 0 : index
    %c0_10 = arith.constant 0 : index
    %11 = vector.load %arg3[%c0_9, %c0_10] : memref<256x128xbf16, #tpu.memory_space<vmem>>, vector<256x128xbf16>
    %cst_11 = arith.constant dense<0.000000e+00> : vector<2x128xf32>
    %12 = tpu.matmul %10, %11, %cst_11 {dimension_numbers = #tpu.dot_dimension_numbers<[1], [0], [0], [1], [0, 0, 1, 1], [], []>} : vector<2x256xbf16>, vector<256x128xbf16>, vector<2x128xf32> -> vector<2x128xf32>
    %c0_12 = arith.constant 0 : index
    %c0_13 = arith.constant 0 : index
    %13 = vector.load %arg4[%c0_12, %c0_13] : memref<1x128xf32, #tpu.memory_space<vmem>>, vector<1x128xf32>
    %14 = vector.broadcast %13 : vector<1x128xf32> to vector<2x128xf32>
    %15 = arith.addf %12, %14 : vector<2x128xf32>
    %cst_14 = arith.constant 0.000000e+00 : f32
    %16 = vector.broadcast %cst_14 : f32 to vector<2x128xf32>
    %17 = arith.maximumf %15, %16 : vector<2x128xf32>
    %18 = arith.truncf %17 : vector<2x128xf32> to vector<2x128xbf16>
    %c0_15 = arith.constant 0 : index
    %c0_16 = arith.constant 0 : index
    %19 = vector.load %arg5[%c0_15, %c0_16] : memref<128x128xbf16, #tpu.memory_space<vmem>>, vector<128x128xbf16>
    %cst_17 = arith.constant dense<0.000000e+00> : vector<2x128xf32>
    %20 = tpu.matmul %18, %19, %cst_17 {dimension_numbers = #tpu.dot_dimension_numbers<[1], [0], [0], [1], [0, 0, 1, 1], [], []>} : vector<2x128xbf16>, vector<128x128xbf16>, vector<2x128xf32> -> vector<2x128xf32>
    %c0_18 = arith.constant 0 : index
    %c0_19 = arith.constant 0 : index
    %21 = vector.load %arg6[%c0_18, %c0_19] : memref<1x128xf32, #tpu.memory_space<vmem>>, vector<1x128xf32>
    %22 = vector.broadcast %21 : vector<1x128xf32> to vector<2x128xf32>
    %23 = arith.addf %20, %22 : vector<2x128xf32>
    %c0_20 = arith.constant 0 : index
    %c0_21 = arith.constant 0 : index
    %24 = vector.load %arg7[%c0_20, %c0_21] : memref<2x128xf32, #tpu.memory_space<vmem>>, vector<2x128xf32>
    tpu.vector_store %arg7[%c0_20, %c0_21], %23 {strides = array<i32>} : memref<2x128xf32, #tpu.memory_space<vmem>>, vector<2x128xf32>,
    return
  }
}

</mosaic_0001>

<bundles_post_ra>
// kernel: qnet_spatial_forward.6
= control target key start
LH: loop header
LB: loop body
LE: loop exit
PB: predicated region body
PF: predicated region fallthrough
CT: control target
= control target key end

     0   :  { %s5247_s21 = smov 0   ;;  %s5249_s22 = smov 0   ;;  %s7142_s0 = inlined_call_operand.vmem [shape: bf16[2,16,16,128], index: 0, kind: input, shape index: {}]   ;;  %s7143_s1 = inlined_call_operand.vmem [shape: f32[1,128], index: 1, kind: input, shape index: {}]   ;;  %s7144_s2 = inlined_call_operand.vmem [shape: f32[1,128], index: 2, kind: input, shape index: {}]   ;;  %s7145_s3 = inlined_call_operand.vmem [shape: bf16[3,384,128], index: 3, kind: input, shape index: {}]   ;;  %s7146_s4 = inlined_call_operand.vmem [shape: f32[1,128], index: 4, kind: input, shape index: {}]   ;;  %s7147_s5 = inlined_call_operand.vmem [shape: bf16[2,16,16,128], index: 5, kind: output, shape index: {0}]   ;;  %s7148_s6 = inlined_call_operand.vmem [shape: f32[2,2,128], index: 6, kind: output, shape index: {1}]  }
   0x1   :  { %s5251_s23 = smov 0  }
   0x2 LB: > { %s29_s24 = sadd.s32 1, %s5204_s22  ;;  %p3541_p0 = scmp.ge.s32.totalorder %s5208_s23, 1  ;;  %s5208_s23 = sphi %s5251_s23, %s17_s23   ;;  %s5204_s22 = sphi %s5249_s22, %s7465_s22   ;;  %s5200_s21 = sphi %s5247_s21, %s7464_s21  }
   0x3   : > { %p31_p1 = scmp.ge.s32.totalorder %s29_s24, 2  ;;  %p248_p2 = scmp.lt.s32.totalorder %s5208_s23, 3 }
   0x5   : > { %s7467_s24 = smov (%p31_p1, %s29_s24), 0  ;;  %p249_p3 = pnand %p3541_p0, %p248_p2 }
   0x7   : > { %252 = sbr.rel (%p249_p3) target bundleno = 577 (0x241), region = 40 }
   0xe   : > { %v5114_v0 = vld [vmem:[%s7145_s3 + $0x100] sm:$0xff]   ;;  %v469_v1 = vlaneseq  ;;  %v5117_v4 = vld [vmem:[%s7145_s3 + $0x108] sm:$0xff]   ;;  %v5120_v9 = vld [vmem:[%s7145_s3 + $0x110] sm:$0xff]   ;;  %p295_p4 = scmp.lt.s32.totalorder %s5200_s21, 1  ;;  %vm7197_vm6 = vmmov 1   ;;  %v7252_v49 = vmov 0 }
   0xf   : > { %v5273_v2 = vld [vmem:[%s7145_s3 + $0x140] sm:$0xff]   ;;  %4328 = vmatprep.subr.bf16.mxu0 %v5114_v0  ;;  %v5288_v6 = vld [vmem:[%s7145_s3 + $0x148] sm:$0xff]   ;;  %v5302_v10 = vld [vmem:[%s7145_s3 + $0x150] sm:$0xff]  }
  0x10   : > { %v5116_v3 = vld [vmem:[%s7145_s3 + $0xc0] sm:$0xff]   ;;  %4880 = vmatprep.subr.bf16.mxu1 %v5273_v2  ;;  %v5282_v5 = vshrl.u32 %v469_v1, 7  ;;  %v5119_v7 = vld [vmem:[%s7145_s3 + $0xc8] sm:$0xff]   ;;  %v5122_v12 = vld [vmem:[%s7145_s3 + $0xd0] sm:$0xff]   ;;  %s7469_s21 = smov (!%p295_p4, %s5200_s21), 1 }
  0x11   : > { %4329 = vmatpush3.bf16.msra.mxu0 %v5116_v3  ;;  %4888 = vmatpush3.bf16.msra.mxu1 %v5273_v2  ;;  %v5123_v14 = vld [vmem:[%s7145_s3 + $0x118] sm:$0xff]   ;;  %v5126_v17 = vld [vmem:[%s7145_s3 + $0x120] sm:$0xff]   ;;  %v5129_v22 = vld [vmem:[%s7145_s3 + $0x128] sm:$0xff]   ;;  %s3752_s15 = sshll.u32 %s7469_s21, 7 }
  0x12   : > { %4330 = vmatprep.subr.bf16.mxu0 %v5117_v4  ;;  %v487_v8 = vadd.s32 136, %v5282_v5  ;;  %4881 = vmatprep.subr.bf16.mxu1 %v5288_v6  ;;  %v506_v13 = vand.u32 15, %v5282_v5  ;;  %v5316_v15 = vld [vmem:[%s7145_s3 + $0x158] sm:$0xff]   ;;  %v5329_v18 = vld [vmem:[%s7145_s3 + $0x160] sm:$0xff]   ;;  %v489_v19 = vadd.s32 152, %v5282_v5  ;;  %v5341_v21 = vadd.s32 168, %v5282_v5  ;;  %s5373_s28 = scalar_lea.vmem %s7142_s0, %s3752_s15  ;;  %s7031_s29 = scalar_lea.vmem %s7147_s5, %s3752_s15 }
  0x13   : > { %v5125_v16 = vld [vmem:[%s7145_s3 + $0xd8] sm:$0xff]   ;;  %v5128_v20 = vld [vmem:[%s7145_s3 + $0xe0] sm:$0xff]   ;;  %v5351_v24 = vld [vmem:[%s7145_s3 + $0x168] sm:$0xff]   ;;  %v5376_v29 = vadd.s32 16, %v5282_v5  ;;  %vm7178_vm0 = vcmp.lt.s32.totalorder %v5282_v5, 7  ;;  %v5383_v31 = vadd.s32 184, %v5282_v5 }
  0x14   : > { %v625_v11 = vand.u32 15, %v487_v8  ;;  %v639_v23 = vand.u32 15, %v489_v19  ;;  %v653_v25 = vand.u32 15, %v5341_v21  ;;  %v5131_v26 = vld [vmem:[%s7145_s3 + $0xe8] sm:$0xff]   ;;  %v5132_v27 = vld [vmem:[%s7145_s3 + $0x130] sm:$0xff]   ;;  %v5135_v32 = vld [vmem:[%s7145_s3 + $0x138] sm:$0xff]  }
  0x15   : > { %4331 = vmatpush3.bf16.msra.mxu0 %v5119_v7  ;;  %4889 = vmatpush3.bf16.msra.mxu1 %v5288_v6  ;;  %v5366_v28 = vld [vmem:[%s7145_s3 + $0x170] sm:$0xff]   ;;  %v3787_v33 = vld [vmem:[%s5373_s28] sm:$0xff]   ;;  %vm7194_vm2 = vcmp.lt.s32.totalorder %v5282_v5, 1  ;;  %v5404_v36 = vld [vmem:[%s7145_s3 + $0x178] sm:$0xff]   ;;  %v520_v41 = vand.u32 15, %v5376_v29  ;;  %v667_v42 = vand.u32 15, %v5383_v31 }
  0x16   : > { %4332 = vmatprep.subr.bf16.mxu0 %v5120_v9  ;;  %4882 = vmatprep.subr.bf16.mxu1 %v5302_v10  ;;  %v5134_v30 = vld [vmem:[%s7145_s3 + $0xf0] sm:$0xff]   ;;  %v5393_v34 = vld [vmem:[%s7143_s1] ss:$0 sm:$0xff]  ;;  %vm5395_vm1 = vcmp.ne.s32.totalorder %v625_v11, 15  ;;  %v3788_v37 = vunpack.c.l.bf16 %v3787_v33  ;;  %v3789_v38 = vunpack.c.h.bf16 %v3787_v33  ;;  %v3938_v40 = vld [vmem:[%s5373_s28 + $0x48] sm:$0xff]   ;;  %vm5418_vm3 = vcmp.ne.s32.totalorder %v506_v13, 0 }
  0x17   : > { %v3937_v39 = vld [vmem:[%s5373_s28 + $0x40] sm:$0xff]   ;;  %v3824_v46 = vunpack.c.l.bf16 %v3938_v40  ;;  %v3825_v47 = vunpack.c.h.bf16 %v3938_v40  ;;  %v5416_v48 = vld [vmem:[%s5373_s28 + $0x78] sm:$0xff]   ;;  %v3939_v50 = vld [vmem:[%s5373_s28 + $0x50] sm:$0xff]   ;;  %vm5426_vm4 = vcmp.ne.s32.totalorder %v639_v23, 15  ;;  %v5431_v55 = vadd.s32 200, %v5282_v5  ;;  %s3546_s15 = sshll.u32 %s7469_s21, 1 }
  0x18   : > { %v5413_v43 = vld [vmem:[%s7144_s2] ss:$0 sm:$0xff]  ;;  %v3820_v44 = vunpack.c.l.bf16 %v3937_v39  ;;  %v3821_v45 = vunpack.c.h.bf16 %v3937_v39  ;;  %v398_v51 = vmul.f32 %v3788_v37, %v5393_v34  ;;  %v399_v52 = vmul.f32 %v3789_v38, %v5393_v34  ;;  %v5137_v56 = vld [vmem:[%s7145_s3 + $0xf8] sm:$0xff]   ;;  %vm5502_vm7 = vmpackc.low %vm5395_vm1, %vm7197_vm6  ;;  %s321_s8 = scalar_lea.vmem %s7148_s6, %s3546_s15 }
  0x19   : > { %4333 = vmatpush3.bf16.msra.mxu0 %v5122_v12  ;;  %4890 = vmatpush3.bf16.msra.mxu1 %v5302_v10  ;;  %v3849_v53 = vunpack.c.h.bf16 %v5416_v48  ;;  %v416_v59 = vmul.f32 %v3824_v46, %v5393_v34  ;;  %v3828_v60 = vunpack.c.l.bf16 %v3939_v50  ;;  %v417_v4 = vmul.f32 %v3825_v47, %v5393_v34  ;;  %v5138_v7 = vld [vmem:[%s7145_s3 + $0x40] sm:$0xff]   ;;  %v3930_v12 = vld [vmem:[%s5373_s28 + $0x8] sm:$0xff]   ;;  %vm5529_vm8 = vmpackc.low %vm7197_vm6, %vm5418_vm3 }
  0x1a   : > { %4334 = vmatprep.subr.bf16.mxu0 %v5123_v14  ;;  %4883 = vmatprep.subr.bf16.mxu1 %v5316_v15  ;;  %v414_v57 = vmul.f32 %v3820_v44, %v5393_v34  ;;  %v415_v58 = vmul.f32 %v3821_v45, %v5393_v34  ;;  %v5442_v61 = vadd.f32 %v5413_v43, %v398_v51  ;;  %v3829_v13 = vunpack.c.h.bf16 %v3939_v50  ;;  %v5517_v50 = vld [vmem:[%s5373_s28 + $0x60] sm:$0xff]   ;;  %vm5547_vm10 = vmpackc.low %vm5426_vm4, %vm7197_vm6 }
  0x1b   : > { %v5445_v62 = vadd.f32 %v5413_v43, %v399_v52  ;;  %v429_v63 = vmul.f32 %v3849_v53, %v5393_v34  ;;  %v5455_v3 = vadd.f32 %v5413_v43, %v416_v59  ;;  %vm5467_vm5 = vcmp.ne.s32.totalorder %v653_v25, 15  ;;  %v5139_v54 = vld [vmem:[%s7145_s3] sm:$0xff]  }
  0x1c   : > { %v5449_v0 = vadd.f32 %v5413_v43, %v414_v57  ;;  %v5452_v1 = vadd.f32 %v5413_v43, %v415_v58  ;;  %v918_v8 = vrot.slane %v5442_v61, 7  ;;  %v418_v25 = vmul.f32 %v3828_v60, %v5393_v34  ;;  %vm5600_vm11 = vmpackc.low %vm5467_vm5, %vm7197_vm6 }
  0x1d   : > { %4335 = vmatpush3.bf16.msra.mxu0 %v5125_v16  ;;  %4891 = vmatpush3.bf16.msra.mxu1 %v5316_v15  ;;  %v919_v9 = vrot.slane %v5445_v62, 7  ;;  %v5474_v16 = vpack.c.bf16 %v5445_v62, %v5442_v61  ;;  %v5481_v21 = vadd.f32 %v5413_v43, %v429_v63  ;;  %v3792_v33 = vunpack.c.l.bf16 %v3930_v12 }
  0x1e   : > { %4336 = vmatprep.subr.bf16.mxu0 %v5126_v17  ;;  %4884 = vmatprep.subr.bf16.mxu1 %v5329_v18  ;;  %7241 = vst [vmem:[#allocation3_spill] sm:$0xff] %v5449_v0  ;;  %v7149_v17 = vrot.slane %v5449_v0, 1  ;;  %v1128_v19 = vrot.slane %v5452_v1, 1  ;;  %v3793_v37 = vunpack.c.h.bf16 %v3930_v12  ;;  %v5510_v40 = vadd.f32 %v5413_v43, %v418_v25  ;;  %v5140_v12 = vld [vmem:[%s7145_s3 + $0x48] sm:$0xff]  }
  0x1f   : > { %v981_v23 = vsel %vm7194_vm2, %v918_v8, %v919_v9  ;;  %1698 = vmatprep.mubr.bf16.mxu0 %v5474_v16  ;;  %v7152_v39 = vrot.slane %v5481_v21, 7  ;;  %v400_v45 = vmul.f32 %v3792_v33, %v5393_v34  ;;  %v419_v47 = vmul.f32 %v3829_v13, %v5393_v34  ;;  %v5141_v33 = vld [vmem:[%s7145_s3 + $0x8] sm:$0xff]  }
  0x20   : > { %v401_v35 = vmul.f32 %v3793_v37, %v5393_v34  ;;  %v1131_v53 = vrot.slane %v5510_v40, 1  ;;  %vm5538_vm9 = vcmp.ne.s32.totalorder %v520_v41, 0  ;;  %v7253_v49 = vsel %vm5547_vm10, 4294967295, %v7252_v49 }
  0x21   : > { %4337 = vmatpush3.bf16.msra.mxu0 %v5128_v20  ;;  %4892 = vmatpush3.bf16.msra.mxu1 %v5329_v18  ;;  %v1129_v20 = vrot.slane %v5455_v3, 1  ;;  %v982_v51 = vsel %vm7194_vm2, %v7152_v39, %v918_v8  ;;  %7254 = vst [vmem:[#allocation6_spill] sm:$0xff] %v7253_v49  ;;  %v5552_v59 = vadd.f32 %v5413_v43, %v400_v45  ;;  %v7257_v37 = vmov 0  ;;  %vm5643_vm13 = vmpackc.low %vm7197_vm6, %vm5538_vm9  ;;  %v5144_v45 = vld [vmem:[%s7145_s3 + $0x58] sm:$0xff]  }
  0x22   : > { %4338 = vmatprep.subr.bf16.mxu0 %v5129_v22  ;;  %4885 = vmatprep.subr.bf16.mxu1 %v5351_v24  ;;  %v3940_v22 = vld [vmem:[%s5373_s28 + $0x58] sm:$0xff]   ;;  %v5542_v58 = vpack.c.bf16 %v981_v23, %v982_v51  ;;  %v5555_v60 = vadd.f32 %v5413_v43, %v401_v35  ;;  %v5564_v63 = vadd.f32 %v5413_v43, %v419_v47  ;;  %v7258_v37 = vsel %vm5600_vm11, 4294967295, %v7257_v37 }
  0x23   : > { %v3832_v46 = vunpack.c.l.bf16 %v3940_v22  ;;  %v920_v23 = vrot.slane %v5552_v59, 7  ;;  %7259 = vst [vmem:[#allocation9_spill] sm:$0xff] %v7258_v37  ;;  %vm5607_vm12 = vcmp.ne.s32.totalorder %v667_v42, 15  ;;  %v5625_v42 = vld [vmem:[%s5373_s28 + $0x68] sm:$0xff]   ;;  %v681_v57 = vand.u32 15, %v5431_v55 }
  0x24   : > { %v7151_v13 = vrot.slane %v5555_v60, 1  ;;  %v921_v25 = vrot.slane %v5555_v60, 7  ;;  %vm5671_vm14 = vmpackc.low %vm5607_vm12, %vm7197_vm6  ;;  %v497_v39 = vadd.s32 216, %v5282_v5  ;;  %v3934_v37 = vld [vmem:[%s5373_s28 + $0x28] sm:$0xff]   ;;  %v938_v52 = vrot.slane %v5510_v40, 7 }
  0x25   : > { %4339 = vmatpush3.bf16.msra.mxu0 %v5131_v26  ;;  %4893 = vmatpush3.bf16.msra.mxu1 %v5351_v24  ;;  %v5490_v26 = vadd.f32 %v5413_v43, %v417_v4  ;;  %v420_v29 = vmul.f32 %v3832_v46, %v5393_v34  ;;  %v3833_v4 = vunpack.c.h.bf16 %v3940_v22  ;;  %v1132_v22 = vrot.slane %v5564_v63, 1 }
  0x26   : > { %4340 = vmatprep.subr.bf16.mxu0 %v5132_v27  ;;  %4886 = vmatprep.subr.bf16.mxu1 %v5366_v28  ;;  %v1157_v27 = vsel %vm7178_vm0, %v1128_v19, %v1129_v20  ;;  %v979_v14 = vsel %vm7194_vm2, %v920_v23, %v921_v25  ;;  %v980_v46 = vsel %vm7194_vm2, %v919_v9, %v920_v23  ;;  %v3840_v23 = vunpack.c.l.bf16 %v5625_v42 }
  0x27   : > { %v1130_v44 = vrot.slane %v5490_v26, 1  ;;  %v1154_v35 = vsel %vm7178_vm0, %v1131_v53, %v1132_v22  ;;  %v5629_v51 = vpack.c.bf16 %v979_v14, %v980_v46  ;;  %vm5693_vm15 = vcmp.ne.s32.totalorder %v681_v57, 15 }
  0x28   : > { %vm5741_vm1 = vmpackc.low %vm5693_vm15, %vm7197_vm6 }
  0x29   : > { %4341 = vmatpush3.bf16.msra.mxu0 %v5134_v30  ;;  %4894 = vmatpush3.bf16.msra.mxu1 %v5366_v28  ;;  %v1158_v30 = vsel %vm7178_vm0, %v7149_v17, %v1128_v19  ;;  %v1155_v41 = vsel %vm7178_vm0, %v1130_v44, %v1131_v53  ;;  %v5578_v19 = vpack.c.bf16 %v5555_v60, %v5552_v59  ;;  %v7274_v17 = vmov 0 }
  0x2a   : > { %4342 = vmatprep.subr.bf16.mxu0 %v5135_v32  ;;  %4887 = vmatprep.subr.bf16.mxu1 %v5404_v36  ;;  %v7244_v32 = vmov 0  ;;  %v5506_v38 = vpack.c.bf16 %v1157_v27, %v1158_v30  ;;  %v421_v27 = vmul.f32 %v3833_v4, %v5393_v34  ;;  %v3931_v30 = vld [vmem:[%s5373_s28 + $0x10] sm:$0xff]   ;;  %7262 = vst [vmem:[#allocation10_spill] sm:$0xff] %v5629_v51  ;;  %v7275_v17 = vsel %vm5741_vm1, 4294967295, %v7274_v17 }
  0x2b   : > { %v7245_v32 = vsel %vm5502_vm7, 4294967295, %v7244_v32  ;;  %7256 = vst [vmem:[#allocation8_spill] sm:$0xff] %v5578_v19  ;;  %v3797_v4 = vunpack.c.h.bf16 %v3931_v30  ;;  %7276 = vst [vmem:[#allocation16_spill] sm:$0xff] %v7275_v17 }
  0x2c   : > { %7246 = vst [vmem:[#allocation4_spill] sm:$0xff] %v7245_v32  ;;  %7247 = vst [vmem:[#allocation5_spill] sm:$0xff] %v5506_v38  ;;  %4768 = vmatprep.mubr.msk.bf16.mxu1 %vm5502_vm7, %v5506_v38  ;;  %v5622_v31 = vadd.f32 %v5413_v43, %v421_v27  ;;  %v3935_v32 = vld [vmem:[%s5373_s28 + $0x30] sm:$0xff]  }
  0x2d   : > { %4343 = vmatpush3.bf16.msra.mxu0 %v5137_v56  ;;  %4895 = vmatpush3.bf16.msra.mxu1 %v5404_v36  ;;  %v1156_v56 = vsel %vm7178_vm0, %v1129_v20, %v1130_v44  ;;  %v5581_v20 = vadd.f32 %v5413_v43, %v420_v29  ;;  %v3796_v29 = vunpack.c.l.bf16 %v3931_v30  ;;  %v474_v30 = vadd.s32 32, %v5282_v5 }
  0x2e   : > { %4736 = vmatprep.subr.bf16.mxu0 %v5273_v2  ;;  %4464 = vmatprep.subr.bf16.mxu1 %v5138_v7  ;;  %v3836_v7 = vunpack.c.l.bf16 %v5517_v50  ;;  %v5570_v8 = vpack.c.bf16 %v1155_v41, %v1156_v56  ;;  %v5142_v56 = vld [vmem:[%s7145_s3 + $0x50] sm:$0xff]   ;;  %v7264_v41 = vmov 0 }
  0x2f   : > { %v7265_v41 = vsel %vm5643_vm13, 4294967295, %v7264_v41 }
  0x30   : > { %3963 = vmatmul.mubr.msk.bf16.vlgmr.msra.gmra.mrb[0].mxu0 %vm5529_vm8, %v5542_v58  ;;  %7255 = vst [vmem:[#allocation7_spill] sm:$0xff] %v5570_v8  ;;  %4769 = vmatmul.mubr.msk.bf16.vlgmr.msra.gmra.mrb[0].mxu1 %vm5547_vm10, %v5570_v8  ;;  %v422_v44 = vmul.f32 %v3836_v7, %v5393_v34  ;;  %7266 = vst [vmem:[#allocation12_spill] sm:$0xff] %v7265_v41  ;;  %v3837_v7 = vunpack.c.h.bf16 %v5517_v50 }
  0x31   : > { %4737 = vmatpush3.bf16.msra.mxu0 %v5273_v2  ;;  %1706 = vmatprep.mubr.bf16.mxu0 %v5578_v19  ;;  %v1133_v2 = vrot.slane %v5581_v20, 1 }
  0x32   : > { %4465 = vmatpush3.bf16.msra.mxu1 %v5139_v54  ;;  %v5632_v53 = vadd.f32 %v5413_v43, %v422_v44  ;;  %4738 = vmatprep.subr.bf16.mxu0 %v5288_v6  ;;  %v1134_v54 = vrot.slane %v5622_v31, 1  ;;  %v423_v27 = vmul.f32 %v3837_v7, %v5393_v34  ;;  %v534_v7 = vand.u32 15, %v474_v30 }
  0x33   : > { %4466 = vmatprep.subr.bf16.mxu1 %v5140_v12  ;;  %v1153_v47 = vsel %vm7178_vm0, %v1132_v22, %v1133_v2  ;;  %v402_v22 = vmul.f32 %v3796_v29, %v5393_v34  ;;  %v5145_v29 = vld [vmem:[%s7145_s3 + $0x18] sm:$0xff]  }
  0x34   : > { %v5638_v9 = vpack.c.bf16 %v1153_v47, %v1154_v35  ;;  %v1135_v12 = vrot.slane %v5632_v53, 1  ;;  %v1152_v50 = vsel %vm7178_vm0, %v1133_v2, %v1134_v54  ;;  %v5143_v2 = vld [vmem:[%s7145_s3 + $0x10] sm:$0xff]   ;;  %v424_v35 = vmul.f32 %v3840_v23, %v5393_v34 }
  0x35   : > { %4739 = vmatpush3.bf16.msra.mxu0 %v5288_v6  ;;  %v403_v6 = vmul.f32 %v3797_v4, %v5393_v34  ;;  %v5679_v44 = vadd.f32 %v5413_v43, %v402_v22  ;;  %v5691_v47 = vadd.f32 %v5413_v43, %v423_v27  ;;  %v3943_v23 = vld [vmem:[%s5373_s28 + $0x70] sm:$0xff]   ;;  %vm5058_vm3 = vcmp.ne.s32.totalorder %v534_v7, 0 }
  0x36   : > { %7263 = vst [vmem:[#allocation11_spill] sm:$0xff] %v5638_v9  ;;  %4740 = vmatprep.subr.bf16.mxu0 %v5302_v10  ;;  %4467 = vmatpush3.bf16.msra.mxu1 %v5141_v33  ;;  %v1151_v55 = vsel %vm7178_vm0, %v1134_v54, %v1135_v12  ;;  %v7267_v33 = vmov 0  ;;  %v5703_v4 = vadd.f32 %v5413_v43, %v424_v35  ;;  %vm5752_vm4 = vmpackc.low %vm7197_vm6, %vm5058_vm3 }
  0x37   : > { %4772 = vmatprep.mubr.msk.bf16.mxu1 %vm5600_vm11, %v5638_v9  ;;  %v7268_v33 = vsel %vm5671_vm14, 4294967295, %v7267_v33  ;;  %4468 = vmatprep.subr.bf16.mxu1 %v5142_v56  ;;  %v5682_v14 = vpack.c.bf16 %v1151_v55, %v1152_v50  ;;  %v5688_v46 = vadd.f32 %v5413_v43, %v403_v6  ;;  %v7150_v54 = vrot.slane %v5679_v44, 1 }
  0x38   : > { %3967 = vmatmul.mubr.msk.bf16.gmra.mrb[4].mxu0 %vm5643_vm13, %v5629_v51  ;;  %7269 = vst [vmem:[#allocation13_spill] sm:$0xff] %v7268_v33  ;;  %v922_v22 = vrot.slane %v5679_v44, 7  ;;  %v1136_v57 = vrot.slane %v5691_v47, 1  ;;  %v3841_v6 = vunpack.c.h.bf16 %v5625_v42  ;;  %v1137_v30 = vrot.slane %v5703_v4, 1  ;;  %v5146_v42 = vld [vmem:[%s7145_s3 + $0x60] sm:$0xff]   ;;  %v5151_v33 = vld [vmem:[%s7145_s3 + $0x30] sm:$0xff]  }
  0x39   : > { %7270 = vst [vmem:[#allocation14_spill] sm:$0xff] %v5682_v14  ;;  %4741 = vmatpush3.bf16.msra.mxu0 %v5302_v10  ;;  %4773 = vmatmul.mubr.msk.bf16.gmra.mrb[4].mxu1 %vm5671_vm14, %v5682_v14  ;;  %v5713_v10 = vpack.c.bf16 %v5688_v46, %v5679_v44  ;;  %v7153_v50 = vrot.slane %v5688_v46, 7  ;;  %v5724_v27 = vsel %vm7178_vm0, %v7151_v13, %v7150_v54  ;;  %v3844_v54 = vunpack.c.l.bf16 %v3943_v23 }
  0x3a   : > { %4742 = vmatprep.subr.bf16.mxu0 %v5316_v15  ;;  %4469 = vmatpush3.bf16.msra.mxu1 %v5143_v2  ;;  %v978_v55 = vsel %vm7194_vm2, %v921_v25, %v922_v22  ;;  %v3932_v2 = vld [vmem:[%s5373_s28 + $0x18] sm:$0xff]   ;;  %v1150_v35 = vsel %vm7178_vm0, %v1135_v12, %v1136_v57  ;;  %v425_v13 = vmul.f32 %v3841_v6, %v5393_v34  ;;  %v695_v6 = vand.u32 15, %v497_v39  ;;  %v5182_v12 = vld [vmem:[%s7145_s3 + $0x220] sm:$0xff]  }
  0x3b   : > { %7273 = vst [vmem:[#allocation15_spill] sm:$0xff] %v5713_v10  ;;  %4470 = vmatprep.subr.bf16.mxu1 %v5144_v45  ;;  %1714 = vmatprep.mubr.bf16.mxu0 %v5713_v10  ;;  %v977_v25 = vsel %vm7194_vm2, %v922_v22, %v7153_v50  ;;  %v1149_v45 = vsel %vm7178_vm0, %v1136_v57, %v1137_v30  ;;  %v3800_v22 = vunpack.c.l.bf16 %v3932_v2  ;;  %v3801_v50 = vunpack.c.h.bf16 %v3932_v2 }
  0x3c   : > { %v5756_v56 = vpack.c.bf16 %v977_v25, %v978_v55  ;;  %v5761_v11 = vpack.c.bf16 %v1149_v45, %v1150_v35  ;;  %v426_v7 = vmul.f32 %v3844_v54, %v5393_v34  ;;  %v5769_v57 = vadd.f32 %v5413_v43, %v425_v13  ;;  %v5148_v13 = vld [vmem:[%s7145_s3 + $0x68] sm:$0xff]  }
  0x3d   : > { %4743 = vmatpush3.bf16.msra.mxu0 %v5316_v15  ;;  %v5147_v15 = vld [vmem:[%s7145_s3 + $0x20] sm:$0xff]   ;;  %v3845_v55 = vunpack.c.h.bf16 %v3943_v23  ;;  %v3848_v54 = vunpack.c.l.bf16 %v5416_v48  ;;  %v404_v39 = vmul.f32 %v3800_v22, %v5393_v34  ;;  %v405_v2 = vmul.f32 %v3801_v50, %v5393_v34 }
  0x3e   : > { %7279 = vst [vmem:[#allocation17_spill] sm:$0xff] %v5761_v11  ;;  %4744 = vmatprep.subr.bf16.mxu0 %v5329_v18  ;;  %4471 = vmatpush3.bf16.msra.mxu1 %v5145_v29  ;;  %v5779_v29 = vadd.f32 %v5413_v43, %v426_v7  ;;  %v499_v23 = vadd.s32 232, %v5282_v5  ;;  %v1138_v48 = vrot.slane %v5769_v57, 1  ;;  %vm5788_vm5 = vcmp.ne.s32.totalorder %v695_v6, 15 }
  0x3f   : > { %4776 = vmatprep.mubr.msk.bf16.mxu1 %vm5741_vm1, %v5761_v11  ;;  %4472 = vmatprep.subr.bf16.mxu1 %v5146_v42  ;;  %v427_v25 = vmul.f32 %v3845_v55, %v5393_v34  ;;  %v5796_v45 = vadd.f32 %v5413_v43, %v404_v39  ;;  %v5799_v50 = vadd.f32 %v5413_v43, %v405_v2  ;;  %v476_v39 = vadd.s32 48, %v5282_v5  ;;  %v3933_v2 = vld [vmem:[%s5373_s28 + $0x20] sm:$0xff]   ;;  %vm5818_vm9 = vmpackc.low %vm5788_vm5, %vm7197_vm6 }
  0x40   : > { %3971 = vmatmul.mubr.msk.bf16.gmra.mrb[8].mxu0 %vm5752_vm4, %v5756_v56  ;;  %v1139_v42 = vrot.slane %v5779_v29, 1  ;;  %v428_v7 = vmul.f32 %v3848_v54, %v5393_v34  ;;  %v1148_v22 = vsel %vm7178_vm0, %v1137_v30, %v1138_v48  ;;  %v709_v55 = vand.u32 15, %v499_v23 }
  0x41   : > { %4745 = vmatpush3.bf16.msra.mxu0 %v5329_v18  ;;  %v5149_v18 = vld [vmem:[%s7145_s3 + $0x28] sm:$0xff]   ;;  %v5809_v6 = vadd.f32 %v5413_v43, %v427_v25  ;;  %v7282_v30 = vmov 0  ;;  %v924_v25 = vrot.slane %v5796_v45, 7  ;;  %v548_v11 = vand.u32 15, %v476_v39 }
  0x42   : > { %4746 = vmatprep.subr.bf16.mxu0 %v5351_v24  ;;  %4473 = vmatpush3.bf16.msra.mxu1 %v5147_v15  ;;  %v1147_v54 = vsel %vm7178_vm0, %v1138_v48, %v1139_v42  ;;  %v7283_v30 = vsel %vm5818_vm9, 4294967295, %v7282_v30  ;;  %v5824_v15 = vpack.c.bf16 %v5799_v50, %v5796_v45  ;;  %v5827_v23 = vadd.f32 %v5413_v43, %v428_v7 }
  0x43   : > { %7284 = vst [vmem:[#allocation18_spill] sm:$0xff] %v7283_v30  ;;  %4474 = vmatprep.subr.bf16.mxu1 %v5148_v13  ;;  %v5830_v17 = vpack.c.bf16 %v1147_v54, %v1148_v22  ;;  %v1140_v48 = vrot.slane %v5809_v6, 1  ;;  %vm5833_vm12 = vcmp.ne.s32.totalorder %v709_v55, 15  ;;  %v5150_v13 = vld [vmem:[%s7145_s3 + $0x70] sm:$0xff]   ;;  %v7288_v54 = vrot.slane %v5688_v46, 7 }
  0x44   : > { %1722 = vmatprep.mubr.bf16.mxu0 %v5824_v15  ;;  %v1141_v7 = vrot.slane %v5827_v23, 1  ;;  %v501_v39 = vadd.s32 248, %v5282_v5  ;;  %v1142_v22 = vrot.slane %v5481_v21, 1  ;;  %v3804_v14 = vunpack.c.l.bf16 %v3933_v2  ;;  %vm5868_vm15 = vmpackc.low %vm5833_vm12, %vm7197_vm6 }
  0x45   : > { %7285 = vst [vmem:[#allocation19_spill] sm:$0xff] %v5830_v17  ;;  %4747 = vmatpush3.bf16.msra.mxu0 %v5351_v24  ;;  %v976_v55 = vsel %vm7194_vm2, %v7288_v54, %v924_v25  ;;  %4777 = vmatmul.mubr.msk.bf16.gmra.mrb[8].mxu1 %vm5818_vm9, %v5830_v17  ;;  %v1146_v24 = vsel %vm7178_vm0, %v1139_v42, %v1140_v48  ;;  %v5152_v54 = vld [vmem:[%s7145_s3 + $0x78] sm:$0xff]   ;;  %v7289_v42 = vmov 0  ;;  %v7292_v30 = vrot.slane %v5799_v50, 7 }
  0x46   : > { %4748 = vmatprep.subr.bf16.mxu0 %v5366_v28  ;;  %4475 = vmatpush3.bf16.msra.mxu1 %v5149_v18  ;;  %v1145_v9 = vsel %vm7178_vm0, %v1140_v48, %v1141_v7  ;;  %v7290_v42 = vsel %vm5868_vm15, 4294967295, %v7289_v42  ;;  %vm5059_vm3 = vcmp.ne.s32.totalorder %v548_v11, 0  ;;  %v723_v35 = vand.u32 15, %v501_v39  ;;  %v5154_v39 = vld [vmem:[%s7145_s3 + $0x80] sm:$0xff]   ;;  %v5184_v18 = vld [vmem:[%s7145_s3 + $0x230] sm:$0xff]  }
  0x47   : > { %7291 = vst [vmem:[#allocation20_spill] sm:$0xff] %v7290_v42  ;;  %v975_v17 = vsel %vm7194_vm2, %v924_v25, %v7292_v30  ;;  %v5876_v49 = vpack.c.bf16 %v1145_v9, %v1146_v24  ;;  %vm5879_vm5 = vmpackc.low %vm7197_vm6, %vm5059_vm3  ;;  %v1144_v8 = vsel %vm7178_vm0, %v1141_v7, %v1142_v22  ;;  %4476 = vmatprep.subr.bf16.mxu1 %v5150_v13  ;;  %v7296_v30 = vrot.slane %v5442_v61, 1 }
  0x48   : > { %v5883_v48 = vpack.c.bf16 %v975_v17, %v976_v55  ;;  %v3805_v9 = vunpack.c.h.bf16 %v3933_v2  ;;  %v406_v25 = vmul.f32 %v3804_v14, %v5393_v34  ;;  %v5161_v17 = vld [vmem:[%s7145_s3 + $0x1c0] sm:$0xff]   ;;  %vm5087_vm12 = vcmp.ne.s32.totalorder %v723_v35, 15  ;;  %v5153_v14 = vld [vmem:[%s7145_s3 + $0x38] sm:$0xff]  }
  0x49   : > { %7293 = vst [vmem:[#allocation21_spill] sm:$0xff] %v5876_v49  ;;  %4749 = vmatpush3.bf16.msra.mxu0 %v5366_v28  ;;  %v1175_v11 = vsel %vm7178_vm0, %v1142_v22, %v7296_v30  ;;  %4780 = vmatprep.mubr.msk.bf16.mxu1 %vm5868_vm15, %v5876_v49  ;;  %v478_v2 = vadd.s32 64, %v5282_v5  ;;  %vm5911_vm3 = vmpackc.low %vm5087_vm12, %vm7197_vm6  ;;  %v7298_v13 = vmov 0  ;;  %v3808_v55 = vunpack.c.l.bf16 %v3934_v37 }
  0x4a   : > { %4750 = vmatprep.subr.bf16.mxu0 %v5404_v36  ;;  %3975 = vmatmul.mubr.msk.bf16.gmra.mrb[12].mxu0 %vm5879_vm5, %v5883_v48  ;;  %v5904_v28 = vpack.c.bf16 %v1175_v11, %v1144_v8  ;;  %v7299_v13 = vsel %vm5911_vm3, 4294967295, %v7298_v13  ;;  %v407_v7 = vmul.f32 %v3805_v9, %v5393_v34  ;;  %v5917_v22 = vadd.f32 %v5413_v43, %v406_v25 }
  0x4b   : > { %7300 = vst [vmem:[#allocation23_spill] sm:$0xff] %v7299_v13  ;;  %4477 = vmatpush3.bf16.msra.mxu1 %v5151_v33  ;;  %v3809_v8 = vunpack.c.h.bf16 %v3934_v37  ;;  %v562_v24 = vand.u32 15, %v478_v2  ;;  %v480_v35 = vadd.s32 80, %v5282_v5  ;;  %v3812_v30 = vunpack.c.l.bf16 %v3935_v32 }
  0x4c   : > { %7297 = vst [vmem:[#allocation22_spill] sm:$0xff] %v5904_v28  ;;  %4478 = vmatprep.subr.bf16.mxu1 %v5152_v54  ;;  %v3813_v11 = vunpack.c.h.bf16 %v3935_v32  ;;  %v5925_v33 = vadd.f32 %v5413_v43, %v407_v7  ;;  %v926_v9 = vrot.slane %v5917_v22, 7  ;;  %v408_v25 = vmul.f32 %v3808_v55, %v5393_v34 }
  0x4d   : > { %4751 = vmatpush3.bf16.msra.mxu0 %v5404_v36  ;;  %v409_v37 = vmul.f32 %v3809_v8, %v5393_v34  ;;  %4781 = vmatmul.mubr.msk.bf16.gmra.mrb[12].mxu1 %vm5911_vm3, %v5904_v28  ;;  %vm5933_vm12 = vcmp.ne.s32.totalorder %v562_v24, 0  ;;  %v576_v36 = vand.u32 15, %v480_v35  ;;  %v410_v32 = vmul.f32 %v3812_v30, %v5393_v34  ;;  %v3936_v30 = vld [vmem:[%s5373_s28 + $0x38] sm:$0xff]  }
  0x4e   : > { %4600 = vmatprep.subr.bf16.mxu0 %v5161_v17  ;;  %v5940_v2 = vpack.c.bf16 %v5925_v33, %v5917_v22  ;;  %v7176_v7 = vmov 0   ;;  %v927_v17 = vrot.slane %v5925_v33, 7  ;;  %v7304_v55 = vrot.slane %v5799_v50, 7  ;;  %vm5962_vm0 = vmpackc.low %vm7197_vm6, %vm5933_vm12 }
  0x4f   : > { %4479 = vmatpush3.bf16.msra.mxu1 %v5153_v14  ;;  %2164 = vmatprep.mubr.bf16.mxu1 %v7176_v7  ;;  %v5949_v24 = vadd.f32 %v5413_v43, %v408_v25  ;;  %v5952_v14 = vadd.f32 %v5413_v43, %v409_v37  ;;  %v411_v35 = vmul.f32 %v3813_v11, %v5393_v34  ;;  %v482_v11 = vadd.s32 96, %v5282_v5 }
  0x50   : > { %7303 = vst [vmem:[#allocation24_spill] sm:$0xff] %v5940_v2  ;;  %v974_v8 = vsel %vm7194_vm2, %v7304_v55, %v926_v9  ;;  %4784 = vmatprep.subr.bf16.mxu1 %v5154_v39  ;;  %1730 = vmatprep.mubr.bf16.mxu0 %v5940_v2  ;;  %v973_v7 = vsel %vm7194_vm2, %v926_v9, %v927_v17  ;;  %v7306_v55 = vmov 0  ;;  %v3816_v38 = vunpack.c.l.bf16 %v3936_v30 }
  0x51   : > { %7305 = vst [vmem:[#allocation25_spill] sm:$0xff] %v5952_v14  ;;  %v7307_v55 = vsel %vm5962_vm0, 4294967295, %v7306_v55  ;;  %v928_v25 = vrot.slane %v5949_v24, 7  ;;  %v5968_v37 = vadd.f32 %v5413_v43, %v410_v32  ;;  %v5971_v13 = vpack.c.bf16 %v973_v7, %v974_v8 }
  0x52   : > { %7308 = vst [vmem:[#allocation26_spill] sm:$0xff] %v7307_v55  ;;  %v5975_v28 = vpack.c.bf16 %v5952_v14, %v5949_v24  ;;  %v929_v9 = vrot.slane %v5952_v14, 7  ;;  %v5979_v54 = vadd.f32 %v5413_v43, %v411_v35  ;;  %v590_v49 = vand.u32 15, %v482_v11  ;;  %v5155_v35 = vld [vmem:[%s7145_s3 + $0x88] sm:$0xff]  }
  0x53   : > { %7309 = vst [vmem:[#allocation27_spill] sm:$0xff] %v5971_v13  ;;  %v972_v42 = vsel %vm7194_vm2, %v927_v17, %v928_v25  ;;  %v930_v32 = vrot.slane %v5968_v37, 7  ;;  %3979 = vmatmul.mubr.msk.bf16.gmra.mrb[16].mxu0 %vm5962_vm0, %v5971_v13  ;;  %v3817_v14 = vunpack.c.h.bf16 %v3936_v30  ;;  %vm5994_vm12 = vcmp.ne.s32.totalorder %v576_v36, 0 }
  0x54   : > { %7310 = vst [vmem:[#allocation28_spill] sm:$0xff] %v5975_v28  ;;  %v971_v7 = vsel %vm7194_vm2, %v928_v25, %v929_v9  ;;  %1738 = vmatprep.mubr.bf16.mxu0 %v5975_v28  ;;  %v6002_v55 = vpack.c.bf16 %v5979_v54, %v5968_v37  ;;  %v7315_v25 = vmov 0   ;;  %v412_v13 = vmul.f32 %v3816_v38, %v5393_v34 }
  0x55   : > { %v5998_v11 = vpack.c.bf16 %v971_v7, %v972_v42  ;;  %2165 = vmatmul.mubr.bf16.vlgmr.msra.gmra.mrb[16].mxu1 %v7315_v25  ;;  %v970_v8 = vsel %vm7194_vm2, %v929_v9, %v930_v32  ;;  %v413_v30 = vmul.f32 %v3817_v14, %v5393_v34  ;;  %v484_v36 = vadd.s32 112, %v5282_v5  ;;  %v5156_v42 = vld [vmem:[%s7145_s3 + $0x90] sm:$0xff]  }
  0x56   : > { %7314 = vst [vmem:[#allocation30_spill] sm:$0xff] %v6002_v55  ;;  %4785 = vmatpush3.bf16.msra.mxu1 %v5154_v39  ;;  %2172 = vmatprep.mubr.bf16.mxu1 %v5474_v16  ;;  %v7316_v7 = vrot.slane %v5979_v54, 7  ;;  %v6020_v9 = vpack.c.bf16 %v5452_v1, %v5449_v0  ;;  %v6023_v34 = vadd.s32 128, %v5282_v5  ;;  %v934_v38 = vrot.slane %v5449_v0, 7 }
  0x57   : > { %7313 = vst [vmem:[#allocation29_spill] sm:$0xff] %v5998_v11  ;;  %4786 = vmatprep.subr.bf16.mxu1 %v5155_v35  ;;  %v6027_v14 = vadd.f32 %v5413_v43, %v412_v13  ;;  %v6030_v16 = vadd.f32 %v5413_v43, %v413_v30  ;;  %v604_v39 = vand.u32 15, %v484_v36  ;;  %v935_v28 = vrot.slane %v5452_v1, 7 }
  0x58   : > { %v969_v25 = vsel %vm7194_vm2, %v930_v32, %v7316_v7  ;;  %vm6036_vm2 = vmpackc.low %vm7197_vm6, %vm5994_vm12  ;;  %v7317_v32 = vmov 0  ;;  %v6043_v0 = vpack.c.bf16 %v5490_v26, %v5455_v3  ;;  %v6046_v13 = vadd.s32 144, %v5282_v5 }
  0x59   : > { %v7318_v32 = vsel %vm6036_vm2, 4294967295, %v7317_v32  ;;  %v936_v43 = vrot.slane %v5455_v3, 7  ;;  %v933_v1 = vrot.slane %v6030_v16, 7  ;;  %vm6050_vm3 = vcmp.ne.s32.totalorder %v590_v49, 0 }
  0x5a   : > { %7319 = vst [vmem:[#allocation31_spill] sm:$0xff] %v7318_v32  ;;  %4787 = vmatpush3.bf16.msra.mxu1 %v5155_v35  ;;  %vm7322_vm12 = vcmp.lt.s32.totalorder %v5282_v5, 1  ;;  %v6059_v36 = vpack.c.bf16 %v969_v25, %v970_v8  ;;  %v6063_v7 = vpack.c.bf16 %v6030_v16, %v6027_v14  ;;  %v5157_v35 = vld [vmem:[%s7145_s3 + $0x98] sm:$0xff]   ;;  %v932_v32 = vrot.slane %v6027_v14, 7 }
  0x5b   : > { %v965_v30 = vsel %vm7322_vm12, %v934_v38, %v935_v28  ;;  %3983 = vmatmul.mubr.msk.bf16.gmra.mrb[20].mxu0 %vm6036_vm2, %v5998_v11  ;;  %vm7323_vm6 = vmmov %vm7322_vm12  ;;  %4788 = vmatprep.subr.bf16.mxu1 %v5156_v42  ;;  %v937_v25 = vrot.slane %v5490_v26, 7  ;;  %v6087_v49 = vpack.c.bf16 %v5564_v63, %v5510_v40  ;;  %v5158_v40 = vld [vmem:[%s7145_s3 + $0xa0] sm:$0xff]   ;;  %vm7331_vm15 = vcmp.lt.s32.totalorder %v5282_v5, 1 }
  0x5c   : > { %v966_v3 = vsel %vm7323_vm6, %v933_v1, %v934_v38  ;;  %1746 = vmatprep.mubr.bf16.mxu0 %v6002_v55  ;;  %vm7324_vm12 = vmmov %vm7323_vm6  ;;  %vm6081_vm6 = vcmp.ne.s32.totalorder %v604_v39, 0  ;;  %v6105_v55 = vadd.s32 176, %v5282_v5  ;;  %v948_v41 = vrot.slane %v5827_v23, 7 }
  0x5d   : > { %v6073_v8 = vpack.c.bf16 %v965_v30, %v966_v3  ;;  %v964_v11 = vsel %vm7324_vm12, %v935_v28, %v936_v43  ;;  %4091 = vmatmul.mubr.msk.bf16.gmra.mrb[20].mxu1 %vm5529_vm8, %v5542_v58  ;;  %v6090_v30 = vadd.s32 160, %v5282_v5  ;;  %v963_v26 = vsel %vm7324_vm12, %v936_v43, %v937_v25  ;;  %vm7332_vm9 = vmmov %vm7331_vm15 }
  0x5e   : > { %2180 = vmatprep.mubr.bf16.mxu1 %v5578_v19  ;;  %4789 = vmatpush3.bf16.msra.mxu1 %v5156_v42  ;;  %v939_v58 = vrot.slane %v5564_v63, 7  ;;  %v6099_v28 = vpack.c.bf16 %v5622_v31, %v5581_v20  ;;  %v6101_v39 = vpack.c.bf16 %v963_v26, %v964_v11  ;;  %v940_v42 = vrot.slane %v5581_v20, 7  ;;  %vm7333_vm1 = vmmov %vm7332_vm9 }
  0x5f   : > { %4790 = vmatprep.subr.bf16.mxu1 %v5157_v35  ;;  %vm7328_vm8 = vmmov 1   ;;  %v7329_v63 = vmov 0  ;;  %v962_v43 = vsel %vm7332_vm9, %v937_v25, %v938_v52  ;;  %v941_v26 = vrot.slane %v5622_v31, 7  ;;  %vm7337_vm9 = vmmov %vm7333_vm1 }
  0x60   : > { %7327 = vst [vmem:[#allocation32_spill] sm:$0xff] %v6099_v28  ;;  %vm6114_vm12 = vmpackc.low %vm7328_vm8, %vm6050_vm3  ;;  %v961_v11 = vsel %vm7331_vm15, %v938_v52, %v939_v58  ;;  %v6125_v20 = vpack.c.bf16 %v5691_v47, %v5632_v53  ;;  %v967_v17 = vsel %vm7333_vm1, %v932_v32, %v933_v1  ;;  %v6137_v31 = vadd.s32 192, %v5282_v5 }
  0x61   : > { %v7330_v63 = vsel %vm6114_vm12, 4294967295, %v7329_v63  ;;  %v6129_v3 = vpack.c.bf16 %v961_v11, %v962_v43  ;;  %vm7334_vm3 = vmmov %vm7333_vm1  ;;  %v942_v52 = vrot.slane %v5632_v53, 7  ;;  %v7336_v1 = vrot.slane %v5979_v54, 7 }
  0x62   : > { %4791 = vmatpush3.bf16.msra.mxu1 %v5157_v35  ;;  %v959_v28 = vsel %vm7334_vm3, %v940_v42, %v941_v26  ;;  %vm7335_vm15 = vmmov %vm7333_vm1  ;;  %v943_v43 = vrot.slane %v5691_v47, 7  ;;  %v6159_v19 = vpack.c.bf16 %v5769_v57, %v5703_v4 }
  0x63   : > { %v960_v25 = vsel %vm7335_vm15, %v939_v58, %v940_v42  ;;  %3987 = vmatmul.mubr.msk.bf16.gmra.mrb[24].mxu0 %vm6114_vm12, %v6059_v36  ;;  %v968_v35 = vsel %vm7333_vm1, %v7336_v1, %v932_v32  ;;  %4792 = vmatprep.subr.bf16.mxu1 %v5158_v40  ;;  %v5159_v58 = vld [vmem:[%s7145_s3 + $0xa8] sm:$0xff]   ;;  %v958_v42 = vsel %vm7337_vm9, %v941_v26, %v942_v52  ;;  %v6162_v32 = vadd.s32 208, %v5282_v5  ;;  %vm7338_vm3 = vmmov %vm7333_vm1 }
  0x64   : > { %v6147_v11 = vpack.c.bf16 %v959_v28, %v960_v25  ;;  %1754 = vmatprep.mubr.bf16.mxu0 %v6063_v7  ;;  %v957_v47 = vsel %vm7338_vm3, %v942_v52, %v943_v43  ;;  %v944_v28 = vrot.slane %v5703_v4, 7  ;;  %v945_v25 = vrot.slane %v5769_v57, 7  ;;  %vm7339_vm15 = vmmov %vm7333_vm1 }
  0x65   : > { %4095 = vmatmul.mubr.msk.bf16.gmra.mrb[24].mxu1 %vm5643_vm13, %v5629_v51  ;;  %v6173_v26 = vpack.c.bf16 %v5809_v6, %v5779_v29  ;;  %v6176_v1 = vpack.c.bf16 %v967_v17, %v968_v35  ;;  %v6178_v53 = vpack.c.bf16 %v957_v47, %v958_v42  ;;  %v6186_v57 = vadd.s32 224, %v5282_v5  ;;  %v5160_v17 = vld [vmem:[%s7145_s3 + $0xb0] sm:$0xff]   ;;  %vm6195_vm9 = vmpackc.low %vm7328_vm8, %vm6081_vm6 }
  0x66   : > { %2188 = vmatprep.mubr.bf16.mxu1 %v5713_v10  ;;  %4793 = vmatpush3.bf16.msra.mxu1 %v5158_v40  ;;  %v955_v52 = vsel %vm7339_vm15, %v944_v28, %v945_v25  ;;  %v956_v4 = vsel %vm7333_vm1, %v943_v43, %v944_v28  ;;  %v946_v51 = vrot.slane %v5779_v29, 7  ;;  %v7340_v40 = vmov 0  ;;  %vm7342_vm3 = vmmov %vm7333_vm1 }
  0x67   : > { %4794 = vmatprep.subr.bf16.mxu1 %v5159_v58  ;;  %v7341_v40 = vsel %vm6195_vm9, 4294967295, %v7340_v40  ;;  %v6199_v35 = vpack.c.bf16 %v955_v52, %v956_v4  ;;  %v947_v43 = vrot.slane %v5809_v6, 7  ;;  %v1112_v42 = vrot.slane %v5445_v62, 1  ;;  %vm7343_vm15 = vmmov %vm7333_vm1 }
  0x68   : > { %v954_v47 = vsel %vm7342_vm3, %v945_v25, %v946_v51  ;;  %v6207_v28 = vadd.s32 240, %v5282_v5  ;;  %v6213_v52 = vadd.s32 8, %v5282_v5  ;;  %v1113_v6 = vrot.slane %v5552_v59, 1  ;;  %vm7345_vm6 = vmmov %vm7333_vm1 }
  0x69   : > { %v953_v38 = vsel %vm7343_vm15, %v946_v51, %v947_v43  ;;  %v5169_v51 = vld [vmem:[%s7145_s3 + $0xb8] sm:$0xff]   ;;  %v952_v4 = vsel %vm7333_vm1, %v947_v43, %v948_v41  ;;  %vm7347_vm3 = vcmp.lt.s32.totalorder %v5282_v5, 7  ;;  %v7348_v29 = vand.u32 15, %v6023_v34 }
  0x6a   : > { %4795 = vmatpush3.bf16.msra.mxu1 %v5159_v58  ;;  %v6219_v62 = vpack.c.bf16 %v953_v38, %v954_v47  ;;  %v7344_v58 = vrot.slane %v5481_v21, 7  ;;  %v7346_v38 = vrot.slane %v5555_v60, 1  ;;  %vm7351_vm1 = vmmov %vm7347_vm3  ;;  %v6252_v43 = vadd.s32 24, %v5282_v5 }
  0x6b   : > { %3991 = vmatmul.mubr.msk.bf16.gmra.mrb[28].mxu0 %vm6195_vm9, %v6176_v1  ;;  %4796 = vmatprep.subr.bf16.mxu1 %v5160_v17  ;;  %vm5064_vm15 = vcmp.ne.s32.totalorder %v7348_v29, 0  ;;  %v6260_v29 = vadd.s32 40, %v5282_v5  ;;  %vm7365_vm11 = vmmov %vm7351_vm1 }
  0x6c   : > { %1762 = vmatprep.mubr.bf16.mxu0 %v6020_v9  ;;  %v951_v59 = vsel %vm7345_vm6, %v948_v41, %v7344_v58  ;;  %v1172_v25 = vsel %vm7347_vm3, %v1113_v6, %v7346_v38  ;;  %vm7349_vm6 = vmmov %vm7347_vm3  ;;  %v7350_v41 = vrot.slane %v5442_v61, 1  ;;  %v6266_v61 = vld [vmem:[%s7145_s3 + $0x200] sm:$0xff]  }
  0x6d   : > { %4099 = vmatmul.mubr.msk.bf16.gmra.mrb[28].mxu1 %vm5752_vm4, %v5756_v56  ;;  %v6242_v10 = vpack.c.bf16 %v951_v59, %v952_v4  ;;  %v1173_v58 = vsel %vm7349_vm6, %v1112_v42, %v1113_v6  ;;  %v6257_v34 = vpack.c.bf16 %v5724_v27, %v1172_v25  ;;  %v1116_v6 = vrot.slane %v5688_v46, 1  ;;  %vm6269_vm3 = vmpackc.low %vm7328_vm8, %vm5064_vm15 }
  0x6e   : > { %2196 = vmatprep.mubr.bf16.mxu1 %v5824_v15  ;;  %v1174_v60 = vsel %vm7351_vm1, %v7350_v41, %v1112_v42  ;;  %4797 = vmatpush3.bf16.msra.mxu1 %v5160_v17  ;;  %v7352_v42 = vmov 0  ;;  %v1117_v27 = vrot.slane %v5796_v45, 1  ;;  %v6276_v25 = vadd.s32 56, %v5282_v5  ;;  %vm7355_vm6 = vmmov %vm7351_vm1 }
  0x6f   : > { %v6254_v38 = vpack.c.bf16 %v1173_v58, %v1174_v60  ;;  %4798 = vmatprep.subr.bf16.mxu1 %v5169_v51  ;;  %v7353_v42 = vsel %vm6269_vm3, 4294967295, %v7352_v42  ;;  %v1118_v46 = vrot.slane %v5799_v50, 1  ;;  %v7354_v4 = vrot.slane %v5679_v44, 1  ;;  %vm7356_vm15 = vmmov %vm7351_vm1 }
  0x70   : > { %v1119_v41 = vrot.slane %v5917_v22, 1  ;;  %v6286_v60 = vadd.s32 72, %v5282_v5  ;;  %v1169_v45 = vsel %vm7356_vm15, %v1116_v6, %v1117_v27  ;;  %v7357_v22 = vand.u32 15, %v6046_v13  ;;  %vm7360_vm15 = vmmov %vm7351_vm1 }
  0x71   : > { %v1170_v58 = vsel %vm7355_vm6, %v7354_v4, %v1116_v6  ;;  %v1121_v17 = vrot.slane %v5949_v24, 1  ;;  %v6317_v13 = vadd.s32 88, %v5282_v5  ;;  %v7363_v24 = vmov 0 }
  0x72   : > { %4799 = vmatpush3.bf16.msra.mxu1 %v5169_v51  ;;  %v6294_v50 = vpack.c.bf16 %v1169_v45, %v1170_v58  ;;  %v1167_v44 = vsel %vm7351_vm1, %v1118_v46, %v1119_v41  ;;  %vm6302_vm6 = vcmp.ne.s32.totalorder %v7357_v22, 0  ;;  %v1168_v51 = vsel %vm7360_vm15, %v1117_v27, %v1118_v46  ;;  %v7361_v22 = vld [vmem:[#allocation25_spill] sm:$0xff]  ;;  %vm7362_vm15 = vmmov %vm7351_vm1 }
  0x73   : > { %3995 = vmatmul.mubr.msk.bf16.gmra.mrb[32].mxu0 %vm6269_vm3, %v6073_v8  ;;  %4832 = vmatprep.subr.bf16.mxu1 %v6266_v61  ;;  %v6312_v58 = vpack.c.bf16 %v1167_v44, %v1168_v51  ;;  %v1120_v45 = vrot.slane %v5925_v33, 1  ;;  %v1122_v59 = vrot.slane %v7361_v22, 1  ;;  %v1123_v27 = vrot.slane %v5968_v37, 1  ;;  %vm6333_vm14 = vmpackc.low %vm7328_vm8, %vm6302_vm6 }
  0x74   : > { %1770 = vmatprep.mubr.bf16.mxu0 %v6043_v0  ;;  %v6328_v33 = vadd.s32 104, %v5282_v5  ;;  %v7364_v24 = vsel %vm6333_vm14, 4294967295, %v7363_v24  ;;  %v1125_v6 = vrot.slane %v6027_v14, 1  ;;  %vm7366_vm6 = vmmov %vm7351_vm1  ;;  %v7368_v14 = vld [vmem:[#allocation3_spill] sm:$0xff]  ;;  %v7373_v4 = vand.u32 15, %v6090_v30 }
  0x75   : > { %4103 = vmatmul.mubr.msk.bf16.gmra.mrb[32].mxu1 %vm5879_vm5, %v5883_v48  ;;  %v1165_v46 = vsel %vm7351_vm1, %v1120_v45, %v1121_v17  ;;  %v1166_v44 = vsel %vm7362_vm15, %v1119_v41, %v1120_v45  ;;  %v1163_v37 = vsel %vm7365_vm11, %v1122_v59, %v1123_v27  ;;  %v1164_v41 = vsel %vm7351_vm1, %v1121_v17, %v1122_v59  ;;  %vm7367_vm11 = vmmov %vm7351_vm1  ;;  %v7374_v17 = vld [vmem:[#allocation28_spill] sm:$0xff]  ;;  %v7379_v30 = vld [vmem:[#allocation31_spill] sm:$0xff] }
  0x76   : > { %2204 = vmatprep.mubr.bf16.mxu1 %v5940_v2  ;;  %v6337_v22 = vpack.c.bf16 %v1165_v46, %v1166_v44  ;;  %v1124_v45 = vrot.slane %v5979_v54, 1  ;;  %v6344_v51 = vpack.c.bf16 %v1163_v37, %v1164_v41  ;;  %v6351_v46 = vadd.s32 120, %v5282_v5  ;;  %vm7370_vm15 = vmmov %vm7351_vm1  ;;  %v7377_v5 = vld [vmem:[#allocation32_spill] sm:$0xff]  ;;  %v7432_v41 = vld [vmem:[#allocation6_spill] sm:$0xff] }
  0x77   : > { %v1126_v44 = vrot.slane %v6030_v16, 1  ;;  %v7369_v59 = vrot.slane %v7368_v14, 1  ;;  %v7371_v16 = vld [vmem:[#allocation27_spill] sm:$0xff]  ;;  %v7375_v14 = vmov 0 }
  0x78   : > { %v1162_v47 = vsel %vm7366_vm6, %v1123_v27, %v1124_v45  ;;  %v1161_v54 = vsel %vm7367_vm11, %v1124_v45, %v1125_v6  ;;  %vm5066_vm6 = vcmp.ne.s32.totalorder %v7373_v4, 0  ;;  %v7381_v4 = vld [vmem:[#allocation30_spill] sm:$0xff] }
  0x79   : > { %v1159_v27 = vsel %vm7370_vm15, %v1126_v44, %v7369_v59  ;;  %v1160_v37 = vsel %vm7351_vm1, %v1125_v6, %v1126_v44  ;;  %v6372_v2 = vpack.c.bf16 %v1161_v54, %v1162_v47  ;;  %vm6378_vm11 = vmpackc.low %vm7328_vm8, %vm5066_vm6  ;;  %v7378_v6 = vld [vmem:[#allocation29_spill] sm:$0xff]  ;;  %v7380_v47 = vand.u32 15, %v6105_v55 }
  0x7a   : > { %v6374_v45 = vpack.c.bf16 %v1159_v27, %v1160_v37  ;;  %v7376_v14 = vsel %vm6378_vm11, 4294967295, %v7375_v14  ;;  %v7382_v44 = vmov 0  ;;  %v7384_v55 = vand.u32 15, %v6137_v31 }
  0x7b   : > { %3999 = vmatmul.mubr.msk.bf16.gmra.mrb[36].mxu0 %vm6333_vm14, %v6101_v39  ;;  %vm5067_vm15 = vcmp.ne.s32.totalorder %v7380_v47, 0  ;;  %v7385_v54 = vmov 0  ;;  %v7387_v31 = vand.u32 15, %v6162_v32  ;;  %v7390_v32 = vand.u32 15, %v6186_v57 }
  0x7c   : > { %1778 = vmatprep.mubr.bf16.mxu0 %v6087_v49  ;;  %vm6393_vm1 = vmpackc.low %vm7328_vm8, %vm5067_vm15  ;;  %vm5068_vm6 = vcmp.ne.s32.totalorder %v7384_v55, 0  ;;  %v6444_v37 = vpack.c.bf16 %v5481_v21, %v5827_v23  ;;  %v7393_v57 = vand.u32 15, %v6207_v28  ;;  %v7394_v47 = vand.u32 15, %v6213_v52  ;;  %v7436_v23 = vld [vmem:[#allocation9_spill] sm:$0xff] }
  0x7d   : > { %4107 = vmatmul.mubr.msk.bf16.gmra.mrb[36].mxu1 %vm5962_vm0, %v7371_v16  ;;  %v7383_v44 = vsel %vm6393_vm1, 4294967295, %v7382_v44  ;;  %vm6408_vm15 = vmpackc.low %vm7328_vm8, %vm5068_vm6  ;;  %v7395_v21 = vmov 0  ;;  %v7400_v28 = vand.u32 15, %v6252_v43  ;;  %v7401_v52 = vand.u32 15, %v6260_v29  ;;  %v5164_v29 = vld [vmem:[%s7145_s3 + $0x188] sm:$0xff]  }
  0x7e   : > { %2212 = vmatprep.mubr.bf16.mxu1 %v7374_v17  ;;  %v7386_v54 = vsel %vm6408_vm15, 4294967295, %v7385_v54 }
  0x83   : > { %4003 = vmatmul.mubr.msk.bf16.gmra.mrb[40].mxu0 %vm6378_vm11, %v6129_v3 }
  0x84   : > { %1786 = vmatprep.mubr.bf16.mxu0 %v7377_v5 }
  0x85   : > { %4111 = vmatmul.mubr.msk.bf16.gmra.mrb[40].mxu1 %vm6036_vm2, %v7378_v6 }
  0x86   : > { %2220 = vmatprep.mubr.bf16.mxu1 %v7381_v4 }
  0x8b   : > { %4007 = vmatmul.mubr.msk.bf16.gmra.mrb[44].mxu0 %vm6393_vm1, %v6147_v11 }
  0x8c   : > { %1794 = vmatprep.mubr.bf16.mxu0 %v6125_v20 }
  0x8d   : > { %4115 = vmatmul.mubr.msk.bf16.gmra.mrb[44].mxu1 %vm6114_vm12, %v6059_v36  ;;  %vm5069_vm12 = vcmp.ne.s32.totalorder %v7387_v31, 0  ;;  %v5162_v31 = vld [vmem:[%s7145_s3 + $0x180] sm:$0xff]  }
  0x8e   : > { %2228 = vmatprep.mubr.bf16.mxu1 %v6063_v7  ;;  %vm6423_vm6 = vmpackc.low %vm7328_vm8, %vm5069_vm12 }
  0x93   : > { %4011 = vmatmul.mubr.msk.bf16.gmra.mrb[48].mxu0 %vm6408_vm15, %v6178_v53 }
  0x94   : > { %1802 = vmatprep.mubr.bf16.mxu0 %v6159_v19 }
  0x95   : > { %4119 = vmatmul.mubr.msk.bf16.gmra.mrb[48].mxu1 %vm6195_vm9, %v6176_v1  ;;  %vm5070_vm9 = vcmp.ne.s32.totalorder %v7390_v32, 0  ;;  %v5163_v32 = vld [vmem:[%s7145_s3 + $0x1c8] sm:$0xff]  }
  0x96   : > { %2236 = vmatprep.mubr.bf16.mxu1 %v6020_v9  ;;  %vm6438_vm12 = vmpackc.low %vm7328_vm8, %vm5070_vm9  ;;  %vm5071_vm9 = vcmp.ne.s32.totalorder %v7393_v57, 0  ;;  %v7406_v57 = vand.u32 15, %v6276_v25  ;;  %v5166_v25 = vld [vmem:[%s7145_s3 + $0x190] sm:$0xff]  }
  0x97   : > { %vm6459_vm10 = vmpackc.low %vm7328_vm8, %vm5071_vm9  ;;  %vm5073_vm9 = vcmp.ne.s32.totalorder %v7400_v28, 15  ;;  %v7407_v28 = vand.u32 15, %v6286_v60  ;;  %v5168_v60 = vld [vmem:[%s7145_s3 + $0x198] sm:$0xff]  }
  0x98   : > { %v7396_v21 = vsel %vm6459_vm10, 4294967295, %v7395_v21 }
  0x99   : > { %7397 = vst [vmem:[#allocation25_spill] sm:$0xff] %v7396_v21  ;;  %v7425_v21 = vld [vmem:[#allocation15_spill] sm:$0xff] }
  0x9b   : > { %4015 = vmatmul.mubr.msk.bf16.gmra.mrb[52].mxu0 %vm6423_vm6, %v6199_v35 }
  0x9c   : > { %1810 = vmatprep.mubr.bf16.mxu0 %v6173_v26 }
  0x9d   : > { %4123 = vmatmul.mubr.msk.bf16.gmra.mrb[52].mxu1 %vm6269_vm3, %v6073_v8  ;;  %vm5072_vm3 = vcmp.ne.s32.totalorder %v7394_v47, 15  ;;  %v5165_v47 = vld [vmem:[%s7145_s3 + $0x1d0] sm:$0xff]  }
  0x9e   : > { %2244 = vmatprep.mubr.bf16.mxu1 %v6043_v0  ;;  %vm6464_vm7 = vmpackc.low %vm5072_vm3, %vm7328_vm8  ;;  %vm5074_vm3 = vcmp.ne.s32.totalorder %v7401_v52, 15 }
  0xa3   : > { %4019 = vmatmul.mubr.msk.bf16.gmra.mrb[56].mxu0 %vm6438_vm12, %v6219_v62 }
  0xa4   : > { %1818 = vmatprep.mubr.bf16.mxu0 %v6444_v37 }
  0xa5   : > { %4127 = vmatmul.mubr.msk.bf16.gmra.mrb[56].mxu1 %vm6333_vm14, %v6101_v39  ;;  %vm6483_vm14 = vmpackc.low %vm5073_vm9, %vm7328_vm8  ;;  %vm5075_vm9 = vcmp.ne.s32.totalorder %v7406_v57, 15  ;;  %v5170_v57 = vld [vmem:[%s7145_s3 + $0x1e0] sm:$0xff]  }
  0xa6   : > { %2252 = vmatprep.mubr.bf16.mxu1 %v6087_v49 }
  0xab   : > { %4023 = vmatmul.mubr.msk.bf16.gmra.mrb[60].mxu0 %vm6459_vm10, %v6242_v10  ;;  %vm6494_vm10 = vmpackc.low %vm5074_vm3, %vm7328_vm8  ;;  %vm5076_vm3 = vcmp.ne.s32.totalorder %v7407_v28, 15 }
  0xac   : > { %4752 = vmatprep.mubr.msk.bf16.mxu0 %vm6464_vm7, %v6254_v38 }
  0xad   : > { %4131 = vmatmul.mubr.msk.bf16.gmra.mrb[60].mxu1 %vm6378_vm11, %v6129_v3  ;;  %vm6519_vm11 = vmpackc.low %vm5075_vm9, %vm7328_vm8 }
  0xae   : > { %2260 = vmatprep.mubr.bf16.mxu1 %v7377_v5 }
  0xb3   : > { %4753 = vmatmul.mubr.msk.bf16.vlgmr.msra.gmra.mrb[64].mxu0 %vm6483_vm14, %v6257_v34 }
  0xb4   : > { %4601 = vmatpush3.bf16.msra.mxu0 %v5162_v31  ;;  %4756 = vmatprep.mubr.msk.bf16.mxu0 %vm6494_vm10, %v6294_v50  ;;  %v5167_v31 = vld [vmem:[%s7145_s3 + $0x1d8] sm:$0xff]  }
  0xb5   : > { %4135 = vmatmul.mubr.msk.bf16.gmra.mrb[64].mxu1 %vm6393_vm1, %v6147_v11  ;;  %4602 = vmatprep.subr.bf16.mxu0 %v5163_v32  ;;  %vm6530_vm1 = vmpackc.low %vm5076_vm3, %vm7328_vm8 }
  0xb6   : > { %2268 = vmatprep.mubr.bf16.mxu1 %v6125_v20 }
  0xb8   : > { %4603 = vmatpush3.bf16.msra.mxu0 %v5164_v29  ;;  %v7412_v29 = vand.u32 15, %v6317_v13  ;;  %v5171_v13 = vld [vmem:[%s7145_s3 + $0x1a0] sm:$0xff]  }
  0xb9   : > { %4604 = vmatprep.subr.bf16.mxu0 %v5165_v47  ;;  %v7413_v47 = vand.u32 15, %v6328_v33  ;;  %v5173_v33 = vld [vmem:[%s7145_s3 + $0x1a8] sm:$0xff]  }
  0xba   : > { %vm5077_vm9 = vcmp.ne.s32.totalorder %v7412_v29, 15  ;;  %v5174_v29 = vld [vmem:[%s7145_s3 + $0x1f0] sm:$0xff]  }
  0xbb   : > { %4757 = vmatmul.mubr.msk.bf16.gmra.mrb[68].mxu0 %vm6519_vm11, %v6312_v58  ;;  %vm5078_vm3 = vcmp.ne.s32.totalorder %v7413_v47, 15  ;;  %vm6555_vm2 = vmpackc.low %vm5077_vm9, %vm7328_vm8  ;;  %v5175_v47 = vld [vmem:[%s7145_s3 + $0x1b0] sm:$0xff]  }
  0xbc   : > { %4605 = vmatpush3.bf16.msra.mxu0 %v5166_v25  ;;  %4760 = vmatprep.mubr.msk.bf16.mxu0 %vm6530_vm1, %v6337_v22  ;;  %v5172_v25 = vld [vmem:[%s7145_s3 + $0x1e8] sm:$0xff]  }
  0xbd   : > { %4139 = vmatmul.mubr.msk.bf16.gmra.mrb[68].mxu1 %vm6408_vm15, %v6178_v53  ;;  %4606 = vmatprep.subr.bf16.mxu0 %v5167_v31  ;;  %vm6566_vm15 = vmpackc.low %vm5078_vm3, %vm7328_vm8 }
  0xbe   : > { %2276 = vmatprep.mubr.bf16.mxu1 %v6159_v19 }
  0xc0   : > { %4607 = vmatpush3.bf16.msra.mxu0 %v5168_v60  ;;  %v7418_v60 = vand.u32 15, %v6351_v46  ;;  %v5176_v46 = vld [vmem:[%s7145_s3 + $0x1f8] sm:$0xff]  }
  0xc1   : > { %4608 = vmatprep.subr.bf16.mxu0 %v5170_v57 }
  0xc2   : > { %vm5079_vm9 = vcmp.ne.s32.totalorder %v7418_v60, 15  ;;  %v7423_v60 = vld [vmem:[#allocation10_spill] sm:$0xff] }
  0xc3   : > { %4761 = vmatmul.mubr.msk.bf16.gmra.mrb[72].mxu0 %vm6555_vm2, %v6344_v51  ;;  %vm6589_vm3 = vmpackc.low %vm5079_vm9, %vm7328_vm8  ;;  %vm7441_vm9 = vnez %v7341_v40 }
  0xc4   : > { %4609 = vmatpush3.bf16.msra.mxu0 %v5171_v13  ;;  %4764 = vmatprep.mubr.msk.bf16.mxu0 %vm6566_vm15, %v6372_v2  ;;  %v5177_v13 = vld [vmem:[%s7145_s3 + $0x1b8] sm:$0xff]  }
  0xc5   : > { %4143 = vmatmul.mubr.msk.bf16.gmra.mrb[72].mxu1 %vm6423_vm6, %v6199_v35  ;;  %4610 = vmatprep.subr.bf16.mxu0 %v5172_v25  ;;  %v7421_v25 = vld [vmem:[#allocation8_spill] sm:$0xff] }
  0xc6   : > { %2284 = vmatprep.mubr.bf16.mxu1 %v6173_v26 }
  0xc8   : > { %4611 = vmatpush3.bf16.msra.mxu0 %v5173_v33  ;;  %v7422_v33 = vmov 0  }
  0xc9   : > { %4612 = vmatprep.subr.bf16.mxu0 %v5174_v29  ;;  %v7443_v29 = vld [vmem:[#allocation16_spill] sm:$0xff] }
  0xcb   : > { %4765 = vmatmul.mubr.msk.bf16.gmra.mrb[76].mxu0 %vm6589_vm3, %v6374_v45 }
  0xcc   : > { %4613 = vmatpush3.bf16.msra.mxu0 %v5175_v47  ;;  %2727 = vmatprep.mubr.bf16.mxu0 %v7421_v25  ;;  %v5179_v47 = vld [vmem:[%s7145_s3 + $0x208] sm:$0xff]  }
  0xcd   : > { %4147 = vmatmul.mubr.msk.bf16.gmra.mrb[76].mxu1 %vm6438_vm12, %v6219_v62  ;;  %4614 = vmatprep.subr.bf16.mxu0 %v5176_v46  ;;  %v5180_v46 = vld [vmem:[%s7145_s3 + $0x210] sm:$0xff]  }
  0xce   : > { %4800 = vmatprep.mubr.bf16.mxu1 %v7422_v33 }
  0xd0   : > { %4615 = vmatpush3.bf16.msra.mxu0 %v5177_v13 }
  0xd3   : > { %4211 = vmatmul.mubr.msk.bf16.vlgmr.msra.gmra.mrb[80].mxu0 %vm5643_vm13, %v7423_v60  ;;  %vm7433_vm13 = vnez %v7432_v41 }
  0xd4   : > { %2735 = vmatprep.mubr.bf16.mxu0 %v7425_v21  ;;  %v7435_v21 = vld [vmem:[#allocation11_spill] sm:$0xff] }
  0xd5   : > { %4801 = vmatmul.mubr.msk.bf16.vlgmr.msra.gmra.mrb[80].mxu1 %vm6464_vm7, %v6254_v38  ;;  %v5181_v38 = vld [vmem:[%s7145_s3 + $0x218] sm:$0xff]  }
  0xd6   : > { %4833 = vmatpush3.bf16.msra.mxu1 %v6266_v61  ;;  %4804 = vmatprep.mubr.msk.bf16.mxu1 %vm6483_vm14, %v6257_v34  ;;  %v7428_v61 = vld [vmem:[#allocation5_spill] sm:$0xff] }
  0xd7   : > { %4834 = vmatprep.subr.bf16.mxu1 %v5179_v47 }
  0xda   : > { %4835 = vmatpush3.bf16.msra.mxu1 %v5179_v47  ;;  %v7445_v47 = vld [vmem:[#allocation19_spill] sm:$0xff] }
  0xdb   : > { %4215 = vmatmul.mubr.msk.bf16.gmra.mrb[84].mxu0 %vm5752_vm4, %v5756_v56  ;;  %4836 = vmatprep.subr.bf16.mxu1 %v5180_v46  ;;  %v5183_v56 = vld [vmem:[%s7145_s3 + $0x228] sm:$0xff]   ;;  %vm7434_vm4 = vnez %v7330_v63 }
  0xdc   : > { %2743 = vmatprep.mubr.bf16.mxu0 %v5824_v15  ;;  %v7426_v15 = vld [vmem:[#allocation24_spill] sm:$0xff] }
  0xdd   : > { %4805 = vmatmul.mubr.msk.bf16.gmra.mrb[84].mxu1 %vm6494_vm10, %v6294_v50 }
  0xde   : > { %4808 = vmatprep.mubr.msk.bf16.mxu1 %vm6519_vm11, %v6312_v58  ;;  %4837 = vmatpush3.bf16.msra.mxu1 %v5180_v46  ;;  %v7446_v46 = vld [vmem:[#allocation18_spill] sm:$0xff] }
  0xdf   : > { %4838 = vmatprep.subr.bf16.mxu1 %v5181_v38 }
  0xe2   : > { %4839 = vmatpush3.bf16.msra.mxu1 %v5181_v38 }
  0xe3   : > { %4219 = vmatmul.mubr.msk.bf16.gmra.mrb[88].mxu0 %vm5879_vm5, %v5883_v48  ;;  %4840 = vmatprep.subr.bf16.mxu1 %v5182_v12  ;;  %v5185_v48 = vld [vmem:[%s7145_s3 + $0x238] sm:$0xff]   ;;  %vm7437_vm5 = vnez %v7436_v23 }
  0xe4   : > { %2751 = vmatprep.mubr.bf16.mxu0 %v7426_v15 }
  0xe5   : > { %4809 = vmatmul.mubr.msk.bf16.gmra.mrb[88].mxu1 %vm6530_vm1, %v6337_v22 }
  0xe6   : > { %4812 = vmatprep.mubr.msk.bf16.mxu1 %vm6555_vm2, %v6344_v51  ;;  %4841 = vmatpush3.bf16.msra.mxu1 %v5182_v12 }
  0xe7   : > { %4842 = vmatprep.subr.bf16.mxu1 %v5183_v56 }
  0xea   : > { %4843 = vmatpush3.bf16.msra.mxu1 %v5183_v56 }
  0xeb   : > { %4223 = vmatmul.mubr.msk.bf16.gmra.mrb[92].mxu0 %vm5962_vm0, %v7371_v16  ;;  %4844 = vmatprep.subr.bf16.mxu1 %v5184_v18  ;;  %vm7427_vm0 = vnez %v7379_v30  ;;  %v7429_v16 = vld [vmem:[#allocation4_spill] sm:$0xff]  ;;  %v7439_v30 = vld [vmem:[#allocation13_spill] sm:$0xff] }
  0xec   : > { %2759 = vmatprep.mubr.bf16.mxu0 %v7374_v17  ;;  %vm7430_vm7 = vnez %v7429_v16  ;;  %v7431_v17 = vld [vmem:[#allocation7_spill] sm:$0xff]  ;;  %vm7440_vm8 = vnez %v7439_v30 }
  0xed   : > { %4813 = vmatmul.mubr.msk.bf16.gmra.mrb[92].mxu1 %vm6566_vm15, %v6372_v2 }
  0xee   : > { %4816 = vmatprep.mubr.msk.bf16.mxu1 %vm6589_vm3, %v6374_v45  ;;  %4845 = vmatpush3.bf16.msra.mxu1 %v5184_v18  ;;  %v7450_v18 = vld [vmem:[#allocation20_spill] sm:$0xff] }
  0xef   : > { %4846 = vmatprep.subr.bf16.mxu1 %v5185_v48 }
  0xf2   : > { %4847 = vmatpush3.bf16.msra.mxu1 %v5185_v48 }
  0xf3   : > { %4227 = vmatmul.mubr.msk.bf16.gmra.mrb[96].mxu0 %vm7427_vm0, %v7378_v6  ;;  %v7438_v6 = vld [vmem:[#allocation14_spill] sm:$0xff]  ;;  %vm7444_vm0 = vnez %v7443_v29 }
  0xf4   : > { %2767 = vmatprep.mubr.bf16.mxu0 %v7381_v4 }
  0xf5   : > { %4817 = vmatmul.mubr.msk.bf16.gmra.mrb[0].mxu1 %vm7430_vm7, %v7428_v61 }
  0xf6   : > { %4820 = vmatprep.mubr.msk.bf16.mxu1 %vm7433_vm13, %v7431_v17 }
  0xfb   : > { %4231 = vmatmul.mubr.msk.bf16.gmra.mrb[100].mxu0 %vm7434_vm4, %v6059_v36  ;;  %vm7447_vm4 = vnez %v7446_v46  ;;  %v7459_v46 = vld [vmem:[#allocation22_spill] sm:$0xff] }
  0xfc   : > { %2775 = vmatprep.mubr.bf16.mxu0 %v6063_v7  ;;  %v7442_v7 = vld [vmem:[#allocation17_spill] sm:$0xff] }
  0xfd   : > { %4821 = vmatmul.mubr.msk.bf16.gmra.mrb[4].mxu1 %vm7437_vm5, %v7435_v21 }
  0xfe   : > { %4824 = vmatprep.mubr.msk.bf16.mxu1 %vm7440_vm8, %v7438_v6 }
 0x103   : > { %v4344_v4 = vpop.f32.mrb[0].mxu0  ;;  %4235 = vmatmul.mubr.msk.bf16.gmra.mrb[104].mxu0 %vm7441_vm9, %v6176_v1  ;;  %vm7448_vm9 = vnez %v7353_v42 }
 0x104   : > { %v4345_v13 = vpop.f32.mrb[1].mxu0  ;;  %2783 = vmatprep.mubr.bf16.mxu0 %v6020_v9  ;;  %v7449_v9 = vld [vmem:[#allocation21_spill] sm:$0xff] }
 0x105   : > { %v6692_v25 = vadd.f32 %v4345_v13, %v4344_v4  ;;  %v4347_v60 = vpop.f32.mrb[2].mxu0  ;;  %4825 = vmatmul.mubr.msk.bf16.gmra.mrb[8].mxu1 %vm7444_vm0, %v7442_v7  ;;  %vm7451_vm0 = vnez %v7450_v18 }
 0x106   : > { %v4348_v36 = vpop.f32.mrb[3].mxu0  ;;  %4828 = vmatprep.mubr.msk.bf16.mxu1 %vm7447_vm4, %v7445_v47 }
 0x107   : > { %v6697_v63 = vadd.f32 %v4348_v36, %v4347_v60 }
 0x10b   : > { %v4350_v38 = vpop.f32.mrb[4].mxu0  ;;  %4239 = vmatmul.mubr.msk.bf16.gmra.mrb[108].mxu0 %vm7448_vm9, %v6073_v8  ;;  %vm7452_vm9 = vnez %v7364_v24 }
 0x10c   : > { %v4351_v12 = vpop.f32.mrb[5].mxu0  ;;  %2791 = vmatprep.mubr.bf16.mxu0 %v6043_v0 }
 0x10d   : > { %v6706_v56 = vadd.f32 %v4351_v12, %v4350_v38  ;;  %v4353_v15 = vpop.f32.mrb[6].mxu0  ;;  %4829 = vmatmul.mubr.msk.bf16.gmra.mrb[12].mxu1 %vm7451_vm0, %v7449_v9 }
 0x10e   : > { %v4354_v1 = vpop.f32.mrb[7].mxu0  ;;  %4848 = vmatprep.mubr.msk.bf16.mxu1 %vm6483_vm14, %v6257_v34  ;;  %vm7453_vm14 = vnez %v7376_v14 }
 0x10f   : > { %v6711_v40 = vadd.f32 %v4354_v1, %v4353_v15 }
 0x113   : > { %v4356_v48 = vpop.f32.mrb[8].mxu0  ;;  %4243 = vmatmul.mubr.msk.bf16.gmra.mrb[112].mxu0 %vm7452_vm9, %v6101_v39 }
 0x114   : > { %v4357_v4 = vpop.f32.mrb[9].mxu0  ;;  %2799 = vmatprep.mubr.bf16.mxu0 %v6087_v49 }
 0x115   : > { %v6720_v13 = vadd.f32 %v4357_v4, %v4356_v48  ;;  %v4359_v60 = vpop.f32.mrb[10].mxu0  ;;  %4849 = vmatmul.mubr.msk.bf16.vlgmr.msra.gmra.mrb[80].mxu1 %vm6494_vm10, %v6294_v50  ;;  %vm7454_vm10 = vnez %v7383_v44 }
 0x116   : > { %v4360_v8 = vpop.f32.mrb[11].mxu0  ;;  %4852 = vmatprep.mubr.msk.bf16.mxu1 %vm6519_vm11, %v6312_v58  ;;  %vm7456_vm11 = vnez %v7443_v29 }
 0x117   : > { %v6725_v42 = vadd.f32 %v4360_v8, %v4359_v60 }
 0x11b   : > { %4247 = vmatmul.mubr.msk.bf16.gmra.mrb[116].mxu0 %vm7453_vm14, %v6129_v3 }
 0x11c   : > { %2807 = vmatprep.mubr.bf16.mxu0 %v7377_v5 }
 0x11d   : > { %v4362_v0 = vpop.f32.mrb[12].mxu0  ;;  %4853 = vmatmul.mubr.msk.bf16.gmra.mrb[84].mxu1 %vm6530_vm1, %v6337_v22 }
 0x11e   : > { %v4363_v49 = vpop.f32.mrb[13].mxu0  ;;  %4856 = vmatprep.mubr.msk.bf16.mxu1 %vm6555_vm2, %v6344_v51  ;;  %vm7455_vm2 = vnez %v7386_v54 }
 0x11f   : > { %v6741_v39 = vadd.f32 %v4363_v49, %v4362_v0  ;;  %v4365_v34 = vpop.f32.mrb[14].mxu0 }
 0x120   : > { %v4366_v50 = vpop.f32.mrb[15].mxu0 }
 0x121   : > { %v6746_v58 = vadd.f32 %v4366_v50, %v4365_v34  ;;  %v7460_v50 = vld [vmem:[#allocation23_spill] sm:$0xff] }
 0x123   : > { %4251 = vmatmul.mubr.msk.bf16.gmra.mrb[120].mxu0 %vm7454_vm10, %v6147_v11 }
 0x124   : > { %2815 = vmatprep.mubr.bf16.mxu0 %v6125_v20 }
 0x125   : > { %4857 = vmatmul.mubr.msk.bf16.gmra.mrb[88].mxu1 %vm6566_vm15, %v6372_v2  ;;  %vm7461_vm15 = vnez %v7460_v50 }
 0x126   : > { %v4368_v3 = vpop.f32.mrb[16].mxu0  ;;  %4860 = vmatprep.mubr.msk.bf16.mxu1 %vm6589_vm3, %v6374_v45 }
 0x127   : > { %v4369_v24 = vpop.f32.mrb[17].mxu0 }
 0x128   : > { %v4480_v51 = vpop.f32.mrb[16].mxu1  ;;  %v6758_v22 = vadd.f32 %v4369_v24, %v4368_v3  ;;  %v4371_v14 = vpop.f32.mrb[18].mxu0 }
 0x129   : > { %v4481_v5 = vpop.f32.mrb[17].mxu1  ;;  %v4372_v55 = vpop.f32.mrb[19].mxu0 }
 0x12a   : > { %v6760_v44 = vadd.f32 %v4481_v5, %v4480_v51  ;;  %v4483_v11 = vpop.f32.mrb[18].mxu1  ;;  %v6762_v20 = vadd.f32 %v4372_v55, %v4371_v14 }
 0x12b   : > { %v4484_v43 = vpop.f32.mrb[19].mxu1  ;;  %4255 = vmatmul.mubr.msk.bf16.gmra.mrb[124].mxu0 %vm7455_vm2, %v6178_v53 }
 0x12c   : > { %v6767_v2 = vadd.f32 %v4484_v43, %v4483_v11  ;;  %2823 = vmatprep.mubr.bf16.mxu0 %v6159_v19 }
 0x12d   : > { %4861 = vmatmul.mubr.msk.bf16.gmra.mrb[92].mxu1 %vm7430_vm7, %v7428_v61 }
 0x12e   : > { %v4374_v45 = vpop.f32.mrb[20].mxu0  ;;  %4864 = vmatprep.mubr.msk.bf16.mxu1 %vm7433_vm13, %v7431_v17 }
 0x12f   : > { %v4375_v52 = vpop.f32.mrb[21].mxu0 }
 0x130   : > { %v4486_v32 = vpop.f32.mrb[20].mxu1  ;;  %v6776_v28 = vadd.f32 %v4375_v52, %v4374_v45  ;;  %v4377_v31 = vpop.f32.mrb[22].mxu0 }
 0x131   : > { %v4487_v54 = vpop.f32.mrb[21].mxu1  ;;  %v4378_v53 = vpop.f32.mrb[23].mxu0 }
 0x132   : > { %v6778_v57 = vadd.f32 %v4487_v54, %v4486_v32  ;;  %v4489_v36 = vpop.f32.mrb[22].mxu1  ;;  %v6780_v19 = vadd.f32 %v4378_v53, %v4377_v31 }
 0x133   : > { %v4490_v38 = vpop.f32.mrb[23].mxu1  ;;  %4259 = vmatmul.mubr.msk.bf16.gmra.mrb[128].mxu0 %vm6423_vm6, %v6199_v35  ;;  %vm3386_vm6 = vcmask 1040384  }
 0x134   : > { %v6785_v61 = vadd.f32 %v4490_v38, %v4489_v36  ;;  %2831 = vmatprep.mubr.bf16.mxu0 %v6173_v26 }
 0x135   : > { %4865 = vmatmul.mubr.msk.bf16.gmra.mrb[0].mxu1 %vm7437_vm5, %v7435_v21 }
 0x136   : > { %v4380_v16 = vpop.f32.mrb[24].mxu0  ;;  %4868 = vmatprep.mubr.msk.bf16.mxu1 %vm7440_vm8, %v7438_v6 }
 0x137   : > { %v4381_v17 = vpop.f32.mrb[25].mxu0 }
 0x138   : > { %v4492_v41 = vpop.f32.mrb[24].mxu1  ;;  %v6794_v12 = vadd.f32 %v4381_v17, %v4380_v16  ;;  %v4383_v15 = vpop.f32.mrb[26].mxu0 }
 0x139   : > { %v4493_v59 = vpop.f32.mrb[25].mxu1  ;;  %v4384_v35 = vpop.f32.mrb[27].mxu0 }
 0x13a   : > { %v6796_v1 = vadd.f32 %v4493_v59, %v4492_v41  ;;  %v4495_v48 = vpop.f32.mrb[26].mxu1  ;;  %v6798_v26 = vadd.f32 %v4384_v35, %v4383_v15 }
 0x13b   : > { %v4496_v4 = vpop.f32.mrb[27].mxu1  ;;  %4263 = vmatmul.mubr.msk.bf16.gmra.mrb[132].mxu0 %vm6438_vm12, %v6219_v62 }
 0x13c   : > { %v6803_v21 = vadd.f32 %v4496_v4, %v4495_v48  ;;  %2839 = vmatprep.mubr.bf16.mxu0 %v6444_v37 }
 0x13d   : > { %4869 = vmatmul.mubr.msk.bf16.gmra.mrb[4].mxu1 %vm7456_vm11, %v7442_v7  ;;  %v7457_v7 = vld [vmem:[#allocation25_spill] sm:$0xff] }
 0x13e   : > { %v4386_v23 = vpop.f32.mrb[28].mxu0  ;;  %4872 = vmatprep.mubr.msk.bf16.mxu1 %vm7447_vm4, %v7445_v47  ;;  %vm7458_vm1 = vnez %v7457_v7 }
 0x13f   : > { %v4387_v6 = vpop.f32.mrb[29].mxu0 }
 0x140   : > { %v4498_v30 = vpop.f32.mrb[28].mxu1  ;;  %v6812_v60 = vadd.f32 %v4387_v6, %v4386_v23  ;;  %v4389_v8 = vpop.f32.mrb[30].mxu0 }
 0x141   : > { %v4499_v27 = vpop.f32.mrb[29].mxu1  ;;  %v4390_v62 = vpop.f32.mrb[31].mxu0 }
 0x142   : > { %v6814_v0 = vadd.f32 %v4499_v27, %v4498_v30  ;;  %v4501_v49 = vpop.f32.mrb[30].mxu1  ;;  %v6816_v37 = vadd.f32 %v4390_v62, %v4389_v8 }
 0x143   : > { %v4502_v34 = vpop.f32.mrb[31].mxu1  ;;  %4267 = vmatmul.mubr.msk.bf16.gmra.mrb[136].mxu0 %vm7458_vm1, %v6242_v10 }
 0x144   : > { %v6821_v29 = vadd.f32 %v4502_v34, %v4501_v49  ;;  %2847 = vmatprep.mubr.bf16.mxu0 %v7422_v33 }
 0x145   : > { %4873 = vmatmul.mubr.msk.bf16.gmra.mrb[8].mxu1 %vm7451_vm0, %v7449_v9 }
 0x146   : > { %v4392_v47 = vpop.f32.mrb[32].mxu0  ;;  %4876 = vmatprep.mubr.msk.bf16.mxu1 %vm7461_vm15, %v7459_v46 }
 0x147   : > { %v4393_v3 = vpop.f32.mrb[33].mxu0 }
 0x148   : > { %v4504_v24 = vpop.f32.mrb[32].mxu1  ;;  %v4394_v51 = vadd.f32 %v4393_v3, %v4392_v47  ;;  %v4395_v14 = vpop.f32.mrb[34].mxu0 }
 0x149   : > { %v4505_v5 = vpop.f32.mrb[33].mxu1  ;;  %v4396_v55 = vpop.f32.mrb[35].mxu0 }
 0x14a   : > { %v6830_v10 = vadd.f32 %v4505_v5, %v4504_v24  ;;  %v4507_v11 = vpop.f32.mrb[34].mxu1  ;;  %v4397_v43 = vadd.f32 %v4396_v55, %v4395_v14 }
 0x14b   : > { %v4508_v45 = vpop.f32.mrb[35].mxu1  ;;  %2848 = vmatmul.mubr.bf16.gmra.mrb[140].mxu0 %v7422_v33 }
 0x14c   : > { %v6833_v18 = vadd.f32 %v4508_v45, %v4507_v11 }
 0x14d   : > { %4877 = vmatmul.mubr.bf16.gmra.mrb[12].mxu1 %v7422_v33 }
 0x14e   : > { %v4398_v9 = vpop.f32.mrb[36].mxu0 }
 0x14f   : > { %v4399_v52 = vpop.f32.mrb[37].mxu0 }
 0x150   : > { %v4510_v32 = vpop.f32.mrb[36].mxu1  ;;  %v4400_v31 = vadd.f32 %v4399_v52, %v4398_v9  ;;  %v4401_v54 = vpop.f32.mrb[38].mxu0 }
 0x151   : > { %v4511_v53 = vpop.f32.mrb[37].mxu1  ;;  %v4402_v36 = vpop.f32.mrb[39].mxu0 }
 0x152   : > { %v6836_v38 = vadd.f32 %v4511_v53, %v4510_v32  ;;  %v4513_v16 = vpop.f32.mrb[38].mxu1  ;;  %v4403_v17 = vadd.f32 %v4402_v36, %v4401_v54 }
 0x153   : > { %v4514_v41 = vpop.f32.mrb[39].mxu1 }
 0x154   : > { %v6838_v15 = vadd.f32 %v4514_v41, %v4513_v16 }
 0x156   : > { %v4404_v59 = vpop.f32.mrb[40].mxu0 }
 0x157   : > { %v4405_v35 = vpop.f32.mrb[41].mxu0 }
 0x158   : > { %v4516_v48 = vpop.f32.mrb[40].mxu1  ;;  %v4406_v4 = vadd.f32 %v4405_v35, %v4404_v59  ;;  %v4407_v23 = vpop.f32.mrb[42].mxu0 }
 0x159   : > { %v4517_v33 = vpop.f32.mrb[41].mxu1  ;;  %v4408_v6 = vpop.f32.mrb[43].mxu0 }
 0x15a   : > { %v6840_v30 = vadd.f32 %v4517_v33, %v4516_v48  ;;  %v4519_v8 = vpop.f32.mrb[42].mxu1  ;;  %v4409_v27 = vadd.f32 %v4408_v6, %v4407_v23 }
 0x15b   : > { %v4520_v62 = vpop.f32.mrb[43].mxu1 }
 0x15c   : > { %v6842_v49 = vadd.f32 %v4520_v62, %v4519_v8 }
 0x15e   : > { %v4410_v34 = vpop.f32.mrb[44].mxu0 }
 0x15f   : > { %v4411_v7 = vpop.f32.mrb[45].mxu0 }
 0x160   : > { %v4522_v47 = vpop.f32.mrb[44].mxu1  ;;  %v4412_v46 = vadd.f32 %v4411_v7, %v4410_v34  ;;  %v4413_v50 = vpop.f32.mrb[46].mxu0 }
 0x161   : > { %v4523_v3 = vpop.f32.mrb[45].mxu1  ;;  %v4414_v24 = vpop.f32.mrb[47].mxu0 }
 0x162   : > { %v6844_v14 = vadd.f32 %v4523_v3, %v4522_v47  ;;  %v4525_v5 = vpop.f32.mrb[46].mxu1  ;;  %v4415_v55 = vadd.f32 %v4414_v24, %v4413_v50 }
 0x163   : > { %v4526_v11 = vpop.f32.mrb[47].mxu1 }
 0x164   : > { %v6846_v45 = vadd.f32 %v4526_v11, %v4525_v5 }
 0x166   : > { %v4416_v9 = vpop.f32.mrb[48].mxu0 }
 0x167   : > { %v4417_v52 = vpop.f32.mrb[49].mxu0 }
 0x168   : > { %v4528_v32 = vpop.f32.mrb[48].mxu1  ;;  %v6848_v54 = vadd.f32 %v4417_v52, %v4416_v9  ;;  %v4419_v53 = vpop.f32.mrb[50].mxu0 }
 0x169   : > { %v4529_v36 = vpop.f32.mrb[49].mxu1  ;;  %v4420_v16 = vpop.f32.mrb[51].mxu0 }
 0x16a   : > { %v4530_v41 = vadd.f32 %v4529_v36, %v4528_v32  ;;  %v4531_v59 = vpop.f32.mrb[50].mxu1  ;;  %v6850_v35 = vadd.f32 %v4420_v16, %v4419_v53 }
 0x16b   : > { %v4532_v48 = vpop.f32.mrb[51].mxu1 }
 0x16c   : > { %v6852_v23 = vadd.f32 %v4530_v41, %v4394_v51  ;;  %v4533_v33 = vadd.f32 %v4532_v48, %v4531_v59 }
 0x16e   : > { %v6854_v6 = vadd.f32 %v4533_v33, %v4397_v43  ;;  %v4422_v8 = vpop.f32.mrb[52].mxu0 }
 0x16f   : > { %v4423_v62 = vpop.f32.mrb[53].mxu0 }
 0x170   : > { %v4534_v34 = vpop.f32.mrb[52].mxu1  ;;  %v6856_v7 = vadd.f32 %v4423_v62, %v4422_v8  ;;  %v4425_v47 = vpop.f32.mrb[54].mxu0 }
 0x171   : > { %v4535_v50 = vpop.f32.mrb[53].mxu1  ;;  %v4426_v3 = vpop.f32.mrb[55].mxu0 }
 0x172   : > { %v4536_v24 = vadd.f32 %v4535_v50, %v4534_v34  ;;  %v4537_v5 = vpop.f32.mrb[54].mxu1  ;;  %v6858_v11 = vadd.f32 %v4426_v3, %v4425_v47 }
 0x173   : > { %v4538_v9 = vpop.f32.mrb[55].mxu1 }
 0x174   : > { %v6860_v52 = vadd.f32 %v4536_v24, %v4400_v31  ;;  %v4539_v51 = vadd.f32 %v4538_v9, %v4537_v5 }
 0x176   : > { %v6862_v32 = vadd.f32 %v4539_v51, %v4403_v17  ;;  %v4428_v43 = vpop.f32.mrb[56].mxu0 }
 0x177   : > { %v4429_v53 = vpop.f32.mrb[57].mxu0 }
 0x178   : > { %7462 = vst [vmem:[#allocation3_spill] sm:$0xff] %v6862_v32  ;;  %v4540_v36 = vpop.f32.mrb[56].mxu1  ;;  %v6864_v16 = vadd.f32 %v4429_v53, %v4428_v43  ;;  %v4431_v41 = vpop.f32.mrb[58].mxu0 }
 0x179   : > { %v4541_v59 = vpop.f32.mrb[57].mxu1  ;;  %v4432_v48 = vpop.f32.mrb[59].mxu0 }
 0x17a   : > { %v4542_v33 = vadd.f32 %v4541_v59, %v4540_v36  ;;  %v4543_v8 = vpop.f32.mrb[58].mxu1  ;;  %v6866_v62 = vadd.f32 %v4432_v48, %v4431_v41 }
 0x17b   : > { %v4544_v34 = vpop.f32.mrb[59].mxu1 }
 0x17c   : > { %v6868_v47 = vadd.f32 %v4542_v33, %v4406_v4  ;;  %v4545_v31 = vadd.f32 %v4544_v34, %v4543_v8 }
 0x17e   : > { %v6870_v50 = vadd.f32 %v4545_v31, %v4409_v27  ;;  %v4434_v17 = vpop.f32.mrb[60].mxu0 }
 0x17f   : > { %v4435_v3 = vpop.f32.mrb[61].mxu0 }
 0x180   : > { %v4546_v24 = vpop.f32.mrb[60].mxu1  ;;  %v6872_v5 = vadd.f32 %v4435_v3, %v4434_v17  ;;  %v4437_v9 = vpop.f32.mrb[62].mxu0 }
 0x181   : > { %v4547_v51 = vpop.f32.mrb[61].mxu1  ;;  %v4438_v43 = vpop.f32.mrb[63].mxu0 }
 0x182   : > { %v4548_v53 = vadd.f32 %v4547_v51, %v4546_v24  ;;  %v4549_v32 = vpop.f32.mrb[62].mxu1  ;;  %v6874_v36 = vadd.f32 %v4438_v43, %v4437_v9 }
 0x183   : > { %v4550_v41 = vpop.f32.mrb[63].mxu1 }
 0x184   : > { %v6876_v59 = vadd.f32 %v4548_v53, %v4412_v46  ;;  %v4551_v4 = vadd.f32 %v4550_v41, %v4549_v32 }
 0x186   : > { %v6878_v48 = vadd.f32 %v4551_v4, %v4415_v55  ;;  %v4754_v27 = vpop.f32.mrb[64].mxu0 }
 0x187   : > { %v1870_v33 = vadd.f32 %v4754_v27, %v6706_v56  ;;  %v1861_v8 = vpop.f32.mrb[65].mxu0 }
 0x188   : > { %v4552_v34 = vpop.f32.mrb[64].mxu1  ;;  %v1862_v31 = vadd.f32 %v6692_v25, %v1861_v8  ;;  %v4755_v17 = vpop.f32.mrb[66].mxu0 }
 0x189   : > { %v6883_v3 = vadd.f32 %v6778_v57, %v1870_v33  ;;  %v4553_v24 = vpop.f32.mrb[65].mxu1  ;;  %v1873_v9 = vadd.f32 %v4755_v17, %v6711_v40  ;;  %v1864_v51 = vpop.f32.mrb[67].mxu0 }
 0x18a   : > { %v6887_v46 = vadd.f32 %v6760_v44, %v1862_v31  ;;  %v4554_v55 = vadd.f32 %v4553_v24, %v4552_v34  ;;  %v4555_v32 = vpop.f32.mrb[66].mxu1  ;;  %v1865_v43 = vadd.f32 %v6697_v63, %v1864_v51 }
 0x18b   : > { %v6891_v56 = vadd.f32 %v6785_v61, %v1873_v9  ;;  %v4556_v53 = vpop.f32.mrb[67].mxu1 }
 0x18c   : > { %v6894_v25 = vadd.f32 %v4554_v55, %v6848_v54  ;;  %v6897_v57 = vadd.f32 %v6767_v2, %v1865_v43  ;;  %v4557_v41 = vadd.f32 %v4556_v53, %v4555_v32 }
 0x18e   : > { %v6900_v40 = vadd.f32 %v4557_v41, %v6850_v35  ;;  %v4758_v44 = vpop.f32.mrb[68].mxu0 }
 0x18f   : > { %v1886_v4 = vadd.f32 %v4758_v44, %v6741_v39  ;;  %v1877_v27 = vpop.f32.mrb[69].mxu0 }
 0x190   : > { %v4558_v33 = vpop.f32.mrb[68].mxu1  ;;  %v1878_v63 = vadd.f32 %v6720_v13, %v1877_v27  ;;  %v4759_v61 = vpop.f32.mrb[70].mxu0 }
 0x191   : > { %v6905_v8 = vadd.f32 %v6814_v0, %v1886_v4  ;;  %v4559_v54 = vpop.f32.mrb[69].mxu1  ;;  %v1889_v34 = vadd.f32 %v4759_v61, %v6746_v58  ;;  %v1880_v2 = vpop.f32.mrb[71].mxu0 }
 0x192   : > { %v6909_v31 = vadd.f32 %v6796_v1, %v1878_v63  ;;  %v4560_v35 = vadd.f32 %v4559_v54, %v4558_v33  ;;  %v4561_v17 = vpop.f32.mrb[70].mxu1  ;;  %v1881_v24 = vadd.f32 %v6725_v42, %v1880_v2 }
 0x193   : > { %v6913_v39 = vadd.f32 %v6821_v29, %v1889_v34  ;;  %v4562_v9 = vpop.f32.mrb[71].mxu1 }
 0x194   : > { %v6916_v13 = vadd.f32 %v4560_v35, %v6856_v7  ;;  %v6919_v0 = vadd.f32 %v6803_v21, %v1881_v24  ;;  %v4563_v51 = vadd.f32 %v4562_v9, %v4561_v17 }
 0x196   : > { %v6922_v58 = vadd.f32 %v4563_v51, %v6858_v11  ;;  %v4762_v1 = vpop.f32.mrb[72].mxu0 }
 0x197   : > { %v1902_v55 = vadd.f32 %v4762_v1, %v6776_v28  ;;  %v1893_v32 = vpop.f32.mrb[73].mxu0 }
 0x198   : > { %v4564_v43 = vpop.f32.mrb[72].mxu1  ;;  %v1894_v42 = vadd.f32 %v6758_v22, %v1893_v32  ;;  %v4763_v29 = vpop.f32.mrb[74].mxu0 }
 0x199   : > { %v6927_v53 = vadd.f32 %v6836_v38, %v1902_v55  ;;  %v4565_v7 = vpop.f32.mrb[73].mxu1  ;;  %v1905_v41 = vadd.f32 %v4763_v29, %v6780_v19  ;;  %v1896_v21 = vpop.f32.mrb[75].mxu0 }
 0x19a   : > { %v6931_v44 = vadd.f32 %v6830_v10, %v1894_v42  ;;  %v4566_v11 = vadd.f32 %v4565_v7, %v4564_v43  ;;  %v4567_v4 = vpop.f32.mrb[74].mxu1  ;;  %v1897_v27 = vadd.f32 %v6762_v20, %v1896_v21 }
 0x19b   : > { %v6935_v28 = vadd.f32 %v6838_v15, %v1905_v41  ;;  %v4568_v33 = vpop.f32.mrb[75].mxu1 }
 0x19c   : > { %v6938_v22 = vadd.f32 %v4566_v11, %v6864_v16  ;;  %v2202_v38 = vadd.f32 %v6833_v18, %v1897_v27  ;;  %v4569_v63 = vadd.f32 %v4568_v33, %v4567_v4 }
 0x19e   : > { %v6942_v19 = vadd.f32 %v4569_v63, %v6866_v62  ;;  %v4766_v61 = vpop.f32.mrb[76].mxu0 }
 0x19f   : > { %v1918_v10 = vadd.f32 %v4766_v61, %v6812_v60  ;;  %v1909_v54 = vpop.f32.mrb[77].mxu0 }
 0x1a0   : > { %v4570_v34 = vpop.f32.mrb[76].mxu1  ;;  %v1910_v20 = vadd.f32 %v6794_v12, %v1909_v54  ;;  %v4767_v2 = vpop.f32.mrb[78].mxu0 }
 0x1a1   : > { %v6947_v15 = vadd.f32 %v6844_v14, %v1918_v10  ;;  %v4571_v35 = vpop.f32.mrb[77].mxu1  ;;  %v1921_v16 = vadd.f32 %v4767_v2, %v6816_v37  ;;  %v1912_v17 = vpop.f32.mrb[79].mxu0 }
 0x1a2   : > { %v6951_v18 = vadd.f32 %v6840_v30, %v1910_v20  ;;  %v4572_v62 = vadd.f32 %v4571_v35, %v4570_v34  ;;  %v4573_v24 = vpop.f32.mrb[78].mxu1  ;;  %v1913_v9 = vadd.f32 %v6798_v26, %v1912_v17 }
 0x1a3   : > { %v6955_v60 = vadd.f32 %v6846_v45, %v1921_v16  ;;  %v4574_v51 = vpop.f32.mrb[79].mxu1 }
 0x1a4   : > { %v6958_v12 = vadd.f32 %v4572_v62, %v6872_v5  ;;  %v2218_v14 = vadd.f32 %v6842_v49, %v1913_v9  ;;  %v4575_v1 = vadd.f32 %v4574_v51, %v4573_v24 }
 0x1a6   : > { %v6962_v37 = vadd.f32 %v4575_v1, %v6874_v36  ;;  %v4616_v55 = vpop.f32.mrb[80].mxu0 }
 0x1a7   : > { %v4617_v30 = vpop.f32.mrb[81].mxu0 }
 0x1a8   : > { %v4618_v32 = vadd.f32 %v4617_v30, %v4616_v55  ;;  %v4619_v43 = vpop.f32.mrb[82].mxu0 }
 0x1a9   : > { %v4620_v42 = vpop.f32.mrb[83].mxu0 }
 0x1aa   : > { %v4621_v29 = vadd.f32 %v4620_v42, %v4619_v43  ;;  %v6965_v26 = vadd.f32 %v4618_v32, %v6887_v46 }
 0x1ac   : > { %v6968_v45 = vadd.f32 %v4621_v29, %v6897_v57 }
 0x1ae   : > { %v4622_v5 = vpop.f32.mrb[84].mxu0 }
 0x1af   : > { %v4623_v7 = vpop.f32.mrb[85].mxu0 }
 0x1b0   : > { %v4624_v41 = vadd.f32 %v4623_v7, %v4622_v5  ;;  %v4625_v49 = vpop.f32.mrb[86].mxu0 }
 0x1b1   : > { %v4626_v21 = vpop.f32.mrb[87].mxu0 }
 0x1b2   : > { %v4627_v11 = vadd.f32 %v4626_v21, %v4625_v49  ;;  %v4898_v36 = vadd.f32 %v4624_v41, %v6883_v3 }
 0x1b4   : > { %v6972_v4 = vadd.f32 %v4627_v11, %v6891_v56 }
 0x1b6   : > { %v4628_v27 = vpop.f32.mrb[88].mxu0 }
 0x1b7   : > { %v4629_v33 = vpop.f32.mrb[89].mxu0 }
 0x1b8   : > { %v4630_v63 = vadd.f32 %v4629_v33, %v4628_v27  ;;  %v4631_v61 = vpop.f32.mrb[90].mxu0 }
 0x1b9   : > { %v4632_v46 = vpop.f32.mrb[91].mxu0 }
 0x1ba   : > { %v4633_v10 = vadd.f32 %v4632_v46, %v4631_v61  ;;  %v6975_v57 = vadd.f32 %v4630_v63, %v6909_v31 }
 0x1bc   : > { %v6978_v54 = vadd.f32 %v4633_v10, %v6919_v0 }
 0x1be   : > { %v4634_v34 = vpop.f32.mrb[92].mxu0 }
 0x1bf   : > { %v4635_v20 = vpop.f32.mrb[93].mxu0 }
 0x1c0   : > { %v4636_v2 = vadd.f32 %v4635_v20, %v4634_v34  ;;  %v4637_v35 = vpop.f32.mrb[94].mxu0 }
 0x1c1   : > { %v4638_v3 = vpop.f32.mrb[95].mxu0 }
 0x1c2   : > { %v4639_v16 = vadd.f32 %v4638_v3, %v4637_v35  ;;  %v6981_v56 = vadd.f32 %v4636_v2, %v6905_v8 }
 0x1c4   : > { %v6984_v17 = vadd.f32 %v4639_v16, %v6913_v39 }
 0x1c6   : > { %v4640_v62 = vpop.f32.mrb[96].mxu0 }
 0x1c7   : > { %v4641_v24 = vpop.f32.mrb[97].mxu0 }
 0x1c8   : > { %v4642_v9 = vadd.f32 %v4641_v24, %v4640_v62  ;;  %v4643_v31 = vpop.f32.mrb[98].mxu0 }
 0x1c9   : > { %v4644_v51 = vpop.f32.mrb[99].mxu0 }
 0x1ca   : > { %v4645_v1 = vadd.f32 %v4644_v51, %v4643_v31  ;;  %v6987_v0 = vadd.f32 %v4642_v9, %v6931_v44 }
 0x1cc   : > { %v6989_v55 = vadd.f32 %v4645_v1, %v2202_v38 }
 0x1ce   : > { %v4646_v30 = vpop.f32.mrb[100].mxu0 }
 0x1cf   : > { %v4647_v32 = vpop.f32.mrb[101].mxu0 }
 0x1d0   : > { %v4648_v43 = vadd.f32 %v4647_v32, %v4646_v30  ;;  %v4649_v42 = vpop.f32.mrb[102].mxu0 }
 0x1d1   : > { %v4650_v8 = vpop.f32.mrb[103].mxu0 }
 0x1d2   : > { %v4651_v29 = vadd.f32 %v4650_v8, %v4649_v42  ;;  %v6992_v39 = vadd.f32 %v4648_v43, %v6927_v53 }
 0x1d4   : > { %v6995_v5 = vadd.f32 %v4651_v29, %v6935_v28 }
 0x1d6   : > { %v4652_v7 = vpop.f32.mrb[104].mxu0 }
 0x1d7   : > { %v4653_v41 = vpop.f32.mrb[105].mxu0 }
 0x1d8   : > { %v4654_v49 = vadd.f32 %v4653_v41, %v4652_v7  ;;  %v4655_v21 = vpop.f32.mrb[106].mxu0 }
 0x1d9   : > { %v4656_v44 = vpop.f32.mrb[107].mxu0 }
 0x1da   : > { %v4657_v11 = vadd.f32 %v4656_v44, %v4655_v21  ;;  %v6998_v38 = vadd.f32 %v4654_v49, %v6951_v18  ;;  %v7011_v18 = vld [vmem:[%s7146_s4] ss:$0 sm:$0xff] }
 0x1dc   : > { %v7000_v27 = vadd.f32 %v4657_v11, %v2218_v14 }
 0x1de   : > { %v4658_v33 = vpop.f32.mrb[108].mxu0 }
 0x1df   : > { %v4659_v63 = vpop.f32.mrb[109].mxu0 }
 0x1e0   : > { %v4660_v61 = vadd.f32 %v4659_v63, %v4658_v33  ;;  %v4661_v46 = vpop.f32.mrb[110].mxu0 }
 0x1e1   : > { %v4662_v53 = vpop.f32.mrb[111].mxu0 }
 0x1e2   : > { %v4663_v10 = vadd.f32 %v4662_v53, %v4661_v46  ;;  %v7003_v28 = vadd.f32 %v4660_v61, %v6947_v15 }
 0x1e4   : > { %v7006_v34 = vadd.f32 %v4663_v10, %v6955_v60 }
 0x1e6   : > { %v4664_v20 = vpop.f32.mrb[112].mxu0 }
 0x1e7   : > { %v4665_v2 = vpop.f32.mrb[113].mxu0 }
 0x1e8   : > { %v4850_v35 = vpop.f32.mrb[80].mxu1  ;;  %v4666_v14 = vadd.f32 %v4665_v2, %v4664_v20  ;;  %v4667_v3 = vpop.f32.mrb[114].mxu0 }
 0x1e9   : > { %v4899_v16 = vadd.f32 %v4898_v36, %v4850_v35  ;;  %v2890_v62 = vpop.f32.mrb[81].mxu1  ;;  %v4668_v24 = vpop.f32.mrb[115].mxu0 }
 0x1ea   : > { %v4903_v9 = vadd.f32 %v6965_v26, %v2890_v62  ;;  %v4851_v15 = vpop.f32.mrb[82].mxu1  ;;  %v4669_v31 = vadd.f32 %v4668_v24, %v4667_v3  ;;  %v7015_v60 = vadd.f32 %v6852_v23, %v4666_v14 }
 0x1eb   : > { %v3058_v51 = vadd.f32 %v4899_v16, %v7011_v18  ;;  %v4907_v1 = vadd.f32 %v6972_v4, %v4851_v15  ;;  %v2893_v30 = vpop.f32.mrb[83].mxu1 }
 0x1ec   : > { %v3056_v32 = vadd.f32 %v4903_v9, %v7011_v18  ;;  %v4911_v43 = vadd.f32 %v6968_v45, %v2893_v30  ;;  %v7022_v36 = vadd.f32 %v6854_v6, %v4669_v31 }
 0x1ed   : > { %v3090_v42 = vmax.f32 %v3058_v51, 0.0  ;;  %v3059_v26 = vadd.f32 %v4907_v1, %v7011_v18  ;;  %v7463_v1 = vld [vmem:[#allocation3_spill] sm:$0xff] }
 0x1ee   : > { %v3088_v8 = vmax.f32 %v3056_v32, 0.0  ;;  %v3057_v29 = vadd.f32 %v4911_v43, %v7011_v18  ;;  %v4670_v23 = vpop.f32.mrb[116].mxu0 }
 0x1ef   : > { %v3091_v7 = vmax.f32 %v3059_v26, 0.0  ;;  %v4671_v41 = vpop.f32.mrb[117].mxu0  ;;  %v3319_v21 = vmul.f32 %v3090_v42, %v3090_v42 }
 0x1f0   : > { %v3089_v45 = vmax.f32 %v3057_v29, 0.0  ;;  %v4854_v4 = vpop.f32.mrb[84].mxu1  ;;  %v4672_v6 = vadd.f32 %v4671_v41, %v4670_v23  ;;  %v4673_v49 = vpop.f32.mrb[118].mxu0  ;;  %v3317_v44 = vmul.f32 %v3088_v8, %v3088_v8 }
 0x1f1   : > { %v3858_v11 = vpack.c.bf16 %v3091_v7, %v3090_v42  ;;  %v4915_v33 = vadd.f32 %v6981_v56, %v4854_v4  ;;  %v2906_v63 = vpop.f32.mrb[85].mxu1  ;;  %v4674_v61 = vpop.f32.mrb[119].mxu0  ;;  %v3320_v31 = vmul.f32 %v3091_v7, %v3091_v7 }
 0x1f2   : > { %v3853_v46 = vpack.c.bf16 %v3089_v45, %v3088_v8  ;;  %v3280_v53 = vadd.f32 %v3089_v45, %v3088_v8  ;;  %v3318_v10 = vmul.f32 %v3089_v45, %v3089_v45  ;;  %v4919_v20 = vadd.f32 %v6975_v57, %v2906_v63  ;;  %v4855_v2 = vpop.f32.mrb[86].mxu1 }
 0x1f3   : > { %3945 = vst [vmem:[%s7031_s29 + $0x8] sm:$0xff] %v3858_v11   ;;  %v3062_v35 = vadd.f32 %v4915_v33, %v7011_v18  ;;  %v4923_v14 = vadd.f32 %v6984_v17, %v4855_v2  ;;  %v4675_v3 = vadd.f32 %v4674_v61, %v4673_v49  ;;  %v2909_v16 = vpop.f32.mrb[87].mxu1  ;;  %v7039_v62 = vadd.f32 %v6860_v52, %v4672_v6 }
 0x1f4   : > { %3854 = vst [vmem:[%s7031_s29] sm:$0xff] %v3853_v46   ;;  %v3281_v56 = vadd.f32 %v3280_v53, %v3090_v42  ;;  %v3349_v24 = vadd.f32 %v3318_v10, %v3317_v44  ;;  %v3060_v9 = vadd.f32 %v4919_v20, %v7011_v18  ;;  %v4927_v15 = vadd.f32 %v6978_v54, %v2909_v16 }
 0x1f5   : > { %v3094_v57 = vmax.f32 %v3062_v35, 0.0  ;;  %v3063_v51 = vadd.f32 %v4923_v14, %v7011_v18  ;;  %v7046_v30 = vadd.f32 %v7463_v1, %v4675_v3 }
 0x1f6   : > { %v3350_v17 = vadd.f32 %v3349_v24, %v3319_v21  ;;  %v3092_v32 = vmax.f32 %v3060_v9, 0.0  ;;  %v3282_v43 = vadd.f32 %v3281_v56, %v3091_v7  ;;  %v3061_v52 = vadd.f32 %v4927_v15, %v7011_v18  ;;  %v4676_v26 = vpop.f32.mrb[120].mxu0 }
 0x1f7   : > { %v3095_v8 = vmax.f32 %v3063_v51, 0.0  ;;  %v4677_v42 = vpop.f32.mrb[121].mxu0  ;;  %v3323_v6 = vmul.f32 %v3094_v57, %v3094_v57 }
 0x1f8   : > { %v3283_v29 = vadd.f32 %v3282_v43, %v3092_v32  ;;  %v3321_v23 = vmul.f32 %v3092_v32, %v3092_v32  ;;  %v3351_v41 = vadd.f32 %v3350_v17, %v3320_v31  ;;  %v3093_v54 = vmax.f32 %v3061_v52, 0.0  ;;  %v4858_v45 = vpop.f32.mrb[88].mxu1  ;;  %v4679_v4 = vpop.f32.mrb[122].mxu0 }
 0x1f9   : > { %v3868_v49 = vpack.c.bf16 %v3095_v8, %v3094_v57  ;;  %v4931_v44 = vadd.f32 %v6992_v39, %v4858_v45  ;;  %v4678_v21 = vadd.f32 %v4677_v42, %v4676_v26  ;;  %v2922_v11 = vpop.f32.mrb[89].mxu1  ;;  %v4680_v7 = vpop.f32.mrb[123].mxu0 }
 0x1fa   : > { %v3352_v33 = vadd.f32 %v3351_v41, %v3321_v23  ;;  %v3863_v63 = vpack.c.bf16 %v3093_v54, %v3092_v32  ;;  %v3284_v61 = vadd.f32 %v3283_v29, %v3093_v54  ;;  %v3322_v46 = vmul.f32 %v3093_v54, %v3093_v54  ;;  %v4859_v53 = vpop.f32.mrb[90].mxu1 }
 0x1fb   : > { %3947 = vst [vmem:[%s7031_s29 + $0x18] sm:$0xff] %v3868_v49   ;;  %v3066_v10 = vadd.f32 %v4931_v44, %v7011_v18  ;;  %v4935_v20 = vadd.f32 %v6987_v0, %v2922_v11  ;;  %v4939_v2 = vadd.f32 %v6995_v5, %v4859_v53  ;;  %v4681_v35 = vadd.f32 %v4680_v7, %v4679_v4  ;;  %v2925_v14 = vpop.f32.mrb[91].mxu1 }
 0x1fc   : > { %3946 = vst [vmem:[%s7031_s29 + $0x10] sm:$0xff] %v3863_v63   ;;  %v3285_v3 = vadd.f32 %v3284_v61, %v3094_v57  ;;  %v3353_v39 = vadd.f32 %v3352_v33, %v3322_v46  ;;  %v4943_v16 = vadd.f32 %v6989_v55, %v2925_v14  ;;  %v7057_v56 = vadd.f32 %v6868_v47, %v4678_v21 }
 0x1fd   : > { %v3098_v24 = vmax.f32 %v3066_v10, 0.0  ;;  %v3064_v9 = vadd.f32 %v4935_v20, %v7011_v18  ;;  %v3067_v15 = vadd.f32 %v4939_v2, %v7011_v18  ;;  %v7062_v31 = vadd.f32 %v6870_v50, %v4681_v35 }
 0x1fe   : > { %v3324_v0 = vmul.f32 %v3095_v8, %v3095_v8  ;;  %v3354_v5 = vadd.f32 %v3353_v39, %v3323_v6  ;;  %v3286_v51 = vadd.f32 %v3285_v3, %v3095_v8  ;;  %v3065_v1 = vadd.f32 %v4943_v16, %v7011_v18  ;;  %v4682_v57 = vpop.f32.mrb[124].mxu0 }
 0x1ff   : > { %v3096_v17 = vmax.f32 %v3064_v9, 0.0  ;;  %v3099_v32 = vmax.f32 %v3067_v15, 0.0  ;;  %v4683_v55 = vpop.f32.mrb[125].mxu0  ;;  %v3327_v29 = vmul.f32 %v3098_v24, %v3098_v24 }
 0x200   : > { %v3355_v43 = vadd.f32 %v3354_v5, %v3324_v0  ;;  %v3097_v47 = vmax.f32 %v3065_v1, 0.0  ;;  %v4862_v52 = vpop.f32.mrb[92].mxu1  ;;  %v4684_v26 = vadd.f32 %v4683_v55, %v4682_v57  ;;  %v4685_v42 = vpop.f32.mrb[126].mxu0 }
 0x201   : > { %v3287_v23 = vadd.f32 %v3286_v51, %v3096_v17  ;;  %v3325_v50 = vmul.f32 %v3096_v17, %v3096_v17  ;;  %v3878_v41 = vpack.c.bf16 %v3099_v32, %v3098_v24  ;;  %v2938_v54 = vpop.f32.mrb[93].mxu1  ;;  %v4686_v45 = vpop.f32.mrb[127].mxu0  ;;  %v4947_v6 = vadd.f32 %v7003_v28, %v4862_v52 }
 0x202   : > { %v3873_v8 = vpack.c.bf16 %v3097_v47, %v3096_v17  ;;  %v3326_v4 = vmul.f32 %v3097_v47, %v3097_v47  ;;  %v4951_v49 = vadd.f32 %v6998_v38, %v2938_v54  ;;  %v4863_v44 = vpop.f32.mrb[94].mxu1  ;;  %v4687_v33 = vadd.f32 %v4686_v45, %v4685_v42 }
 0x203   : > { %v3356_v21 = vadd.f32 %v3355_v43, %v3325_v50  ;;  %3949 = vst [vmem:[%s7031_s29 + $0x28] sm:$0xff] %v3878_v41   ;;  %v3288_v11 = vadd.f32 %v3287_v23, %v3097_v47  ;;  %v4955_v7 = vadd.f32 %v7006_v34, %v4863_v44  ;;  %v2941_v63 = vpop.f32.mrb[95].mxu1  ;;  %v3070_v61 = vadd.f32 %v4947_v6, %v7011_v18 }
 0x204   : > { %3948 = vst [vmem:[%s7031_s29 + $0x20] sm:$0xff] %v3873_v8   ;;  %v3068_v46 = vadd.f32 %v4951_v49, %v7011_v18  ;;  %v4959_v53 = vadd.f32 %v7000_v27, %v2941_v63  ;;  %v7074_v10 = vadd.f32 %v6876_v59, %v4684_v26  ;;  %v7078_v2 = vadd.f32 %v6878_v48, %v4687_v33 }
 0x205   : > { %v3289_v28 = vadd.f32 %v3288_v11, %v3098_v24  ;;  %v3357_v38 = vadd.f32 %v3356_v21, %v3326_v4  ;;  %v3071_v20 = vadd.f32 %v4955_v7, %v7011_v18  ;;  %v3102_v34 = vmax.f32 %v3070_v61, 0.0 }
 0x206   : > { %v3100_v35 = vmax.f32 %v3068_v46, 0.0  ;;  %v3069_v14 = vadd.f32 %v4959_v53, %v7011_v18  ;;  %v4688_v3 = vpop.f32.mrb[128].mxu0  ;;  %v3328_v39 = vmul.f32 %v3099_v32, %v3099_v32 }
 0x207   : > { %v3358_v16 = vadd.f32 %v3357_v38, %v3327_v29  ;;  %v3290_v9 = vadd.f32 %v3289_v28, %v3099_v32  ;;  %v3103_v15 = vmax.f32 %v3071_v20, 0.0  ;;  %v4689_v27 = vpop.f32.mrb[129].mxu0  ;;  %v3331_v1 = vmul.f32 %v3102_v34, %v3102_v34 }
 0x208   : > { %v3329_v0 = vmul.f32 %v3100_v35, %v3100_v35  ;;  %v3101_v59 = vmax.f32 %v3069_v14, 0.0  ;;  %v4866_v24 = vpop.f32.mrb[0].mxu1  ;;  %v4690_v5 = vadd.f32 %v4689_v27, %v4688_v3  ;;  %v4691_v51 = vpop.f32.mrb[130].mxu0 }
 0x209   : > { %v3291_v57 = vadd.f32 %v3290_v9, %v3100_v35  ;;  %v3359_v48 = vadd.f32 %v3358_v16, %v3328_v39  ;;  %v3888_v17 = vpack.c.bf16 %v3103_v15, %v3102_v34  ;;  %v2954_v55 = vpop.f32.mrb[1].mxu1  ;;  %v4692_v43 = vpop.f32.mrb[131].mxu0  ;;  %v4962_v26 = vadd.f32 %v7039_v62, %v4866_v24 }
 0x20a   : > { %v3883_v47 = vpack.c.bf16 %v3101_v59, %v3100_v35  ;;  %v3330_v52 = vmul.f32 %v3101_v59, %v3101_v59  ;;  %v4965_v32 = vadd.f32 %v7015_v60, %v2954_v55  ;;  %v4867_v42 = vpop.f32.mrb[2].mxu1  ;;  %v4693_v41 = vadd.f32 %v4692_v43, %v4691_v51 }
 0x20b   : > { %v3360_v29 = vadd.f32 %v3359_v48, %v3329_v0  ;;  %3951 = vst [vmem:[%s7031_s29 + $0x38] sm:$0xff] %v3888_v17   ;;  %v3292_v23 = vadd.f32 %v3291_v57, %v3101_v59  ;;  %v4968_v50 = vadd.f32 %v7046_v30, %v4867_v42  ;;  %v2957_v54 = vpop.f32.mrb[3].mxu1  ;;  %v3074_v45 = vadd.f32 %v4962_v26, %v7011_v18 }
 0x20c   : > { %3950 = vst [vmem:[%s7031_s29 + $0x30] sm:$0xff] %v3883_v47   ;;  %v3072_v8 = vadd.f32 %v4965_v32, %v7011_v18  ;;  %v4971_v4 = vadd.f32 %v7022_v36, %v2957_v54  ;;  %v7090_v6 = vadd.f32 %v6894_v25, %v4690_v5  ;;  %v7094_v44 = vadd.f32 %v6900_v40, %v4693_v41 }
 0x20d   : > { %v3293_v62 = vadd.f32 %v3292_v23, %v3102_v34  ;;  %v3361_v60 = vadd.f32 %v3360_v29, %v3330_v52  ;;  %v3075_v49 = vadd.f32 %v4968_v50, %v7011_v18  ;;  %v3106_v30 = vmax.f32 %v3074_v45, 0.0 }
 0x20e   : > { %v3104_v21 = vmax.f32 %v3072_v8, 0.0  ;;  %v3073_v11 = vadd.f32 %v4971_v4, %v7011_v18  ;;  %v4694_v7 = vpop.f32.mrb[132].mxu0  ;;  %v3332_v33 = vmul.f32 %v3103_v15, %v3103_v15 }
 0x20f   : > { %v3362_v63 = vadd.f32 %v3361_v60, %v3331_v1  ;;  %v3294_v61 = vadd.f32 %v3293_v62, %v3103_v15  ;;  %v3107_v46 = vmax.f32 %v3075_v49, 0.0  ;;  %v4695_v36 = vpop.f32.mrb[133].mxu0  ;;  %v3335_v34 = vmul.f32 %v3106_v30, %v3106_v30 }
 0x210   : > { %v3333_v53 = vmul.f32 %v3104_v21, %v3104_v21  ;;  %v3105_v25 = vmax.f32 %v3073_v11, 0.0  ;;  %v4870_v28 = vpop.f32.mrb[4].mxu1  ;;  %v4696_v38 = vadd.f32 %v4695_v36, %v4694_v7  ;;  %v4697_v20 = vpop.f32.mrb[134].mxu0 }
 0x211   : > { %v3295_v35 = vadd.f32 %v3294_v61, %v3104_v21  ;;  %v3363_v40 = vadd.f32 %v3362_v63, %v3332_v33  ;;  %v3898_v14 = vpack.c.bf16 %v3107_v46, %v3106_v30  ;;  %v2970_v3 = vpop.f32.mrb[5].mxu1  ;;  %v4698_v39 = vpop.f32.mrb[135].mxu0  ;;  %v4974_v27 = vadd.f32 %v7074_v10, %v4870_v28 }
 0x212   : > { %v3893_v16 = vpack.c.bf16 %v3105_v25, %v3104_v21  ;;  %v3334_v9 = vmul.f32 %v3105_v25, %v3105_v25  ;;  %v4977_v15 = vadd.f32 %v7057_v56, %v2970_v3  ;;  %v4871_v0 = vpop.f32.mrb[6].mxu1  ;;  %v4699_v51 = vadd.f32 %v4698_v39, %v4697_v20 }
 0x213   : > { %v3364_v59 = vadd.f32 %v3363_v40, %v3333_v53  ;;  %3953 = vst [vmem:[%s7031_s29 + $0x48] sm:$0xff] %v3898_v14   ;;  %v3296_v24 = vadd.f32 %v3295_v35, %v3105_v25  ;;  %v4980_v5 = vadd.f32 %v7078_v2, %v4871_v0  ;;  %v2973_v1 = vpop.f32.mrb[7].mxu1  ;;  %v3078_v57 = vadd.f32 %v4974_v27, %v7011_v18 }
 0x214   : > { %3952 = vst [vmem:[%s7031_s29 + $0x40] sm:$0xff] %v3893_v16   ;;  %v3076_v48 = vadd.f32 %v4977_v15, %v7011_v18  ;;  %v4983_v17 = vadd.f32 %v7062_v31, %v2973_v1  ;;  %v4985_v55 = vadd.f32 %v6916_v13, %v4696_v38  ;;  %v4991_v47 = vadd.f32 %v6922_v58, %v4699_v51 }
 0x215   : > { %v3297_v10 = vadd.f32 %v3296_v24, %v3106_v30  ;;  %v3365_v43 = vadd.f32 %v3364_v59, %v3334_v9  ;;  %v3079_v56 = vadd.f32 %v4980_v5, %v7011_v18  ;;  %v3110_v52 = vmax.f32 %v3078_v57, 0.0 }
 0x216   : > { %v3108_v26 = vmax.f32 %v3076_v48, 0.0  ;;  %v3077_v2 = vadd.f32 %v4983_v17, %v7011_v18  ;;  %v4700_v32 = vpop.f32.mrb[136].mxu0  ;;  %v3336_v42 = vmul.f32 %v3107_v46, %v3107_v46 }
 0x217   : > { %v3366_v29 = vadd.f32 %v3365_v43, %v3335_v34  ;;  %v3298_v23 = vadd.f32 %v3297_v10, %v3107_v46  ;;  %v3111_v50 = vmax.f32 %v3079_v56, 0.0  ;;  %v4701_v41 = vpop.f32.mrb[137].mxu0  ;;  %v3339_v4 = vmul.f32 %v3110_v52, %v3110_v52 }
 0x218   : > { %v3337_v54 = vmul.f32 %v3108_v26, %v3108_v26  ;;  %v3109_v31 = vmax.f32 %v3077_v2, 0.0  ;;  %v4874_v13 = vpop.f32.mrb[8].mxu1  ;;  %v4702_v45 = vadd.f32 %v4701_v41, %v4700_v32  ;;  %v4703_v8 = vpop.f32.mrb[138].mxu0 }
 0x219   : > { %v3299_v62 = vadd.f32 %v3298_v23, %v3108_v26  ;;  %v3367_v58 = vadd.f32 %v3366_v29, %v3336_v42  ;;  %v3908_v60 = vpack.c.bf16 %v3111_v50, %v3110_v52  ;;  %v2986_v49 = vpop.f32.mrb[9].mxu1  ;;  %v4704_v30 = vpop.f32.mrb[139].mxu0  ;;  %v4986_v7 = vadd.f32 %v4985_v55, %v4874_v13 }
 0x21a   : > { %v3903_v21 = vpack.c.bf16 %v3109_v31, %v3108_v26  ;;  %v3338_v11 = vmul.f32 %v3109_v31, %v3109_v31  ;;  %v4989_v33 = vadd.f32 %v7090_v6, %v2986_v49  ;;  %v4875_v63 = vpop.f32.mrb[10].mxu1  ;;  %v4705_v53 = vadd.f32 %v4704_v30, %v4703_v8 }
 0x21b   : > { %v3368_v61 = vadd.f32 %v3367_v58, %v3337_v54  ;;  %3955 = vst [vmem:[%s7031_s29 + $0x58] sm:$0xff] %v3908_v60   ;;  %v3300_v46 = vadd.f32 %v3299_v62, %v3109_v31  ;;  %v4992_v36 = vadd.f32 %v4991_v47, %v4875_v63  ;;  %v2989_v25 = vpop.f32.mrb[11].mxu1  ;;  %v3082_v28 = vadd.f32 %v4986_v7, %v7011_v18 }
 0x21c   : > { %3954 = vst [vmem:[%s7031_s29 + $0x50] sm:$0xff] %v3903_v21   ;;  %v3080_v38 = vadd.f32 %v4989_v33, %v7011_v18  ;;  %v4995_v20 = vadd.f32 %v7094_v44, %v2989_v25  ;;  %v5000_v34 = vadd.f32 %v6938_v22, %v4702_v45  ;;  %v5006_v14 = vadd.f32 %v6942_v19, %v4705_v53 }
 0x21d   : > { %v3301_v35 = vadd.f32 %v3300_v46, %v3110_v52  ;;  %v3369_v40 = vadd.f32 %v3368_v61, %v3338_v11  ;;  %v3083_v6 = vadd.f32 %v4992_v36, %v7011_v18  ;;  %v3340_v3 = vmul.f32 %v3111_v50, %v3111_v50 }
 0x21e   : > { %v3112_v39 = vmax.f32 %v3080_v38, 0.0  ;;  %v3081_v16 = vadd.f32 %v4995_v20, %v7011_v18  ;;  %v4706_v9 = vpop.f32.mrb[140].mxu0  ;;  %v3114_v15 = vmax.f32 %v3082_v28, 0.0 }
 0x21f   : > { %v3370_v27 = vadd.f32 %v3369_v40, %v3339_v4  ;;  %v3302_v0 = vadd.f32 %v3301_v35, %v3111_v50  ;;  %v3115_v59 = vmax.f32 %v3083_v6, 0.0  ;;  %v4707_v24 = vpop.f32.mrb[141].mxu0 }
 0x220   : > { %v3341_v5 = vmul.f32 %v3112_v39, %v3112_v39  ;;  %v3113_v44 = vmax.f32 %v3081_v16, 0.0  ;;  %v4878_v22 = vpop.f32.mrb[12].mxu1  ;;  %v4708_v51 = vadd.f32 %v4707_v24, %v4706_v9  ;;  %v4709_v1 = vpop.f32.mrb[142].mxu0  ;;  %v3343_v41 = vmul.f32 %v3114_v15, %v3114_v15 }
 0x221   : > { %v3303_v57 = vadd.f32 %v3302_v0, %v3112_v39  ;;  %v3371_v48 = vadd.f32 %v3370_v27, %v3340_v3  ;;  %v3918_v19 = vpack.c.bf16 %v3115_v59, %v3114_v15  ;;  %v3002_v17 = vpop.f32.mrb[13].mxu1  ;;  %v4710_v55 = vpop.f32.mrb[143].mxu0  ;;  %v3344_v4 = vmul.f32 %v3115_v59, %v3115_v59 }
 0x222   : > { %v3913_v10 = vpack.c.bf16 %v3113_v44, %v3112_v39  ;;  %v3342_v43 = vmul.f32 %v3113_v44, %v3113_v44  ;;  %v4997_v56 = vadd.f32 %v6958_v12, %v4708_v51  ;;  %v5001_v47 = vadd.f32 %v5000_v34, %v3002_v17  ;;  %v4879_v52 = vpop.f32.mrb[14].mxu1 }
 0x223   : > { %v3372_v26 = vadd.f32 %v3371_v48, %v3341_v5  ;;  %3957 = vst [vmem:[%s7031_s29 + $0x68] sm:$0xff] %v3918_v19   ;;  %v3304_v2 = vadd.f32 %v3303_v57, %v3113_v44  ;;  %v4711_v32 = vadd.f32 %v4710_v55, %v4709_v1  ;;  %v3005_v42 = vpop.f32.mrb[15].mxu1 }
 0x224   : > { %3956 = vst [vmem:[%s7031_s29 + $0x60] sm:$0xff] %v3913_v10   ;;  %v4998_v29 = vadd.f32 %v4997_v56, %v4878_v22  ;;  %v3084_v23 = vadd.f32 %v5001_v47, %v7011_v18  ;;  %v5007_v50 = vadd.f32 %v5006_v14, %v3005_v42 }
 0x225   : > { %v3305_v54 = vadd.f32 %v3304_v2, %v3114_v15  ;;  %v3373_v31 = vadd.f32 %v3372_v26, %v3342_v43  ;;  %v5003_v13 = vadd.f32 %v6962_v37, %v4711_v32 }
 0x226   : > { %v3086_v45 = vadd.f32 %v4998_v29, %v7011_v18  ;;  %v3116_v12 = vmax.f32 %v3084_v23, 0.0  ;;  %v3085_v8 = vadd.f32 %v5007_v50, %v7011_v18 }
 0x227   : > { %v3374_v62 = vadd.f32 %v3373_v31, %v3343_v41  ;;  %v3306_v58 = vadd.f32 %v3305_v54, %v3115_v59  ;;  %v5004_v60 = vadd.f32 %v5003_v13, %v4879_v52 }
 0x228   : > { %v3118_v49 = vmax.f32 %v3086_v45, 0.0  ;;  %v3345_v30 = vmul.f32 %v3116_v12, %v3116_v12  ;;  %v3117_v21 = vmax.f32 %v3085_v8, 0.0 }
 0x229   : > { %v3307_v11 = vadd.f32 %v3306_v58, %v3116_v12  ;;  %v3375_v7 = vadd.f32 %v3374_v62, %v3344_v4  ;;  %v3087_v33 = vadd.f32 %v5004_v60, %v7011_v18 }
 0x22a   : > { %v3923_v63 = vpack.c.bf16 %v3117_v21, %v3116_v12  ;;  %v3346_v37 = vmul.f32 %v3117_v21, %v3117_v21  ;;  %v3347_v61 = vmul.f32 %v3118_v49, %v3118_v49 }
 0x22b   : > { %v3376_v46 = vadd.f32 %v3375_v7, %v3345_v30  ;;  %v3119_v36 = vmax.f32 %v3087_v33, 0.0  ;;  %v3308_v53 = vadd.f32 %v3307_v11, %v3117_v21 }
 0x22c   : > { %3958 = vst [vmem:[%s7031_s29 + $0x70] sm:$0xff] %v3923_v63  }
 0x22d   : > { %v3928_v25 = vpack.c.bf16 %v3119_v36, %v3118_v49  ;;  %v3348_v28 = vmul.f32 %v3119_v36, %v3119_v36  ;;  %v3309_v38 = vadd.f32 %v3308_v53, %v3118_v49  ;;  %v3377_v20 = vadd.f32 %v3376_v46, %v3346_v37 }
 0x22f   : > { %3959 = vst [vmem:[%s7031_s29 + $0x78] sm:$0xff] %v3928_v25   ;;  %v3310_v34 = vadd.f32 %v3309_v38, %v3119_v36  ;;  %v3378_v35 = vadd.f32 %v3377_v20, %v3347_v61 }
 0x231   : > { %v3311_v40 = vrot.slane %v3310_v34, 4  ;;  %v3379_v6 = vadd.f32 %v3378_v35, %v3348_v28 }
 0x233   : > { %v3312_v14 = vadd.f32 %v3311_v40, %v3310_v34  ;;  %v3380_v3 = vrot.slane %v3379_v6, 4 }
 0x235   : > { %v3313_v18 = vrot.slane %v3312_v14, 2  ;;  %v3381_v39 = vadd.f32 %v3380_v3, %v3379_v6 }
 0x237   : > { %v3314_v16 = vadd.f32 %v3313_v18, %v3312_v14  ;;  %v3382_v9 = vrot.slane %v3381_v39, 2 }
 0x239   : > { %v3315_v27 = vrot.slane %v3314_v16, 1  ;;  %v3383_v15 = vadd.f32 %v3382_v9, %v3381_v39 }
 0x23b   : > { %v3384_v0 = vrot.slane %v3383_v15, 1  ;;  %v3316_v59 = vadd.f32 %v3315_v27, %v3314_v16 }
 0x23d   : > { %v3385_v24 = vadd.f32 %v3384_v0, %v3383_v15 }
 0x23f   : > { %v3387_v5 = vsel %vm3386_vm6, %v3316_v59, %v3385_v24 }
 0x240   : > { %3388 = vst [vmem:[%s321_s8] sm:$0x3] %v3387_v5 }
 0x241 PF: > { %s17_s23 = sadd.s32 1, %s5208_s23   ;;  %s7464_s21 = smov %s5204_s22 }
 0x242   : > { %p14_p5 = scmp.ge.s32.totalorder %s17_s23, 4   ;;  %s7465_s22 = smov %s7467_s24 }
 0x244   :  { %16 = sbr.rel (!%p14_p5) target bundleno = 2 (0x2), region = 94 }

// kernel: qnet_spatial_forward.5
= control target key start
LH: loop header
LB: loop body
LE: loop exit
PB: predicated region body
PF: predicated region fallthrough
CT: control target
= control target key end

     0   :  { %s5491_s21 = smov 0   ;;  %s5493_s22 = smov 0   ;;  %s7210_s0 = inlined_call_operand.vmem [shape: bf16[2,16,16,8], index: 0, kind: input, shape index: {}]   ;;  %s7211_s1 = inlined_call_operand.vmem [shape: bf16[8,128], index: 1, kind: input, shape index: {}]   ;;  %s7212_s2 = inlined_call_operand.vmem [shape: f32[1,128], index: 2, kind: input, shape index: {}]   ;;  %s7213_s3 = inlined_call_operand.vmem [shape: bf16[3,384,128], index: 3, kind: input, shape index: {}]   ;;  %s7214_s4 = inlined_call_operand.vmem [shape: f32[1,128], index: 4, kind: input, shape index: {}]   ;;  %s7215_s5 = inlined_call_operand.vmem [shape: bf16[2,16,16,128], index: 5, kind: output, shape index: {0}]   ;;  %s7216_s6 = inlined_call_operand.vmem [shape: f32[2,2,128], index: 6, kind: output, shape index: {1}]  }
   0x1   :  { %s5495_s23 = smov 0  }
   0x2 LB: > { %s29_s24 = sadd.s32 1, %s5448_s22  ;;  %p3765_p0 = scmp.ge.s32.totalorder %s5452_s23, 1  ;;  %s5452_s23 = sphi %s5495_s23, %s17_s23   ;;  %s5448_s22 = sphi %s5493_s22, %s7648_s22   ;;  %s5444_s21 = sphi %s5491_s21, %s7647_s21  }
   0x3   : > { %p31_p1 = scmp.ge.s32.totalorder %s29_s24, 2  ;;  %p248_p2 = scmp.lt.s32.totalorder %s5452_s23, 3 }
   0x5   : > { %s7650_s24 = smov (%p31_p1, %s29_s24), 0  ;;  %p249_p3 = pnand %p3765_p0, %p248_p2 }
   0x7   : > { %252 = sbr.rel (%p249_p3) target bundleno = 851 (0x353), region = 40 }
   0xe   : > { %v359_v0 = vld [vmem:[%s7211_s1] sm:$0xf]  ;;  %vm496_vm0 = vcmask 1043456   ;;  %p295_p4 = scmp.lt.s32.totalorder %s5444_s21, 1  ;;  %vm447_vm1 = vcmask 64512   ;;  %v5359_v3 = vld [vmem:[%s7213_s3 + $0x148] sm:$0xff]   ;;  %v693_v23 = vlaneseq }
   0xf   : > { %v5358_v1 = vld [vmem:[%s7213_s3 + $0x140] sm:$0xff]   ;;  %5283 = vmatprep.subr.msk.bf16.mxu0 %vm496_vm0, %v359_v0  ;;  %v498_v2 = vsel %vm496_vm0, %v359_v0, 0  ;;  %v5360_v7 = vld [vmem:[%s7213_s3 + $0x150] sm:$0xff]   ;;  %v5361_v10 = vld [vmem:[%s7213_s3 + $0x158] sm:$0xff]   ;;  %vm7272_vm6 = vmmov 1  }
  0x10   : > { %4930 = vmatpush3.bf16.msra.mxu0 %v498_v2  ;;  %s7652_s21 = smov (!%p295_p4, %s5444_s21), 1  ;;  %v5362_v22 = vld [vmem:[%s7213_s3 + $0x160] sm:$0xff]   ;;  %v5569_v24 = vshrl.u32 %v693_v23, 7  ;;  %v5363_v25 = vld [vmem:[%s7213_s3 + $0x168] sm:$0xff]   ;;  %v5364_v27 = vld [vmem:[%s7213_s3 + $0x170] sm:$0xff]  }
  0x11   : > { %4963 = vmatprep.subr.bf16.mxu0 %v5358_v1  ;;  %s4007_s29 = sshll.u32 %s7652_s21, 7  ;;  %v5365_v29 = vld [vmem:[%s7213_s3 + $0x178] sm:$0xff]   ;;  %v5366_v42 = vld [vmem:[%s7213_s3 + $0x100] sm:$0xff]   ;;  %v5368_v45 = vld [vmem:[%s7213_s3 + $0x108] sm:$0xff]  }
  0x12   : > { %s5523_s8 = scalar_lea.vmem %s7210_s0, %s4007_s29  ;;  %v5575_v26 = vadd.s32 8, %v5569_v24  ;;  %v5585_v30 = vadd.s32 24, %v5569_v24  ;;  %v5589_v32 = vadd.s32 40, %v5569_v24  ;;  %v5593_v34 = vadd.s32 56, %v5569_v24  ;;  %v5367_v43 = vld [vmem:[%s7213_s3 + $0xc0] sm:$0xff]   ;;  %4521 = vmatprep.subr.bf16.mxu1 %v5366_v42  ;;  %v5369_v46 = vld [vmem:[%s7213_s3 + $0xc8] sm:$0xff]   ;;  %s7059_s28 = scalar_lea.vmem %s7215_s5, %s4007_s29 }
  0x13   : > { %v5342_v4 = vld [vmem:[%s5523_s8] sm:$0xff]   ;;  %v5343_v5 = vld [vmem:[%s5523_s8 + $0x8] sm:$0xff]   ;;  %v5344_v6 = vld [vmem:[%s5523_s8 + $0x10] sm:$0xff]   ;;  %v5597_v36 = vadd.s32 72, %v5569_v24  ;;  %v5601_v38 = vadd.s32 88, %v5569_v24  ;;  %v5605_v40 = vadd.s32 104, %v5569_v24  ;;  %4522 = vmatpush3.bf16.msra.mxu1 %v5367_v43 }
  0x14   : > { %4931 = vmatprep.mubr.msk.bf16.mxu0 %vm447_vm1, %v5342_v4  ;;  %v5345_v8 = vld [vmem:[%s5523_s8 + $0x18] sm:$0xff]   ;;  %v5346_v9 = vld [vmem:[%s5523_s8 + $0x20] sm:$0xff]   ;;  %v5347_v11 = vld [vmem:[%s5523_s8 + $0x28] sm:$0xff]   ;;  %v737_v28 = vand.u32 15, %v5575_v26  ;;  %v751_v31 = vand.u32 15, %v5585_v30  ;;  %v765_v33 = vand.u32 15, %v5589_v32  ;;  %4523 = vmatprep.subr.bf16.mxu1 %v5368_v45 }
  0x15   : > { %4932 = vmatmul.mubr.msk.bf16.vlgmr.msra.gmra.mrb[0].mxu0 %vm447_vm1, %v5343_v5  ;;  %v5348_v12 = vld [vmem:[%s5523_s8 + $0x30] sm:$0xff]   ;;  %v5349_v13 = vld [vmem:[%s5523_s8 + $0x38] sm:$0xff]   ;;  %v5350_v14 = vld [vmem:[%s5523_s8 + $0x40] sm:$0xff]   ;;  %v779_v35 = vand.u32 15, %v5593_v34  ;;  %v793_v37 = vand.u32 15, %v5597_v36  ;;  %v807_v39 = vand.u32 15, %v5601_v38 }
  0x16   : > { %4935 = vmatprep.mubr.msk.bf16.mxu0 %vm447_vm1, %v5344_v6  ;;  %4964 = vmatpush3.bf16.msra.mxu0 %v5358_v1  ;;  %v5351_v15 = vld [vmem:[%s5523_s8 + $0x48] sm:$0xff]   ;;  %v5352_v16 = vld [vmem:[%s5523_s8 + $0x50] sm:$0xff]   ;;  %v5353_v17 = vld [vmem:[%s5523_s8 + $0x58] sm:$0xff]   ;;  %v821_v41 = vand.u32 15, %v5605_v40  ;;  %v5615_v44 = vadd.s32 120, %v5569_v24  ;;  %v5625_v48 = vadd.s32 136, %v5569_v24 }
  0x17   : > { %4965 = vmatprep.subr.bf16.mxu0 %v5359_v3  ;;  %v5354_v18 = vld [vmem:[%s5523_s8 + $0x60] sm:$0xff]   ;;  %v5355_v19 = vld [vmem:[%s5523_s8 + $0x68] sm:$0xff]   ;;  %v5356_v20 = vld [vmem:[%s5523_s8 + $0x70] sm:$0xff]   ;;  %4524 = vmatpush3.bf16.msra.mxu1 %v5369_v46  ;;  %v5635_v52 = vadd.s32 152, %v5569_v24  ;;  %v5645_v56 = vadd.s32 168, %v5569_v24  ;;  %v5658_v61 = vadd.s32 184, %v5569_v24 }
  0x18   : > { %v5357_v21 = vld [vmem:[%s5523_s8 + $0x78] sm:$0xff]   ;;  %v5370_v50 = vld [vmem:[%s7213_s3 + $0x110] sm:$0xff]   ;;  %v5375_v57 = vld [vmem:[%s7213_s3 + $0x40] sm:$0xff]   ;;  %v5668_v1 = vadd.s32 200, %v5569_v24  ;;  %v5678_v5 = vadd.s32 216, %v5569_v24  ;;  %vm7274_vm2 = vcmp.lt.s32.totalorder %v5569_v24, 7 }
  0x19   : > { %v5371_v51 = vld [vmem:[%s7213_s3 + $0xd0] sm:$0xff]   ;;  %4525 = vmatprep.subr.bf16.mxu1 %v5370_v50  ;;  %v5372_v53 = vld [vmem:[%s7213_s3 + $0x118] sm:$0xff]   ;;  %v5374_v59 = vld [vmem:[%s7213_s3 + $0x120] sm:$0xff]   ;;  %vm7281_vm3 = vcmp.lt.s32.totalorder %v5569_v24, 1  ;;  %vm5745_vm4 = vcmp.ne.s32.totalorder %v737_v28, 15  ;;  %vm5751_vm5 = vcmp.ne.s32.totalorder %v751_v31, 15 }
  0x1a   : > { %4966 = vmatpush3.bf16.msra.mxu0 %v5359_v3  ;;  %v5373_v54 = vld [vmem:[%s7213_s3 + $0xd8] sm:$0xff]   ;;  %v5376_v60 = vld [vmem:[%s7213_s3 + $0xe0] sm:$0xff]   ;;  %v5378_v62 = vld [vmem:[%s7213_s3 + $0x128] sm:$0xff]   ;;  %vm5810_vm8 = vcmp.ne.s32.totalorder %v765_v33, 15  ;;  %vm5816_vm9 = vcmp.ne.s32.totalorder %v779_v35, 15  ;;  %vm5824_vm10 = vcmp.ne.s32.totalorder %v793_v37, 15 }
  0x1b   : > { %4967 = vmatprep.subr.bf16.mxu0 %v5360_v7  ;;  %4526 = vmatpush3.bf16.msra.mxu1 %v5371_v51  ;;  %v5380_v63 = vld [vmem:[%s7213_s3 + $0xe8] sm:$0xff]   ;;  %v5382_v3 = vld [vmem:[%s7213_s3 + $0x130] sm:$0xff]   ;;  %v5386_v6 = vld [vmem:[%s7213_s3 + $0x138] sm:$0xff]   ;;  %v5731_v51 = vadd.s32 128, %v5569_v24  ;;  %vm5901_vm13 = vcmp.ne.s32.totalorder %v807_v39, 15  ;;  %vm5917_vm14 = vcmp.ne.s32.totalorder %v821_v41, 15 }
  0x1c   : > { %4527 = vmatprep.subr.bf16.mxu1 %v5372_v53  ;;  %v5384_v4 = vld [vmem:[%s7213_s3 + $0xf0] sm:$0xff]   ;;  %v5727_v43 = vld [vmem:[%s7212_s2] ss:$0 sm:$0xff]  ;;  %vm5784_vm7 = vmpackc.low %vm5745_vm4, %vm7272_vm6  ;;  %v7375_v40 = vmov 0  ;;  %s3770_s29 = sshll.u32 %s7652_s21, 1 }
  0x1d   : > { %4936 = vmatmul.mubr.msk.bf16.gmra.mrb[4].mxu0 %vm447_vm1, %v5345_v8  ;;  %7345 = vst [vmem:[#allocation6_spill] sm:$0xff] %v5731_v51  ;;  %vm5836_vm11 = vmpackc.low %vm5751_vm5, %vm7272_vm6  ;;  %v5843_v36 = vld [vmem:[%s7213_s3] sm:$0xff]   ;;  %v5940_v41 = vld [vmem:[%s7213_s3 + $0x10] sm:$0xff]   ;;  %s321_s8 = scalar_lea.vmem %s7216_s6, %s3770_s29 }
  0x1e   : > { %4939 = vmatprep.mubr.msk.bf16.mxu0 %vm447_vm1, %v5346_v9  ;;  %4968 = vmatpush3.bf16.msra.mxu0 %v5360_v7  ;;  %v5388_v7 = vld [vmem:[%s7213_s3 + $0xf8] sm:$0xff]   ;;  %v5688_v9 = vadd.s32 232, %v5569_v24  ;;  %vm5867_vm12 = vmpackc.low %vm5810_vm8, %vm7272_vm6 }
  0x1f   : > { %4969 = vmatprep.subr.bf16.mxu0 %v5361_v10  ;;  %4528 = vmatpush3.bf16.msra.mxu1 %v5373_v54  ;;  %vm5932_vm15 = vmpackc.low %vm5816_vm9, %vm7272_vm6 }
  0x20   : > { %4529 = vmatprep.subr.bf16.mxu1 %v5374_v59  ;;  %v7376_v40 = vsel %vm5932_vm15, 4294967295, %v7375_v40  ;;  %vm5967_vm0 = vmpackc.low %vm5824_vm10, %vm7272_vm6 }
  0x21   : > { %7377 = vst [vmem:[#allocation16_spill] sm:$0xff] %v7376_v40  ;;  %vm6030_vm5 = vmpackc.low %vm5901_vm13, %vm7272_vm6 }
  0x22   : > { %4970 = vmatpush3.bf16.msra.mxu0 %v5361_v10  ;;  %vm6065_vm8 = vmpackc.low %vm5917_vm14, %vm7272_vm6 }
  0x23   : > { %4971 = vmatprep.subr.bf16.mxu0 %v5362_v22  ;;  %4530 = vmatpush3.bf16.msra.mxu1 %v5376_v60 }
  0x24   : > { %4531 = vmatprep.subr.bf16.mxu1 %v5378_v62 }
  0x25   : > { %4940 = vmatmul.mubr.msk.bf16.gmra.mrb[8].mxu0 %vm447_vm1, %v5347_v11 }
  0x26   : > { %4943 = vmatprep.mubr.msk.bf16.mxu0 %vm447_vm1, %v5348_v12  ;;  %4972 = vmatpush3.bf16.msra.mxu0 %v5362_v22  ;;  %v5693_v12 = vadd.s32 248, %v5569_v24  ;;  %v5713_v22 = vadd.s32 80, %v5569_v24 }
  0x27   : > { %4973 = vmatprep.subr.bf16.mxu0 %v5363_v25  ;;  %4532 = vmatpush3.bf16.msra.mxu1 %v5380_v63 }
  0x28   : > { %4533 = vmatprep.subr.bf16.mxu1 %v5382_v3  ;;  %7342 = vst [vmem:[#allocation3_spill] sm:$0xff] %v5713_v22 }
  0x2a   : > { %4974 = vmatpush3.bf16.msra.mxu0 %v5363_v25  ;;  %v5717_v25 = vadd.s32 96, %v5569_v24 }
  0x2b   : > { %4975 = vmatprep.subr.bf16.mxu0 %v5364_v27  ;;  %4534 = vmatpush3.bf16.msra.mxu1 %v5384_v4 }
  0x2c   : > { %4535 = vmatprep.subr.bf16.mxu1 %v5386_v6  ;;  %7343 = vst [vmem:[#allocation4_spill] sm:$0xff] %v5717_v25  ;;  %v6151_v25 = vld [vmem:[%s7213_s3 + $0x78] sm:$0xff]  }
  0x2d   : > { %4944 = vmatmul.mubr.msk.bf16.gmra.mrb[12].mxu0 %vm447_vm1, %v5349_v13  ;;  %v5696_v13 = vadd.s32 16, %v5569_v24 }
  0x2e   : > { %4947 = vmatprep.mubr.msk.bf16.mxu0 %vm447_vm1, %v5350_v14  ;;  %4976 = vmatpush3.bf16.msra.mxu0 %v5364_v27 }
  0x2f   : > { %4977 = vmatprep.subr.bf16.mxu0 %v5365_v29  ;;  %4536 = vmatpush3.bf16.msra.mxu1 %v5388_v7 }
  0x30   : > { %5107 = vmatprep.subr.bf16.mxu1 %v5375_v57 }
  0x32   : > { %4978 = vmatpush3.bf16.msra.mxu0 %v5365_v29  ;;  %v5721_v29 = vadd.s32 112, %v5569_v24 }
  0x33   : > { %4657 = vmatprep.subr.bf16.mxu0 %v5375_v57 }
  0x34   : > { %7344 = vst [vmem:[#allocation5_spill] sm:$0xff] %v5721_v29  ;;  %v7399_v29 = vmov 0 }
  0x35   : > { %4948 = vmatmul.mubr.msk.bf16.gmra.mrb[16].mxu0 %vm447_vm1, %v5351_v15  ;;  %v7400_v29 = vsel %vm6065_vm8, 4294967295, %v7399_v29 }
  0x36   : > { %4951 = vmatprep.mubr.msk.bf16.mxu0 %vm447_vm1, %v5352_v16  ;;  %v5701_v16 = vadd.s32 32, %v5569_v24  ;;  %7401 = vst [vmem:[#allocation25_spill] sm:$0xff] %v7400_v29 }
  0x3d   : > { %4952 = vmatmul.mubr.msk.bf16.gmra.mrb[20].mxu0 %vm447_vm1, %v5353_v17 }
  0x3e   : > { %4955 = vmatprep.mubr.msk.bf16.mxu0 %vm447_vm1, %v5354_v18  ;;  %v5705_v18 = vadd.s32 48, %v5569_v24 }
  0x45   : > { %4956 = vmatmul.mubr.msk.bf16.gmra.mrb[24].mxu0 %vm447_vm1, %v5355_v19  ;;  %v7351_v19 = vmov 0 }
  0x46   : > { %4959 = vmatprep.mubr.msk.bf16.mxu0 %vm447_vm1, %v5356_v20  ;;  %v5709_v20 = vadd.s32 64, %v5569_v24  ;;  %v7352_v19 = vsel %vm5784_vm7, 4294967295, %v7351_v19 }
  0x47   : > { %7353 = vst [vmem:[#allocation8_spill] sm:$0xff] %v7352_v19 }
  0x4d   : > { %4960 = vmatmul.mubr.msk.bf16.gmra.mrb[28].mxu0 %vm447_vm1, %v5357_v21 }
  0xe8   : > { %v4933_v45 = vpop.f32.mrb[0].mxu0 }
  0xe9   : > { %v543_v46 = vadd.f32 %v4933_v45, %v5727_v43  ;;  %v534_v50 = vpop.f32.mrb[1].mxu0 }
  0xea   : > { %v535_v53 = vadd.f32 %v5727_v43, %v534_v50  ;;  %v4934_v54 = vpop.f32.mrb[2].mxu0  ;;  %v5855_v50 = vld [vmem:[%s7213_s3 + $0x48] sm:$0xff]  }
  0xeb   : > { %v663_v57 = vmax.f32 %v543_v46, 0.0  ;;  %v546_v59 = vadd.f32 %v4934_v54, %v5727_v43  ;;  %v537_v60 = vpop.f32.mrb[3].mxu0 }
  0xec   : > { %v5736_v63 = vmax.f32 %v535_v53, 0.0  ;;  %v538_v3 = vadd.f32 %v5727_v43, %v537_v60 }
  0xed   : > { %v5741_v4 = vmax.f32 %v546_v59, 0.0  ;;  %v1144_v7 = vrot.slane %v663_v57, 7  ;;  %v1337_v45 = vrot.slane %v663_v57, 1 }
  0xee   : > { %v662_v46 = vmax.f32 %v538_v3, 0.0  ;;  %v7218_v53 = vrot.slane %v5736_v63, 7  ;;  %v7217_v28 = vrot.slane %v5736_v63, 1 }
  0xef   : > { %v1145_v54 = vrot.slane %v5741_v4, 7  ;;  %v1338_v59 = vrot.slane %v5741_v4, 1  ;;  %v5759_v26 = vpack.c.bf16 %v5741_v4, %v663_v57  ;;  %v5771_v57 = vadd.s32 144, %v5569_v24 }
  0xf0   : > { %v1143_v60 = vrot.slane %v662_v46, 7  ;;  %v1336_v62 = vrot.slane %v662_v46, 1  ;;  %v4937_v3 = vpop.f32.mrb[4].mxu0  ;;  %v5763_v30 = vpack.c.bf16 %v662_v46, %v5736_v63 }
  0xf1   : > { %v1396_v31 = vsel %vm7274_vm2, %v1337_v45, %v1338_v59  ;;  %v559_v42 = vadd.f32 %v4937_v3, %v5727_v43  ;;  %v550_v27 = vpop.f32.mrb[5].mxu0  ;;  %v1203_v23 = vsel %vm7281_vm3, %v1144_v7, %v1145_v54  ;;  %7350 = vst [vmem:[#allocation7_spill] sm:$0xff] %v5771_v57 }
  0xf2   : > { %v551_v4 = vadd.f32 %v5727_v43, %v550_v27  ;;  %v4938_v21 = vpop.f32.mrb[6].mxu0  ;;  %1922 = vmatprep.mubr.bf16.mxu1 %v5763_v30  ;;  %v1397_v46 = vsel %vm7274_vm2, %v1336_v62, %v1337_v45  ;;  %v1398_v3 = vsel %vm7274_vm2, %v7217_v28, %v1336_v62  ;;  %v5792_v27 = vsel %vm7281_vm3, %v7218_v53, %v1143_v60 }
  0xf3   : > { %v667_v45 = vmax.f32 %v559_v42, 0.0  ;;  %v562_v17 = vadd.f32 %v4938_v21, %v5727_v43  ;;  %v553_v15 = vpop.f32.mrb[7].mxu0  ;;  %v5795_v14 = vpack.c.bf16 %v1397_v46, %v1398_v3  ;;  %v1204_v62 = vsel %vm7281_vm3, %v1143_v60, %v1144_v7 }
  0xf4   : > { %v665_v6 = vmax.f32 %v551_v4, 0.0  ;;  %v554_v28 = vadd.f32 %v5727_v43, %v553_v15  ;;  %v5800_v11 = vpack.c.bf16 %v1203_v23, %v1204_v62  ;;  %v7361_v3 = vmov 0 }
  0xf5   : > { %7354 = vst [vmem:[#allocation9_spill] sm:$0xff] %v5795_v14  ;;  %v1148_v8 = vrot.slane %v667_v45, 7  ;;  %v5803_v2 = vmax.f32 %v562_v17, 0.0  ;;  %4979 = vmatprep.mubr.msk.bf16.mxu0 %vm5784_vm7, %v5795_v14  ;;  %v1341_v7 = vrot.slane %v667_v45, 1  ;;  %v7362_v3 = vsel %vm5836_vm11, 4294967295, %v7361_v3 }
  0xf6   : > { %v1146_v23 = vrot.slane %v665_v6, 7  ;;  %v1339_v42 = vrot.slane %v665_v6, 1  ;;  %v666_v17 = vmax.f32 %v554_v28, 0.0  ;;  %7363 = vst [vmem:[#allocation10_spill] sm:$0xff] %v7362_v3 }
  0xf7   : > { %v7219_v60 = vrot.slane %v5803_v2, 7  ;;  %v1342_v4 = vrot.slane %v5803_v2, 1  ;;  %v5829_v33 = vpack.c.bf16 %v5803_v2, %v667_v45  ;;  %v7379_v3 = vrot.slane %v5803_v2, 7 }
  0xf8   : > { %v1395_v34 = vsel %vm7274_vm2, %v1338_v59, %v1339_v42  ;;  %v1147_v35 = vrot.slane %v666_v17, 7  ;;  %v1340_v46 = vrot.slane %v666_v17, 1  ;;  %v4941_v28 = vpop.f32.mrb[8].mxu0  ;;  %v5845_v37 = vpack.c.bf16 %v666_v17, %v665_v6 }
  0xf9   : > { %v5847_v45 = vpack.c.bf16 %v1395_v34, %v1396_v31  ;;  %v575_v59 = vadd.f32 %v4941_v28, %v5727_v43  ;;  %v566_v62 = vpop.f32.mrb[9].mxu0  ;;  %v1392_v10 = vsel %vm7274_vm2, %v1341_v7, %v1342_v4  ;;  %v1202_v53 = vsel %vm7281_vm3, %v1145_v54, %v1146_v23 }
  0xfa   : > { %v567_v0 = vadd.f32 %v5727_v43, %v566_v62  ;;  %v4942_v6 = vpop.f32.mrb[10].mxu0  ;;  %v1393_v31 = vsel %vm7274_vm2, %v1340_v46, %v1341_v7  ;;  %v1394_v17 = vsel %vm7274_vm2, %v1339_v42, %v1340_v46  ;;  %v7365_v34 = vmov 0 }
  0xfb   : > { %7364 = vst [vmem:[#allocation11_spill] sm:$0xff] %v5847_v45  ;;  %v7366_v34 = vsel %vm5867_vm12, 4294967295, %v7365_v34  ;;  %v1201_v28 = vsel %vm7281_vm3, %v1146_v23, %v1147_v35  ;;  %v671_v54 = vmax.f32 %v575_v59, 0.0  ;;  %v578_v62 = vadd.f32 %v4942_v6, %v5727_v43  ;;  %v569_v58 = vpop.f32.mrb[11].mxu0  ;;  %4980 = vmatmul.mubr.msk.bf16.vlgmr.msra.gmra.mrb[32].mxu0 %vm5836_vm11, %v5847_v45  ;;  %v5886_v23 = vld [vmem:[%s7213_s3 + $0x8] sm:$0xff]  }
  0xfc   : > { %7367 = vst [vmem:[#allocation12_spill] sm:$0xff] %v7366_v34  ;;  %v5877_v7 = vpack.c.bf16 %v1393_v31, %v1394_v17  ;;  %v5879_v42 = vpack.c.bf16 %v1201_v28, %v1202_v53  ;;  %v669_v21 = vmax.f32 %v567_v0, 0.0  ;;  %v570_v46 = vadd.f32 %v5727_v43, %v569_v58  ;;  %4658 = vmatpush3.bf16.msra.mxu0 %v5843_v36  ;;  %v5909_v0 = vld [vmem:[%s7213_s3 + $0x50] sm:$0xff]  }
  0xfd   : > { %v1199_v59 = vsel %vm7281_vm3, %v1148_v8, %v7219_v60  ;;  %v1200_v6 = vsel %vm7281_vm3, %v1147_v35, %v1148_v8  ;;  %v1152_v53 = vrot.slane %v671_v54, 7  ;;  %v5894_v31 = vmax.f32 %v578_v62, 0.0  ;;  %4659 = vmatprep.subr.bf16.mxu0 %v5855_v50 }
  0xfe   : > { %7368 = vst [vmem:[#allocation13_spill] sm:$0xff] %v5877_v7  ;;  %4983 = vmatprep.mubr.msk.bf16.mxu0 %vm5867_vm12, %v5877_v7  ;;  %v5911_v8 = vpack.c.bf16 %v1199_v59, %v1200_v6  ;;  %v1345_v35 = vrot.slane %v671_v54, 1  ;;  %v1150_v17 = vrot.slane %v669_v21, 7  ;;  %v1343_v28 = vrot.slane %v669_v21, 1  ;;  %v5953_v7 = vld [vmem:[%s7213_s3 + $0x58] sm:$0xff]  }
  0xff   : > { %v670_v62 = vmax.f32 %v570_v46, 0.0  ;;  %v1346_v38 = vrot.slane %v5894_v31, 1  ;;  %v5922_v49 = vpack.c.bf16 %v5894_v31, %v671_v54  ;;  %v5925_v59 = vadd.s32 160, %v5569_v24 }
 0x100   : > { %v4945_v60 = vpop.f32.mrb[12].mxu0  ;;  %v1391_v46 = vsel %vm7274_vm2, %v1342_v4, %v1343_v28  ;;  %4660 = vmatpush3.bf16.msra.mxu0 %v5886_v23  ;;  %v7380_v45 = vmov 0  ;;  %v7398_v51 = vrot.slane %v5894_v31, 7 }
 0x101   : > { %7373 = vst [vmem:[#allocation14_spill] sm:$0xff] %v5922_v49  ;;  %7374 = vst [vmem:[#allocation15_spill] sm:$0xff] %v5925_v59  ;;  %v1151_v6 = vrot.slane %v670_v62, 7  ;;  %v1344_v47 = vrot.slane %v670_v62, 1  ;;  %v5942_v54 = vpack.c.bf16 %v670_v62, %v669_v21  ;;  %v591_v55 = vadd.f32 %v4945_v60, %v5727_v43  ;;  %v582_v34 = vpop.f32.mrb[13].mxu0  ;;  %4661 = vmatprep.subr.bf16.mxu0 %v5909_v0  ;;  %v6051_v59 = vld [vmem:[%s7213_s3 + $0x68] sm:$0xff]  }
 0x102   : > { %v5945_v4 = vpack.c.bf16 %v1391_v46, %v1392_v10  ;;  %v1388_v15 = vsel %vm7274_vm2, %v1345_v35, %v1346_v38  ;;  %v1198_v21 = vsel %vm7281_vm3, %v7379_v3, %v1150_v17  ;;  %v583_v60 = vadd.f32 %v5727_v43, %v582_v34  ;;  %v4946_v62 = vpop.f32.mrb[14].mxu0 }
 0x103   : > { %v1389_v10 = vsel %vm7274_vm2, %v1344_v47, %v1345_v35  ;;  %v1390_v46 = vsel %vm7274_vm2, %v1343_v28, %v1344_v47  ;;  %v7381_v45 = vsel %vm5967_vm0, 4294967295, %v7380_v45  ;;  %v1197_v2 = vsel %vm7281_vm3, %v1150_v17, %v1151_v6  ;;  %v585_v19 = vpop.f32.mrb[15].mxu0 }
 0x104   : > { %7378 = vst [vmem:[#allocation17_spill] sm:$0xff] %v5945_v4  ;;  %7382 = vst [vmem:[#allocation18_spill] sm:$0xff] %v7381_v45  ;;  %v675_v3 = vmax.f32 %v591_v55, 0.0  ;;  %v594_v34 = vadd.f32 %v4946_v62, %v5727_v43  ;;  %4984 = vmatmul.mubr.msk.bf16.gmra.mrb[36].mxu0 %vm5932_vm15, %v5945_v4  ;;  %v5977_v35 = vpack.c.bf16 %v1389_v10, %v1390_v46  ;;  %v673_v32 = vmax.f32 %v583_v60, 0.0  ;;  %v5986_v55 = vld [vmem:[%s7213_s3 + $0x18] sm:$0xff]  }
 0x105   : > { %v5979_v47 = vpack.c.bf16 %v1197_v2, %v1198_v21  ;;  %v586_v28 = vadd.f32 %v5727_v43, %v585_v19  ;;  %4662 = vmatpush3.bf16.msra.mxu0 %v5940_v41  ;;  %v7384_v17 = vrot.slane %v5894_v31, 7  ;;  %v1196_v10 = vsel %vm7281_vm3, %v1151_v6, %v1152_v53  ;;  %v6009_v2 = vld [vmem:[%s7213_s3 + $0x60] sm:$0xff]  }
 0x106   : > { %7383 = vst [vmem:[#allocation19_spill] sm:$0xff] %v5977_v35  ;;  %v1156_v21 = vrot.slane %v675_v3, 7  ;;  %v5994_v46 = vmax.f32 %v594_v34, 0.0  ;;  %4987 = vmatprep.mubr.msk.bf16.mxu0 %vm5967_vm0, %v5977_v35  ;;  %v7385_v19 = vand.u32 15, %v5615_v44  ;;  %4663 = vmatprep.subr.bf16.mxu0 %v5953_v7  ;;  %v1349_v6 = vrot.slane %v675_v3, 1 }
 0x107   : > { %v1195_v62 = vsel %vm7281_vm3, %v1152_v53, %v7384_v17  ;;  %v1154_v34 = vrot.slane %v673_v32, 7  ;;  %v1347_v17 = vrot.slane %v673_v32, 1  ;;  %v674_v45 = vmax.f32 %v586_v28, 0.0 }
 0x108   : > { %vm6001_vm1 = vcmp.ne.s32.totalorder %v7385_v19, 15  ;;  %v6011_v53 = vpack.c.bf16 %v1195_v62, %v1196_v10  ;;  %v1350_v44 = vrot.slane %v5994_v46, 1  ;;  %v7389_v19 = vand.u32 15, %v5625_v48  ;;  %v4949_v57 = vpop.f32.mrb[16].mxu0 }
 0x109   : > { %v6022_v4 = vpack.c.bf16 %v5994_v46, %v675_v3  ;;  %v1155_v10 = vrot.slane %v674_v45, 7  ;;  %v1348_v14 = vrot.slane %v674_v45, 1  ;;  %v1387_v28 = vsel %vm7274_vm2, %v1346_v38, %v1347_v17  ;;  %4664 = vmatpush3.bf16.msra.mxu0 %v5986_v55  ;;  %v6038_v3 = vld [vmem:[%s7213_s3 + $0x20] sm:$0xff]   ;;  %v598_v35 = vpop.f32.mrb[17].mxu0  ;;  %vm6130_vm13 = vmpackc.low %vm6001_vm1, %vm7272_vm6 }
 0x10a   : > { %7388 = vst [vmem:[#allocation20_spill] sm:$0xff] %v6011_v53  ;;  %vm6017_vm4 = vcmp.ne.s32.totalorder %v7389_v19, 15  ;;  %v7393_v48 = vmov 0  ;;  %v6040_v19 = vpack.c.bf16 %v674_v45, %v673_v32  ;;  %v607_v62 = vadd.f32 %v4949_v57, %v5727_v43  ;;  %4665 = vmatprep.subr.bf16.mxu0 %v6009_v2  ;;  %v4950_v32 = vpop.f32.mrb[18].mxu0 }
 0x10b   : > { %7392 = vst [vmem:[#allocation21_spill] sm:$0xff] %v6022_v4  ;;  %v7394_v48 = vsel %vm6030_vm5, 4294967295, %v7393_v48  ;;  %v6043_v38 = vpack.c.bf16 %v1387_v28, %v1388_v15  ;;  %v1384_v58 = vsel %vm7274_vm2, %v1349_v6, %v1350_v44  ;;  %v1194_v45 = vsel %vm7281_vm3, %v7398_v51, %v1154_v34  ;;  %v601_v4 = vpop.f32.mrb[19].mxu0  ;;  %vm6165_vm14 = vmpackc.low %vm6017_vm4, %vm7272_vm6 }
 0x10c   : > { %7395 = vst [vmem:[#allocation22_spill] sm:$0xff] %v7394_v48  ;;  %7396 = vst [vmem:[#allocation23_spill] sm:$0xff] %v6040_v19  ;;  %v599_v57 = vadd.f32 %v5727_v43, %v598_v35  ;;  %v1385_v15 = vsel %vm7274_vm2, %v1348_v14, %v1349_v6  ;;  %v1386_v28 = vsel %vm7274_vm2, %v1347_v17, %v1348_v14  ;;  %v679_v51 = vmax.f32 %v607_v62, 0.0 }
 0x10d   : > { %7397 = vst [vmem:[#allocation24_spill] sm:$0xff] %v6043_v38  ;;  %v1193_v31 = vsel %vm7281_vm3, %v1154_v34, %v1155_v10  ;;  %v610_v35 = vadd.f32 %v4950_v32, %v5727_v43  ;;  %4988 = vmatmul.mubr.msk.bf16.gmra.mrb[40].mxu0 %vm6030_vm5, %v6043_v38  ;;  %v6075_v6 = vpack.c.bf16 %v1385_v15, %v1386_v28  ;;  %v6084_v34 = vld [vmem:[%s7213_s3 + $0x28] sm:$0xff]   ;;  %v7404_v62 = vrot.slane %v5994_v46, 7 }
 0x10e   : > { %v6077_v14 = vpack.c.bf16 %v1193_v31, %v1194_v45  ;;  %v677_v39 = vmax.f32 %v599_v57, 0.0  ;;  %v602_v17 = vadd.f32 %v5727_v43, %v601_v4  ;;  %4666 = vmatpush3.bf16.msra.mxu0 %v6038_v3  ;;  %v1192_v15 = vsel %vm7281_vm3, %v1155_v10, %v1156_v21  ;;  %v6107_v31 = vld [vmem:[%s7213_s3 + $0x70] sm:$0xff]  }
 0x10f   : > { %7402 = vst [vmem:[#allocation26_spill] sm:$0xff] %v6075_v6  ;;  %v1191_v32 = vsel %vm7281_vm3, %v1156_v21, %v7404_v62  ;;  %v1160_v45 = vrot.slane %v679_v51, 7  ;;  %v6092_v28 = vmax.f32 %v610_v35, 0.0  ;;  %4991 = vmatprep.mubr.msk.bf16.mxu0 %vm6065_vm8, %v6075_v6  ;;  %v7405_v4 = vand.u32 15, %v5635_v52  ;;  %4667 = vmatprep.subr.bf16.mxu0 %v6051_v59 }
 0x110   : > { %7403 = vst [vmem:[#allocation27_spill] sm:$0xff] %v6077_v14  ;;  %v6109_v21 = vpack.c.bf16 %v1191_v32, %v1192_v15  ;;  %v6112_v10 = vadd.s32 176, %v5569_v24  ;;  %v1158_v35 = vrot.slane %v677_v39, 7  ;;  %v1351_v62 = vrot.slane %v677_v39, 1  ;;  %v4953_v14 = vpop.f32.mrb[20].mxu0 }
 0x111   : > { %vm6099_vm9 = vcmp.ne.s32.totalorder %v7405_v4, 15  ;;  %v678_v29 = vmax.f32 %v602_v17, 0.0  ;;  %v1353_v52 = vrot.slane %v679_v51, 1  ;;  %v1354_v6 = vrot.slane %v6092_v28, 1 }
 0x112   : > { %7408 = vst [vmem:[#allocation28_spill] sm:$0xff] %v6109_v21  ;;  %7409 = vst [vmem:[#allocation29_spill] sm:$0xff] %v6112_v10  ;;  %v7410_v48 = vand.u32 15, %v5645_v56  ;;  %v6123_v32 = vpack.c.bf16 %v6092_v28, %v679_v51  ;;  %v1383_v17 = vsel %vm7274_vm2, %v1350_v44, %v1351_v62  ;;  %v7414_v4 = vmov 0  ;;  %4668 = vmatpush3.bf16.msra.mxu0 %v6084_v34  ;;  %v6138_v56 = vld [vmem:[%s7213_s3 + $0x30] sm:$0xff]  }
 0x113   : > { %v1159_v15 = vrot.slane %v678_v29, 7  ;;  %v1352_v21 = vrot.slane %v678_v29, 1  ;;  %v7415_v4 = vsel %vm6130_vm13, 4294967295, %v7414_v4  ;;  %v623_v51 = vadd.f32 %v4953_v14, %v5727_v43  ;;  %4669 = vmatprep.subr.bf16.mxu0 %v6107_v31  ;;  %vm6225_vm4 = vmpackc.low %vm6099_vm9, %vm7272_vm6 }
 0x114   : > { %vm6118_vm10 = vcmp.ne.s32.totalorder %v7410_v48, 15  ;;  %7413 = vst [vmem:[#allocation30_spill] sm:$0xff] %v6123_v32  ;;  %7416 = vst [vmem:[#allocation31_spill] sm:$0xff] %v7415_v4  ;;  %v6140_v48 = vpack.c.bf16 %v678_v29, %v677_v39  ;;  %v614_v32 = vpop.f32.mrb[21].mxu0  ;;  %v6143_v44 = vpack.c.bf16 %v1383_v17, %v1384_v58  ;;  %v1380_v60 = vsel %vm7274_vm2, %v1353_v52, %v1354_v6 }
 0x115   : > { %v7419_v19 = vrot.slane %v5994_v46, 7  ;;  %v615_v14 = vadd.f32 %v5727_v43, %v614_v32  ;;  %v4954_v39 = vpop.f32.mrb[22].mxu0  ;;  %v1381_v58 = vsel %vm7274_vm2, %v1352_v21, %v1353_v52  ;;  %v1382_v17 = vsel %vm7274_vm2, %v1351_v62, %v1352_v21  ;;  %vm6250_vm9 = vmpackc.low %vm6118_vm10, %vm7272_vm6 }
 0x116   : > { %7417 = vst [vmem:[#allocation32_spill] sm:$0xff] %v6140_v48  ;;  %7418 = vst [vmem:[#allocation33_spill] sm:$0xff] %v6143_v44  ;;  %v7420_v48 = vmov 0  ;;  %v1189_v46 = vsel %vm7281_vm3, %v1158_v35, %v1159_v15  ;;  %v626_v32 = vadd.f32 %v4954_v39, %v5727_v43  ;;  %v617_v53 = vpop.f32.mrb[23].mxu0  ;;  %4992 = vmatmul.mubr.msk.bf16.gmra.mrb[44].mxu0 %vm6130_vm13, %v6143_v44  ;;  %v6175_v52 = vpack.c.bf16 %v1381_v58, %v1382_v17 }
 0x117   : > { %v1190_v29 = vsel %vm7281_vm3, %v7419_v19, %v1158_v35  ;;  %v7421_v48 = vsel %vm6165_vm14, 4294967295, %v7420_v48  ;;  %v683_v19 = vmax.f32 %v623_v51, 0.0  ;;  %v681_v40 = vmax.f32 %v615_v14, 0.0  ;;  %4670 = vmatpush3.bf16.msra.mxu0 %v6138_v56  ;;  %v6184_v35 = vld [vmem:[%s7213_s3 + $0x38] sm:$0xff]  }
 0x118   : > { %7422 = vst [vmem:[#allocation34_spill] sm:$0xff] %v7421_v48  ;;  %7423 = vst [vmem:[#allocation35_spill] sm:$0xff] %v6175_v52  ;;  %v6177_v21 = vpack.c.bf16 %v1189_v46, %v1190_v29  ;;  %v618_v62 = vadd.f32 %v5727_v43, %v617_v53  ;;  %v7425_v51 = vrot.slane %v6092_v28, 7  ;;  %v1188_v58 = vsel %vm7281_vm3, %v1159_v15, %v1160_v45  ;;  %v4957_v49 = vpop.f32.mrb[24].mxu0 }
 0x119   : > { %v1164_v29 = vrot.slane %v683_v19, 7  ;;  %v1357_v17 = vrot.slane %v683_v19, 1  ;;  %v6192_v14 = vmax.f32 %v626_v32, 0.0  ;;  %4995 = vmatprep.mubr.msk.bf16.mxu0 %vm6165_vm14, %v6175_v52  ;;  %v7426_v53 = vand.u32 15, %v5658_v61  ;;  %4671 = vmatprep.subr.bf16.mxu0 %v6151_v25  ;;  %v630_v48 = vpop.f32.mrb[25].mxu0 }
 0x11a   : > { %7424 = vst [vmem:[#allocation36_spill] sm:$0xff] %v6177_v21  ;;  %v1187_v39 = vsel %vm7281_vm3, %v1160_v45, %v7425_v51  ;;  %v6207_v45 = vld [vmem:[%s7213_s3 + $0x80] sm:$0xff]   ;;  %v1162_v32 = vrot.slane %v681_v40, 7  ;;  %v1355_v51 = vrot.slane %v681_v40, 1  ;;  %v682_v4 = vmax.f32 %v618_v62, 0.0 }
 0x11b   : > { %vm6199_vm1 = vcmp.ne.s32.totalorder %v7426_v53, 15  ;;  %v6209_v15 = vpack.c.bf16 %v1187_v39, %v1188_v58  ;;  %v1358_v53 = vrot.slane %v6192_v14, 1  ;;  %v6215_v52 = vpack.c.bf16 %v6192_v14, %v683_v19  ;;  %4672 = vmatpush3.bf16.msra.mxu0 %v6184_v35 }
 0x11c   : > { %v6218_v44 = vadd.s32 192, %v5569_v24  ;;  %v1163_v21 = vrot.slane %v682_v4, 7  ;;  %v1356_v22 = vrot.slane %v682_v4, 1  ;;  %v1379_v39 = vsel %vm7274_vm2, %v1354_v6, %v1355_v51  ;;  %5011 = vmatprep.subr.bf16.mxu0 %v6207_v45 }
 0x11d   : > { %7429 = vst [vmem:[#allocation37_spill] sm:$0xff] %v6209_v15  ;;  %7430 = vst [vmem:[#allocation38_spill] sm:$0xff] %v6215_v52  ;;  %v7432_v62 = vmov 0  ;;  %v6230_v19 = vpack.c.bf16 %v682_v4, %v681_v40  ;;  %v639_v58 = vadd.f32 %v4957_v49, %v5727_v43  ;;  %v6233_v61 = vpack.c.bf16 %v1379_v39, %v1380_v60  ;;  %v4958_v15 = vpop.f32.mrb[26].mxu0 }
 0x11e   : > { %7431 = vst [vmem:[#allocation39_spill] sm:$0xff] %v6218_v44  ;;  %v7433_v62 = vsel %vm6225_vm4, 4294967295, %v7432_v62  ;;  %v1376_v10 = vsel %vm7274_vm2, %v1357_v17, %v1358_v53  ;;  %v7437_v6 = vrot.slane %v6092_v28, 7  ;;  %v631_v52 = vadd.f32 %v5727_v43, %v630_v48  ;;  %v633_v39 = vpop.f32.mrb[27].mxu0 }
 0x11f   : > { %7434 = vst [vmem:[#allocation40_spill] sm:$0xff] %v7433_v62  ;;  %7435 = vst [vmem:[#allocation41_spill] sm:$0xff] %v6230_v19  ;;  %v1377_v4 = vsel %vm7274_vm2, %v1356_v22, %v1357_v17  ;;  %v1378_v49 = vsel %vm7274_vm2, %v1355_v51, %v1356_v22  ;;  %v7438_v60 = vmov 0  ;;  %v1185_v28 = vsel %vm7281_vm3, %v1162_v32, %v1163_v21  ;;  %4996 = vmatmul.mubr.msk.bf16.gmra.mrb[48].mxu0 %vm6225_vm4, %v6233_v61 }
 0x120   : > { %7436 = vst [vmem:[#allocation42_spill] sm:$0xff] %v6233_v61  ;;  %v1186_v57 = vsel %vm7281_vm3, %v7437_v6, %v1162_v32  ;;  %v7439_v60 = vsel %vm6250_vm9, 4294967295, %v7438_v60  ;;  %v6256_v40 = vmax.f32 %v639_v58, 0.0  ;;  %v642_v48 = vadd.f32 %v4958_v15, %v5727_v43  ;;  %v4961_v62 = vpop.f32.mrb[28].mxu0 }
 0x121   : > { %7440 = vst [vmem:[#allocation43_spill] sm:$0xff] %v7439_v60  ;;  %v6262_v22 = vpack.c.bf16 %v1377_v4, %v1378_v49  ;;  %v6264_v17 = vpack.c.bf16 %v1185_v28, %v1186_v57  ;;  %v685_v38 = vmax.f32 %v631_v52, 0.0  ;;  %v634_v51 = vadd.f32 %v5727_v43, %v633_v39 }
 0x122   : > { %v7443_v6 = vrot.slane %v6192_v14, 7  ;;  %v6271_v58 = vmax.f32 %v642_v48, 0.0  ;;  %v7444_v15 = vand.u32 15, %v5668_v1  ;;  %v7447_v52 = vand.u32 15, %v5678_v5 }
 0x123   : > { %7441 = vst [vmem:[#allocation44_spill] sm:$0xff] %v6262_v22  ;;  %7442 = vst [vmem:[#allocation45_spill] sm:$0xff] %v6264_v17  ;;  %4999 = vmatprep.mubr.msk.bf16.mxu0 %vm6250_vm9, %v6262_v22  ;;  %v1184_v49 = vsel %vm7281_vm3, %v1163_v21, %v1164_v29  ;;  %v1361_v28 = vrot.slane %v6256_v40, 1  ;;  %v1166_v48 = vrot.slane %v685_v38, 7  ;;  %v1359_v39 = vrot.slane %v685_v38, 1 }
 0x124   : > { %v1183_v32 = vsel %vm7281_vm3, %v1164_v29, %v7443_v6  ;;  %vm6278_vm10 = vcmp.ne.s32.totalorder %v7444_v15, 15  ;;  %vm6284_vm6 = vcmp.ne.s32.totalorder %v7447_v52, 15  ;;  %v686_v6 = vmax.f32 %v634_v51, 0.0 }
 0x125   : > { %v7450_v1 = vand.u32 15, %v5569_v24  ;;  %v1362_v52 = vrot.slane %v6271_v58, 1  ;;  %v6299_v60 = vpack.c.bf16 %v1183_v32, %v1184_v49  ;;  %vm7454_vm3 = vcmp.lt.s32.totalorder %v5569_v24, 7  ;;  %v646_v49 = vpop.f32.mrb[29].mxu0 }
 0x126   : > { %v1167_v21 = vrot.slane %v686_v6, 7  ;;  %v1360_v29 = vrot.slane %v686_v6, 1  ;;  %v1375_v51 = vsel %vm7454_vm3, %v1358_v53, %v1359_v39  ;;  %vm7455_vm9 = vmmov 1   ;;  %vm7461_vm14 = vmmov %vm7454_vm3  ;;  %v4962_v53 = vpop.f32.mrb[30].mxu0 }
 0x127   : > { %vm6293_vm2 = vcmp.ne.s32.totalorder %v7450_v1, 0  ;;  %7453 = vst [vmem:[#allocation46_spill] sm:$0xff] %v6299_v60  ;;  %vm6307_vm4 = vmpackc.low %vm6199_vm1, %vm7455_vm9  ;;  %v7456_v1 = vmov 0  ;;  %v6311_v5 = vpack.c.bf16 %v686_v6, %v685_v38  ;;  %v655_v32 = vadd.f32 %v4961_v62, %v5727_v43 }
 0x128   : > { %v7457_v1 = vsel %vm6307_vm4, 4294967295, %v7456_v1  ;;  %v6314_v61 = vpack.c.bf16 %v1375_v51, %v1376_v10  ;;  %v1372_v22 = vsel %vm7461_vm14, %v1361_v28, %v1362_v52  ;;  %v647_v44 = vadd.f32 %v5727_v43, %v646_v49  ;;  %vm7462_vm1 = vmmov %vm7454_vm3  ;;  %v649_v51 = vpop.f32.mrb[31].mxu0 }
 0x129   : > { %7458 = vst [vmem:[#allocation47_spill] sm:$0xff] %v7457_v1  ;;  %7459 = vst [vmem:[#allocation48_spill] sm:$0xff] %v6311_v5  ;;  %v1373_v46 = vsel %vm7454_vm3, %v1360_v29, %v1361_v28  ;;  %v1374_v60 = vsel %vm7462_vm1, %v1359_v39, %v1360_v29  ;;  %v7463_v62 = vmov 0  ;;  %vm7466_vm8 = vcmp.lt.s32.totalorder %v5569_v24, 1 }
 0x12a   : > { %7460 = vst [vmem:[#allocation49_spill] sm:$0xff] %v6314_v61  ;;  %vm6326_vm13 = vmpackc.low %vm6278_vm10, %vm7455_vm9  ;;  %v1181_v10 = vsel %vm7466_vm8, %v1166_v48, %v1167_v21  ;;  %v691_v38 = vmax.f32 %v655_v32, 0.0  ;;  %v658_v6 = vadd.f32 %v4962_v53, %v5727_v43  ;;  %5000 = vmatmul.mubr.msk.bf16.gmra.mrb[52].mxu0 %vm6307_vm4, %v6314_v61  ;;  %v6336_v28 = vpack.c.bf16 %v1373_v46, %v1374_v60 }
 0x12b   : > { %v7464_v62 = vsel %vm6326_vm13, 4294967295, %v7463_v62  ;;  %v7468_v39 = vrot.slane %v6192_v14, 7  ;;  %vm7469_vm14 = vmmov %vm7466_vm8  ;;  %v689_v29 = vmax.f32 %v647_v44, 0.0  ;;  %v650_v49 = vadd.f32 %v5727_v43, %v649_v51  ;;  %v7521_v43 = vld [vmem:[#allocation23_spill] sm:$0xff] }
 0x12c   : > { %7465 = vst [vmem:[#allocation50_spill] sm:$0xff] %v7464_v62  ;;  %7467 = vst [vmem:[#allocation51_spill] sm:$0xff] %v6336_v28  ;;  %v7470_v5 = vand.u32 15, %v5688_v9  ;;  %v1168_v1 = vrot.slane %v6256_v40, 7  ;;  %v1365_v60 = vrot.slane %v691_v38, 1  ;;  %v692_v46 = vmax.f32 %v658_v6, 0.0  ;;  %5003 = vmatprep.mubr.msk.bf16.mxu0 %vm6326_vm13, %v6336_v28 }
 0x12d   : > { %v1182_v4 = vsel %vm7469_vm14, %v7468_v39, %v1166_v48  ;;  %v7473_v44 = vand.u32 15, %v5693_v12  ;;  %v6363_v9 = vpack.c.bf16 %v6271_v58, %v6256_v40  ;;  %v1170_v14 = vrot.slane %v689_v29, 7  ;;  %vm7478_vm3 = vmmov %vm7469_vm14 }
 0x12e   : > { %vm6345_vm8 = vcmp.ne.s32.totalorder %v7470_v5, 15  ;;  %v6349_v53 = vpack.c.bf16 %v1181_v10, %v1182_v4  ;;  %v1363_v48 = vrot.slane %v689_v29, 1  ;;  %v690_v5 = vmax.f32 %v650_v49, 0.0  ;;  %vm7479_vm1 = vmmov %vm7478_vm3 }
 0x12f   : > { %vm6357_vm10 = vcmp.ne.s32.totalorder %v7473_v44, 15  ;;  %v6366_v10 = vadd.s32 208, %v5569_v24  ;;  %v1173_v6 = vrot.slane %v692_v46, 7  ;;  %v1366_v51 = vrot.slane %v692_v46, 1  ;;  %vm6379_vm13 = vmpackc.low %vm6284_vm6, %vm7455_vm9 }
 0x130   : > { %v7477_v39 = vrot.slane %v6271_v58, 7  ;;  %v1180_v4 = vsel %vm7479_vm1, %v1167_v21, %v1168_v1  ;;  %v1171_v44 = vrot.slane %v690_v5, 7  ;;  %v1364_v62 = vrot.slane %v690_v5, 1 }
 0x131   : > { %7476 = vst [vmem:[#allocation52_spill] sm:$0xff] %v6366_v10  ;;  %vm7480_vm14 = vcmp.lt.s32.totalorder %v5569_v24, 7  ;;  %v1172_v10 = vrot.slane %v691_v38, 7  ;;  %v7495_v32 = vrot.slane %v6271_v58, 7  ;;  %v7499_v58 = vand.u32 15, %v5696_v13 }
 0x132   : > { %v1179_v12 = vsel %vm7478_vm3, %v1168_v1, %v7477_v39  ;;  %v1371_v40 = vsel %vm7480_vm14, %v1362_v52, %v1363_v48  ;;  %v7483_v39 = vrot.slane %v5736_v63, 7  ;;  %vm7484_vm3 = vmmov %vm7479_vm1  ;;  %v7488_v1 = vrot.slane %v5736_v63, 1  ;;  %v5407_v52 = vld [vmem:[%s7213_s3 + $0x200] sm:$0xff]  }
 0x133   : > { %v6384_v61 = vpack.c.bf16 %v1371_v40, %v1372_v22  ;;  %vm6393_vm1 = vmpackc.low %vm7455_vm9, %vm6293_vm2  ;;  %v7504_v13 = vmov 0 }
 0x134   : > { %v1206_v21 = vsel %vm7484_vm3, %v1173_v6, %v7483_v39  ;;  %vm7487_vm6 = vmmov %vm7480_vm14 }
 0x135   : > { %v1368_v57 = vsel %vm7487_vm6, %v1365_v60, %v1366_v51  ;;  %vm7489_vm14 = vmmov %vm7487_vm6  ;;  %v4138_v40 = vpack.c.bf16 %v5792_v27, %v1206_v21  ;;  %5004 = vmatmul.mubr.msk.bf16.gmra.mrb[56].mxu0 %vm6379_vm13, %v6384_v61 }
 0x136   : > { %v1399_v22 = vsel %vm7489_vm14, %v1366_v51, %v7488_v1  ;;  %vm7490_vm4 = vmmov %vm7487_vm6  ;;  %vm5285_vm14 = vcmp.ne.s32.totalorder %v7499_v58, 0  ;;  %v7526_v1 = vld [vmem:[#allocation27_spill] sm:$0xff]  ;;  %v7537_v58 = vmov 0 }
 0x137   : > { %v1369_v39 = vsel %vm7490_vm4, %v1364_v62, %v1365_v60  ;;  %vm7491_vm3 = vmmov %vm7490_vm4  ;;  %v6408_v28 = vpack.c.bf16 %v1399_v22, %v1368_v57  ;;  %v6422_v60 = vpack.c.bf16 %v1179_v12, %v1180_v4  ;;  %4139 = vmatmul.mubr.msk.bf16.vlgmr.msra.gmra.mrb[0].mxu1 %vm6393_vm1, %v4138_v40  ;;  %vm7494_vm4 = vcmp.lt.s32.totalorder %v5569_v24, 1  ;;  %v7527_v22 = vld [vmem:[#allocation21_spill] sm:$0xff] }
 0x138   : > { %v1370_v15 = vsel %vm7491_vm3, %v1363_v48, %v1364_v62  ;;  %vm6416_vm2 = vmpackc.low %vm6345_vm8, %vm7455_vm9  ;;  %v6426_v62 = vpack.c.bf16 %v690_v5, %v689_v29  ;;  %v6429_v48 = vadd.s32 224, %v5569_v24  ;;  %v1177_v51 = vsel %vm7494_vm4, %v1170_v14, %v1171_v44  ;;  %5115 = vmatpush3.bf16.msra.mxu1 %v5843_v36  ;;  %1930 = vmatprep.mubr.bf16.mxu1 %v5759_v26 }
 0x139   : > { %v6420_v27 = vpack.c.bf16 %v1369_v39, %v1370_v15  ;;  %vm7496_vm8 = vmmov %vm7494_vm4  ;;  %v6441_v4 = vpack.c.bf16 %v692_v46, %v691_v38  ;;  %v6444_v29 = vadd.s32 240, %v5569_v24  ;;  %5108 = vmatprep.subr.bf16.mxu1 %v5855_v50  ;;  %v7318_v24 = vmov 0  }
 0x13a   : > { %v1178_v21 = vsel %vm7496_vm8, %v7495_v32, %v1170_v14  ;;  %vm7498_vm6 = vmmov %vm7494_vm4  ;;  %v926_v36 = vand.u32 15, %v6429_v48  ;;  %v7506_v50 = vand.u32 15, %v5701_v16  ;;  %v7509_v16 = vand.u32 15, %v5705_v18  ;;  %v5401_v18 = vld [vmem:[%s7213_s3 + $0x98] sm:$0xff]   ;;  %v7534_v32 = vld [vmem:[#allocation32_spill] sm:$0xff] }
 0x13b   : > { %v6439_v12 = vpack.c.bf16 %v1177_v51, %v1178_v21  ;;  %7497 = vst [vmem:[#allocation53_spill] sm:$0xff] %v6441_v4  ;;  %v1175_v5 = vsel %vm7498_vm6, %v1172_v10, %v1173_v6  ;;  %5007 = vmatprep.mubr.msk.bf16.mxu0 %vm6416_vm2, %v6420_v27  ;;  %vm7500_vm3 = vmmov %vm7494_vm4  ;;  %v7502_v6 = vmov 0  ;;  %v7524_v57 = vmov 0  ;;  %v7533_v51 = vld [vmem:[#allocation28_spill] sm:$0xff]  ;;  %v7535_v21 = vld [vmem:[#allocation6_spill] sm:$0xff] }
 0x13c   : > { %v1176_v38 = vsel %vm7500_vm3, %v1171_v44, %v1172_v10  ;;  %vm6463_vm4 = vmpackc.low %vm6357_vm10, %vm7455_vm9  ;;  %5116 = vmatpush3.bf16.msra.mxu1 %v5886_v23  ;;  %vm5286_vm10 = vcmp.ne.s32.totalorder %v7506_v50, 0  ;;  %v7507_v23 = vmov 0  ;;  %v7522_v10 = vld [vmem:[#allocation4_spill] sm:$0xff]  ;;  %v7530_v15 = vmov 0  ;;  %v7541_v50 = vld [vmem:[#allocation30_spill] sm:$0xff] }
 0x13d   : > { %v6458_v14 = vpack.c.bf16 %v1175_v5, %v1176_v38  ;;  %v7503_v6 = vsel %vm6463_vm4, 4294967295, %v7502_v6  ;;  %vm6468_vm8 = vmpackc.low %vm7455_vm9, %vm5285_vm14  ;;  %5109 = vmatprep.subr.bf16.mxu1 %v5909_v0  ;;  %5008 = vmatmul.mubr.msk.bf16.gmra.mrb[60].mxu0 %vm6463_vm4, %v6408_v28  ;;  %v5399_v0 = vld [vmem:[%s7213_s3 + $0x88] sm:$0xff]   ;;  %vm5287_vm14 = vcmp.ne.s32.totalorder %v7509_v16, 0  ;;  %v7523_v44 = vand.u32 15, %v7522_v10 }
 0x13e   : > { %v7505_v13 = vsel %vm6468_vm8, 4294967295, %v7504_v13  ;;  %2388 = vmatprep.mubr.bf16.mxu0 %v7318_v24  ;;  %vm6487_vm6 = vmpackc.low %vm7455_vm9, %vm5286_vm10  ;;  %v7536_v5 = vand.u32 15, %v7535_v21  ;;  %v7540_v38 = vld [vmem:[#allocation36_spill] sm:$0xff] }
 0x13f   : > { %7501 = vst [vmem:[#allocation54_spill] sm:$0xff] %v6458_v14  ;;  %4143 = vmatmul.mubr.msk.bf16.gmra.mrb[4].mxu1 %vm6468_vm8, %v5800_v11  ;;  %v7508_v23 = vsel %vm6487_vm6, 4294967295, %v7507_v23  ;;  %vm6511_vm3 = vmpackc.low %vm7455_vm9, %vm5287_vm14  ;;  %v7559_v10 = vld [vmem:[#allocation48_spill] sm:$0xff] }
 0x140   : > { %1938 = vmatprep.mubr.bf16.mxu1 %v5845_v37  ;;  %5117 = vmatpush3.bf16.msra.mxu1 %v5940_v41  ;;  %v7510_v41 = vmov 0  ;;  %v5409_v21 = vld [vmem:[%s7213_s3 + $0x208] sm:$0xff]  }
 0x141   : > { %5110 = vmatprep.subr.bf16.mxu1 %v5953_v7  ;;  %v5400_v7 = vld [vmem:[%s7213_s3 + $0x90] sm:$0xff]   ;;  %v7511_v41 = vsel %vm6511_vm3, 4294967295, %v7510_v41  ;;  %v7580_v48 = vld [vmem:[#allocation24_spill] sm:$0xff] }
 0x144   : > { %5118 = vmatpush3.bf16.msra.mxu1 %v5986_v55  ;;  %v5402_v55 = vld [vmem:[%s7213_s3 + $0xa0] sm:$0xff]  }
 0x145   : > { %5111 = vmatprep.subr.bf16.mxu1 %v6009_v2  ;;  %2389 = vmatmul.mubr.bf16.vlgmr.msra.gmra.mrb[64].mxu0 %v7318_v24  ;;  %v7513_v2 = vmov 0 }
 0x146   : > { %2396 = vmatprep.mubr.bf16.mxu0 %v5763_v30  ;;  %5012 = vmatpush3.bf16.msra.mxu0 %v6207_v45  ;;  %v7512_v30 = vand.u32 15, %v5709_v20  ;;  %v5403_v20 = vld [vmem:[%s7213_s3 + $0xa8] sm:$0xff]  }
 0x147   : > { %4147 = vmatmul.mubr.msk.bf16.gmra.mrb[8].mxu1 %vm6487_vm6, %v5879_v42  ;;  %5013 = vmatprep.subr.bf16.mxu0 %v5399_v0  ;;  %v7520_v45 = vld [vmem:[#allocation20_spill] sm:$0xff] }
 0x148   : > { %1946 = vmatprep.mubr.bf16.mxu1 %v5829_v33  ;;  %5119 = vmatpush3.bf16.msra.mxu1 %v6038_v3  ;;  %vm5288_vm10 = vcmp.ne.s32.totalorder %v7512_v30, 0  ;;  %v7516_v3 = vld [vmem:[#allocation3_spill] sm:$0xff] }
 0x149   : > { %5112 = vmatprep.subr.bf16.mxu1 %v6051_v59  ;;  %v5406_v59 = vld [vmem:[%s7213_s3 + $0x1c0] sm:$0xff]  }
 0x14a   : > { %5014 = vmatpush3.bf16.msra.mxu0 %v5399_v0  ;;  %v7542_v0 = vld [vmem:[#allocation7_spill] sm:$0xff] }
 0x14b   : > { %5015 = vmatprep.subr.bf16.mxu0 %v5400_v7  ;;  %v7543_v16 = vand.u32 15, %v7542_v0  ;;  %v7548_v30 = vld [vmem:[#allocation15_spill] sm:$0xff]  ;;  %v7574_v0 = vld [vmem:[#allocation17_spill] sm:$0xff] }
 0x14c   : > { %5120 = vmatpush3.bf16.msra.mxu1 %v6084_v34  ;;  %v7517_v34 = vand.u32 15, %v7516_v3  ;;  %v7554_v3 = vld [vmem:[#allocation29_spill] sm:$0xff] }
 0x14d   : > { %5113 = vmatprep.subr.bf16.mxu1 %v6107_v31  ;;  %4267 = vmatmul.mubr.msk.bf16.gmra.mrb[68].mxu0 %vm6393_vm1, %v4138_v40  ;;  %vm6538_vm1 = vmpackc.low %vm7455_vm9, %vm5288_vm10  ;;  %v5404_v31 = vld [vmem:[%s7213_s3 + $0xb0] sm:$0xff]  }
 0x14e   : > { %2404 = vmatprep.mubr.bf16.mxu0 %v5759_v26  ;;  %5016 = vmatpush3.bf16.msra.mxu0 %v5400_v7  ;;  %v7514_v2 = vsel %vm6538_vm1, 4294967295, %v7513_v2  ;;  %vm5289_vm14 = vcmp.ne.s32.totalorder %v7517_v34, 0  ;;  %v7528_v40 = vld [vmem:[#allocation5_spill] sm:$0xff]  ;;  %v7544_v7 = vmov 0  ;;  %v7555_v34 = vand.u32 15, %v7554_v3 }
 0x14f   : > { %4151 = vmatmul.mubr.msk.bf16.gmra.mrb[12].mxu1 %vm6511_vm3, %v5911_v8  ;;  %5017 = vmatprep.subr.bf16.mxu0 %v5401_v18  ;;  %vm6560_vm10 = vmpackc.low %vm7455_vm9, %vm5289_vm14  ;;  %vm5290_vm14 = vcmp.ne.s32.totalorder %v7523_v44, 0  ;;  %v7529_v39 = vand.u32 15, %v7528_v40  ;;  %v7560_v44 = vld [vmem:[#allocation39_spill] sm:$0xff] }
 0x150   : > { %1954 = vmatprep.mubr.bf16.mxu1 %v5942_v54  ;;  %5121 = vmatpush3.bf16.msra.mxu1 %v6138_v56  ;;  %v7518_v56 = vmov 0  ;;  %vm6581_vm4 = vmpackc.low %vm7455_vm9, %vm5290_vm14  ;;  %v7561_v40 = vand.u32 15, %v7560_v44 }
 0x151   : > { %5114 = vmatprep.subr.bf16.mxu1 %v6151_v25  ;;  %v7515_v25 = vld [vmem:[#allocation14_spill] sm:$0xff]  ;;  %v7519_v56 = vsel %vm6560_vm10, 4294967295, %v7518_v56  ;;  %v7525_v57 = vsel %vm6581_vm4, 4294967295, %v7524_v57  ;;  %vm5291_vm14 = vcmp.ne.s32.totalorder %v7529_v39, 0 }
 0x152   : > { %5018 = vmatpush3.bf16.msra.mxu0 %v5401_v18  ;;  %v7547_v18 = vld [vmem:[#allocation37_spill] sm:$0xff] }
 0x153   : > { %5019 = vmatprep.subr.bf16.mxu0 %v5402_v55 }
 0x154   : > { %5122 = vmatpush3.bf16.msra.mxu1 %v6184_v35  ;;  %v5405_v35 = vld [vmem:[%s7213_s3 + $0xb8] sm:$0xff]  }
 0x155   : > { %4793 = vmatprep.subr.bf16.mxu1 %v5406_v59  ;;  %4271 = vmatmul.mubr.msk.bf16.gmra.mrb[72].mxu0 %vm6468_vm8, %v5800_v11  ;;  %v7549_v59 = vand.u32 15, %v7548_v30 }
 0x156   : > { %2412 = vmatprep.mubr.bf16.mxu0 %v5845_v37  ;;  %5020 = vmatpush3.bf16.msra.mxu0 %v5402_v55  ;;  %v7550_v55 = vmov 0 }
 0x157   : > { %4155 = vmatmul.mubr.msk.bf16.gmra.mrb[16].mxu1 %vm6538_vm1, %v5979_v47  ;;  %5021 = vmatprep.subr.bf16.mxu0 %v5403_v20 }
 0x158   : > { %1962 = vmatprep.mubr.bf16.mxu1 %v7515_v25 }
 0x15a   : > { %5022 = vmatpush3.bf16.msra.mxu0 %v5403_v20  ;;  %v7553_v20 = vld [vmem:[#allocation38_spill] sm:$0xff] }
 0x15b   : > { %5023 = vmatprep.subr.bf16.mxu0 %v5404_v31 }
 0x15d   : > { %4275 = vmatmul.mubr.msk.bf16.gmra.mrb[76].mxu0 %vm6487_vm6, %v5879_v42  ;;  %vm6596_vm6 = vmpackc.low %vm7455_vm9, %vm5291_vm14 }
 0x15e   : > { %2420 = vmatprep.mubr.bf16.mxu0 %v5829_v33  ;;  %5024 = vmatpush3.bf16.msra.mxu0 %v5404_v31  ;;  %v7531_v15 = vsel %vm6596_vm6, 4294967295, %v7530_v15 }
 0x15f   : > { %4159 = vmatmul.mubr.msk.bf16.gmra.mrb[20].mxu1 %vm6560_vm10, %v7520_v45  ;;  %5025 = vmatprep.subr.bf16.mxu0 %v5405_v35  ;;  %7532 = vst [vmem:[#allocation14_spill] sm:$0xff] %v7531_v15  ;;  %v5410_v15 = vld [vmem:[%s7213_s3 + $0x1c8] sm:$0xff]  }
 0x160   : > { %1970 = vmatprep.mubr.bf16.mxu1 %v7521_v43 }
 0x162   : > { %5026 = vmatpush3.bf16.msra.mxu0 %v5405_v35  ;;  %v7558_v35 = vld [vmem:[#allocation46_spill] sm:$0xff] }
 0x163   : > { %5059 = vmatprep.subr.bf16.mxu0 %v5407_v52 }
 0x165   : > { %4279 = vmatmul.mubr.msk.bf16.gmra.mrb[80].mxu0 %vm6511_vm3, %v5911_v8  ;;  %vm5292_vm3 = vcmp.ne.s32.totalorder %v7536_v5, 0  ;;  %v7564_v5 = vld [vmem:[#allocation9_spill] sm:$0xff] }
 0x166   : > { %2428 = vmatprep.mubr.bf16.mxu0 %v5942_v54  ;;  %vm6611_vm14 = vmpackc.low %vm7455_vm9, %vm5292_vm3  ;;  %v7619_v46 = vld [vmem:[#allocation14_spill] sm:$0xff] }
 0x167   : > { %4163 = vmatmul.mubr.msk.bf16.gmra.mrb[24].mxu1 %vm6581_vm4, %v7526_v1  ;;  %v7538_v58 = vsel %vm6611_vm14, 4294967295, %v7537_v58 }
 0x168   : > { %1978 = vmatprep.mubr.bf16.mxu1 %v7527_v22  ;;  %7539 = vst [vmem:[#allocation3_spill] sm:$0xff] %v7538_v58  ;;  %v5421_v58 = vld [vmem:[%s7213_s3 + $0x230] sm:$0xff]  }
 0x16d   : > { %4283 = vmatmul.mubr.msk.bf16.gmra.mrb[84].mxu0 %vm6538_vm1, %v5979_v47  ;;  %vm5293_vm1 = vcmp.ne.s32.totalorder %v7543_v16, 0  ;;  %v7566_v16 = vld [vmem:[#allocation11_spill] sm:$0xff] }
 0x16e   : > { %2436 = vmatprep.mubr.bf16.mxu0 %v7515_v25  ;;  %vm6626_vm3 = vmpackc.low %vm7455_vm9, %vm5293_vm1 }
 0x16f   : > { %4167 = vmatmul.mubr.msk.bf16.gmra.mrb[28].mxu1 %vm6596_vm6, %v7533_v51  ;;  %v7545_v7 = vsel %vm6626_vm3, 4294967295, %v7544_v7 }
 0x170   : > { %1986 = vmatprep.mubr.bf16.mxu1 %v7534_v32  ;;  %7546 = vst [vmem:[#allocation20_spill] sm:$0xff] %v7545_v7  ;;  %v5415_v7 = vld [vmem:[%s7213_s3 + $0x190] sm:$0xff]  }
 0x175   : > { %4287 = vmatmul.mubr.msk.bf16.gmra.mrb[88].mxu0 %vm6560_vm10, %v7520_v45  ;;  %vm5294_vm10 = vcmp.ne.s32.totalorder %v7549_v59, 0  ;;  %v7568_v59 = vld [vmem:[#allocation52_spill] sm:$0xff] }
 0x176   : > { %2444 = vmatprep.mubr.bf16.mxu0 %v7521_v43  ;;  %vm6641_vm1 = vmpackc.low %vm7455_vm9, %vm5294_vm10  ;;  %v7569_v3 = vand.u32 15, %v7568_v59 }
 0x177   : > { %4171 = vmatmul.mubr.msk.bf16.gmra.mrb[32].mxu1 %vm6611_vm14, %v7540_v38  ;;  %v7551_v55 = vsel %vm6641_vm1, 4294967295, %v7550_v55 }
 0x178   : > { %1994 = vmatprep.mubr.bf16.mxu1 %v7541_v50  ;;  %7552 = vst [vmem:[#allocation23_spill] sm:$0xff] %v7551_v55  ;;  %v5422_v55 = vld [vmem:[%s7213_s3 + $0x1a0] sm:$0xff]  }
 0x17d   : > { %4291 = vmatmul.mubr.msk.bf16.gmra.mrb[92].mxu0 %vm6581_vm4, %v7526_v1  ;;  %vm5295_vm4 = vcmp.ne.s32.totalorder %v7555_v34, 0  ;;  %v5412_v34 = vld [vmem:[%s7213_s3 + $0x210] sm:$0xff]  }
 0x17e   : > { %2452 = vmatprep.mubr.bf16.mxu0 %v7527_v22  ;;  %vm6656_vm10 = vmpackc.low %vm7455_vm9, %vm5295_vm4  ;;  %v7602_v22 = vld [vmem:[#allocation47_spill] sm:$0xff] }
 0x17f   : > { %4175 = vmatmul.mubr.msk.bf16.gmra.mrb[36].mxu1 %vm6626_vm3, %v7547_v18 }
 0x180   : > { %2002 = vmatprep.mubr.bf16.mxu1 %v6230_v19 }
 0x185   : > { %4295 = vmatmul.mubr.msk.bf16.gmra.mrb[96].mxu0 %vm6596_vm6, %v7533_v51  ;;  %vm5296_vm6 = vcmp.ne.s32.totalorder %v7561_v40, 0  ;;  %v5414_v40 = vld [vmem:[%s7213_s3 + $0x218] sm:$0xff]   ;;  %v7592_v51 = vld [vmem:[#allocation35_spill] sm:$0xff] }
 0x186   : > { %2460 = vmatprep.mubr.bf16.mxu0 %v7534_v32  ;;  %vm6671_vm4 = vmpackc.low %vm7455_vm9, %vm5296_vm6  ;;  %vm5297_vm6 = vcmp.ne.s32.totalorder %v7569_v3, 0  ;;  %v7587_v32 = vld [vmem:[#allocation25_spill] sm:$0xff]  ;;  %v7636_v3 = vld [vmem:[#allocation54_spill] sm:$0xff] }
 0x187   : > { %4179 = vmatmul.mubr.msk.bf16.gmra.mrb[40].mxu1 %vm6641_vm1, %v6264_v17 }
 0x188   : > { %2010 = vmatprep.mubr.bf16.mxu1 %v7553_v20 }
 0x18d   : > { %4299 = vmatmul.mubr.msk.bf16.gmra.mrb[100].mxu0 %vm6611_vm14, %v7540_v38  ;;  %v7583_v38 = vmov 0 }
 0x18e   : > { %5027 = vmatprep.mubr.bf16.mxu0 %v7318_v24  ;;  %v5419_v24 = vld [vmem:[%s7213_s3 + $0x228] sm:$0xff]  }
 0x18f   : > { %4183 = vmatmul.mubr.msk.bf16.gmra.mrb[44].mxu1 %vm6656_vm10, %v7558_v35 }
 0x190   : > { %2018 = vmatprep.mubr.bf16.mxu1 %v7559_v10 }
 0x195   : > { %5028 = vmatmul.mubr.msk.bf16.vlgmr.msra.gmra.mrb[32].mxu0 %vm5784_vm7, %v7564_v5  ;;  %vm6694_vm7 = vmpackc.low %vm7455_vm9, %vm5297_vm6  ;;  %vm5298_vm6 = vcmp.ne.s32.totalorder %v926_v36, 0  ;;  %v7581_v36 = vld [vmem:[#allocation22_spill] sm:$0xff] }
 0x196   : > { %5031 = vmatprep.mubr.msk.bf16.mxu0 %vm5836_vm11, %v7566_v16  ;;  %5060 = vmatpush3.bf16.msra.mxu0 %v5407_v52  ;;  %v7572_v52 = vld [vmem:[#allocation13_spill] sm:$0xff]  ;;  %vm6717_vm14 = vmpackc.low %vm7455_vm9, %vm5298_vm6 }
 0x197   : > { %4187 = vmatmul.mubr.msk.bf16.gmra.mrb[48].mxu1 %vm6671_vm4, %v6349_v53  ;;  %5061 = vmatprep.subr.bf16.mxu0 %v5409_v21 }
 0x198   : > { %2026 = vmatprep.mubr.bf16.mxu1 %v6363_v9 }
 0x19a   : > { %5062 = vmatpush3.bf16.msra.mxu0 %v5409_v21  ;;  %v5416_v21 = vld [vmem:[%s7213_s3 + $0x220] sm:$0xff]  }
 0x19b   : > { %5063 = vmatprep.subr.bf16.mxu0 %v5412_v34 }
 0x19d   : > { %5032 = vmatmul.mubr.msk.bf16.gmra.mrb[36].mxu0 %vm5867_vm12, %v7572_v52 }
 0x19e   : > { %5035 = vmatprep.mubr.msk.bf16.mxu0 %vm5932_vm15, %v7574_v0  ;;  %5064 = vmatpush3.bf16.msra.mxu0 %v5412_v34  ;;  %v7578_v34 = vld [vmem:[#allocation19_spill] sm:$0xff] }
 0x19f   : > { %4191 = vmatmul.mubr.msk.bf16.gmra.mrb[52].mxu1 %vm6694_vm7, %v6422_v60  ;;  %5065 = vmatprep.subr.bf16.mxu0 %v5414_v40 }
 0x1a0   : > { %2034 = vmatprep.mubr.bf16.mxu1 %v6426_v62 }
 0x1a2   : > { %5066 = vmatpush3.bf16.msra.mxu0 %v5414_v40  ;;  %v7582_v40 = vand.u32 15, %v6444_v29  ;;  %v7589_v29 = vld [vmem:[#allocation33_spill] sm:$0xff] }
 0x1a3   : > { %5067 = vmatprep.subr.bf16.mxu0 %v5416_v21 }
 0x1a4   : > { %vm5299_vm6 = vcmp.ne.s32.totalorder %v7582_v40, 0  ;;  %v7590_v40 = vld [vmem:[#allocation31_spill] sm:$0xff] }
 0x1a5   : > { %5036 = vmatmul.mubr.msk.bf16.gmra.mrb[40].mxu0 %vm5967_vm0, %v7578_v34  ;;  %vm6740_vm8 = vmpackc.low %vm7455_vm9, %vm5299_vm6  ;;  %vm7591_vm9 = vnez %v7590_v40 }
 0x1a6   : > { %5039 = vmatprep.mubr.msk.bf16.mxu0 %vm6030_vm5, %v7580_v48  ;;  %5068 = vmatpush3.bf16.msra.mxu0 %v5416_v21  ;;  %v7584_v38 = vsel %vm6740_vm8, 4294967295, %v7583_v38  ;;  %v7586_v21 = vld [vmem:[#allocation26_spill] sm:$0xff]  ;;  %vm7588_vm5 = vnez %v7587_v32 }
 0x1a7   : > { %4195 = vmatmul.mubr.msk.bf16.gmra.mrb[56].mxu1 %vm6717_vm14, %v6439_v12  ;;  %5069 = vmatprep.subr.bf16.mxu0 %v5419_v24  ;;  %7585 = vst [vmem:[#allocation4_spill] sm:$0xff] %v7584_v38  ;;  %v7593_v38 = vld [vmem:[#allocation34_spill] sm:$0xff] }
 0x1a8   : > { %2042 = vmatprep.mubr.bf16.mxu1 %v6441_v4  ;;  %v5423_v4 = vld [vmem:[%s7213_s3 + $0x238] sm:$0xff]   ;;  %vm7594_vm6 = vnez %v7593_v38  ;;  %v7622_v38 = vld [vmem:[#allocation36_spill] sm:$0xff] }
 0x1aa   : > { %5070 = vmatpush3.bf16.msra.mxu0 %v5419_v24  ;;  %v5408_v24 = vld [vmem:[%s7213_s3 + $0x180] sm:$0xff]  }
 0x1ab   : > { %5071 = vmatprep.subr.bf16.mxu0 %v5421_v58 }
 0x1ad   : > { %5040 = vmatmul.mubr.msk.bf16.gmra.mrb[44].mxu0 %vm7588_vm5, %v7586_v21 }
 0x1ae   : > { %5043 = vmatprep.mubr.msk.bf16.mxu0 %vm7591_vm9, %v7589_v29  ;;  %5072 = vmatpush3.bf16.msra.mxu0 %v5421_v58  ;;  %v7596_v58 = vld [vmem:[#allocation40_spill] sm:$0xff] }
 0x1af   : > { %4199 = vmatmul.mubr.msk.bf16.gmra.mrb[60].mxu1 %vm6740_vm8, %v6458_v14  ;;  %5073 = vmatprep.subr.bf16.mxu0 %v5423_v4  ;;  %v7595_v14 = vld [vmem:[#allocation42_spill] sm:$0xff]  ;;  %vm7597_vm8 = vnez %v7596_v58 }
 0x1b0   : > { %2468 = vmatprep.mubr.bf16.mxu1 %v7541_v50  ;;  %v5413_v50 = vld [vmem:[%s7213_s3 + $0x1d0] sm:$0xff]  }
 0x1b2   : > { %5074 = vmatpush3.bf16.msra.mxu0 %v5423_v4  ;;  %v5411_v4 = vld [vmem:[%s7213_s3 + $0x188] sm:$0xff]  }
 0x1b5   : > { %5044 = vmatmul.mubr.msk.bf16.gmra.mrb[48].mxu0 %vm7594_vm6, %v7592_v51 }
 0x1b6   : > { %5047 = vmatprep.mubr.msk.bf16.mxu0 %vm7597_vm8, %v7595_v14  ;;  %vm7603_vm8 = vnez %v7602_v22 }
 0x1b7   : > { %4303 = vmatmul.mubr.msk.bf16.vlgmr.msra.gmra.mrb[64].mxu1 %vm6626_vm3, %v7547_v18  ;;  %v7599_v18 = vld [vmem:[#allocation43_spill] sm:$0xff] }
 0x1b8   : > { %4794 = vmatpush3.bf16.msra.mxu1 %v5408_v24  ;;  %2476 = vmatprep.mubr.bf16.mxu1 %v6230_v19  ;;  %v5417_v24 = vld [vmem:[%s7213_s3 + $0x1d8] sm:$0xff]   ;;  %v7598_v19 = vld [vmem:[#allocation44_spill] sm:$0xff]  ;;  %vm7600_vm3 = vnez %v7599_v18  ;;  %v7623_v18 = vld [vmem:[#allocation3_spill] sm:$0xff] }
 0x1b9   : > { %4795 = vmatprep.subr.bf16.mxu1 %v5410_v15  ;;  %v7601_v15 = vld [vmem:[#allocation49_spill] sm:$0xff] }
 0x1bc   : > { %4796 = vmatpush3.bf16.msra.mxu1 %v5411_v4  ;;  %v5420_v4 = vld [vmem:[%s7213_s3 + $0x1e0] sm:$0xff]  }
 0x1bd   : > { %4797 = vmatprep.subr.bf16.mxu1 %v5413_v50  ;;  %5048 = vmatmul.mubr.msk.bf16.gmra.mrb[52].mxu0 %vm7600_vm3, %v7598_v19  ;;  %v5418_v50 = vld [vmem:[%s7213_s3 + $0x198] sm:$0xff]  }
 0x1be   : > { %5051 = vmatprep.mubr.msk.bf16.mxu0 %vm7603_vm8, %v7601_v15 }
 0x1bf   : > { %4307 = vmatmul.mubr.msk.bf16.gmra.mrb[68].mxu1 %vm6641_vm1, %v6264_v17  ;;  %v7605_v17 = vld [vmem:[#allocation50_spill] sm:$0xff] }
 0x1c0   : > { %2484 = vmatprep.mubr.bf16.mxu1 %v7553_v20  ;;  %4798 = vmatpush3.bf16.msra.mxu1 %v5415_v7  ;;  %v5424_v20 = vld [vmem:[%s7213_s3 + $0x1e8] sm:$0xff]   ;;  %v7604_v7 = vld [vmem:[#allocation51_spill] sm:$0xff]  ;;  %vm7606_vm1 = vnez %v7605_v17 }
 0x1c1   : > { %4799 = vmatprep.subr.bf16.mxu1 %v5417_v24  ;;  %v5425_v24 = vld [vmem:[%s7213_s3 + $0x1a8] sm:$0xff]  }
 0x1c4   : > { %4800 = vmatpush3.bf16.msra.mxu1 %v5418_v50  ;;  %v5426_v50 = vld [vmem:[%s7213_s3 + $0x1f0] sm:$0xff]  }
 0x1c5   : > { %4801 = vmatprep.subr.bf16.mxu1 %v5420_v4  ;;  %5052 = vmatmul.mubr.msk.bf16.gmra.mrb[56].mxu0 %vm7606_vm1, %v7604_v7  ;;  %v5427_v4 = vld [vmem:[%s7213_s3 + $0x1b0] sm:$0xff]  }
 0x1c6   : > { %5055 = vmatprep.mubr.msk.bf16.mxu0 %vm6379_vm13, %v6384_v61 }
 0x1c7   : > { %4311 = vmatmul.mubr.msk.bf16.gmra.mrb[72].mxu1 %vm6656_vm10, %v7558_v35 }
 0x1c8   : > { %2492 = vmatprep.mubr.bf16.mxu1 %v7559_v10  ;;  %4802 = vmatpush3.bf16.msra.mxu1 %v5422_v55  ;;  %v5428_v10 = vld [vmem:[%s7213_s3 + $0x1f8] sm:$0xff]  }
 0x1c9   : > { %4803 = vmatprep.subr.bf16.mxu1 %v5424_v20  ;;  %v5429_v55 = vld [vmem:[%s7213_s3 + $0x1b8] sm:$0xff]  }
 0x1ca   : > { %v7625_v20 = vld [vmem:[#allocation30_spill] sm:$0xff] }
 0x1cc   : > { %4804 = vmatpush3.bf16.msra.mxu1 %v5425_v24  ;;  %v7629_v24 = vld [vmem:[#allocation41_spill] sm:$0xff] }
 0x1cd   : > { %4805 = vmatprep.subr.bf16.mxu1 %v5426_v50  ;;  %5056 = vmatmul.mubr.msk.bf16.gmra.mrb[60].mxu0 %vm6416_vm2, %v6420_v27 }
 0x1ce   : > { %5075 = vmatprep.mubr.msk.bf16.mxu0 %vm5836_vm11, %v7566_v16  ;;  %vm7607_vm11 = vnez %v7581_v36 }
 0x1cf   : > { %4315 = vmatmul.mubr.msk.bf16.gmra.mrb[76].mxu1 %vm6671_vm4, %v6349_v53 }
 0x1d0   : > { %2500 = vmatprep.mubr.bf16.mxu1 %v6363_v9  ;;  %4806 = vmatpush3.bf16.msra.mxu1 %v5427_v4 }
 0x1d1   : > { %4807 = vmatprep.subr.bf16.mxu1 %v5428_v10 }
 0x1d4   : > { %4808 = vmatpush3.bf16.msra.mxu1 %v5429_v55 }
 0x1d5   : > { %5076 = vmatmul.mubr.msk.bf16.vlgmr.msra.gmra.mrb[32].mxu0 %vm5867_vm12, %v7572_v52  ;;  %vm7608_vm12 = vnez %v7505_v13 }
 0x1d6   : > { %5079 = vmatprep.mubr.msk.bf16.mxu0 %vm5932_vm15, %v7574_v0  ;;  %vm7609_vm15 = vnez %v7508_v23 }
 0x1d7   : > { %4319 = vmatmul.mubr.msk.bf16.gmra.mrb[80].mxu1 %vm6694_vm7, %v6422_v60 }
 0x1d8   : > { %2508 = vmatprep.mubr.bf16.mxu1 %v6426_v62 }
 0x1dd   : > { %5080 = vmatmul.mubr.msk.bf16.gmra.mrb[36].mxu0 %vm5967_vm0, %v7578_v34  ;;  %vm7610_vm0 = vnez %v7596_v58 }
 0x1de   : > { %5083 = vmatprep.mubr.msk.bf16.mxu0 %vm7607_vm11, %v7580_v48 }
 0x1df   : > { %4323 = vmatmul.mubr.msk.bf16.gmra.mrb[84].mxu1 %vm6717_vm14, %v6439_v12 }
 0x1e0   : > { %2951 = vmatprep.mubr.bf16.mxu1 %v5759_v26 }
 0x1e5   : > { %5084 = vmatmul.mubr.msk.bf16.gmra.mrb[40].mxu0 %vm7588_vm5, %v7586_v21  ;;  %vm7611_vm5 = vnez %v7511_v41 }
 0x1e6   : > { %5087 = vmatprep.mubr.msk.bf16.mxu0 %vm7591_vm9, %v7589_v29  ;;  %vm7612_vm9 = vnez %v7514_v2 }
 0x1e7   : > { %4387 = vmatmul.mubr.msk.bf16.vlgmr.msra.gmra.mrb[88].mxu1 %vm7608_vm12, %v5800_v11 }
 0x1e8   : > { %2959 = vmatprep.mubr.bf16.mxu1 %v5845_v37 }
 0x1ed   : > { %5088 = vmatmul.mubr.msk.bf16.gmra.mrb[44].mxu0 %vm7594_vm6, %v7592_v51 }
 0x1ee   : > { %5091 = vmatprep.mubr.msk.bf16.mxu0 %vm7610_vm0, %v7595_v14  ;;  %v7621_v14 = vld [vmem:[#allocation32_spill] sm:$0xff] }
 0x1ef   : > { %4391 = vmatmul.mubr.msk.bf16.gmra.mrb[92].mxu1 %vm7609_vm15, %v5879_v42 }
 0x1f0   : > { %2967 = vmatprep.mubr.bf16.mxu1 %v5829_v33 }
 0x1f5   : > { %5092 = vmatmul.mubr.msk.bf16.gmra.mrb[48].mxu0 %vm7600_vm3, %v7598_v19  ;;  %vm7614_vm3 = vnez %v7503_v6 }
 0x1f6   : > { %5095 = vmatprep.mubr.msk.bf16.mxu0 %vm7603_vm8, %v7601_v15  ;;  %vm7613_vm8 = vnez %v7519_v56  ;;  %v7626_v15 = vld [vmem:[#allocation37_spill] sm:$0xff] }
 0x1f7   : > { %4395 = vmatmul.mubr.msk.bf16.gmra.mrb[96].mxu1 %vm7611_vm5, %v5911_v8 }
 0x1f8   : > { %2975 = vmatprep.mubr.bf16.mxu1 %v5942_v54  ;;  %v7615_v54 = vmov 0  }
 0x1fd   : > { %5096 = vmatmul.mubr.msk.bf16.gmra.mrb[52].mxu0 %vm7606_vm1, %v7604_v7  ;;  %vm7624_vm1 = vnez %v7623_v18  ;;  %v7627_v7 = vld [vmem:[#allocation20_spill] sm:$0xff] }
 0x1fe   : > { %5099 = vmatprep.mubr.msk.bf16.mxu0 %vm6379_vm13, %v6384_v61  ;;  %vm7616_vm13 = vnez %v7525_v57  ;;  %vm7628_vm6 = vnez %v7627_v7 }
 0x1ff   : > { %4399 = vmatmul.mubr.msk.bf16.gmra.mrb[100].mxu1 %vm7612_vm9, %v5979_v47  ;;  %v7617_v47 = vld [vmem:[#allocation21_spill] sm:$0xff] }
 0x200   : > { %2983 = vmatprep.mubr.bf16.mxu1 %v7515_v25 }
 0x205   : > { %5100 = vmatmul.mubr.msk.bf16.gmra.mrb[56].mxu0 %vm6416_vm2, %v6420_v27  ;;  %v7618_v27 = vld [vmem:[#allocation28_spill] sm:$0xff]  ;;  %vm7620_vm2 = vnez %v7619_v46 }
 0x206   : > { %5103 = vmatprep.mubr.msk.bf16.mxu0 %vm7614_vm3, %v6408_v28 }
 0x207   : > { %4403 = vmatmul.mubr.msk.bf16.gmra.mrb[104].mxu1 %vm7613_vm8, %v7520_v45 }
 0x208   : > { %2991 = vmatprep.mubr.bf16.mxu1 %v7521_v43 }
 0x20a   : > { %v4537_v11 = vpop.f32.mrb[0].mxu1 }
 0x20b   : > { %v4538_v26 = vpop.f32.mrb[1].mxu1 }
 0x20c   : > { %v4539_v33 = vadd.f32 %v4538_v26, %v4537_v11  ;;  %v4540_v37 = vpop.f32.mrb[2].mxu1 }
 0x20d   : > { %v4541_v42 = vpop.f32.mrb[3].mxu1  ;;  %5104 = vmatmul.mubr.bf16.gmra.mrb[60].mxu0 %v7615_v54 }
 0x20e   : > { %v4542_v8 = vadd.f32 %v4541_v42, %v4540_v37 }
 0x20f   : > { %4407 = vmatmul.mubr.msk.bf16.gmra.mrb[108].mxu1 %vm7616_vm13, %v7526_v1 }
 0x210   : > { %2999 = vmatprep.mubr.bf16.mxu1 %v7617_v47 }
 0x212   : > { %v4543_v61 = vpop.f32.mrb[4].mxu1 }
 0x213   : > { %v4544_v19 = vpop.f32.mrb[5].mxu1 }
 0x214   : > { %v4545_v17 = vadd.f32 %v4544_v19, %v4543_v61  ;;  %v4546_v28 = vpop.f32.mrb[6].mxu1 }
 0x215   : > { %v4547_v49 = vpop.f32.mrb[7].mxu1 }
 0x216   : > { %v4548_v63 = vadd.f32 %v4547_v49, %v4546_v28  ;;  %v7630_v49 = vld [vmem:[#allocation45_spill] sm:$0xff] }
 0x217   : > { %4411 = vmatmul.mubr.msk.bf16.gmra.mrb[112].mxu1 %vm7620_vm2, %v7618_v27  ;;  %v7633_v27 = vld [vmem:[#allocation38_spill] sm:$0xff] }
 0x218   : > { %3007 = vmatprep.mubr.bf16.mxu1 %v7621_v14  ;;  %v4673_v6 = vpop.f32.mrb[64].mxu0 }
 0x219   : > { %v4674_v23 = vpop.f32.mrb[65].mxu0 }
 0x21a   : > { %v4549_v13 = vpop.f32.mrb[8].mxu1  ;;  %v4675_v41 = vadd.f32 %v4674_v23, %v4673_v6  ;;  %v4676_v25 = vpop.f32.mrb[66].mxu0 }
 0x21b   : > { %v4550_v2 = vpop.f32.mrb[9].mxu1  ;;  %v4677_v43 = vpop.f32.mrb[67].mxu0 }
 0x21c   : > { %v4551_v56 = vadd.f32 %v4550_v2, %v4549_v13  ;;  %v4552_v45 = vpop.f32.mrb[10].mxu1  ;;  %v6921_v57 = vadd.f32 %v4675_v41, %v4539_v33  ;;  %v4678_v1 = vadd.f32 %v4677_v43, %v4676_v25 }
 0x21d   : > { %v4553_v22 = vpop.f32.mrb[11].mxu1 }
 0x21e   : > { %v4554_v51 = vadd.f32 %v4553_v22, %v4552_v45  ;;  %v6923_v32 = vadd.f32 %v4678_v1, %v4542_v8 }
 0x21f   : > { %4415 = vmatmul.mubr.msk.bf16.gmra.mrb[116].mxu1 %vm7624_vm1, %v7622_v38  ;;  %v7634_v38 = vld [vmem:[#allocation48_spill] sm:$0xff] }
 0x220   : > { %3015 = vmatprep.mubr.bf16.mxu1 %v7625_v20  ;;  %v4679_v10 = vpop.f32.mrb[68].mxu0 }
 0x221   : > { %v4680_v30 = vpop.f32.mrb[69].mxu0 }
 0x222   : > { %v4555_v16 = vpop.f32.mrb[12].mxu1  ;;  %v4681_v52 = vadd.f32 %v4680_v30, %v4679_v10  ;;  %v4682_v0 = vpop.f32.mrb[70].mxu0 }
 0x223   : > { %v4556_v5 = vpop.f32.mrb[13].mxu1  ;;  %v4683_v48 = vpop.f32.mrb[71].mxu0 }
 0x224   : > { %v4557_v59 = vadd.f32 %v4556_v5, %v4555_v16  ;;  %v4558_v34 = vpop.f32.mrb[14].mxu1  ;;  %v6929_v36 = vadd.f32 %v4681_v52, %v4545_v17  ;;  %v4684_v21 = vadd.f32 %v4683_v48, %v4682_v0 }
 0x225   : > { %v4559_v29 = vpop.f32.mrb[15].mxu1 }
 0x226   : > { %v4560_v40 = vadd.f32 %v4559_v29, %v4558_v34  ;;  %v6931_v58 = vadd.f32 %v4684_v21, %v4548_v63  ;;  %v7631_v63 = vld [vmem:[#allocation23_spill] sm:$0xff] }
 0x227   : > { %4419 = vmatmul.mubr.msk.bf16.gmra.mrb[120].mxu1 %vm7628_vm6, %v7626_v15  ;;  %vm7632_vm11 = vnez %v7631_v63 }
 0x228   : > { %3023 = vmatprep.mubr.bf16.mxu1 %v7629_v24  ;;  %v4685_v50 = vpop.f32.mrb[72].mxu0 }
 0x229   : > { %v4686_v55 = vpop.f32.mrb[73].mxu0 }
 0x22a   : > { %v4561_v4 = vpop.f32.mrb[16].mxu1  ;;  %v4687_v11 = vadd.f32 %v4686_v55, %v4685_v50  ;;  %v4688_v33 = vpop.f32.mrb[74].mxu0 }
 0x22b   : > { %v4562_v26 = vpop.f32.mrb[17].mxu1  ;;  %v4689_v8 = vpop.f32.mrb[75].mxu0 }
 0x22c   : > { %v4563_v37 = vadd.f32 %v4562_v26, %v4561_v4  ;;  %v4564_v42 = vpop.f32.mrb[18].mxu1  ;;  %v6937_v47 = vadd.f32 %v4687_v11, %v4551_v56  ;;  %v4690_v61 = vadd.f32 %v4689_v8, %v4688_v33 }
 0x22d   : > { %v4565_v19 = vpop.f32.mrb[19].mxu1 }
 0x22e   : > { %v4566_v17 = vadd.f32 %v4565_v19, %v4564_v42  ;;  %v6939_v28 = vadd.f32 %v4690_v61, %v4554_v51 }
 0x22f   : > { %4423 = vmatmul.mubr.msk.bf16.gmra.mrb[124].mxu1 %vm7632_vm11, %v7630_v49 }
 0x230   : > { %3031 = vmatprep.mubr.bf16.mxu1 %v7633_v27  ;;  %v4691_v46 = vpop.f32.mrb[76].mxu0 }
 0x231   : > { %v4692_v6 = vpop.f32.mrb[77].mxu0 }
 0x232   : > { %v4567_v14 = vpop.f32.mrb[20].mxu1  ;;  %v4693_v13 = vadd.f32 %v4692_v6, %v4691_v46  ;;  %v4694_v41 = vpop.f32.mrb[78].mxu0 }
 0x233   : > { %v4568_v23 = vpop.f32.mrb[21].mxu1  ;;  %v4695_v56 = vpop.f32.mrb[79].mxu0 }
 0x234   : > { %v4569_v2 = vadd.f32 %v4568_v23, %v4567_v14  ;;  %v4570_v25 = vpop.f32.mrb[22].mxu1  ;;  %v6945_v45 = vadd.f32 %v4693_v13, %v4557_v59  ;;  %v4696_v43 = vadd.f32 %v4695_v56, %v4694_v41 }
 0x235   : > { %v4571_v1 = vpop.f32.mrb[23].mxu1 }
 0x236   : > { %v4572_v22 = vadd.f32 %v4571_v1, %v4570_v25  ;;  %v6947_v51 = vadd.f32 %v4696_v43, %v4560_v40 }
 0x237   : > { %4427 = vmatmul.mubr.msk.bf16.gmra.mrb[128].mxu1 %vm6656_vm10, %v7558_v35  ;;  %vm3610_vm10 = vcmask 1040384  }
 0x238   : > { %3039 = vmatprep.mubr.bf16.mxu1 %v7634_v38  ;;  %v4697_v18 = vpop.f32.mrb[80].mxu0 }
 0x239   : > { %v4698_v10 = vpop.f32.mrb[81].mxu0 }
 0x23a   : > { %v4573_v20 = vpop.f32.mrb[24].mxu1  ;;  %v4699_v16 = vadd.f32 %v4698_v10, %v4697_v18  ;;  %v4700_v52 = vpop.f32.mrb[82].mxu0 }
 0x23b   : > { %v4574_v30 = vpop.f32.mrb[25].mxu1  ;;  %v4701_v59 = vpop.f32.mrb[83].mxu0 }
 0x23c   : > { %v4575_v5 = vadd.f32 %v4574_v30, %v4573_v20  ;;  %v4576_v0 = vpop.f32.mrb[26].mxu1  ;;  %v6953_v34 = vadd.f32 %v4699_v16, %v4563_v37  ;;  %v4702_v48 = vadd.f32 %v4701_v59, %v4700_v52 }
 0x23d   : > { %v4577_v21 = vpop.f32.mrb[27].mxu1 }
 0x23e   : > { %v4578_v29 = vadd.f32 %v4577_v21, %v4576_v0  ;;  %v6955_v40 = vadd.f32 %v4702_v48, %v4566_v17 }
 0x23f   : > { %4431 = vmatmul.mubr.msk.bf16.gmra.mrb[132].mxu1 %vm6671_vm4, %v6349_v53 }
 0x240   : > { %3047 = vmatprep.mubr.bf16.mxu1 %v6363_v9  ;;  %v4703_v31 = vpop.f32.mrb[84].mxu0 }
 0x241   : > { %v4704_v15 = vpop.f32.mrb[85].mxu0 }
 0x242   : > { %v4579_v35 = vpop.f32.mrb[28].mxu1  ;;  %v4705_v7 = vadd.f32 %v4704_v15, %v4703_v31  ;;  %v4706_v50 = vpop.f32.mrb[86].mxu0 }
 0x243   : > { %v4580_v24 = vpop.f32.mrb[29].mxu1  ;;  %v4707_v11 = vpop.f32.mrb[87].mxu0 }
 0x244   : > { %v4581_v4 = vadd.f32 %v4580_v24, %v4579_v35  ;;  %v4582_v55 = vpop.f32.mrb[30].mxu1  ;;  %v6961_v26 = vadd.f32 %v4705_v7, %v4569_v2  ;;  %v4708_v33 = vadd.f32 %v4707_v11, %v4706_v50 }
 0x245   : > { %v4583_v37 = vpop.f32.mrb[31].mxu1 }
 0x246   : > { %v4584_v42 = vadd.f32 %v4583_v37, %v4582_v55  ;;  %v6963_v8 = vadd.f32 %v4708_v33, %v4572_v22 }
 0x247   : > { %4435 = vmatmul.mubr.msk.bf16.gmra.mrb[136].mxu1 %vm6694_vm7, %v6422_v60  ;;  %v7635_v60 = vld [vmem:[#allocation53_spill] sm:$0xff] }
 0x248   : > { %3055 = vmatprep.mubr.bf16.mxu1 %v6426_v62  ;;  %v4709_v53 = vpop.f32.mrb[88].mxu0 }
 0x249   : > { %v4710_v39 = vpop.f32.mrb[89].mxu0 }
 0x24a   : > { %v4585_v9 = vpop.f32.mrb[32].mxu1  ;;  %v4711_v61 = vadd.f32 %v4710_v39, %v4709_v53  ;;  %v4712_v17 = vpop.f32.mrb[90].mxu0 }
 0x24b   : > { %v4586_v19 = vpop.f32.mrb[33].mxu1  ;;  %v4713_v27 = vpop.f32.mrb[91].mxu0 }
 0x24c   : > { %v4587_v49 = vadd.f32 %v4586_v19, %v4585_v9  ;;  %v4588_v63 = vpop.f32.mrb[34].mxu1  ;;  %v6969_v46 = vadd.f32 %v4711_v61, %v4575_v5  ;;  %v4714_v14 = vadd.f32 %v4713_v27, %v4712_v17 }
 0x24d   : > { %v4589_v6 = vpop.f32.mrb[35].mxu1 }
 0x24e   : > { %v4590_v13 = vadd.f32 %v4589_v6, %v4588_v63  ;;  %v6971_v23 = vadd.f32 %v4714_v14, %v4578_v29 }
 0x24f   : > { %4439 = vmatmul.mubr.msk.bf16.gmra.mrb[140].mxu1 %vm6717_vm14, %v6439_v12  ;;  %v7637_v12 = vld [vmem:[#allocation4_spill] sm:$0xff] }
 0x250   : > { %3063 = vmatprep.mubr.bf16.mxu1 %v7635_v60  ;;  %v4715_v62 = vpop.f32.mrb[92].mxu0  ;;  %vm7638_vm14 = vnez %v7637_v12 }
 0x251   : > { %v4716_v41 = vpop.f32.mrb[93].mxu0 }
 0x252   : > { %v4591_v44 = vpop.f32.mrb[36].mxu1  ;;  %v4717_v2 = vadd.f32 %v4716_v41, %v4715_v62  ;;  %v4718_v56 = vpop.f32.mrb[94].mxu0 }
 0x253   : > { %v4592_v25 = vpop.f32.mrb[37].mxu1  ;;  %v4719_v22 = vpop.f32.mrb[95].mxu0 }
 0x254   : > { %v4593_v43 = vadd.f32 %v4592_v25, %v4591_v44  ;;  %v4594_v1 = vpop.f32.mrb[38].mxu1  ;;  %v6977_v38 = vadd.f32 %v4717_v2, %v4581_v4  ;;  %v4720_v18 = vadd.f32 %v4719_v22, %v4718_v56 }
 0x255   : > { %v4595_v20 = vpop.f32.mrb[39].mxu1 }
 0x256   : > { %v4596_v10 = vadd.f32 %v4595_v20, %v4594_v1  ;;  %v6979_v16 = vadd.f32 %v4720_v18, %v4584_v42 }
 0x257   : > { %4443 = vmatmul.mubr.msk.bf16.gmra.mrb[144].mxu1 %vm7638_vm14, %v7636_v3 }
 0x258   : > { %3071 = vmatprep.mubr.bf16.mxu1 %v7615_v54  ;;  %v4721_v30 = vpop.f32.mrb[96].mxu0 }
 0x259   : > { %v4722_v5 = vpop.f32.mrb[97].mxu0 }
 0x25a   : > { %v4597_v52 = vpop.f32.mrb[40].mxu1  ;;  %v4723_v0 = vadd.f32 %v4722_v5, %v4721_v30  ;;  %v4724_v48 = vpop.f32.mrb[98].mxu0 }
 0x25b   : > { %v4598_v59 = vpop.f32.mrb[41].mxu1  ;;  %v4725_v31 = vpop.f32.mrb[99].mxu0 }
 0x25c   : > { %v4599_v21 = vadd.f32 %v4598_v59, %v4597_v52  ;;  %v4600_v29 = vpop.f32.mrb[42].mxu1  ;;  %v6985_v35 = vadd.f32 %v4723_v0, %v4587_v49  ;;  %v4726_v15 = vadd.f32 %v4725_v31, %v4724_v48 }
 0x25d   : > { %v4601_v7 = vpop.f32.mrb[43].mxu1 }
 0x25e   : > { %v4602_v24 = vadd.f32 %v4601_v7, %v4600_v29  ;;  %v6987_v50 = vadd.f32 %v4726_v15, %v4590_v13 }
 0x25f   : > { %3072 = vmatmul.mubr.bf16.gmra.mrb[148].mxu1 %v7615_v54 }
 0x260   : > { %v4727_v4 = vpop.f32.mrb[100].mxu0 }
 0x261   : > { %v4728_v11 = vpop.f32.mrb[101].mxu0 }
 0x262   : > { %v4603_v55 = vpop.f32.mrb[44].mxu1  ;;  %v4729_v33 = vadd.f32 %v4728_v11, %v4727_v4  ;;  %v4730_v42 = vpop.f32.mrb[102].mxu0 }
 0x263   : > { %v4604_v37 = vpop.f32.mrb[45].mxu1  ;;  %v4731_v39 = vpop.f32.mrb[103].mxu0 }
 0x264   : > { %v4605_v53 = vadd.f32 %v4604_v37, %v4603_v55  ;;  %v4606_v9 = vpop.f32.mrb[46].mxu1  ;;  %v6990_v61 = vadd.f32 %v4729_v33, %v4593_v43  ;;  %v4732_v19 = vadd.f32 %v4731_v39, %v4730_v42 }
 0x265   : > { %v4607_v17 = vpop.f32.mrb[47].mxu1 }
 0x266   : > { %v4608_v49 = vadd.f32 %v4607_v17, %v4606_v9  ;;  %v6992_v63 = vadd.f32 %v4732_v19, %v4596_v10 }
 0x26a   : > { %v4609_v27 = vpop.f32.mrb[48].mxu1 }
 0x26b   : > { %v4610_v14 = vpop.f32.mrb[49].mxu1 }
 0x26c   : > { %v4611_v6 = vadd.f32 %v4610_v14, %v4609_v27  ;;  %v4612_v54 = vpop.f32.mrb[50].mxu1 }
 0x26d   : > { %v4613_v13 = vpop.f32.mrb[51].mxu1 }
 0x26e   : > { %v4614_v60 = vadd.f32 %v4613_v13, %v4612_v54 }
 0x272   : > { %v4615_v62 = vpop.f32.mrb[52].mxu1 }
 0x273   : > { %v4616_v44 = vpop.f32.mrb[53].mxu1 }
 0x274   : > { %v4617_v41 = vadd.f32 %v4616_v44, %v4615_v62  ;;  %v4618_v2 = vpop.f32.mrb[54].mxu1 }
 0x275   : > { %v4619_v25 = vpop.f32.mrb[55].mxu1 }
 0x276   : > { %v4620_v56 = vadd.f32 %v4619_v25, %v4618_v2 }
 0x27a   : > { %v4621_v1 = vpop.f32.mrb[56].mxu1 }
 0x27b   : > { %v4622_v43 = vpop.f32.mrb[57].mxu1 }
 0x27c   : > { %v4623_v22 = vadd.f32 %v4622_v43, %v4621_v1  ;;  %v4624_v18 = vpop.f32.mrb[58].mxu1 }
 0x27d   : > { %v4625_v20 = vpop.f32.mrb[59].mxu1 }
 0x27e   : > { %v4626_v3 = vadd.f32 %v4625_v20, %v4624_v18 }
 0x282   : > { %v4627_v10 = vpop.f32.mrb[60].mxu1 }
 0x283   : > { %v4628_v12 = vpop.f32.mrb[61].mxu1 }
 0x284   : > { %v4629_v30 = vadd.f32 %v4628_v12, %v4627_v10  ;;  %v4630_v52 = vpop.f32.mrb[62].mxu1 }
 0x285   : > { %v4631_v5 = vpop.f32.mrb[63].mxu1 }
 0x286   : > { %v4632_v0 = vadd.f32 %v4631_v5, %v4630_v52 }
 0x28a   : > { %v4733_v59 = vpop.f32.mrb[64].mxu1 }
 0x28b   : > { %v4734_v48 = vpop.f32.mrb[65].mxu1 }
 0x28c   : > { %v4735_v29 = vadd.f32 %v4734_v48, %v4733_v59  ;;  %v4736_v31 = vpop.f32.mrb[66].mxu1 }
 0x28d   : > { %v4737_v15 = vpop.f32.mrb[67].mxu1 }
 0x28e   : > { %v6994_v7 = vadd.f32 %v4735_v29, %v4599_v21  ;;  %v4738_v4 = vadd.f32 %v4737_v15, %v4736_v31 }
 0x290   : > { %v6996_v55 = vadd.f32 %v4738_v4, %v4602_v24 }
 0x292   : > { %v4739_v11 = vpop.f32.mrb[68].mxu1 }
 0x293   : > { %v4740_v33 = vpop.f32.mrb[69].mxu1 }
 0x294   : > { %v4741_v37 = vadd.f32 %v4740_v33, %v4739_v11  ;;  %v4742_v42 = vpop.f32.mrb[70].mxu1 }
 0x295   : > { %v4743_v9 = vpop.f32.mrb[71].mxu1 }
 0x296   : > { %v6998_v39 = vadd.f32 %v4741_v37, %v4605_v53  ;;  %v4744_v19 = vadd.f32 %v4743_v9, %v4742_v42 }
 0x298   : > { %v7000_v17 = vadd.f32 %v4744_v19, %v4608_v49 }
 0x29a   : > { %v4745_v27 = vpop.f32.mrb[72].mxu1 }
 0x29b   : > { %v4746_v14 = vpop.f32.mrb[73].mxu1 }
 0x29c   : > { %v4747_v54 = vadd.f32 %v4746_v14, %v4745_v27  ;;  %v4748_v13 = vpop.f32.mrb[74].mxu1 }
 0x29d   : > { %v4749_v62 = vpop.f32.mrb[75].mxu1 }
 0x29e   : > { %v7002_v21 = vadd.f32 %v4747_v54, %v4611_v6  ;;  %v4750_v44 = vadd.f32 %v4749_v62, %v4748_v13 }
 0x2a0   : > { %v7004_v24 = vadd.f32 %v4750_v44, %v4614_v60 }
 0x2a2   : > { %v4751_v2 = vpop.f32.mrb[76].mxu1 }
 0x2a3   : > { %v4752_v25 = vpop.f32.mrb[77].mxu1 }
 0x2a4   : > { %v4753_v1 = vadd.f32 %v4752_v25, %v4751_v2  ;;  %v4754_v43 = vpop.f32.mrb[78].mxu1 }
 0x2a5   : > { %v4755_v18 = vpop.f32.mrb[79].mxu1 }
 0x2a6   : > { %v7006_v53 = vadd.f32 %v4753_v1, %v4617_v41  ;;  %v4756_v20 = vadd.f32 %v4755_v18, %v4754_v43 }
 0x2a8   : > { %v7008_v49 = vadd.f32 %v4756_v20, %v4620_v56  ;;  %v5077_v10 = vpop.f32.mrb[32].mxu0 }
 0x2a9   : > { %v3114_v52 = vpop.f32.mrb[33].mxu0 }
 0x2aa   : > { %v4757_v12 = vpop.f32.mrb[80].mxu1  ;;  %v7010_v59 = vpop.f32.mrb[34].mxu0 }
 0x2ab   : > { %v4758_v5 = vpop.f32.mrb[81].mxu1  ;;  %v3117_v60 = vpop.f32.mrb[35].mxu0 }
 0x2ac   : > { %v4759_v6 = vadd.f32 %v4758_v5, %v4757_v12  ;;  %v4760_v48 = vpop.f32.mrb[82].mxu1 }
 0x2ad   : > { %v4761_v29 = vpop.f32.mrb[83].mxu1 }
 0x2ae   : > { %v7012_v31 = vadd.f32 %v4759_v6, %v4623_v22  ;;  %v4762_v15 = vadd.f32 %v4761_v29, %v4760_v48 }
 0x2b0   : > { %v7014_v4 = vadd.f32 %v4762_v15, %v4626_v3  ;;  %v7016_v41 = vpop.f32.mrb[36].mxu0 }
 0x2b1   : > { %v7018_v56 = vpop.f32.mrb[37].mxu0 }
 0x2b2   : > { %7639 = vst [vmem:[#allocation27_spill] sm:$0xff] %v7014_v4  ;;  %v4763_v11 = vpop.f32.mrb[84].mxu1  ;;  %v7020_v37 = vpop.f32.mrb[38].mxu0 }
 0x2b3   : > { %v4764_v33 = vpop.f32.mrb[85].mxu1  ;;  %v7022_v19 = vpop.f32.mrb[39].mxu0 }
 0x2b4   : > { %v4765_v42 = vadd.f32 %v4764_v33, %v4763_v11  ;;  %v4766_v9 = vpop.f32.mrb[86].mxu1 }
 0x2b5   : > { %v4767_v27 = vpop.f32.mrb[87].mxu1 }
 0x2b6   : > { %v7024_v14 = vadd.f32 %v4765_v42, %v4629_v30  ;;  %v4768_v22 = vadd.f32 %v4767_v27, %v4766_v9 }
 0x2b8   : > { %7640 = vst [vmem:[#allocation5_spill] sm:$0xff] %v7024_v14  ;;  %v7026_v54 = vadd.f32 %v4768_v22, %v4632_v0  ;;  %v7028_v3 = vpop.f32.mrb[40].mxu0  ;;  %v7040_v0 = vld [vmem:[%s7214_s4] ss:$0 sm:$0xff] }
 0x2b9   : > { %v7030_v62 = vpop.f32.mrb[41].mxu0 }
 0x2ba   : > { %7641 = vst [vmem:[#allocation6_spill] sm:$0xff] %v7026_v54  ;;  %v4809_v13 = vpop.f32.mrb[88].mxu1  ;;  %v7032_v2 = vpop.f32.mrb[42].mxu0 }
 0x2bb   : > { %v4810_v44 = vpop.f32.mrb[89].mxu1  ;;  %v7034_v43 = vpop.f32.mrb[43].mxu0 }
 0x2bc   : > { %v4811_v25 = vadd.f32 %v4810_v44, %v4809_v13  ;;  %v4812_v1 = vpop.f32.mrb[90].mxu1 }
 0x2bd   : > { %v4813_v18 = vpop.f32.mrb[91].mxu1 }
 0x2be   : > { %v5127_v20 = vadd.f32 %v6921_v57, %v4811_v25  ;;  %v4814_v30 = vadd.f32 %v4813_v18, %v4812_v1 }
 0x2c0   : > { %v5128_v12 = vadd.f32 %v5127_v20, %v3114_v52  ;;  %v5133_v5 = vadd.f32 %v6923_v32, %v4814_v30  ;;  %v7043_v6 = vpop.f32.mrb[44].mxu0 }
 0x2c1   : > { %v7046_v11 = vpop.f32.mrb[45].mxu0 }
 0x2c2   : > { %v3280_v48 = vadd.f32 %v5128_v12, %v7040_v0  ;;  %v5134_v29 = vadd.f32 %v5133_v5, %v3117_v60  ;;  %v4815_v15 = vpop.f32.mrb[92].mxu1  ;;  %v7048_v57 = vpop.f32.mrb[46].mxu0 }
 0x2c3   : > { %v4816_v33 = vpop.f32.mrb[93].mxu1  ;;  %v7051_v52 = vpop.f32.mrb[47].mxu0 }
 0x2c4   : > { %v3312_v42 = vmax.f32 %v3280_v48, 0.0  ;;  %v3281_v9 = vadd.f32 %v5134_v29, %v7040_v0  ;;  %v4817_v27 = vadd.f32 %v4816_v33, %v4815_v15  ;;  %v4818_v22 = vpop.f32.mrb[94].mxu1 }
 0x2c5   : > { %v4819_v32 = vpop.f32.mrb[95].mxu1 }
 0x2c6   : > { %v3313_v13 = vmax.f32 %v3281_v9, 0.0  ;;  %v5124_v44 = vadd.f32 %v6929_v36, %v4817_v27  ;;  %v4820_v25 = vadd.f32 %v4819_v32, %v4818_v22  ;;  %v3541_v1 = vmul.f32 %v3312_v42, %v3312_v42 }
 0x2c8   : > { %v4044_v60 = vpack.c.bf16 %v3313_v13, %v3312_v42  ;;  %v3504_v18 = vadd.f32 %v3313_v13, %v3312_v42  ;;  %v3542_v20 = vmul.f32 %v3313_v13, %v3313_v13  ;;  %v5125_v30 = vadd.f32 %v5124_v44, %v5077_v10  ;;  %v7062_v5 = vpop.f32.mrb[48].mxu0 }
 0x2c9   : > { %v5130_v12 = vadd.f32 %v6931_v58, %v4820_v25  ;;  %v7066_v15 = vpop.f32.mrb[49].mxu0 }
 0x2ca   : > { %4045 = vst [vmem:[%s7059_s28] sm:$0xff] %v4044_v60   ;;  %v3573_v48 = vadd.f32 %v3542_v20, %v3541_v1  ;;  %v3282_v36 = vadd.f32 %v5125_v30, %v7040_v0  ;;  %v4821_v29 = vpop.f32.mrb[96].mxu1  ;;  %v7069_v27 = vpop.f32.mrb[50].mxu0 }
 0x2cb   : > { %v5131_v33 = vadd.f32 %v5130_v12, %v7010_v59  ;;  %v4822_v9 = vpop.f32.mrb[97].mxu1  ;;  %v7071_v10 = vpop.f32.mrb[51].mxu0 }
 0x2cc   : > { %v3314_v22 = vmax.f32 %v3282_v36, 0.0  ;;  %v4823_v42 = vadd.f32 %v4822_v9, %v4821_v29  ;;  %v4824_v32 = vpop.f32.mrb[98].mxu1 }
 0x2cd   : > { %v3283_v58 = vadd.f32 %v5131_v33, %v7040_v0  ;;  %v4825_v13 = vpop.f32.mrb[99].mxu1 }
 0x2ce   : > { %v3505_v44 = vadd.f32 %v3504_v18, %v3314_v22  ;;  %v3543_v25 = vmul.f32 %v3314_v22, %v3314_v22  ;;  %v5139_v1 = vadd.f32 %v6937_v47, %v4823_v42  ;;  %v4826_v60 = vadd.f32 %v4825_v13, %v4824_v32 }
 0x2cf   : > { %v3315_v20 = vmax.f32 %v3283_v58, 0.0 }
 0x2d0   : > { %v3574_v30 = vadd.f32 %v3573_v48, %v3543_v25  ;;  %v5140_v59 = vadd.f32 %v5139_v1, %v7018_v56  ;;  %v5145_v12 = vadd.f32 %v6939_v28, %v4826_v60  ;;  %v7077_v54 = vpop.f32.mrb[52].mxu0 }
 0x2d1   : > { %v4049_v36 = vpack.c.bf16 %v3315_v20, %v3314_v22  ;;  %v3506_v29 = vadd.f32 %v3505_v44, %v3315_v20  ;;  %v3544_v9 = vmul.f32 %v3315_v20, %v3315_v20  ;;  %v7081_v4 = vpop.f32.mrb[53].mxu0 }
 0x2d2   : > { %v3284_v33 = vadd.f32 %v5140_v59, %v7040_v0  ;;  %v5146_v18 = vadd.f32 %v5145_v12, %v7022_v19  ;;  %v4827_v14 = vpop.f32.mrb[100].mxu1  ;;  %v7084_v48 = vpop.f32.mrb[54].mxu0 }
 0x2d3   : > { %4121 = vst [vmem:[%s7059_s28 + $0x8] sm:$0xff] %v4049_v36   ;;  %v3575_v47 = vadd.f32 %v3574_v30, %v3544_v9  ;;  %v4828_v42 = vpop.f32.mrb[101].mxu1  ;;  %v7087_v58 = vpop.f32.mrb[55].mxu0 }
 0x2d4   : > { %v3316_v56 = vmax.f32 %v3284_v33, 0.0  ;;  %v3285_v28 = vadd.f32 %v5146_v18, %v7040_v0  ;;  %v4829_v22 = vadd.f32 %v4828_v42, %v4827_v14  ;;  %v4830_v32 = vpop.f32.mrb[102].mxu1 }
 0x2d5   : > { %v4831_v13 = vpop.f32.mrb[103].mxu1 }
 0x2d6   : > { %v3507_v44 = vadd.f32 %v3506_v29, %v3316_v56  ;;  %v3545_v25 = vmul.f32 %v3316_v56, %v3316_v56  ;;  %v3317_v19 = vmax.f32 %v3285_v28, 0.0  ;;  %v5136_v1 = vadd.f32 %v6945_v45, %v4829_v22 }
 0x2d7   : > { %v4832_v60 = vadd.f32 %v4831_v13, %v4830_v32 }
 0x2d8   : > { %v3576_v20 = vadd.f32 %v3575_v47, %v3545_v25  ;;  %v4054_v30 = vpack.c.bf16 %v3317_v19, %v3316_v56  ;;  %v3508_v59 = vadd.f32 %v3507_v44, %v3317_v19  ;;  %v3546_v12 = vmul.f32 %v3317_v19, %v3317_v19  ;;  %v7092_v14 = vpop.f32.mrb[56].mxu0 }
 0x2d9   : > { %v5137_v36 = vadd.f32 %v5136_v1, %v7016_v41  ;;  %v5142_v9 = vadd.f32 %v6947_v51, %v4832_v60  ;;  %v7095_v42 = vpop.f32.mrb[57].mxu0 }
 0x2da   : > { %4122 = vst [vmem:[%s7059_s28 + $0x10] sm:$0xff] %v4054_v30   ;;  %v3577_v33 = vadd.f32 %v3576_v20, %v3546_v12  ;;  %v4833_v18 = vpop.f32.mrb[104].mxu1  ;;  %v7099_v47 = vpop.f32.mrb[58].mxu0 }
 0x2db   : > { %v3286_v29 = vadd.f32 %v5137_v36, %v7040_v0  ;;  %v5143_v45 = vadd.f32 %v5142_v9, %v7020_v37  ;;  %v4834_v28 = vpop.f32.mrb[105].mxu1  ;;  %v7101_v32 = vpop.f32.mrb[59].mxu0 }
 0x2dc   : > { %v4835_v56 = vadd.f32 %v4834_v28, %v4833_v18  ;;  %v4836_v22 = vpop.f32.mrb[106].mxu1 }
 0x2dd   : > { %v3318_v41 = vmax.f32 %v3286_v29, 0.0  ;;  %v3287_v51 = vadd.f32 %v5143_v45, %v7040_v0  ;;  %v4837_v13 = vpop.f32.mrb[107].mxu1 }
 0x2de   : > { %v5151_v44 = vadd.f32 %v6953_v34, %v4835_v56  ;;  %v4838_v25 = vadd.f32 %v4837_v13, %v4836_v22 }
 0x2df   : > { %v3509_v19 = vadd.f32 %v3508_v59, %v3318_v41  ;;  %v3547_v1 = vmul.f32 %v3318_v41, %v3318_v41  ;;  %v3319_v60 = vmax.f32 %v3287_v51, 0.0 }
 0x2e0   : > { %v5152_v37 = vadd.f32 %v5151_v44, %v7030_v62  ;;  %v5157_v20 = vadd.f32 %v6955_v40, %v4838_v25  ;;  %v7107_v18 = vpop.f32.mrb[60].mxu0 }
 0x2e1   : > { %v3578_v30 = vadd.f32 %v3577_v33, %v3547_v1  ;;  %v4059_v12 = vpack.c.bf16 %v3319_v60, %v3318_v41  ;;  %v3510_v36 = vadd.f32 %v3509_v19, %v3319_v60  ;;  %v3548_v9 = vmul.f32 %v3319_v60, %v3319_v60  ;;  %v7111_v28 = vpop.f32.mrb[61].mxu0 }
 0x2e2   : > { %v3288_v29 = vadd.f32 %v5152_v37, %v7040_v0  ;;  %v5158_v45 = vadd.f32 %v5157_v20, %v7034_v43  ;;  %v4839_v34 = vpop.f32.mrb[108].mxu1  ;;  %v7114_v22 = vpop.f32.mrb[62].mxu0 }
 0x2e3   : > { %4123 = vst [vmem:[%s7059_s28 + $0x18] sm:$0xff] %v4059_v12   ;;  %v3579_v59 = vadd.f32 %v3578_v30, %v3548_v9  ;;  %v4840_v56 = vpop.f32.mrb[109].mxu1  ;;  %7642 = vst [vmem:[#allocation7_spill] sm:$0xff] %v7114_v22  ;;  %v7117_v51 = vpop.f32.mrb[63].mxu0 }
 0x2e4   : > { %v3320_v62 = vmax.f32 %v3288_v29, 0.0  ;;  %v3289_v40 = vadd.f32 %v5158_v45, %v7040_v0  ;;  %v4841_v33 = vadd.f32 %v4840_v56, %v4839_v34  ;;  %v4842_v41 = vpop.f32.mrb[110].mxu1 }
 0x2e5   : > { %v4843_v13 = vpop.f32.mrb[111].mxu1 }
 0x2e6   : > { %v3511_v44 = vadd.f32 %v3510_v36, %v3320_v62  ;;  %v3549_v25 = vmul.f32 %v3320_v62, %v3320_v62  ;;  %v3321_v43 = vmax.f32 %v3289_v40, 0.0  ;;  %v5148_v19 = vadd.f32 %v6961_v26, %v4841_v33 }
 0x2e7   : > { %v4844_v1 = vadd.f32 %v4843_v13, %v4842_v41 }
 0x2e8   : > { %v3580_v60 = vadd.f32 %v3579_v59, %v3549_v25  ;;  %v4064_v37 = vpack.c.bf16 %v3321_v43, %v3320_v62  ;;  %v3512_v20 = vadd.f32 %v3511_v44, %v3321_v43  ;;  %v3550_v30 = vmul.f32 %v3321_v43, %v3321_v43 }
 0x2e9   : > { %v5149_v12 = vadd.f32 %v5148_v19, %v7028_v3  ;;  %v5154_v9 = vadd.f32 %v6963_v8, %v4844_v1 }
 0x2ea   : > { %4124 = vst [vmem:[%s7059_s28 + $0x20] sm:$0xff] %v4064_v37   ;;  %v3581_v29 = vadd.f32 %v3580_v60, %v3550_v30  ;;  %v4845_v45 = vpop.f32.mrb[112].mxu1 }
 0x2eb   : > { %v3290_v34 = vadd.f32 %v5149_v12, %v7040_v0  ;;  %v5155_v36 = vadd.f32 %v5154_v9, %v7032_v2  ;;  %v4846_v56 = vpop.f32.mrb[113].mxu1 }
 0x2ec   : > { %v4847_v40 = vadd.f32 %v4846_v56, %v4845_v45  ;;  %v4848_v22 = vpop.f32.mrb[114].mxu1 }
 0x2ed   : > { %v3322_v26 = vmax.f32 %v3290_v34, 0.0  ;;  %v3291_v59 = vadd.f32 %v5155_v36, %v7040_v0  ;;  %v4849_v62 = vpop.f32.mrb[115].mxu1 }
 0x2ee   : > { %v5163_v33 = vadd.f32 %v6969_v46, %v4847_v40  ;;  %v4850_v3 = vadd.f32 %v4849_v62, %v4848_v22 }
 0x2ef   : > { %v3513_v41 = vadd.f32 %v3512_v20, %v3322_v26  ;;  %v3551_v8 = vmul.f32 %v3322_v26, %v3322_v26  ;;  %v3323_v13 = vmax.f32 %v3291_v59, 0.0 }
 0x2f0   : > { %v5164_v44 = vadd.f32 %v5163_v33, %v7046_v11  ;;  %v5169_v25 = vadd.f32 %v6971_v23, %v4850_v3 }
 0x2f1   : > { %v3582_v43 = vadd.f32 %v3581_v29, %v3551_v8  ;;  %v4069_v2 = vpack.c.bf16 %v3323_v13, %v3322_v26  ;;  %v3514_v19 = vadd.f32 %v3513_v41, %v3323_v13  ;;  %v3552_v1 = vmul.f32 %v3323_v13, %v3323_v13 }
 0x2f2   : > { %v3292_v60 = vadd.f32 %v5164_v44, %v7040_v0  ;;  %v5170_v37 = vadd.f32 %v5169_v25, %v7051_v52  ;;  %v4851_v30 = vpop.f32.mrb[116].mxu1 }
 0x2f3   : > { %4125 = vst [vmem:[%s7059_s28 + $0x28] sm:$0xff] %v4069_v2   ;;  %v3583_v12 = vadd.f32 %v3582_v43, %v3552_v1  ;;  %v4852_v46 = vpop.f32.mrb[117].mxu1 }
 0x2f4   : > { %v3324_v22 = vmax.f32 %v3292_v60, 0.0  ;;  %v3293_v20 = vadd.f32 %v5170_v37, %v7040_v0  ;;  %v4853_v9 = vadd.f32 %v4852_v46, %v4851_v30  ;;  %v4854_v11 = vpop.f32.mrb[118].mxu1 }
 0x2f5   : > { %v4855_v45 = vpop.f32.mrb[119].mxu1 }
 0x2f6   : > { %v3515_v23 = vadd.f32 %v3514_v19, %v3324_v22  ;;  %v3553_v29 = vmul.f32 %v3324_v22, %v3324_v22  ;;  %v3325_v34 = vmax.f32 %v3293_v20, 0.0  ;;  %v5160_v36 = vadd.f32 %v6977_v38, %v4853_v9 }
 0x2f7   : > { %v4856_v56 = vadd.f32 %v4855_v45, %v4854_v11 }
 0x2f8   : > { %v3584_v40 = vadd.f32 %v3583_v12, %v3553_v29  ;;  %v4074_v26 = vpack.c.bf16 %v3325_v34, %v3324_v22  ;;  %v3516_v52 = vadd.f32 %v3515_v23, %v3325_v34  ;;  %v3554_v59 = vmul.f32 %v3325_v34, %v3325_v34 }
 0x2f9   : > { %v5161_v62 = vadd.f32 %v5160_v36, %v7043_v6  ;;  %v5166_v33 = vadd.f32 %v6979_v16, %v4856_v56 }
 0x2fa   : > { %4126 = vst [vmem:[%s7059_s28 + $0x30] sm:$0xff] %v4074_v26   ;;  %v3585_v3 = vadd.f32 %v3584_v40, %v3554_v59  ;;  %v4857_v41 = vpop.f32.mrb[120].mxu1 }
 0x2fb   : > { %v3294_v8 = vadd.f32 %v5161_v62, %v7040_v0  ;;  %v5167_v13 = vadd.f32 %v5166_v33, %v7048_v57  ;;  %v4858_v44 = vpop.f32.mrb[121].mxu1 }
 0x2fc   : > { %v4859_v25 = vadd.f32 %v4858_v44, %v4857_v41  ;;  %v4860_v43 = vpop.f32.mrb[122].mxu1 }
 0x2fd   : > { %v3326_v38 = vmax.f32 %v3294_v8, 0.0  ;;  %v3295_v2 = vadd.f32 %v5167_v13, %v7040_v0  ;;  %v4861_v19 = vpop.f32.mrb[123].mxu1 }
 0x2fe   : > { %v5175_v1 = vadd.f32 %v6985_v35, %v4859_v25  ;;  %v4862_v6 = vadd.f32 %v4861_v19, %v4860_v43 }
 0x2ff   : > { %v3517_v60 = vadd.f32 %v3516_v52, %v3326_v38  ;;  %v3555_v16 = vmul.f32 %v3326_v38, %v3326_v38  ;;  %v3327_v37 = vmax.f32 %v3295_v2, 0.0 }
 0x300   : > { %v5176_v30 = vadd.f32 %v5175_v1, %v7066_v15  ;;  %v5181_v12 = vadd.f32 %v6987_v50, %v4862_v6 }
 0x301   : > { %v3586_v46 = vadd.f32 %v3585_v3, %v3555_v16  ;;  %v4079_v57 = vpack.c.bf16 %v3327_v37, %v3326_v38  ;;  %v3518_v22 = vadd.f32 %v3517_v60, %v3327_v37  ;;  %v3556_v20 = vmul.f32 %v3327_v37, %v3327_v37 }
 0x302   : > { %v3296_v9 = vadd.f32 %v5176_v30, %v7040_v0  ;;  %v5182_v11 = vadd.f32 %v5181_v12, %v7071_v10  ;;  %v4863_v45 = vpop.f32.mrb[124].mxu1 }
 0x303   : > { %4127 = vst [vmem:[%s7059_s28 + $0x38] sm:$0xff] %v4079_v57   ;;  %v3587_v23 = vadd.f32 %v3586_v46, %v3556_v20  ;;  %v4864_v35 = vpop.f32.mrb[125].mxu1 }
 0x304   : > { %v3328_v29 = vmax.f32 %v3296_v9, 0.0  ;;  %v3297_v34 = vadd.f32 %v5182_v11, %v7040_v0  ;;  %v4865_v36 = vadd.f32 %v4864_v35, %v4863_v45  ;;  %v4866_v15 = vpop.f32.mrb[126].mxu1 }
 0x305   : > { %v4867_v56 = vpop.f32.mrb[127].mxu1 }
 0x306   : > { %v3519_v50 = vadd.f32 %v3518_v22, %v3328_v29  ;;  %v3557_v40 = vmul.f32 %v3328_v29, %v3328_v29  ;;  %v3329_v26 = vmax.f32 %v3297_v34, 0.0  ;;  %v5172_v52 = vadd.f32 %v6990_v61, %v4865_v36 }
 0x307   : > { %v4868_v59 = vadd.f32 %v4867_v56, %v4866_v15 }
 0x308   : > { %v3588_v62 = vadd.f32 %v3587_v23, %v3557_v40  ;;  %v4084_v33 = vpack.c.bf16 %v3329_v26, %v3328_v29  ;;  %v3520_v10 = vadd.f32 %v3519_v50, %v3329_v26  ;;  %v3558_v3 = vmul.f32 %v3329_v26, %v3329_v26 }
 0x309   : > { %v5173_v41 = vadd.f32 %v5172_v52, %v7062_v5  ;;  %v5178_v8 = vadd.f32 %v6992_v63, %v4868_v59 }
 0x30a   : > { %4128 = vst [vmem:[%s7059_s28 + $0x40] sm:$0xff] %v4084_v33   ;;  %v3589_v13 = vadd.f32 %v3588_v62, %v3558_v3  ;;  %v4869_v44 = vpop.f32.mrb[128].mxu1 }
 0x30b   : > { %v3298_v25 = vadd.f32 %v5173_v41, %v7040_v0  ;;  %v5179_v43 = vadd.f32 %v5178_v8, %v7069_v27  ;;  %v4870_v38 = vpop.f32.mrb[129].mxu1 }
 0x30c   : > { %v4871_v2 = vadd.f32 %v4870_v38, %v4869_v44  ;;  %v4872_v19 = vpop.f32.mrb[130].mxu1 }
 0x30d   : > { %v3330_v61 = vmax.f32 %v3298_v25, 0.0  ;;  %v3299_v1 = vadd.f32 %v5179_v43, %v7040_v0  ;;  %v4873_v6 = vpop.f32.mrb[131].mxu1 }
 0x30e   : > { %v5187_v60 = vadd.f32 %v6994_v7, %v4871_v2  ;;  %v4874_v5 = vadd.f32 %v4873_v6, %v4872_v19 }
 0x30f   : > { %v3521_v16 = vadd.f32 %v3520_v10, %v3330_v61  ;;  %v3559_v63 = vmul.f32 %v3330_v61, %v3330_v61  ;;  %v3331_v37 = vmax.f32 %v3299_v1, 0.0 }
 0x310   : > { %v5188_v30 = vadd.f32 %v5187_v60, %v7081_v4  ;;  %v5193_v12 = vadd.f32 %v6996_v55, %v4874_v5 }
 0x311   : > { %v3590_v46 = vadd.f32 %v3589_v13, %v3559_v63  ;;  %v4089_v27 = vpack.c.bf16 %v3331_v37, %v3330_v61  ;;  %v3522_v57 = vadd.f32 %v3521_v16, %v3331_v37  ;;  %v3560_v22 = vmul.f32 %v3331_v37, %v3331_v37 }
 0x312   : > { %v3300_v20 = vadd.f32 %v5188_v30, %v7040_v0  ;;  %v5194_v9 = vadd.f32 %v5193_v12, %v7087_v58  ;;  %v4875_v11 = vpop.f32.mrb[132].mxu1 }
 0x313   : > { %4129 = vst [vmem:[%s7059_s28 + $0x48] sm:$0xff] %v4089_v27   ;;  %v3591_v45 = vadd.f32 %v3590_v46, %v3560_v22  ;;  %v4876_v7 = vpop.f32.mrb[133].mxu1 }
 0x314   : > { %v3332_v23 = vmax.f32 %v3300_v20, 0.0  ;;  %v3301_v35 = vadd.f32 %v5194_v9, %v7040_v0  ;;  %v4877_v29 = vadd.f32 %v4876_v7, %v4875_v11  ;;  %v4878_v4 = vpop.f32.mrb[134].mxu1 }
 0x315   : > { %v4879_v34 = vpop.f32.mrb[135].mxu1 }
 0x316   : > { %v3523_v55 = vadd.f32 %v3522_v57, %v3332_v23  ;;  %v3561_v36 = vmul.f32 %v3332_v23, %v3332_v23  ;;  %v3333_v15 = vmax.f32 %v3301_v35, 0.0  ;;  %v5184_v56 = vadd.f32 %v6998_v39, %v4877_v29 }
 0x317   : > { %v4880_v50 = vadd.f32 %v4879_v34, %v4878_v4 }
 0x318   : > { %v3592_v40 = vadd.f32 %v3591_v45, %v3561_v36  ;;  %v4094_v26 = vpack.c.bf16 %v3333_v15, %v3332_v23  ;;  %v3524_v58 = vadd.f32 %v3523_v55, %v3333_v15  ;;  %v3562_v52 = vmul.f32 %v3333_v15, %v3333_v15 }
 0x319   : > { %v5185_v59 = vadd.f32 %v5184_v56, %v7077_v54  ;;  %v5190_v62 = vadd.f32 %v7000_v17, %v4880_v50 }
 0x31a   : > { %4130 = vst [vmem:[%s7059_s28 + $0x50] sm:$0xff] %v4094_v26   ;;  %v3593_v33 = vadd.f32 %v3592_v40, %v3562_v52  ;;  %v4881_v10 = vpop.f32.mrb[136].mxu1 }
 0x31b   : > { %v3302_v3 = vadd.f32 %v5185_v59, %v7040_v0  ;;  %v5191_v41 = vadd.f32 %v5190_v62, %v7084_v48  ;;  %v4882_v8 = vpop.f32.mrb[137].mxu1 }
 0x31c   : > { %v4883_v13 = vadd.f32 %v4882_v8, %v4881_v10  ;;  %v4884_v44 = vpop.f32.mrb[138].mxu1 }
 0x31d   : > { %v3334_v39 = vmax.f32 %v3302_v3, 0.0  ;;  %v3303_v25 = vadd.f32 %v5191_v41, %v7040_v0  ;;  %v4885_v43 = vpop.f32.mrb[139].mxu1 }
 0x31e   : > { %v5199_v38 = vadd.f32 %v7002_v21, %v4883_v13  ;;  %v4886_v54 = vadd.f32 %v4885_v43, %v4884_v44 }
 0x31f   : > { %v3525_v2 = vadd.f32 %v3524_v58, %v3334_v39  ;;  %v3563_v17 = vmul.f32 %v3334_v39, %v3334_v39  ;;  %v3335_v19 = vmax.f32 %v3303_v25, 0.0 }
 0x320   : > { %v5200_v61 = vadd.f32 %v5199_v38, %v7095_v42  ;;  %v5205_v1 = vadd.f32 %v7004_v24, %v4886_v54 }
 0x321   : > { %v3594_v6 = vadd.f32 %v3593_v33, %v3563_v17  ;;  %v4099_v48 = vpack.c.bf16 %v3335_v19, %v3334_v39  ;;  %v3526_v60 = vadd.f32 %v3525_v2, %v3335_v19  ;;  %v3564_v5 = vmul.f32 %v3335_v19, %v3335_v19  ;;  %v7643_v33 = vld [vmem:[#allocation27_spill] sm:$0xff] }
 0x322   : > { %v3304_v16 = vadd.f32 %v5200_v61, %v7040_v0  ;;  %v5206_v63 = vadd.f32 %v5205_v1, %v7101_v32  ;;  %v4887_v37 = vpop.f32.mrb[140].mxu1  ;;  %v7644_v1 = vld [vmem:[#allocation5_spill] sm:$0xff] }
 0x323   : > { %4131 = vst [vmem:[%s7059_s28 + $0x58] sm:$0xff] %v4099_v48   ;;  %v3595_v30 = vadd.f32 %v3594_v6, %v3564_v5  ;;  %v4888_v21 = vpop.f32.mrb[141].mxu1 }
 0x324   : > { %v3336_v12 = vmax.f32 %v3304_v16, 0.0  ;;  %v3305_v46 = vadd.f32 %v5206_v63, %v7040_v0  ;;  %v4889_v27 = vadd.f32 %v4888_v21, %v4887_v37  ;;  %v4890_v42 = vpop.f32.mrb[142].mxu1  ;;  %v7645_v37 = vld [vmem:[#allocation6_spill] sm:$0xff] }
 0x325   : > { %v4891_v57 = vpop.f32.mrb[143].mxu1 }
 0x326   : > { %v3527_v24 = vadd.f32 %v3526_v60, %v3336_v12  ;;  %v3565_v22 = vmul.f32 %v3336_v12, %v3336_v12  ;;  %v3337_v20 = vmax.f32 %v3305_v46, 0.0  ;;  %v5196_v9 = vadd.f32 %v7006_v53, %v4889_v27  ;;  %v7646_v46 = vld [vmem:[#allocation7_spill] sm:$0xff] }
 0x327   : > { %v4892_v11 = vadd.f32 %v4891_v57, %v4890_v42 }
 0x328   : > { %v3596_v45 = vadd.f32 %v3595_v30, %v3565_v22  ;;  %v4104_v7 = vpack.c.bf16 %v3337_v20, %v3336_v12  ;;  %v3528_v32 = vadd.f32 %v3527_v24, %v3337_v20  ;;  %v3566_v23 = vmul.f32 %v3337_v20, %v3337_v20 }
 0x329   : > { %v5197_v35 = vadd.f32 %v5196_v9, %v7092_v14  ;;  %v5202_v29 = vadd.f32 %v7008_v49, %v4892_v11 }
 0x32a   : > { %4132 = vst [vmem:[%s7059_s28 + $0x60] sm:$0xff] %v4104_v7   ;;  %v3597_v4 = vadd.f32 %v3596_v45, %v3566_v23  ;;  %v4893_v34 = vpop.f32.mrb[144].mxu1 }
 0x32b   : > { %v3306_v55 = vadd.f32 %v5197_v35, %v7040_v0  ;;  %v5203_v36 = vadd.f32 %v5202_v29, %v7099_v47  ;;  %v4894_v15 = vpop.f32.mrb[145].mxu1 }
 0x32c   : > { %v4895_v56 = vadd.f32 %v4894_v15, %v4893_v34  ;;  %v4896_v50 = vpop.f32.mrb[146].mxu1 }
 0x32d   : > { %v3338_v53 = vmax.f32 %v3306_v55, 0.0  ;;  %v3307_v40 = vadd.f32 %v5203_v36, %v7040_v0  ;;  %v4897_v26 = vpop.f32.mrb[147].mxu1 }
 0x32e   : > { %v5211_v58 = vadd.f32 %v7012_v31, %v4895_v56  ;;  %v4898_v14 = vadd.f32 %v4897_v26, %v4896_v50 }
 0x32f   : > { %v3529_v52 = vadd.f32 %v3528_v32, %v3338_v53  ;;  %v3567_v49 = vmul.f32 %v3338_v53, %v3338_v53  ;;  %v3339_v59 = vmax.f32 %v3307_v40, 0.0 }
 0x330   : > { %v5212_v62 = vadd.f32 %v5211_v58, %v7111_v28  ;;  %v5217_v10 = vadd.f32 %v7643_v33, %v4898_v14 }
 0x331   : > { %v3598_v3 = vadd.f32 %v3597_v4, %v3567_v49  ;;  %v4109_v47 = vpack.c.bf16 %v3339_v59, %v3338_v53  ;;  %v3530_v41 = vadd.f32 %v3529_v52, %v3339_v59  ;;  %v3568_v8 = vmul.f32 %v3339_v59, %v3339_v59 }
 0x332   : > { %v3308_v13 = vadd.f32 %v5212_v62, %v7040_v0  ;;  %v5218_v44 = vadd.f32 %v5217_v10, %v7117_v51  ;;  %v4899_v39 = vpop.f32.mrb[148].mxu1 }
 0x333   : > { %4133 = vst [vmem:[%s7059_s28 + $0x68] sm:$0xff] %v4109_v47   ;;  %v3599_v25 = vadd.f32 %v3598_v3, %v3568_v8  ;;  %v4900_v31 = vpop.f32.mrb[149].mxu1 }
 0x334   : > { %v3340_v43 = vmax.f32 %v3308_v13, 0.0  ;;  %v3309_v38 = vadd.f32 %v5218_v44, %v7040_v0  ;;  %v4901_v54 = vadd.f32 %v4900_v31, %v4899_v39  ;;  %v4902_v28 = vpop.f32.mrb[150].mxu1 }
 0x335   : > { %v4903_v2 = vpop.f32.mrb[151].mxu1 }
 0x336   : > { %v3531_v17 = vadd.f32 %v3530_v41, %v3340_v43  ;;  %v3569_v19 = vmul.f32 %v3340_v43, %v3340_v43  ;;  %v3341_v61 = vmax.f32 %v3309_v38, 0.0  ;;  %v5208_v6 = vadd.f32 %v7644_v1, %v4901_v54 }
 0x337   : > { %v4904_v48 = vadd.f32 %v4903_v2, %v4902_v28 }
 0x338   : > { %v3600_v60 = vadd.f32 %v3599_v25, %v3569_v19  ;;  %v4114_v5 = vpack.c.bf16 %v3341_v61, %v3340_v43  ;;  %v3532_v51 = vadd.f32 %v3531_v17, %v3341_v61  ;;  %v3570_v16 = vmul.f32 %v3341_v61, %v3341_v61 }
 0x339   : > { %v5209_v63 = vadd.f32 %v5208_v6, %v7107_v18  ;;  %v5214_v30 = vadd.f32 %v7645_v37, %v4904_v48 }
 0x33a   : > { %4134 = vst [vmem:[%s7059_s28 + $0x70] sm:$0xff] %v4114_v5   ;;  %v3601_v21 = vadd.f32 %v3600_v60, %v3570_v16 }
 0x33b   : > { %v3310_v12 = vadd.f32 %v5209_v63, %v7040_v0  ;;  %v5215_v27 = vadd.f32 %v5214_v30, %v7646_v46 }
 0x33d   : > { %v3342_v42 = vmax.f32 %v3310_v12, 0.0  ;;  %v3311_v57 = vadd.f32 %v5215_v27, %v7040_v0 }
 0x33f   : > { %v3533_v24 = vadd.f32 %v3532_v51, %v3342_v42  ;;  %v3571_v22 = vmul.f32 %v3342_v42, %v3342_v42  ;;  %v3343_v20 = vmax.f32 %v3311_v57, 0.0 }
 0x341   : > { %v3602_v9 = vadd.f32 %v3601_v21, %v3571_v22  ;;  %v4119_v11 = vpack.c.bf16 %v3343_v20, %v3342_v42  ;;  %v3534_v45 = vadd.f32 %v3533_v24, %v3343_v20  ;;  %v3572_v7 = vmul.f32 %v3343_v20, %v3343_v20 }
 0x343   : > { %4135 = vst [vmem:[%s7059_s28 + $0x78] sm:$0xff] %v4119_v11   ;;  %v3535_v18 = vrot.slane %v3534_v45, 4  ;;  %v3603_v32 = vadd.f32 %v3602_v9, %v3572_v7 }
 0x345   : > { %v3536_v23 = vadd.f32 %v3535_v18, %v3534_v45  ;;  %v3604_v35 = vrot.slane %v3603_v32, 4 }
 0x347   : > { %v3537_v29 = vrot.slane %v3536_v23, 2  ;;  %v3605_v4 = vadd.f32 %v3604_v35, %v3603_v32 }
 0x349   : > { %v3538_v34 = vadd.f32 %v3537_v29, %v3536_v23  ;;  %v3606_v55 = vrot.slane %v3605_v4, 2 }
 0x34b   : > { %v3539_v36 = vrot.slane %v3538_v34, 1  ;;  %v3607_v15 = vadd.f32 %v3606_v55, %v3605_v4 }
 0x34d   : > { %v3608_v0 = vrot.slane %v3607_v15, 1  ;;  %v3540_v56 = vadd.f32 %v3539_v36, %v3538_v34 }
 0x34f   : > { %v3609_v50 = vadd.f32 %v3608_v0, %v3607_v15 }
 0x351   : > { %v3611_v53 = vsel %vm3610_vm10, %v3540_v56, %v3609_v50 }
 0x352   : > { %3612 = vst [vmem:[%s321_s8] sm:$0x3] %v3611_v53 }
 0x353 PF: > { %s17_s23 = sadd.s32 1, %s5452_s23   ;;  %s7647_s21 = smov %s5448_s22 }
 0x354   : > { %p14_p5 = scmp.ge.s32.totalorder %s17_s23, 4   ;;  %s7648_s22 = smov %s7650_s24 }
 0x356   :  { %16 = sbr.rel (!%p14_p5) target bundleno = 2 (0x2), region = 94 }

// kernel: qnet_spatial_forward.7
= control target key start
LH: loop header
LB: loop body
LE: loop exit
PB: predicated region body
PF: predicated region fallthrough
CT: control target
= control target key end

     0   :  { %s2492_s15 = smov 0   ;;  %s2494_s16 = smov 0   ;;  %s3075_s0 = inlined_call_operand.vmem [shape: bf16[2,8,8,128], index: 0, kind: input, shape index: {}]   ;;  %s3076_s1 = inlined_call_operand.vmem [shape: bf16[3,384,128], index: 1, kind: input, shape index: {}]   ;;  %s3077_s2 = inlined_call_operand.vmem [shape: f32[1,128], index: 2, kind: input, shape index: {}]   ;;  %s3078_s3 = inlined_call_operand.vmem [shape: bf16[2,8,8,128], index: 3, kind: output, shape index: {0}]   ;;  %s3079_s4 = inlined_call_operand.vmem [shape: f32[2,2,128], index: 4, kind: output, shape index: {1}]  }
   0x1   :  { %s2496_s17 = smov 0  }
   0x2 LB: > { %s27_s18 = sadd.s32 1, %s2460_s16  ;;  %p1863_p0 = scmp.ge.s32.totalorder %s2464_s17, 1  ;;  %s2464_s17 = sphi %s2496_s17, %s15_s17   ;;  %s2460_s16 = sphi %s2494_s16, %s3113_s16   ;;  %s2456_s15 = sphi %s2492_s15, %s3112_s15  }
   0x3   : > { %p29_p1 = scmp.ge.s32.totalorder %s27_s18, 2  ;;  %p198_p2 = scmp.lt.s32.totalorder %s2464_s17, 3 }
   0x5   : > { %s3115_s18 = smov (%p29_p1, %s27_s18), 0  ;;  %p199_p3 = pnand %p1863_p0, %p198_p2 }
   0x6   : > { %v2362_v0 = vld [vmem:[%s3076_s1 + $0x100] sm:$0xff] (!%p199_p3)   ;;  %v289_v3 = vlaneseq (!%p199_p3)  ;;  %v2365_v4 = vld [vmem:[%s3076_s1 + $0x108] sm:$0xff] (!%p199_p3)   ;;  %v2368_v7 = vld [vmem:[%s3076_s1 + $0x110] sm:$0xff] (!%p199_p3)   ;;  %p241_p4 = scmp.lt.s32.totalorder (!%p199_p3), %s2456_s15, 1  ;;  %vm522_vm1 = vcmask (!%p199_p3), 1043456  }
   0x7   : > { %202 = sbr.rel (%p199_p3) target bundleno = 375 (0x177), region = 32  ;;  %v2363_v1 = vld [vmem:[%s3076_s1 + $0x140] sm:$0xff] (!%p199_p3)   ;;  %2069 = vmatprep.subr.bf16.mxu0 (!%p199_p3), %v2362_v0  ;;  %v2366_v5 = vld [vmem:[%s3076_s1 + $0x148] sm:$0xff] (!%p199_p3)   ;;  %v2369_v9 = vld [vmem:[%s3076_s1 + $0x150] sm:$0xff] (!%p199_p3)  }
   0x8   : > { %v2364_v2 = vld [vmem:[%s3076_s1 + $0xc0] sm:$0xff] (!%p199_p3)   ;;  %2225 = vmatprep.subr.bf16.mxu1 (!%p199_p3), %v2363_v1  ;;  %v2367_v6 = vld [vmem:[%s3076_s1 + $0xc8] sm:$0xff] (!%p199_p3)   ;;  %v2533_v8 = vshrl.u32 (!%p199_p3), %v289_v3, 7  ;;  %v2370_v10 = vld [vmem:[%s3076_s1 + $0xd0] sm:$0xff] (!%p199_p3)  }
   0x9   : > { %2070 = vmatpush3.bf16.msra.mxu0 (!%p199_p3), %v2364_v2  ;;  %2226 = vmatpush3.bf16.msra.mxu1 (!%p199_p3), %v2363_v1  ;;  %v2371_v11 = vld [vmem:[%s3076_s1 + $0x118] sm:$0xff] (!%p199_p3)   ;;  %v2374_v16 = vld [vmem:[%s3076_s1 + $0x120] sm:$0xff] (!%p199_p3)   ;;  %v2377_v22 = vld [vmem:[%s3076_s1 + $0x128] sm:$0xff] (!%p199_p3)  }
   0xa   : > { %2071 = vmatprep.subr.bf16.mxu0 (!%p199_p3), %v2365_v4  ;;  %2227 = vmatprep.subr.bf16.mxu1 (!%p199_p3), %v2366_v5  ;;  %v2372_v12 = vld [vmem:[%s3076_s1 + $0x158] sm:$0xff] (!%p199_p3)   ;;  %v291_v13 = vadd.s32 (!%p199_p3), 8, %v2533_v8  ;;  %v292_v15 = vadd.s32 (!%p199_p3), 16, %v2533_v8  ;;  %v293_v17 = vadd.s32 (!%p199_p3), 24, %v2533_v8  ;;  %v2375_v18 = vld [vmem:[%s3076_s1 + $0x160] sm:$0xff] (!%p199_p3)   ;;  %v2378_v24 = vld [vmem:[%s3076_s1 + $0x168] sm:$0xff] (!%p199_p3)  }
   0xb   : > { %v2373_v14 = vld [vmem:[%s3076_s1 + $0xd8] sm:$0xff] (!%p199_p3)   ;;  %v2376_v20 = vld [vmem:[%s3076_s1 + $0xe0] sm:$0xff] (!%p199_p3)   ;;  %v302_v25 = vand.u32 (!%p199_p3), 7, %v2533_v8  ;;  %v2379_v26 = vld [vmem:[%s3076_s1 + $0xe8] sm:$0xff] (!%p199_p3)   ;;  %vm410_vm5 = vcmp.lt.s32.totalorder (!%p199_p3), %v2533_v8, 1  ;;  %vm459_vm6 = vcmp.lt.s32.totalorder (!%p199_p3), %v2533_v8, 7 }
   0xc   : > { %v309_v19 = vand.u32 (!%p199_p3), 7, %v291_v13  ;;  %v316_v21 = vand.u32 (!%p199_p3), 7, %v292_v15  ;;  %v323_v23 = vand.u32 (!%p199_p3), 7, %v293_v17  ;;  %v2380_v28 = vld [vmem:[%s3076_s1 + $0x130] sm:$0xff] (!%p199_p3)   ;;  %v2610_v34 = vadd.s32 (!%p199_p3), 32, %v2533_v8  ;;  %v2383_v35 = vld [vmem:[%s3076_s1 + $0x138] sm:$0xff] (!%p199_p3)  }
   0xd   : > { %2072 = vmatpush3.bf16.msra.mxu0 (!%p199_p3), %v2367_v6  ;;  %2228 = vmatpush3.bf16.msra.mxu1 (!%p199_p3), %v2366_v5  ;;  %v2381_v31 = vld [vmem:[%s3076_s1 + $0x170] sm:$0xff] (!%p199_p3)   ;;  %vm2600_vm4 = vcmp.eq.s32.totalorder (!%p199_p3), %v302_v25, 0  ;;  %v2384_v36 = vld [vmem:[%s3076_s1 + $0x178] sm:$0xff] (!%p199_p3)   ;;  %vm2618_vm7 = vcmp.eq.s32.totalorder (!%p199_p3), %v302_v25, 7  ;;  %v2631_v40 = vadd.s32 (!%p199_p3), 40, %v2533_v8  ;;  %v2643_v46 = vadd.s32 (!%p199_p3), 48, %v2533_v8 }
   0xe   : > { %2073 = vmatprep.subr.bf16.mxu0 %v2368_v7  ;;  %2229 = vmatprep.subr.bf16.mxu1 %v2369_v9  ;;  %s3117_s15 = smov (!%p241_p4, %s2456_s15), 1  ;;  %vm2577_vm0 = vcmp.eq.s32.totalorder %v316_v21, 0  ;;  %vm2584_vm2 = vcmp.eq.s32.totalorder %v309_v19, 0  ;;  %vm2588_vm3 = vcmp.eq.s32.totalorder %v323_v23, 0  ;;  %v2382_v33 = vld [vmem:[%s3076_s1 + $0xf0] sm:$0xff]   ;;  %vm2622_vm8 = vcmp.eq.s32.totalorder %v309_v19, 7 }
   0xf   : > { %s2044_s5 = sshll.u32 %s3117_s15, 5  ;;  %vm2626_vm9 = vcmp.eq.s32.totalorder %v316_v21, 7  ;;  %vm2637_vm10 = vcmp.eq.s32.totalorder %v323_v23, 7  ;;  %v330_v45 = vand.u32 7, %v2610_v34  ;;  %v2646_v47 = vadd.s32 56, %v2533_v8  ;;  %v2385_v53 = vld [vmem:[%s3076_s1 + $0xf8] sm:$0xff]  }
  0x10   : > { %s245_s14 = scalar_lea.vmem %s3075_s0, %s2044_s5  ;;  %v2388_v60 = vld [vmem:[%s3076_s1 + $0x40] sm:$0xff]   ;;  %v2399_v8 = vld [vmem:[%s3076_s1 + $0x98] sm:$0xff]   ;;  %s3047_s22 = scalar_lea.vmem %s3078_s3, %s2044_s5 }
  0x11   : > { %2074 = vmatpush3.bf16.msra.mxu0 %v2370_v10  ;;  %2230 = vmatpush3.bf16.msra.mxu1 %v2369_v9  ;;  %v273_v41 = vld [vmem:[%s245_s14] sm:$0xff]   ;;  %v2633_v42 = vld [vmem:[%s245_s14 + $0x8] sm:$0xff]   ;;  %v2635_v43 = vld [vmem:[%s245_s14 + $0x18] sm:$0xff]   ;;  %vm2724_vm11 = vcmp.eq.s32.totalorder %v330_v45, 7  ;;  %vm2745_vm13 = vcmp.eq.s32.totalorder %v330_v45, 0  ;;  %s1868_s5 = sshll.u32 %s3117_s15, 1 }
  0x12   : > { %2075 = vmatprep.subr.bf16.mxu0 %v2371_v11  ;;  %2231 = vmatprep.subr.bf16.mxu1 %v2372_v12  ;;  %v281_v48 = vunpack.c.l.bf16 %v273_v41  ;;  %v282_v49 = vunpack.c.h.bf16 %v273_v41  ;;  %v283_v50 = vunpack.c.l.bf16 %v2633_v42  ;;  %v284_v51 = vunpack.c.h.bf16 %v2633_v42  ;;  %v2650_v52 = vld [vmem:[%s245_s14 + $0x10] sm:$0xff]   ;;  %v2665_v61 = vld [vmem:[%s3076_s1 + $0x80] sm:$0xff]   ;;  %s267_s25 = scalar_lea.vmem %s3079_s4, %s1868_s5 }
  0x13   : > { %v288_v54 = vunpack.c.h.bf16 %v2635_v43  ;;  %v285_v55 = vunpack.c.l.bf16 %v2650_v52  ;;  %v524_v1 = vrot.slane %v273_v41, 4  ;;  %v528_v2 = vrot.slane %v2633_v42, 4 }
  0x14   : > { %v402_v56 = vrot.slane %v281_v48, 7  ;;  %v403_v57 = vrot.slane %v282_v49, 7  ;;  %v404_v58 = vrot.slane %v283_v50, 7  ;;  %v2657_v59 = vrot.slane %v284_v51, 7 }
  0x15   : > { %2076 = vmatpush3.bf16.msra.mxu0 %v2373_v14  ;;  %2232 = vmatpush3.bf16.msra.mxu1 %v2372_v12  ;;  %v2667_v62 = vrot.slane %v281_v48, 1  ;;  %v452_v63 = vrot.slane %v282_v49, 1  ;;  %v454_v0 = vrot.slane %v284_v51, 1  ;;  %v2672_v3 = vrot.slane %v288_v54, 7  ;;  %560 = vst [vmem:[#allocation2 + $0x8] sm:$0xf0] %v524_v1 }
  0x16   : > { %2077 = vmatprep.subr.bf16.mxu0 %v2374_v16  ;;  %2233 = vmatprep.subr.bf16.mxu1 %v2375_v18  ;;  %v415_v4 = vsel %vm410_vm5, %v404_v58, %v2657_v59  ;;  %v416_v5 = vsel %vm410_vm5, %v403_v57, %v404_v58  ;;  %v417_v6 = vsel %vm410_vm5, %v402_v56, %v403_v57  ;;  %v453_v10 = vrot.slane %v283_v50, 1  ;;  %v2396_v51 = vld [vmem:[%s3076_s1 + $0x90] sm:$0xff]  }
  0x17   : > { %v437_v7 = vsel %vm2577_vm0, 0.0, %v416_v5  ;;  %v438_v9 = vsel %vm2588_vm3, 0.0, %v415_v4  ;;  %v2686_v11 = vsel %vm522_vm1, %v524_v1, %v528_v2  ;;  %v418_v12 = vsel %vm410_vm5, %v2672_v3, %v402_v56 }
  0x18   : > { %v436_v13 = vsel %vm2584_vm2, 0.0, %v417_v6  ;;  %v2693_v14 = vpack.c.bf16 %v438_v9, %v437_v7  ;;  %v718_v15 = vrot.slane %v2686_v11, 4  ;;  %v435_v16 = vsel %vm2600_vm4, 0.0, %v418_v12  ;;  %v2390_v6 = vld [vmem:[%s3076_s1] sm:$0xff]   ;;  %v2391_v9 = vld [vmem:[%s3076_s1 + $0x48] sm:$0xff]  }
  0x19   : > { %2078 = vmatpush3.bf16.msra.mxu0 %v2376_v20  ;;  %2234 = vmatpush3.bf16.msra.mxu1 %v2375_v18  ;;  %v455_v17 = vrot.slane %v285_v55, 1  ;;  %v464_v18 = vsel %vm459_vm6, %v453_v10, %v454_v0  ;;  %v498_v19 = vpack.c.bf16 %v436_v13, %v435_v16  ;;  %v465_v21 = vsel %vm459_vm6, %v452_v63, %v453_v10 }
  0x1a   : > { %2079 = vmatprep.subr.bf16.mxu0 %v2377_v22  ;;  %2235 = vmatprep.subr.bf16.mxu1 %v2378_v24  ;;  %v526_v20 = vrot.slane %v2693_v14, 4  ;;  %v466_v22 = vsel %vm459_vm6, %v2667_v62, %v452_v63  ;;  %v485_v25 = vsel %vm2622_vm8, 0.0, %v465_v21  ;;  %v286_v30 = vunpack.c.h.bf16 %v2650_v52 }
  0x1b   : > { %v463_v23 = vsel %vm459_vm6, %v454_v0, %v455_v17  ;;  %v523_v27 = vrot.slane %v498_v19, 4  ;;  %v287_v32 = vunpack.c.l.bf16 %v2635_v43  ;;  %v534_v50 = vrot.slane %v2650_v52, 4 }
  0x1c   : > { %v456_v39 = vrot.slane %v286_v30, 1  ;;  %v406_v63 = vrot.slane %v285_v55, 7  ;;  %v407_v4 = vrot.slane %v286_v30, 7  ;;  %v344_v7 = vand.u32 7, %v2643_v46 }
  0x1d   : > { %2080 = vmatpush3.bf16.msra.mxu0 %v2379_v26  ;;  %2236 = vmatpush3.bf16.msra.mxu1 %v2378_v24  ;;  %v484_v24 = vsel %vm2618_vm7, 0.0, %v466_v22  ;;  %v486_v26 = vsel %vm2626_vm9, 0.0, %v464_v18  ;;  %v2731_v37 = vsel %vm522_vm1, %v523_v27, %v526_v20  ;;  %559 = vst [vmem:[#allocation2] sm:$0xf0] %v523_v27  ;;  %v2738_v48 = vrot.slane %v287_v32, 1  ;;  %v2393_v27 = vld [vmem:[%s3076_s1 + $0x8] sm:$0xff]  }
  0x1e   : > { %2081 = vmatprep.subr.bf16.mxu0 %v2380_v28  ;;  %2237 = vmatprep.subr.bf16.mxu1 %v2381_v31  ;;  %v487_v28 = vsel %vm2637_vm10, 0.0, %v463_v23  ;;  %v500_v29 = vpack.c.bf16 %v485_v25, %v484_v24  ;;  %v715_v42 = vrot.slane %v2731_v37, 4  ;;  %v462_v49 = vsel %vm459_vm6, %v455_v17, %v456_v39 }
  0x1f   : > { %v488_v57 = vsel %vm2724_vm11, 0.0, %v462_v49  ;;  %v461_v34 = vsel %vm459_vm6, %v456_v39, %v2738_v48  ;;  %v2764_v45 = vsel %vm522_vm1, %v528_v2, %v534_v50  ;;  %v414_v2 = vsel %vm410_vm5, %v2657_v59, %v406_v63  ;;  %v2424_v49 = vld [vmem:[%s3076_s1 + $0x218] sm:$0xff]  }
  0x20   : > { %v525_v38 = vrot.slane %v500_v29, 4  ;;  %v725_v1 = vrot.slane %v2764_v45, 4  ;;  %v351_v52 = vand.u32 7, %v2646_v47  ;;  %v413_v12 = vsel %vm410_vm5, %v406_v63, %v407_v4 }
  0x21   : > { %2082 = vmatpush3.bf16.msra.mxu0 %v2382_v33  ;;  %2238 = vmatpush3.bf16.msra.mxu1 %v2381_v31  ;;  %v503_v31 = vpack.c.bf16 %v487_v28, %v486_v26  ;;  %v337_v33 = vand.u32 7, %v2631_v40  ;;  %v439_v13 = vsel %vm2745_vm13, 0.0, %v414_v2  ;;  %v540_v59 = vrot.slane %v2635_v43, 4  ;;  %v2392_v26 = vld [vmem:[%s3076_s1 + $0x88] sm:$0xff]   ;;  %v2423_v40 = vld [vmem:[%s3076_s1 + $0x1d8] sm:$0xff]  }
  0x22   : > { %2083 = vmatprep.subr.bf16.mxu0 %v2383_v35  ;;  %2239 = vmatprep.subr.bf16.mxu1 %v2384_v36  ;;  %561 = vst [vmem:[#allocation2 + $0x10] sm:$0xf0] %v525_v38  ;;  %v726_v10 = vsel %vm522_vm1, %v718_v15, %v725_v1  ;;  %vm2795_vm15 = vcmp.eq.s32.totalorder %v344_v7, 0  ;;  %vm2802_vm0 = vcmp.eq.s32.totalorder %v351_v52, 0  ;;  %v408_v22 = vrot.slane %v287_v32, 7 }
  0x23   : > { %v530_v44 = vrot.slane %v503_v31, 4  ;;  %vm2734_vm12 = vcmp.eq.s32.totalorder %v337_v33, 7  ;;  %vm2755_vm14 = vcmp.eq.s32.totalorder %v337_v33, 0  ;;  %v2800_v19 = vsel %vm522_vm1, %v534_v50, %v540_v59  ;;  %572 = vst [vmem:[#allocation2 + $0x68] sm:$0xf] %v540_v59  ;;  %v2406_v59 = vld [vmem:[%s3076_s1 + $0xa8] sm:$0xff]  }
  0x24   : > { %v489_v0 = vsel %vm2734_vm12, 0.0, %v461_v34  ;;  %v634_v55 = vld [vmem:[#allocation2] sm:$0xf0]  ;;  %v440_v16 = vsel %vm2755_vm14, 0.0, %v413_v12  ;;  %v411_v30 = vsel %vm410_vm5, %v408_v22, %v2672_v3  ;;  %v412_v31 = vsel %vm410_vm5, %v407_v4, %v408_v22 }
  0x25   : > { %2084 = vmatpush3.bf16.msra.mxu0 %v2385_v53  ;;  %2240 = vmatpush3.bf16.msra.mxu1 %v2384_v36  ;;  %v635_v36 = vld [vmem:[#allocation2 + $0x8] sm:$0xf0]  ;;  %v2751_v56 = vsel %vm522_vm1, %v525_v38, %v530_v44  ;;  %v2771_v5 = vpack.c.bf16 %v489_v0, %v488_v57  ;;  %v714_v46 = vrot.slane %v634_v55, 4  ;;  %v441_v33 = vsel %vm2795_vm15, 0.0, %v412_v31  ;;  %v2395_v38 = vld [vmem:[%s3076_s1 + $0x50] sm:$0xff]   ;;  %v2403_v55 = vld [vmem:[%s3076_s1 + $0xa0] sm:$0xff]  }
  0x26   : > { %2121 = vmatprep.subr.bf16.mxu0 %v2388_v60  ;;  %2249 = vmatprep.subr.bf16.mxu1 %v2665_v61  ;;  %v717_v41 = vrot.slane %v635_v36, 4  ;;  %v721_v60 = vrot.slane %v2751_v56, 4  ;;  %v442_v35 = vsel %vm2802_vm0, 0.0, %v411_v30  ;;  %v731_v39 = vrot.slane %v2800_v19, 4  ;;  %v2414_v30 = vld [vmem:[%s3076_s1 + $0x1c0] sm:$0xff]  }
  0x27   : > { %v536_v47 = vrot.slane %v2771_v5, 4  ;;  %v716_v23 = vsel %vm522_vm1, %v714_v46, %v715_v42  ;;  %vm2844_vm2 = vcmp.eq.s32.totalorder %v344_v7, 7  ;;  %vm2848_vm3 = vcmp.eq.s32.totalorder %v351_v52, 7  ;;  %v2405_v5 = vld [vmem:[%s3076_s1 + $0x68] sm:$0xff]   ;;  %v2415_v31 = vld [vmem:[%s3076_s1 + $0x200] sm:$0xff]  }
  0x28   : > { %v719_v53 = vsel %vm522_vm1, %v717_v41, %v718_v15  ;;  %v504_v15 = vpack.c.bf16 %v440_v16, %v439_v13  ;;  %v507_v41 = vpack.c.bf16 %v442_v35, %v441_v33  ;;  %v458_v14 = vrot.slane %v288_v54, 1  ;;  %v2407_v46 = vld [vmem:[%s3076_s1 + $0x28] sm:$0xff]   ;;  %v2408_v16 = vld [vmem:[%s3076_s1 + $0x70] sm:$0xff]   ;;  %v2416_v33 = vld [vmem:[%s3076_s1 + $0x180] sm:$0xff]  }
  0x29   : > { %929 = vmatprep.mubr.bf16.mxu0 %v719_v53  ;;  %v636_v18 = vld [vmem:[#allocation2 + $0x10] sm:$0xf0]  ;;  %v2812_v25 = vsel %vm522_vm1, %v530_v44, %v536_v47  ;;  %v2417_v35 = vld [vmem:[%s3076_s1 + $0x1c8] sm:$0xff]  }
  0x2a   : > { %v720_v24 = vrot.slane %v636_v18, 4  ;;  %930 = vmatmul.mubr.bf16.vlgmr.msra.gmra.mrb[0].mxu0 %v716_v23  ;;  %v727_v28 = vrot.slane %v2812_v25, 4  ;;  %v532_v29 = vrot.slane %v504_v15, 4  ;;  %v2397_v53 = vld [vmem:[%s3076_s1 + $0x10] sm:$0xff]   ;;  %v460_v43 = vsel %vm459_vm6, %v2738_v48, %v458_v14  ;;  %v647_v34 = vld [vmem:[#allocation2 + $0x68] sm:$0xf] }
  0x2b   : > { %2122 = vmatpush3.bf16.msra.mxu0 %v2390_v6  ;;  %937 = vmatprep.mubr.bf16.mxu0 %v726_v10  ;;  %v467_v54 = vsel %vm459_vm6, %v458_v14, %v2667_v62  ;;  %v490_v57 = vsel %vm2844_vm2, 0.0, %v460_v43  ;;  %v2466_v48 = vmov 0   ;;  %v2400_v62 = vld [vmem:[%s3076_s1 + $0x18] sm:$0xff]   ;;  %v2402_v6 = vld [vmem:[%s3076_s1 + $0x60] sm:$0xff]   ;;  %v737_v2 = vrot.slane %v647_v34, 4  ;;  %v2409_v18 = vld [vmem:[%s3076_s1 + $0xb0] sm:$0xff]  }
  0x2c   : > { %v722_v32 = vsel %vm522_vm1, %v720_v24, %v721_v60  ;;  %v728_v36 = vsel %vm522_vm1, %v721_v60, %v727_v28  ;;  %2123 = vmatprep.subr.bf16.mxu0 %v2391_v9  ;;  %v2837_v3 = vsel %vm522_vm1, %v526_v20, %v532_v29  ;;  %v538_v20 = vrot.slane %v507_v41, 4  ;;  %493 = vst [vmem:[#allocation2 + $0x8] sm:$0xf] %v2466_v48  ;;  %v2404_v9 = vld [vmem:[%s3076_s1 + $0x20] sm:$0xff]   ;;  %v2410_v24 = vld [vmem:[%s3076_s1 + $0x30] sm:$0xff]   ;;  %v2425_v14 = vld [vmem:[%s3076_s1 + $0x198] sm:$0xff]  }
  0x2d   : > { %2241 = vmatprep.mubr.bf16.mxu1 %v722_v32  ;;  %v723_v44 = vrot.slane %v2837_v3, 4  ;;  %v491_v58 = vsel %vm2848_vm3, 0.0, %v467_v54  ;;  %492 = vst [vmem:[#allocation2] sm:$0xf] %v2466_v48  ;;  %494 = vst [vmem:[#allocation2 + $0x10] sm:$0xf] %v2466_v48  ;;  %v732_v60 = vsel %vm522_vm1, %v725_v1, %v731_v39  ;;  %v738_v13 = vsel %vm522_vm1, %v731_v39, %v737_v2 }
  0x2e   : > { %2242 = vmatmul.mubr.bf16.vlgmr.msra.gmra.mrb[0].mxu1 %v728_v36  ;;  %571 = vst [vmem:[#allocation2 + $0x60] sm:$0xf] %v538_v20  ;;  %495 = vst [vmem:[#allocation2 + $0x60] sm:$0xf0] %v2466_v48  ;;  %v509_v63 = vpack.c.bf16 %v491_v58, %v490_v57  ;;  %v2418_v36 = vld [vmem:[%s3076_s1 + $0x208] sm:$0xff]   ;;  %v2420_v39 = vld [vmem:[%s3076_s1 + $0x1d0] sm:$0xff]  }
  0x2f   : > { %2250 = vmatpush3.bf16.msra.mxu1 %v2665_v61  ;;  %2124 = vmatpush3.bf16.msra.mxu0 %v2393_v27  ;;  %v724_v50 = vsel %vm522_vm1, %v715_v42, %v723_v44  ;;  %v2398_v61 = vld [vmem:[%s3076_s1 + $0x58] sm:$0xff]   ;;  %v2874_v42 = vsel %vm522_vm1, %v532_v29, %v538_v20  ;;  %496 = vst [vmem:[#allocation2 + $0x68] sm:$0xf0] %v2466_v48  ;;  %497 = vst [vmem:[#allocation2 + $0x70] sm:$0xf0] %v2466_v48  ;;  %v2421_v41 = vld [vmem:[%s3076_s1 + $0x210] sm:$0xff]  }
  0x30   : > { %2251 = vmatprep.subr.bf16.mxu1 %v2392_v26  ;;  %2125 = vmatprep.subr.bf16.mxu0 %v2395_v38  ;;  %v729_v0 = vrot.slane %v2874_v42, 4  ;;  %v542_v4 = vrot.slane %v509_v63, 4  ;;  %v2413_v29 = vld [vmem:[%s3076_s1 + $0x38] sm:$0xff]   ;;  %v2419_v38 = vld [vmem:[%s3076_s1 + $0x188] sm:$0xff]   ;;  %v2426_v20 = vld [vmem:[%s3076_s1 + $0x1e0] sm:$0xff]  }
  0x31   : > { %v2431_v43 = vld [vmem:[%s3076_s1 + $0x1a8] sm:$0xff]   ;;  %v2432_v54 = vld [vmem:[%s3076_s1 + $0x1f0] sm:$0xff]   ;;  %v2435_v58 = vld [vmem:[%s3076_s1 + $0x1f8] sm:$0xff]  }
  0x32   : > { %938 = vmatmul.mubr.bf16.gmra.mrb[4].mxu0 %v724_v50  ;;  %v2896_v1 = vsel %vm522_vm1, %v536_v47, %v542_v4  ;;  %573 = vst [vmem:[#allocation2 + $0x70] sm:$0xf] %v542_v4  ;;  %v730_v52 = vsel %vm522_vm1, %v723_v44, %v729_v0  ;;  %v2422_v44 = vld [vmem:[%s3076_s1 + $0x190] sm:$0xff]   ;;  %v2427_v50 = vld [vmem:[%s3076_s1 + $0x220] sm:$0xff]   ;;  %v2436_v48 = vld [vmem:[%s3076_s1 + $0x238] sm:$0xff]  }
  0x33   : > { %2252 = vmatpush3.bf16.msra.mxu1 %v2392_v26  ;;  %2126 = vmatpush3.bf16.msra.mxu0 %v2397_v53  ;;  %v733_v7 = vrot.slane %v2896_v1, 4  ;;  %v2411_v26 = vld [vmem:[%s3076_s1 + $0x78] sm:$0xff]   ;;  %v575_v27 = vld [vmem:[#allocation2 + $0x8] sm:$0xff]  ;;  %v2434_v57 = vld [vmem:[%s3076_s1 + $0x1b0] sm:$0xff]  }
  0x34   : > { %2253 = vmatprep.subr.bf16.mxu1 %v2396_v51  ;;  %2127 = vmatprep.subr.bf16.mxu0 %v2398_v61  ;;  %v576_v21 = vld [vmem:[#allocation2 + $0x10] sm:$0xff]  ;;  %v574_v32 = vld [vmem:[#allocation2] sm:$0xff]  ;;  %v2429_v53 = vld [vmem:[%s3076_s1 + $0x1e8] sm:$0xff]  }
  0x35   : > { %945 = vmatprep.mubr.bf16.mxu0 %v732_v60  ;;  %v646_v10 = vld [vmem:[#allocation2 + $0x60] sm:$0xf]  ;;  %v734_v12 = vsel %vm522_vm1, %v727_v28, %v733_v7  ;;  %v2412_v28 = vld [vmem:[%s3076_s1 + $0xb8] sm:$0xff]   ;;  %v2433_v61 = vld [vmem:[%s3076_s1 + $0x230] sm:$0xff]  }
  0x36   : > { %2245 = vmatprep.mubr.bf16.mxu1 %v734_v12  ;;  %v735_v47 = vrot.slane %v646_v10, 4  ;;  %v1302_v60 = vld [vmem:[#allocation2 + $0x68] sm:$0xff] }
  0x37   : > { %2254 = vmatpush3.bf16.msra.mxu1 %v2396_v51  ;;  %2128 = vmatpush3.bf16.msra.mxu0 %v2400_v62  ;;  %v2428_v51 = vld [vmem:[%s3076_s1 + $0x1a0] sm:$0xff]  }
  0x38   : > { %2255 = vmatprep.subr.bf16.mxu1 %v2399_v8  ;;  %2129 = vmatprep.subr.bf16.mxu0 %v2402_v6  ;;  %v736_v22 = vsel %vm522_vm1, %v729_v0, %v735_v47 }
  0x39   : > { %v648_v17 = vld [vmem:[#allocation2 + $0x70] sm:$0xf] }
  0x3a   : > { %946 = vmatmul.mubr.bf16.gmra.mrb[8].mxu0 %v730_v52  ;;  %v739_v15 = vrot.slane %v648_v17, 4  ;;  %v1303_v62 = vld [vmem:[#allocation2 + $0x70] sm:$0xff] }
  0x3b   : > { %2256 = vmatpush3.bf16.msra.mxu1 %v2399_v8  ;;  %2130 = vmatpush3.bf16.msra.mxu0 %v2404_v9  ;;  %v2437_v8 = vld [vmem:[%s3076_s1 + $0x1b8] sm:$0xff]  }
  0x3c   : > { %2257 = vmatprep.subr.bf16.mxu1 %v2403_v55  ;;  %2131 = vmatprep.subr.bf16.mxu0 %v2405_v5  ;;  %v740_v23 = vsel %vm522_vm1, %v733_v7, %v739_v15  ;;  %vm1708_vm1 = vcmask 1040384  }
  0x3d   : > { %953 = vmatprep.mubr.bf16.mxu0 %v738_v13  ;;  %2246 = vmatmul.mubr.bf16.gmra.mrb[4].mxu1 %v740_v23 }
  0x3e   : > { %2265 = vmatprep.mubr.bf16.mxu1 %v576_v21 }
  0x3f   : > { %2258 = vmatpush3.bf16.msra.mxu1 %v2403_v55  ;;  %2132 = vmatpush3.bf16.msra.mxu0 %v2407_v46 }
  0x40   : > { %2259 = vmatprep.subr.bf16.mxu1 %v2406_v59  ;;  %2133 = vmatprep.subr.bf16.mxu0 %v2408_v16 }
  0x42   : > { %954 = vmatmul.mubr.bf16.gmra.mrb[12].mxu0 %v736_v22 }
  0x43   : > { %2260 = vmatpush3.bf16.msra.mxu1 %v2406_v59  ;;  %2134 = vmatpush3.bf16.msra.mxu0 %v2410_v24 }
  0x44   : > { %2261 = vmatprep.subr.bf16.mxu1 %v2409_v18  ;;  %2135 = vmatprep.subr.bf16.mxu0 %v2411_v26 }
  0x45   : > { %1203 = vmatprep.mubr.bf16.mxu0 %v575_v27 }
  0x47   : > { %2262 = vmatpush3.bf16.msra.mxu1 %v2409_v18  ;;  %2136 = vmatpush3.bf16.msra.mxu0 %v2413_v29 }
  0x48   : > { %2263 = vmatprep.subr.bf16.mxu1 %v2412_v28  ;;  %2173 = vmatprep.subr.bf16.mxu0 %v2414_v30 }
  0x4a   : > { %1204 = vmatmul.mubr.bf16.vlgmr.msra.gmra.mrb[16].mxu0 %v574_v32 }
  0x4b   : > { %2264 = vmatpush3.bf16.msra.mxu1 %v2412_v28  ;;  %2174 = vmatpush3.bf16.msra.mxu0 %v2416_v33 }
  0x4c   : > { %2273 = vmatprep.subr.bf16.mxu1 %v2415_v31  ;;  %2175 = vmatprep.subr.bf16.mxu0 %v2417_v35 }
  0x4d   : > { %1211 = vmatprep.mubr.bf16.mxu0 %v2686_v11 }
  0x4e   : > { %2266 = vmatmul.mubr.bf16.vlgmr.msra.gmra.mrb[0].mxu1 %v2751_v56 }
  0x4f   : > { %2274 = vmatpush3.bf16.msra.mxu1 %v2415_v31  ;;  %2269 = vmatprep.mubr.bf16.mxu1 %v2812_v25 }
  0x50   : > { %2275 = vmatprep.subr.bf16.mxu1 %v2418_v36  ;;  %2176 = vmatpush3.bf16.msra.mxu0 %v2419_v38 }
  0x51   : > { %2177 = vmatprep.subr.bf16.mxu0 %v2420_v39 }
  0x52   : > { %1212 = vmatmul.mubr.bf16.gmra.mrb[20].mxu0 %v2731_v37 }
  0x53   : > { %2276 = vmatpush3.bf16.msra.mxu1 %v2418_v36  ;;  %1219 = vmatprep.mubr.bf16.mxu0 %v2764_v45 }
  0x54   : > { %2277 = vmatprep.subr.bf16.mxu1 %v2421_v41  ;;  %2178 = vmatpush3.bf16.msra.mxu0 %v2422_v44 }
  0x55   : > { %2179 = vmatprep.subr.bf16.mxu0 %v2423_v40 }
  0x56   : > { %2270 = vmatmul.mubr.bf16.gmra.mrb[4].mxu1 %v2896_v1 }
  0x57   : > { %2278 = vmatpush3.bf16.msra.mxu1 %v2421_v41  ;;  %2289 = vmatprep.mubr.bf16.mxu1 %v2751_v56  ;;  %v2430_v56 = vld [vmem:[%s3076_s1 + $0x228] sm:$0xff]  }
  0x58   : > { %2279 = vmatprep.subr.bf16.mxu1 %v2424_v49  ;;  %2180 = vmatpush3.bf16.msra.mxu0 %v2425_v14 }
  0x59   : > { %2181 = vmatprep.subr.bf16.mxu0 %v2426_v20 }
  0x5a   : > { %1220 = vmatmul.mubr.bf16.gmra.mrb[24].mxu0 %v2837_v3 }
  0x5b   : > { %2280 = vmatpush3.bf16.msra.mxu1 %v2424_v49  ;;  %1227 = vmatprep.mubr.bf16.mxu0 %v2800_v19 }
  0x5c   : > { %2281 = vmatprep.subr.bf16.mxu1 %v2427_v50  ;;  %2182 = vmatpush3.bf16.msra.mxu0 %v2428_v51 }
  0x5d   : > { %2183 = vmatprep.subr.bf16.mxu0 %v2429_v53 }
  0x5f   : > { %2282 = vmatpush3.bf16.msra.mxu1 %v2427_v50 }
  0x60   : > { %2283 = vmatprep.subr.bf16.mxu1 %v2430_v56  ;;  %2184 = vmatpush3.bf16.msra.mxu0 %v2431_v43 }
  0x61   : > { %2185 = vmatprep.subr.bf16.mxu0 %v2432_v54 }
  0x62   : > { %1228 = vmatmul.mubr.bf16.gmra.mrb[28].mxu0 %v2874_v42 }
  0x63   : > { %2284 = vmatpush3.bf16.msra.mxu1 %v2430_v56  ;;  %1529 = vmatprep.mubr.bf16.mxu0 %v2686_v11  ;;  %v1301_v11 = vld [vmem:[#allocation2 + $0x60] sm:$0xff] }
  0x64   : > { %2285 = vmatprep.subr.bf16.mxu1 %v2433_v61  ;;  %2186 = vmatpush3.bf16.msra.mxu0 %v2434_v57 }
  0x65   : > { %2187 = vmatprep.subr.bf16.mxu0 %v2435_v58 }
  0x67   : > { %2286 = vmatpush3.bf16.msra.mxu1 %v2433_v61 }
  0x68   : > { %2287 = vmatprep.subr.bf16.mxu1 %v2436_v48  ;;  %2188 = vmatpush3.bf16.msra.mxu0 %v2437_v8 }
  0x6b   : > { %2288 = vmatpush3.bf16.msra.mxu1 %v2436_v48  ;;  %1530 = vmatmul.mubr.bf16.vlgmr.msra.gmra.mrb[32].mxu0 %v2731_v37 }
  0x6c   : > { %1537 = vmatprep.mubr.bf16.mxu0 %v2764_v45 }
  0x6e   : > { %2290 = vmatmul.mubr.bf16.vlgmr.msra.gmra.mrb[0].mxu1 %v2812_v25 }
  0x6f   : > { %2293 = vmatprep.mubr.bf16.mxu1 %v2896_v1 }
  0x73   : > { %1538 = vmatmul.mubr.bf16.gmra.mrb[36].mxu0 %v2837_v3 }
  0x74   : > { %1545 = vmatprep.mubr.bf16.mxu0 %v2800_v19 }
  0x76   : > { %2294 = vmatmul.mubr.bf16.gmra.mrb[4].mxu1 %v1303_v62 }
  0x7b   : > { %1546 = vmatmul.mubr.bf16.gmra.mrb[40].mxu0 %v2874_v42 }
  0x7c   : > { %1553 = vmatprep.mubr.bf16.mxu0 %v1302_v60 }
  0x83   : > { %1554 = vmatmul.mubr.bf16.gmra.mrb[44].mxu0 %v1301_v11 }
  0xfd   : > { %v2085_v34 = vpop.f32.mrb[0].mxu0 }
  0xfe   : > { %v2086_v37 = vpop.f32.mrb[1].mxu0 }
  0xff   : > { %v2087_v63 = vadd.f32 %v2086_v37, %v2085_v34  ;;  %v2088_v45 = vpop.f32.mrb[2].mxu0  ;;  %v3038_v37 = vld [vmem:[%s3077_s2] ss:$0 sm:$0xff] }
 0x100   : > { %v2089_v0 = vpop.f32.mrb[3].mxu0 }
 0x101   : > { %v2090_v25 = vadd.f32 %v2089_v0, %v2088_v45 }
 0x105   : > { %v2091_v4 = vpop.f32.mrb[4].mxu0 }
 0x106   : > { %v2092_v6 = vpop.f32.mrb[5].mxu0 }
 0x107   : > { %v2093_v2 = vadd.f32 %v2092_v6, %v2091_v4  ;;  %v2094_v3 = vpop.f32.mrb[6].mxu0 }
 0x108   : > { %v2095_v1 = vpop.f32.mrb[7].mxu0 }
 0x109   : > { %v2096_v7 = vadd.f32 %v2095_v1, %v2094_v3 }
 0x10d   : > { %v2097_v19 = vpop.f32.mrb[8].mxu0 }
 0x10e   : > { %v2098_v52 = vpop.f32.mrb[9].mxu0 }
 0x10f   : > { %v2099_v55 = vadd.f32 %v2098_v52, %v2097_v19  ;;  %v2100_v9 = vpop.f32.mrb[10].mxu0 }
 0x110   : > { %v2101_v42 = vpop.f32.mrb[11].mxu0 }
 0x111   : > { %v2102_v5 = vadd.f32 %v2101_v42, %v2100_v9 }
 0x115   : > { %v2103_v10 = vpop.f32.mrb[12].mxu0 }
 0x116   : > { %v2104_v12 = vpop.f32.mrb[13].mxu0 }
 0x117   : > { %v2105_v13 = vadd.f32 %v2104_v12, %v2103_v10  ;;  %v2106_v59 = vpop.f32.mrb[14].mxu0 }
 0x118   : > { %v2107_v46 = vpop.f32.mrb[15].mxu0 }
 0x119   : > { %v2108_v47 = vadd.f32 %v2107_v46, %v2106_v59 }
 0x11d   : > { %v2137_v16 = vpop.f32.mrb[16].mxu0 }
 0x11e   : > { %v2138_v17 = vpop.f32.mrb[17].mxu0 }
 0x11f   : > { %v2139_v18 = vadd.f32 %v2138_v17, %v2137_v16  ;;  %v2140_v15 = vpop.f32.mrb[18].mxu0 }
 0x120   : > { %v2141_v21 = vpop.f32.mrb[19].mxu0 }
 0x121   : > { %v2300_v22 = vadd.f32 %v2139_v18, %v2087_v63  ;;  %v2142_v23 = vadd.f32 %v2141_v21, %v2140_v15 }
 0x123   : > { %v2306_v24 = vadd.f32 %v2142_v23, %v2090_v25 }
 0x125   : > { %v2143_v26 = vpop.f32.mrb[20].mxu0 }
 0x126   : > { %v2144_v27 = vpop.f32.mrb[21].mxu0 }
 0x127   : > { %v2145_v28 = vadd.f32 %v2144_v27, %v2143_v26  ;;  %v2146_v29 = vpop.f32.mrb[22].mxu0 }
 0x128   : > { %v2147_v30 = vpop.f32.mrb[23].mxu0 }
 0x129   : > { %v2297_v31 = vadd.f32 %v2145_v28, %v2093_v2  ;;  %v2148_v32 = vadd.f32 %v2147_v30, %v2146_v29 }
 0x12b   : > { %v2303_v33 = vadd.f32 %v2148_v32, %v2096_v7 }
 0x12d   : > { %v2149_v35 = vpop.f32.mrb[24].mxu0 }
 0x12e   : > { %v2150_v36 = vpop.f32.mrb[25].mxu0 }
 0x12f   : > { %v2151_v38 = vadd.f32 %v2150_v36, %v2149_v35  ;;  %v2152_v39 = vpop.f32.mrb[26].mxu0 }
 0x130   : > { %v2153_v41 = vpop.f32.mrb[27].mxu0 }
 0x131   : > { %v2312_v44 = vadd.f32 %v2151_v38, %v2099_v55  ;;  %v2154_v40 = vadd.f32 %v2153_v41, %v2152_v39 }
 0x133   : > { %v3029_v49 = vadd.f32 %v2154_v40, %v2102_v5 }
 0x135   : > { %v2155_v14 = vpop.f32.mrb[28].mxu0 }
 0x136   : > { %v2156_v20 = vpop.f32.mrb[29].mxu0 }
 0x137   : > { %v2157_v50 = vadd.f32 %v2156_v20, %v2155_v14  ;;  %v2158_v51 = vpop.f32.mrb[30].mxu0 }
 0x138   : > { %v2159_v53 = vpop.f32.mrb[31].mxu0 }
 0x139   : > { %v3031_v56 = vadd.f32 %v2157_v50, %v2105_v13  ;;  %v2160_v43 = vadd.f32 %v2159_v53, %v2158_v51 }
 0x13b   : > { %v3033_v54 = vadd.f32 %v2160_v43, %v2108_v47 }
 0x13e   : > { %v2189_v61 = vpop.f32.mrb[32].mxu0 }
 0x13f   : > { %v2190_v57 = vpop.f32.mrb[33].mxu0 }
 0x140   : > { %v2191_v58 = vadd.f32 %v2190_v57, %v2189_v61  ;;  %v2192_v48 = vpop.f32.mrb[34].mxu0 }
 0x141   : > { %v2291_v8 = vpop.f32.mrb[0].mxu1  ;;  %v2193_v62 = vpop.f32.mrb[35].mxu0 }
 0x142   : > { %v1596_v60 = vpop.f32.mrb[1].mxu1  ;;  %v2301_v11 = vadd.f32 %v2300_v22, %v2191_v58  ;;  %v2194_v34 = vadd.f32 %v2193_v62, %v2192_v48 }
 0x143   : > { %v2292_v63 = vpop.f32.mrb[2].mxu1 }
 0x144   : > { %v2302_v45 = vadd.f32 %v2301_v11, %v1596_v60  ;;  %v1599_v0 = vpop.f32.mrb[3].mxu1  ;;  %v2307_v25 = vadd.f32 %v2306_v24, %v2194_v34 }
 0x146   : > { %v1642_v4 = vadd.f32 %v2302_v45, %v3038_v37  ;;  %v2308_v6 = vadd.f32 %v2307_v25, %v1599_v0  ;;  %v2195_v2 = vpop.f32.mrb[36].mxu0 }
 0x147   : > { %v2196_v3 = vpop.f32.mrb[37].mxu0 }
 0x148   : > { %v1650_v1 = vmax.f32 %v1642_v4, 0.0  ;;  %v1643_v7 = vadd.f32 %v2308_v6, %v3038_v37  ;;  %v2197_v19 = vadd.f32 %v2196_v3, %v2195_v2  ;;  %v2198_v52 = vpop.f32.mrb[38].mxu0 }
 0x149   : > { %v2295_v55 = vpop.f32.mrb[4].mxu1  ;;  %v2199_v9 = vpop.f32.mrb[39].mxu0 }
 0x14a   : > { %v1651_v42 = vmax.f32 %v1643_v7, 0.0  ;;  %v2298_v5 = vadd.f32 %v2297_v31, %v2197_v19  ;;  %v1612_v10 = vpop.f32.mrb[5].mxu1  ;;  %v2200_v12 = vadd.f32 %v2199_v9, %v2198_v52  ;;  %v1687_v13 = vmul.f32 %v1650_v1, %v1650_v1 }
 0x14b   : > { %v2296_v59 = vpop.f32.mrb[6].mxu1 }
 0x14c   : > { %v2049_v46 = vpack.c.bf16 %v1651_v42, %v1650_v1  ;;  %v1674_v47 = vadd.f32 %v1651_v42, %v1650_v1  ;;  %v1688_v16 = vmul.f32 %v1651_v42, %v1651_v42  ;;  %v2299_v17 = vadd.f32 %v2298_v5, %v2291_v8  ;;  %v1615_v18 = vpop.f32.mrb[7].mxu1 }
 0x14d   : > { %v2304_v15 = vadd.f32 %v2303_v33, %v2200_v12 }
 0x14e   : > { %2050 = vst [vmem:[%s3047_s22] sm:$0xff] %v2049_v46   ;;  %v1695_v21 = vadd.f32 %v1688_v16, %v1687_v13  ;;  %v1644_v22 = vadd.f32 %v2299_v17, %v3038_v37  ;;  %v2201_v23 = vpop.f32.mrb[40].mxu0 }
 0x14f   : > { %v2305_v24 = vadd.f32 %v2304_v15, %v2292_v63  ;;  %v2202_v26 = vpop.f32.mrb[41].mxu0 }
 0x150   : > { %v1652_v27 = vmax.f32 %v1644_v22, 0.0  ;;  %v2203_v28 = vadd.f32 %v2202_v26, %v2201_v23  ;;  %v2204_v29 = vpop.f32.mrb[42].mxu0 }
 0x151   : > { %v1645_v30 = vadd.f32 %v2305_v24, %v3038_v37  ;;  %v2205_v31 = vpop.f32.mrb[43].mxu0 }
 0x152   : > { %v1675_v32 = vadd.f32 %v1674_v47, %v1652_v27  ;;  %v1689_v35 = vmul.f32 %v1652_v27, %v1652_v27  ;;  %v2313_v36 = vadd.f32 %v2312_v44, %v2203_v28  ;;  %v2206_v38 = vadd.f32 %v2205_v31, %v2204_v29 }
 0x153   : > { %v1653_v39 = vmax.f32 %v1645_v30, 0.0 }
 0x154   : > { %v1696_v33 = vadd.f32 %v1695_v21, %v1689_v35  ;;  %v2314_v41 = vadd.f32 %v2313_v36, %v1612_v10  ;;  %v2319_v40 = vadd.f32 %v3029_v49, %v2206_v38 }
 0x155   : > { %v2054_v14 = vpack.c.bf16 %v1653_v39, %v1652_v27  ;;  %v1676_v20 = vadd.f32 %v1675_v32, %v1653_v39  ;;  %v1690_v50 = vmul.f32 %v1653_v39, %v1653_v39 }
 0x156   : > { %v1646_v51 = vadd.f32 %v2314_v41, %v3038_v37  ;;  %v2320_v53 = vadd.f32 %v2319_v40, %v1615_v18  ;;  %v2207_v43 = vpop.f32.mrb[44].mxu0 }
 0x157   : > { %2066 = vst [vmem:[%s3047_s22 + $0x8] sm:$0xff] %v2054_v14   ;;  %v1697_v61 = vadd.f32 %v1696_v33, %v1690_v50  ;;  %v2208_v57 = vpop.f32.mrb[45].mxu0 }
 0x158   : > { %v1654_v58 = vmax.f32 %v1646_v51, 0.0  ;;  %v1647_v44 = vadd.f32 %v2320_v53, %v3038_v37  ;;  %v2209_v48 = vadd.f32 %v2208_v57, %v2207_v43  ;;  %v2210_v8 = vpop.f32.mrb[46].mxu0 }
 0x159   : > { %v2211_v62 = vpop.f32.mrb[47].mxu0 }
 0x15a   : > { %v1677_v60 = vadd.f32 %v1676_v20, %v1654_v58  ;;  %v1691_v11 = vmul.f32 %v1654_v58, %v1654_v58  ;;  %v1655_v49 = vmax.f32 %v1647_v44, 0.0  ;;  %v2310_v34 = vadd.f32 %v3031_v56, %v2209_v48 }
 0x15b   : > { %v2212_v63 = vadd.f32 %v2211_v62, %v2210_v8 }
 0x15c   : > { %v1698_v45 = vadd.f32 %v1697_v61, %v1691_v11  ;;  %v2059_v0 = vpack.c.bf16 %v1655_v49, %v1654_v58  ;;  %v1678_v25 = vadd.f32 %v1677_v60, %v1655_v49  ;;  %v1692_v4 = vmul.f32 %v1655_v49, %v1655_v49 }
 0x15d   : > { %v2311_v6 = vadd.f32 %v2310_v34, %v2295_v55  ;;  %v2316_v2 = vadd.f32 %v3033_v54, %v2212_v63 }
 0x15e   : > { %2067 = vst [vmem:[%s3047_s22 + $0x10] sm:$0xff] %v2059_v0   ;;  %v1699_v3 = vadd.f32 %v1698_v45, %v1692_v4 }
 0x15f   : > { %v1648_v1 = vadd.f32 %v2311_v6, %v3038_v37  ;;  %v2317_v7 = vadd.f32 %v2316_v2, %v2296_v59 }
 0x161   : > { %v1656_v19 = vmax.f32 %v1648_v1, 0.0  ;;  %v1649_v52 = vadd.f32 %v2317_v7, %v3038_v37 }
 0x163   : > { %v1679_v9 = vadd.f32 %v1678_v25, %v1656_v19  ;;  %v1693_v42 = vmul.f32 %v1656_v19, %v1656_v19  ;;  %v1657_v56 = vmax.f32 %v1649_v52, 0.0 }
 0x165   : > { %v1700_v5 = vadd.f32 %v1699_v3, %v1693_v42  ;;  %v2064_v10 = vpack.c.bf16 %v1657_v56, %v1656_v19  ;;  %v1680_v12 = vadd.f32 %v1679_v9, %v1657_v56  ;;  %v1694_v13 = vmul.f32 %v1657_v56, %v1657_v56 }
 0x167   : > { %2068 = vst [vmem:[%s3047_s22 + $0x18] sm:$0xff] %v2064_v10   ;;  %v1681_v55 = vrot.slane %v1680_v12, 4  ;;  %v1701_v46 = vadd.f32 %v1700_v5, %v1694_v13 }
 0x169   : > { %v1682_v54 = vadd.f32 %v1681_v55, %v1680_v12  ;;  %v1702_v47 = vrot.slane %v1701_v46, 4 }
 0x16b   : > { %v1683_v16 = vrot.slane %v1682_v54, 2  ;;  %v1703_v17 = vadd.f32 %v1702_v47, %v1701_v46 }
 0x16d   : > { %v1684_v18 = vadd.f32 %v1683_v16, %v1682_v54  ;;  %v1704_v59 = vrot.slane %v1703_v17, 2 }
 0x16f   : > { %v1685_v15 = vrot.slane %v1684_v18, 1  ;;  %v1705_v21 = vadd.f32 %v1704_v59, %v1703_v17 }
 0x171   : > { %v1706_v37 = vrot.slane %v1705_v21, 1  ;;  %v1686_v22 = vadd.f32 %v1685_v15, %v1684_v18 }
 0x173   : > { %v1707_v23 = vadd.f32 %v1706_v37, %v1705_v21 }
 0x175   : > { %v1709_v24 = vsel %vm1708_vm1, %v1686_v22, %v1707_v23 }
 0x176   : > { %1710 = vst [vmem:[%s267_s25] sm:$0x3] %v1709_v24 }
 0x177 PF: > { %s15_s17 = sadd.s32 1, %s2464_s17   ;;  %s3112_s15 = smov %s2460_s16 }
 0x178   : > { %p12_p5 = scmp.ge.s32.totalorder %s15_s17, 4   ;;  %s3113_s16 = smov %s3115_s18 }
 0x17a   :  { %14 = sbr.rel (!%p12_p5) target bundleno = 2 (0x2), region = 86 }

// kernel: qnet_spatial_forward.8
= control target key start
LH: loop header
LB: loop body
LE: loop exit
PB: predicated region body
PF: predicated region fallthrough
CT: control target
= control target key end

     0   :  { %s4132_s0 = inlined_call_operand.vmem [shape: bf16[2,8,8,128], index: 0, kind: input, shape index: {}]   ;;  %s4133_s1 = inlined_call_operand.vmem [shape: f32[1,128], index: 1, kind: input, shape index: {}]   ;;  %s4134_s2 = inlined_call_operand.vmem [shape: f32[1,128], index: 2, kind: input, shape index: {}]   ;;  %s4135_s3 = inlined_call_operand.vmem [shape: bf16[3,384,256], index: 3, kind: input, shape index: {}]   ;;  %s4136_s4 = inlined_call_operand.vmem [shape: f32[1,256], index: 4, kind: input, shape index: {}]   ;;  %s4137_s5 = inlined_call_operand.vmem [shape: bf16[2,8,8,256], index: 5, kind: output, shape index: {0}]   ;;  %s4138_s6 = inlined_call_operand.vmem [shape: f32[2,2,256], index: 6, kind: output, shape index: {1}]  }
   0x1   :  { %4144 = sst [smem:[#allocation11_spill]] %s4135_s3 }
   0x2   :  { %s3371_s21 = smov 0   ;;  %s3373_s22 = smov 0  }
   0x3   :  { %s3375_s23 = smov 0   ;;  %s3377_s24 = smov 0  }
   0x4   :  { %s3379_s25 = smov 0   ;;  %s3381_s26 = smov 0  }
   0x5   :  { %s3383_s27 = smov 0   ;;  %s3385_s28 = smov 0  }
   0x6   :  { %s3387_s29 = smov 0  }
   0x7 LB: > { %4145 = sst [smem:[#allocation5_spill]] %s3313_s24  ;;  %s2617_s30 = sadd.s32 4294967295, %s3333_s29   ;;  %s3333_s29 = sphi %s3387_s29, %s17_s29   ;;  %s3329_s28 = sphi %s3385_s28, %s4174_s28   ;;  %s3325_s27 = sphi %s3383_s27, %s4173_s27   ;;  %s3321_s26 = sphi %s3381_s26, %s4172_s26   ;;  %s3317_s25 = sphi %s3379_s25, %s4171_s25   ;;  %s3313_s24 = sphi %s3377_s24, %s4170_s24   ;;  %s3309_s23 = sphi %s3375_s23, %s4169_s23   ;;  %s3305_s22 = sphi %s3373_s22, %s4176_s22   ;;  %s3301_s21 = sphi %s3371_s21, %s4175_s21  }
   0x8   : > { %4146 = sst [smem:[#allocation6_spill]] %s3325_s27  ;;  %s26_s7 = sadd.s32 1, %s3325_s27 }
   0x9   : > { %4147 = sst [smem:[#allocation7_spill]] %s3329_s28  ;;  %p27_p0 = scmp.ge.s32.totalorder %s26_s7, 2 }
   0xa   : > { %s29_s8 = sadd.s32 1, %s3329_s28  ;;  %s104_s9 = sadd.s32 1, %s3313_s24 }
   0xb   : > { %p111_p1 = scmp.ne.s32.totalorder %s3313_s24, %s3309_s23  ;;  %s4178_s7 = smov (%p27_p0, %s26_s7), 0 }
   0xc   : > { %4148 = sst [smem:[#allocation8_spill]] %s4178_s7  ;;  %s4180_s8 = smov (!%p27_p0, %s29_s8), %s3329_s28 }
   0xd   : > { %s101_s10 = ssub.s32 %s3325_s27, %s4178_s7  ;;  %p112_p2 = scmp.eq.s32.totalorder %s3333_s29, 0 }
   0xe   : > { %p31_p3 = scmp.ge.s32.totalorder %s4180_s8, 2  ;;  %p102_p4 = scmp.eq.s32.totalorder %s101_s10, 0 }
   0xf   : > { %p113_p5 = por %p112_p2, %p111_p1  ;;  %s158_s11 = sadd.s32 1, %s3305_s22 }
  0x10   : > { %s4182_s8 = smov (%p31_p3, %s4180_s8), 0  ;;  %p168_p6 = scmp.ne.s32.totalorder %s3305_s22, %s3301_s21 }
  0x11   : > { %4149 = sst [smem:[#allocation9_spill]] %s4182_s8  ;;  %s153_s13 = ssub.s32 %s3329_s28, %s4182_s8 }
  0x12   : > { %s3432_s12 = scalar_select %p102_p4, %s3313_s24, %s104_s9  }
  0x13   : > { %s155_s14 = sor.u32 %s153_s13, %s101_s10  ;;  %p169_p7 = scmp.eq.s32.totalorder %s2617_s30, 3 }
  0x14   : > { %4150 = sst [smem:[#allocation10_spill]] %s3432_s12  ;;  %p156_p8 = scmp.eq.s32.totalorder %s155_s14, 0 }
  0x15   : > { %p3438_p9 = por %p169_p7, %p168_p6  ;;  %p2620_p10 = scmp.ge.s32.totalorder %s3333_s29, 4 }
  0x16   : > { %s3443_s16 = scalar_select %p156_p8, %s3305_s22, %s158_s11  }
  0x17   : > { %225 = sbr.rel (%p2620_p10) target bundleno = 136 (0x88), region = 24 }
  0x1e   : > { %236 = sbr.rel (!%p113_p5) target bundleno = 136 (0x88), region = 32  ;;  %s238_s17 = sand.u32 (%p113_p5), 1, %s3313_s24  }
  0x1f   : > { %s2621_s18 = sshll.u32 (%p113_p5), %s3325_s27, 2  ;;  %s3116_s19 = smul.u32 (%p113_p5), 576, %s238_s17 }
  0x20   : > { %s4152_s3 = sld [smem:[#allocation11_spill]] (%p113_p5) }
  0x21   : > { %s3458_s10 = scalar_lea.vmem (%p113_p5), [#allocation3], %s3116_s19 }
  0x26   : > { %s3451_s30 = scalar_lea.vmem %s4152_s3, %s2621_s18 }
  0x27   : > { %v258_v0 = vld [vmem:[%s3451_s30] sm:$0xf]  ;;  %v260_v1 = vld [vmem:[%s3451_s30 + $0x8] sm:$0xf]  ;;  %v262_v2 = vld [vmem:[%s3451_s30 + $0x10] sm:$0xf] }
  0x28   : > { %v264_v3 = vld [vmem:[%s3451_s30 + $0x18] sm:$0xf]  ;;  %v266_v4 = vld [vmem:[%s3451_s30 + $0x20] sm:$0xf]  ;;  %259 = vst [vmem:[%s3458_s10] sm:$0xf] %v258_v0 }
  0x29   : > { %261 = vst [vmem:[%s3458_s10 + $0x4] sm:$0xf] %v260_v1  ;;  %263 = vst [vmem:[%s3458_s10 + $0x8] sm:$0xf] %v262_v2  ;;  %v268_v5 = vld [vmem:[%s3451_s30 + $0x28] sm:$0xf] }
  0x2a   : > { %265 = vst [vmem:[%s3458_s10 + $0xc] sm:$0xf] %v264_v3  ;;  %267 = vst [vmem:[%s3458_s10 + $0x10] sm:$0xf] %v266_v4  ;;  %v270_v6 = vld [vmem:[%s3451_s30 + $0x30] sm:$0xf] }
  0x2b   : > { %v272_v7 = vld [vmem:[%s3451_s30 + $0x38] sm:$0xf]  ;;  %269 = vst [vmem:[%s3458_s10 + $0x14] sm:$0xf] %v268_v5  ;;  %271 = vst [vmem:[%s3458_s10 + $0x18] sm:$0xf] %v270_v6 }
  0x2c   : > { %273 = vst [vmem:[%s3458_s10 + $0x1c] sm:$0xf] %v272_v7  ;;  %v274_v8 = vld [vmem:[%s3451_s30 + $0x40] sm:$0xf]  ;;  %v276_v9 = vld [vmem:[%s3451_s30 + $0x48] sm:$0xf] }
  0x2d   : > { %v278_v10 = vld [vmem:[%s3451_s30 + $0x50] sm:$0xf]  ;;  %275 = vst [vmem:[%s3458_s10 + $0x20] sm:$0xf] %v274_v8  ;;  %277 = vst [vmem:[%s3458_s10 + $0x24] sm:$0xf] %v276_v9 }
  0x2e   : > { %279 = vst [vmem:[%s3458_s10 + $0x28] sm:$0xf] %v278_v10  ;;  %v280_v11 = vld [vmem:[%s3451_s30 + $0x58] sm:$0xf]  ;;  %v282_v12 = vld [vmem:[%s3451_s30 + $0x60] sm:$0xf] }
  0x2f   : > { %v284_v13 = vld [vmem:[%s3451_s30 + $0x68] sm:$0xf]  ;;  %281 = vst [vmem:[%s3458_s10 + $0x2c] sm:$0xf] %v280_v11  ;;  %283 = vst [vmem:[%s3458_s10 + $0x30] sm:$0xf] %v282_v12 }
  0x30   : > { %285 = vst [vmem:[%s3458_s10 + $0x34] sm:$0xf] %v284_v13  ;;  %v286_v14 = vld [vmem:[%s3451_s30 + $0x70] sm:$0xf]  ;;  %v288_v15 = vld [vmem:[%s3451_s30 + $0x78] sm:$0xf] }
  0x31   : > { %v290_v16 = vld [vmem:[%s3451_s30 + $0x80] sm:$0xf]  ;;  %287 = vst [vmem:[%s3458_s10 + $0x38] sm:$0xf] %v286_v14  ;;  %289 = vst [vmem:[%s3458_s10 + $0x3c] sm:$0xf] %v288_v15 }
  0x32   : > { %291 = vst [vmem:[%s3458_s10 + $0x40] sm:$0xf] %v290_v16  ;;  %v292_v17 = vld [vmem:[%s3451_s30 + $0x88] sm:$0xf]  ;;  %v294_v18 = vld [vmem:[%s3451_s30 + $0x90] sm:$0xf] }
  0x33   : > { %v296_v19 = vld [vmem:[%s3451_s30 + $0x98] sm:$0xf]  ;;  %293 = vst [vmem:[%s3458_s10 + $0x44] sm:$0xf] %v292_v17  ;;  %295 = vst [vmem:[%s3458_s10 + $0x48] sm:$0xf] %v294_v18 }
  0x34   : > { %297 = vst [vmem:[%s3458_s10 + $0x4c] sm:$0xf] %v296_v19  ;;  %v298_v20 = vld [vmem:[%s3451_s30 + $0xa0] sm:$0xf]  ;;  %v300_v21 = vld [vmem:[%s3451_s30 + $0xa8] sm:$0xf] }
  0x35   : > { %v302_v22 = vld [vmem:[%s3451_s30 + $0xb0] sm:$0xf]  ;;  %299 = vst [vmem:[%s3458_s10 + $0x50] sm:$0xf] %v298_v20  ;;  %301 = vst [vmem:[%s3458_s10 + $0x54] sm:$0xf] %v300_v21 }
  0x36   : > { %303 = vst [vmem:[%s3458_s10 + $0x58] sm:$0xf] %v302_v22  ;;  %v304_v23 = vld [vmem:[%s3451_s30 + $0xb8] sm:$0xf]  ;;  %v306_v24 = vld [vmem:[%s3451_s30 + $0xc0] sm:$0xf] }
  0x37   : > { %v308_v25 = vld [vmem:[%s3451_s30 + $0xc8] sm:$0xf]  ;;  %305 = vst [vmem:[%s3458_s10 + $0x5c] sm:$0xf] %v304_v23  ;;  %307 = vst [vmem:[%s3458_s10 + $0x60] sm:$0xf] %v306_v24 }
  0x38   : > { %309 = vst [vmem:[%s3458_s10 + $0x64] sm:$0xf] %v308_v25  ;;  %v310_v26 = vld [vmem:[%s3451_s30 + $0xd0] sm:$0xf]  ;;  %v312_v27 = vld [vmem:[%s3451_s30 + $0xd8] sm:$0xf] }
  0x39   : > { %v314_v28 = vld [vmem:[%s3451_s30 + $0xe0] sm:$0xf]  ;;  %311 = vst [vmem:[%s3458_s10 + $0x68] sm:$0xf] %v310_v26  ;;  %313 = vst [vmem:[%s3458_s10 + $0x6c] sm:$0xf] %v312_v27 }
  0x3a   : > { %315 = vst [vmem:[%s3458_s10 + $0x70] sm:$0xf] %v314_v28  ;;  %v316_v29 = vld [vmem:[%s3451_s30 + $0xe8] sm:$0xf]  ;;  %v318_v30 = vld [vmem:[%s3451_s30 + $0xf0] sm:$0xf] }
  0x3b   : > { %v320_v31 = vld [vmem:[%s3451_s30 + $0xf8] sm:$0xf]  ;;  %317 = vst [vmem:[%s3458_s10 + $0x74] sm:$0xf] %v316_v29  ;;  %319 = vst [vmem:[%s3458_s10 + $0x78] sm:$0xf] %v318_v30 }
  0x3c   : > { %321 = vst [vmem:[%s3458_s10 + $0x7c] sm:$0xf] %v320_v31  ;;  %v322_v32 = vld [vmem:[%s3451_s30 + $0x100] sm:$0xf]  ;;  %v324_v33 = vld [vmem:[%s3451_s30 + $0x108] sm:$0xf] }
  0x3d   : > { %v326_v34 = vld [vmem:[%s3451_s30 + $0x110] sm:$0xf]  ;;  %323 = vst [vmem:[%s3458_s10 + $0x80] sm:$0xf] %v322_v32  ;;  %325 = vst [vmem:[%s3458_s10 + $0x84] sm:$0xf] %v324_v33 }
  0x3e   : > { %327 = vst [vmem:[%s3458_s10 + $0x88] sm:$0xf] %v326_v34  ;;  %v328_v35 = vld [vmem:[%s3451_s30 + $0x118] sm:$0xf]  ;;  %v330_v36 = vld [vmem:[%s3451_s30 + $0x120] sm:$0xf] }
  0x3f   : > { %v332_v37 = vld [vmem:[%s3451_s30 + $0x128] sm:$0xf]  ;;  %329 = vst [vmem:[%s3458_s10 + $0x8c] sm:$0xf] %v328_v35  ;;  %331 = vst [vmem:[%s3458_s10 + $0x90] sm:$0xf] %v330_v36 }
  0x40   : > { %333 = vst [vmem:[%s3458_s10 + $0x94] sm:$0xf] %v332_v37  ;;  %v334_v38 = vld [vmem:[%s3451_s30 + $0x130] sm:$0xf]  ;;  %v336_v39 = vld [vmem:[%s3451_s30 + $0x138] sm:$0xf] }
  0x41   : > { %v338_v40 = vld [vmem:[%s3451_s30 + $0x140] sm:$0xf]  ;;  %335 = vst [vmem:[%s3458_s10 + $0x98] sm:$0xf] %v334_v38  ;;  %337 = vst [vmem:[%s3458_s10 + $0x9c] sm:$0xf] %v336_v39 }
  0x42   : > { %339 = vst [vmem:[%s3458_s10 + $0xa0] sm:$0xf] %v338_v40  ;;  %v340_v41 = vld [vmem:[%s3451_s30 + $0x148] sm:$0xf]  ;;  %v342_v42 = vld [vmem:[%s3451_s30 + $0x150] sm:$0xf] }
  0x43   : > { %v344_v43 = vld [vmem:[%s3451_s30 + $0x158] sm:$0xf]  ;;  %341 = vst [vmem:[%s3458_s10 + $0xa4] sm:$0xf] %v340_v41  ;;  %343 = vst [vmem:[%s3458_s10 + $0xa8] sm:$0xf] %v342_v42 }
  0x44   : > { %345 = vst [vmem:[%s3458_s10 + $0xac] sm:$0xf] %v344_v43  ;;  %v346_v44 = vld [vmem:[%s3451_s30 + $0x160] sm:$0xf]  ;;  %v348_v45 = vld [vmem:[%s3451_s30 + $0x168] sm:$0xf] }
  0x45   : > { %v350_v46 = vld [vmem:[%s3451_s30 + $0x170] sm:$0xf]  ;;  %347 = vst [vmem:[%s3458_s10 + $0xb0] sm:$0xf] %v346_v44  ;;  %349 = vst [vmem:[%s3458_s10 + $0xb4] sm:$0xf] %v348_v45 }
  0x46   : > { %351 = vst [vmem:[%s3458_s10 + $0xb8] sm:$0xf] %v350_v46  ;;  %v352_v47 = vld [vmem:[%s3451_s30 + $0x178] sm:$0xf]  ;;  %v354_v48 = vld [vmem:[%s3451_s30 + $0x180] sm:$0xf] }
  0x47   : > { %v356_v49 = vld [vmem:[%s3451_s30 + $0x188] sm:$0xf]  ;;  %353 = vst [vmem:[%s3458_s10 + $0xbc] sm:$0xf] %v352_v47  ;;  %355 = vst [vmem:[%s3458_s10 + $0xc0] sm:$0xf] %v354_v48 }
  0x48   : > { %357 = vst [vmem:[%s3458_s10 + $0xc4] sm:$0xf] %v356_v49  ;;  %v358_v50 = vld [vmem:[%s3451_s30 + $0x190] sm:$0xf]  ;;  %v360_v51 = vld [vmem:[%s3451_s30 + $0x198] sm:$0xf] }
  0x49   : > { %v362_v52 = vld [vmem:[%s3451_s30 + $0x1a0] sm:$0xf]  ;;  %359 = vst [vmem:[%s3458_s10 + $0xc8] sm:$0xf] %v358_v50  ;;  %361 = vst [vmem:[%s3458_s10 + $0xcc] sm:$0xf] %v360_v51 }
  0x4a   : > { %363 = vst [vmem:[%s3458_s10 + $0xd0] sm:$0xf] %v362_v52  ;;  %v364_v53 = vld [vmem:[%s3451_s30 + $0x1a8] sm:$0xf]  ;;  %v366_v54 = vld [vmem:[%s3451_s30 + $0x1b0] sm:$0xf] }
  0x4b   : > { %v368_v55 = vld [vmem:[%s3451_s30 + $0x1b8] sm:$0xf]  ;;  %365 = vst [vmem:[%s3458_s10 + $0xd4] sm:$0xf] %v364_v53  ;;  %367 = vst [vmem:[%s3458_s10 + $0xd8] sm:$0xf] %v366_v54 }
  0x4c   : > { %369 = vst [vmem:[%s3458_s10 + $0xdc] sm:$0xf] %v368_v55  ;;  %v370_v56 = vld [vmem:[%s3451_s30 + $0x1c0] sm:$0xf]  ;;  %v372_v57 = vld [vmem:[%s3451_s30 + $0x1c8] sm:$0xf] }
  0x4d   : > { %v374_v58 = vld [vmem:[%s3451_s30 + $0x1d0] sm:$0xf]  ;;  %371 = vst [vmem:[%s3458_s10 + $0xe0] sm:$0xf] %v370_v56  ;;  %373 = vst [vmem:[%s3458_s10 + $0xe4] sm:$0xf] %v372_v57 }
  0x4e   : > { %375 = vst [vmem:[%s3458_s10 + $0xe8] sm:$0xf] %v374_v58  ;;  %v376_v59 = vld [vmem:[%s3451_s30 + $0x1d8] sm:$0xf]  ;;  %v378_v60 = vld [vmem:[%s3451_s30 + $0x1e0] sm:$0xf] }
  0x4f   : > { %v380_v61 = vld [vmem:[%s3451_s30 + $0x1e8] sm:$0xf]  ;;  %377 = vst [vmem:[%s3458_s10 + $0xec] sm:$0xf] %v376_v59  ;;  %379 = vst [vmem:[%s3458_s10 + $0xf0] sm:$0xf] %v378_v60 }
  0x50   : > { %381 = vst [vmem:[%s3458_s10 + $0xf4] sm:$0xf] %v380_v61  ;;  %v382_v62 = vld [vmem:[%s3451_s30 + $0x1f0] sm:$0xf]  ;;  %v384_v63 = vld [vmem:[%s3451_s30 + $0x1f8] sm:$0xf] }
  0x51   : > { %v386_v0 = vld [vmem:[%s3451_s30 + $0x200] sm:$0xf]  ;;  %383 = vst [vmem:[%s3458_s10 + $0xf8] sm:$0xf] %v382_v62  ;;  %385 = vst [vmem:[%s3458_s10 + $0xfc] sm:$0xf] %v384_v63 }
  0x52   : > { %387 = vst [vmem:[%s3458_s10 + $0x100] sm:$0xf] %v386_v0  ;;  %v388_v1 = vld [vmem:[%s3451_s30 + $0x208] sm:$0xf]  ;;  %v390_v2 = vld [vmem:[%s3451_s30 + $0x210] sm:$0xf] }
  0x53   : > { %v392_v3 = vld [vmem:[%s3451_s30 + $0x218] sm:$0xf]  ;;  %389 = vst [vmem:[%s3458_s10 + $0x104] sm:$0xf] %v388_v1  ;;  %391 = vst [vmem:[%s3458_s10 + $0x108] sm:$0xf] %v390_v2 }
  0x54   : > { %393 = vst [vmem:[%s3458_s10 + $0x10c] sm:$0xf] %v392_v3  ;;  %v394_v4 = vld [vmem:[%s3451_s30 + $0x220] sm:$0xf]  ;;  %v396_v5 = vld [vmem:[%s3451_s30 + $0x228] sm:$0xf] }
  0x55   : > { %v398_v6 = vld [vmem:[%s3451_s30 + $0x230] sm:$0xf]  ;;  %395 = vst [vmem:[%s3458_s10 + $0x110] sm:$0xf] %v394_v4  ;;  %397 = vst [vmem:[%s3458_s10 + $0x114] sm:$0xf] %v396_v5 }
  0x56   : > { %399 = vst [vmem:[%s3458_s10 + $0x118] sm:$0xf] %v398_v6  ;;  %v400_v7 = vld [vmem:[%s3451_s30 + $0x238] sm:$0xf]  ;;  %v402_v8 = vld [vmem:[%s3451_s30 + $0x240] sm:$0xf] }
  0x57   : > { %v404_v9 = vld [vmem:[%s3451_s30 + $0x248] sm:$0xf]  ;;  %401 = vst [vmem:[%s3458_s10 + $0x11c] sm:$0xf] %v400_v7  ;;  %403 = vst [vmem:[%s3458_s10 + $0x120] sm:$0xf] %v402_v8 }
  0x58   : > { %405 = vst [vmem:[%s3458_s10 + $0x124] sm:$0xf] %v404_v9  ;;  %v406_v10 = vld [vmem:[%s3451_s30 + $0x250] sm:$0xf]  ;;  %v408_v11 = vld [vmem:[%s3451_s30 + $0x258] sm:$0xf] }
  0x59   : > { %v410_v12 = vld [vmem:[%s3451_s30 + $0x260] sm:$0xf]  ;;  %407 = vst [vmem:[%s3458_s10 + $0x128] sm:$0xf] %v406_v10  ;;  %409 = vst [vmem:[%s3458_s10 + $0x12c] sm:$0xf] %v408_v11 }
  0x5a   : > { %411 = vst [vmem:[%s3458_s10 + $0x130] sm:$0xf] %v410_v12  ;;  %v412_v13 = vld [vmem:[%s3451_s30 + $0x268] sm:$0xf]  ;;  %v414_v14 = vld [vmem:[%s3451_s30 + $0x270] sm:$0xf] }
  0x5b   : > { %v416_v15 = vld [vmem:[%s3451_s30 + $0x278] sm:$0xf]  ;;  %413 = vst [vmem:[%s3458_s10 + $0x134] sm:$0xf] %v412_v13  ;;  %415 = vst [vmem:[%s3458_s10 + $0x138] sm:$0xf] %v414_v14 }
  0x5c   : > { %417 = vst [vmem:[%s3458_s10 + $0x13c] sm:$0xf] %v416_v15  ;;  %v418_v16 = vld [vmem:[%s3451_s30 + $0x280] sm:$0xf]  ;;  %v420_v17 = vld [vmem:[%s3451_s30 + $0x288] sm:$0xf] }
  0x5d   : > { %v422_v18 = vld [vmem:[%s3451_s30 + $0x290] sm:$0xf]  ;;  %419 = vst [vmem:[%s3458_s10 + $0x140] sm:$0xf] %v418_v16  ;;  %421 = vst [vmem:[%s3458_s10 + $0x144] sm:$0xf] %v420_v17 }
  0x5e   : > { %423 = vst [vmem:[%s3458_s10 + $0x148] sm:$0xf] %v422_v18  ;;  %v424_v19 = vld [vmem:[%s3451_s30 + $0x298] sm:$0xf]  ;;  %v426_v20 = vld [vmem:[%s3451_s30 + $0x2a0] sm:$0xf] }
  0x5f   : > { %v428_v21 = vld [vmem:[%s3451_s30 + $0x2a8] sm:$0xf]  ;;  %425 = vst [vmem:[%s3458_s10 + $0x14c] sm:$0xf] %v424_v19  ;;  %427 = vst [vmem:[%s3458_s10 + $0x150] sm:$0xf] %v426_v20 }
  0x60   : > { %429 = vst [vmem:[%s3458_s10 + $0x154] sm:$0xf] %v428_v21  ;;  %v430_v22 = vld [vmem:[%s3451_s30 + $0x2b0] sm:$0xf]  ;;  %v432_v23 = vld [vmem:[%s3451_s30 + $0x2b8] sm:$0xf] }
  0x61   : > { %v434_v24 = vld [vmem:[%s3451_s30 + $0x2c0] sm:$0xf]  ;;  %431 = vst [vmem:[%s3458_s10 + $0x158] sm:$0xf] %v430_v22  ;;  %433 = vst [vmem:[%s3458_s10 + $0x15c] sm:$0xf] %v432_v23 }
  0x62   : > { %435 = vst [vmem:[%s3458_s10 + $0x160] sm:$0xf] %v434_v24  ;;  %v436_v25 = vld [vmem:[%s3451_s30 + $0x2c8] sm:$0xf]  ;;  %v438_v26 = vld [vmem:[%s3451_s30 + $0x2d0] sm:$0xf] }
  0x63   : > { %v440_v27 = vld [vmem:[%s3451_s30 + $0x2d8] sm:$0xf]  ;;  %437 = vst [vmem:[%s3458_s10 + $0x164] sm:$0xf] %v436_v25  ;;  %439 = vst [vmem:[%s3458_s10 + $0x168] sm:$0xf] %v438_v26 }
  0x64   : > { %441 = vst [vmem:[%s3458_s10 + $0x16c] sm:$0xf] %v440_v27  ;;  %v442_v28 = vld [vmem:[%s3451_s30 + $0x2e0] sm:$0xf]  ;;  %v444_v29 = vld [vmem:[%s3451_s30 + $0x2e8] sm:$0xf] }
  0x65   : > { %v446_v30 = vld [vmem:[%s3451_s30 + $0x2f0] sm:$0xf]  ;;  %443 = vst [vmem:[%s3458_s10 + $0x170] sm:$0xf] %v442_v28  ;;  %445 = vst [vmem:[%s3458_s10 + $0x174] sm:$0xf] %v444_v29 }
  0x66   : > { %447 = vst [vmem:[%s3458_s10 + $0x178] sm:$0xf] %v446_v30  ;;  %v448_v31 = vld [vmem:[%s3451_s30 + $0x2f8] sm:$0xf]  ;;  %v450_v32 = vld [vmem:[%s3451_s30 + $0x300] sm:$0xf] }
  0x67   : > { %v452_v33 = vld [vmem:[%s3451_s30 + $0x308] sm:$0xf]  ;;  %449 = vst [vmem:[%s3458_s10 + $0x17c] sm:$0xf] %v448_v31  ;;  %451 = vst [vmem:[%s3458_s10 + $0x180] sm:$0xf] %v450_v32 }
  0x68   : > { %453 = vst [vmem:[%s3458_s10 + $0x184] sm:$0xf] %v452_v33  ;;  %v454_v34 = vld [vmem:[%s3451_s30 + $0x310] sm:$0xf]  ;;  %v456_v35 = vld [vmem:[%s3451_s30 + $0x318] sm:$0xf] }
  0x69   : > { %v458_v36 = vld [vmem:[%s3451_s30 + $0x320] sm:$0xf]  ;;  %455 = vst [vmem:[%s3458_s10 + $0x188] sm:$0xf] %v454_v34  ;;  %457 = vst [vmem:[%s3458_s10 + $0x18c] sm:$0xf] %v456_v35 }
  0x6a   : > { %459 = vst [vmem:[%s3458_s10 + $0x190] sm:$0xf] %v458_v36  ;;  %v460_v37 = vld [vmem:[%s3451_s30 + $0x328] sm:$0xf]  ;;  %v462_v38 = vld [vmem:[%s3451_s30 + $0x330] sm:$0xf] }
  0x6b   : > { %v464_v39 = vld [vmem:[%s3451_s30 + $0x338] sm:$0xf]  ;;  %461 = vst [vmem:[%s3458_s10 + $0x194] sm:$0xf] %v460_v37  ;;  %463 = vst [vmem:[%s3458_s10 + $0x198] sm:$0xf] %v462_v38 }
  0x6c   : > { %465 = vst [vmem:[%s3458_s10 + $0x19c] sm:$0xf] %v464_v39  ;;  %v466_v40 = vld [vmem:[%s3451_s30 + $0x340] sm:$0xf]  ;;  %v468_v41 = vld [vmem:[%s3451_s30 + $0x348] sm:$0xf] }
  0x6d   : > { %v470_v42 = vld [vmem:[%s3451_s30 + $0x350] sm:$0xf]  ;;  %467 = vst [vmem:[%s3458_s10 + $0x1a0] sm:$0xf] %v466_v40  ;;  %469 = vst [vmem:[%s3458_s10 + $0x1a4] sm:$0xf] %v468_v41 }
  0x6e   : > { %471 = vst [vmem:[%s3458_s10 + $0x1a8] sm:$0xf] %v470_v42  ;;  %v472_v43 = vld [vmem:[%s3451_s30 + $0x358] sm:$0xf]  ;;  %v474_v44 = vld [vmem:[%s3451_s30 + $0x360] sm:$0xf] }
  0x6f   : > { %v476_v45 = vld [vmem:[%s3451_s30 + $0x368] sm:$0xf]  ;;  %473 = vst [vmem:[%s3458_s10 + $0x1ac] sm:$0xf] %v472_v43  ;;  %475 = vst [vmem:[%s3458_s10 + $0x1b0] sm:$0xf] %v474_v44 }
  0x70   : > { %477 = vst [vmem:[%s3458_s10 + $0x1b4] sm:$0xf] %v476_v45  ;;  %v478_v46 = vld [vmem:[%s3451_s30 + $0x370] sm:$0xf]  ;;  %v480_v47 = vld [vmem:[%s3451_s30 + $0x378] sm:$0xf] }
  0x71   : > { %v482_v48 = vld [vmem:[%s3451_s30 + $0x380] sm:$0xf]  ;;  %479 = vst [vmem:[%s3458_s10 + $0x1b8] sm:$0xf] %v478_v46  ;;  %481 = vst [vmem:[%s3458_s10 + $0x1bc] sm:$0xf] %v480_v47 }
  0x72   : > { %483 = vst [vmem:[%s3458_s10 + $0x1c0] sm:$0xf] %v482_v48  ;;  %v484_v49 = vld [vmem:[%s3451_s30 + $0x388] sm:$0xf]  ;;  %v486_v50 = vld [vmem:[%s3451_s30 + $0x390] sm:$0xf] }
  0x73   : > { %v488_v51 = vld [vmem:[%s3451_s30 + $0x398] sm:$0xf]  ;;  %485 = vst [vmem:[%s3458_s10 + $0x1c4] sm:$0xf] %v484_v49  ;;  %487 = vst [vmem:[%s3458_s10 + $0x1c8] sm:$0xf] %v486_v50 }
  0x74   : > { %489 = vst [vmem:[%s3458_s10 + $0x1cc] sm:$0xf] %v488_v51  ;;  %v490_v52 = vld [vmem:[%s3451_s30 + $0x3a0] sm:$0xf]  ;;  %v492_v53 = vld [vmem:[%s3451_s30 + $0x3a8] sm:$0xf] }
  0x75   : > { %v494_v54 = vld [vmem:[%s3451_s30 + $0x3b0] sm:$0xf]  ;;  %491 = vst [vmem:[%s3458_s10 + $0x1d0] sm:$0xf] %v490_v52  ;;  %493 = vst [vmem:[%s3458_s10 + $0x1d4] sm:$0xf] %v492_v53 }
  0x76   : > { %495 = vst [vmem:[%s3458_s10 + $0x1d8] sm:$0xf] %v494_v54  ;;  %v496_v55 = vld [vmem:[%s3451_s30 + $0x3b8] sm:$0xf]  ;;  %v498_v56 = vld [vmem:[%s3451_s30 + $0x3c0] sm:$0xf] }
  0x77   : > { %v500_v57 = vld [vmem:[%s3451_s30 + $0x3c8] sm:$0xf]  ;;  %497 = vst [vmem:[%s3458_s10 + $0x1dc] sm:$0xf] %v496_v55  ;;  %499 = vst [vmem:[%s3458_s10 + $0x1e0] sm:$0xf] %v498_v56 }
  0x78   : > { %501 = vst [vmem:[%s3458_s10 + $0x1e4] sm:$0xf] %v500_v57  ;;  %v502_v58 = vld [vmem:[%s3451_s30 + $0x3d0] sm:$0xf]  ;;  %v504_v59 = vld [vmem:[%s3451_s30 + $0x3d8] sm:$0xf] }
  0x79   : > { %v506_v60 = vld [vmem:[%s3451_s30 + $0x3e0] sm:$0xf]  ;;  %503 = vst [vmem:[%s3458_s10 + $0x1e8] sm:$0xf] %v502_v58  ;;  %505 = vst [vmem:[%s3458_s10 + $0x1ec] sm:$0xf] %v504_v59 }
  0x7a   : > { %507 = vst [vmem:[%s3458_s10 + $0x1f0] sm:$0xf] %v506_v60  ;;  %v508_v61 = vld [vmem:[%s3451_s30 + $0x3e8] sm:$0xf]  ;;  %v510_v62 = vld [vmem:[%s3451_s30 + $0x3f0] sm:$0xf] }
  0x7b   : > { %v512_v63 = vld [vmem:[%s3451_s30 + $0x3f8] sm:$0xf]  ;;  %509 = vst [vmem:[%s3458_s10 + $0x1f4] sm:$0xf] %v508_v61  ;;  %511 = vst [vmem:[%s3458_s10 + $0x1f8] sm:$0xf] %v510_v62 }
  0x7c   : > { %513 = vst [vmem:[%s3458_s10 + $0x1fc] sm:$0xf] %v512_v63  ;;  %v514_v0 = vld [vmem:[%s3451_s30 + $0x400] sm:$0xf]  ;;  %v516_v1 = vld [vmem:[%s3451_s30 + $0x408] sm:$0xf] }
  0x7d   : > { %v518_v2 = vld [vmem:[%s3451_s30 + $0x410] sm:$0xf]  ;;  %515 = vst [vmem:[%s3458_s10 + $0x200] sm:$0xf] %v514_v0  ;;  %517 = vst [vmem:[%s3458_s10 + $0x204] sm:$0xf] %v516_v1 }
  0x7e   : > { %519 = vst [vmem:[%s3458_s10 + $0x208] sm:$0xf] %v518_v2  ;;  %v520_v3 = vld [vmem:[%s3451_s30 + $0x418] sm:$0xf]  ;;  %v522_v4 = vld [vmem:[%s3451_s30 + $0x420] sm:$0xf] }
  0x7f   : > { %v524_v5 = vld [vmem:[%s3451_s30 + $0x428] sm:$0xf]  ;;  %521 = vst [vmem:[%s3458_s10 + $0x20c] sm:$0xf] %v520_v3  ;;  %523 = vst [vmem:[%s3458_s10 + $0x210] sm:$0xf] %v522_v4 }
  0x80   : > { %525 = vst [vmem:[%s3458_s10 + $0x214] sm:$0xf] %v524_v5  ;;  %v526_v6 = vld [vmem:[%s3451_s30 + $0x430] sm:$0xf]  ;;  %v528_v7 = vld [vmem:[%s3451_s30 + $0x438] sm:$0xf] }
  0x81   : > { %v530_v8 = vld [vmem:[%s3451_s30 + $0x440] sm:$0xf]  ;;  %527 = vst [vmem:[%s3458_s10 + $0x218] sm:$0xf] %v526_v6  ;;  %529 = vst [vmem:[%s3458_s10 + $0x21c] sm:$0xf] %v528_v7 }
  0x82   : > { %531 = vst [vmem:[%s3458_s10 + $0x220] sm:$0xf] %v530_v8  ;;  %v532_v9 = vld [vmem:[%s3451_s30 + $0x448] sm:$0xf]  ;;  %v534_v10 = vld [vmem:[%s3451_s30 + $0x450] sm:$0xf] }
  0x83   : > { %v536_v11 = vld [vmem:[%s3451_s30 + $0x458] sm:$0xf]  ;;  %533 = vst [vmem:[%s3458_s10 + $0x224] sm:$0xf] %v532_v9  ;;  %535 = vst [vmem:[%s3458_s10 + $0x228] sm:$0xf] %v534_v10 }
  0x84   : > { %537 = vst [vmem:[%s3458_s10 + $0x22c] sm:$0xf] %v536_v11  ;;  %v538_v12 = vld [vmem:[%s3451_s30 + $0x460] sm:$0xf]  ;;  %v540_v13 = vld [vmem:[%s3451_s30 + $0x468] sm:$0xf] }
  0x85   : > { %v542_v14 = vld [vmem:[%s3451_s30 + $0x470] sm:$0xf]  ;;  %539 = vst [vmem:[%s3458_s10 + $0x230] sm:$0xf] %v538_v12  ;;  %541 = vst [vmem:[%s3458_s10 + $0x234] sm:$0xf] %v540_v13 }
  0x86   : > { %543 = vst [vmem:[%s3458_s10 + $0x238] sm:$0xf] %v542_v14  ;;  %v544_v15 = vld [vmem:[%s3451_s30 + $0x478] sm:$0xf] }
  0x87   : > { %545 = vst [vmem:[%s3458_s10 + $0x23c] sm:$0xf] %v544_v15 }
  0x88 PF: > { %p2622_p11 = scmp.ge.s32.totalorder %s3333_s29, 1  ;;  %p861_p12 = scmp.lt.s32.totalorder %s3333_s29, 5 }
  0x8a   : > { %p862_p13 = pnand %p2622_p11, %p861_p12 }
  0x8b   : > { %s868_s11 = sand.u32 (!%p862_p13), 1, %s3309_s23   ;;  %s899_s13 = sand.u32 (!%p862_p13), 1, %s3301_s21  }
  0x8c   : > { %865 = sbr.rel (%p862_p13) target bundleno = 564 (0x234), region = 77  ;;  %s2623_s17 = sshll.u32 (!%p862_p13), %s899_s13, 5 }
  0x8d   : > { %s3117_s14 = smul.u32 (!%p862_p13), 576, %s868_s11  ;;  %p912_p0 = scmp.lt.s32.totalorder (!%p862_p13), %s3321_s26, 1 }
  0x8e   : > { %p917_p1 = scmp.lt.s32.totalorder (!%p862_p13), %s3317_s25, 1  ;;  %s3768_s24 = scalar_lea.vmem (!%p862_p13), [#allocation4], %s2623_s17 }
  0x8f   : > { %s3766_s12 = scalar_lea.vmem (!%p862_p13), [#allocation3], %s3117_s14  ;;  %p2628_p2 = scmp.ne.s32.totalorder (!%p862_p13), %s3317_s25, 0 }
  0x93   : > { %s913_s18 = scalar_select %p912_p0, %s3321_s26, 1 }
  0x94   : > { %s3751_s19 = scalar_select %p917_p1, %s3317_s25, 1 }
  0x95   : > { %s2805_s20 = sshll.u32 %s913_s18, 5  ;;  %s2626_s9 = sshll.u32 %s913_s18, 1  ;;  %v3776_v18 = vld [vmem:[%s4133_s1] ss:$0 sm:$0xff] (!%p2628_p2)  ;;  %v979_v19 = vlaneseq (!%p2628_p2)  ;;  %v3335_v20 = vmov (!%p2628_p2), 0   ;;  %vm1212_vm4 = vcmask (!%p2628_p2), 1043456  }
  0x96   : > { %s916_s3 = scalar_lea.vmem %s4132_s0, %s2805_s20  ;;  %s919_s23 = scalar_lea.vmem %s4136_s4, %s3751_s19  ;;  %1182 = vst [vmem:[#allocation2] sm:$0xf] (!%p2628_p2), %v3335_v20  ;;  %1183 = vst [vmem:[#allocation2 + $0x8] sm:$0xf] (!%p2628_p2), %v3335_v20  ;;  %v3785_v27 = vld [vmem:[%s4134_s2] ss:$0 sm:$0xff] (!%p2628_p2) }
  0x97   : > { %s925_s21 = sadd.s32 %s2626_s9, %s3751_s19  ;;  %932 = sbr.rel (%p2628_p2) target bundleno = 193 (0xc1), region = 85  ;;  %v2807_v16 = vld [vmem:[%s916_s3] sm:$0xff] (!%p2628_p2)   ;;  %v3771_v17 = vld [vmem:[%s916_s3 + $0x18] sm:$0xff] (!%p2628_p2)   ;;  %1184 = vst [vmem:[#allocation2 + $0x10] sm:$0xf] (!%p2628_p2), %v3335_v20  ;;  %v2842_v25 = vld [vmem:[%s916_s3 + $0x8] sm:$0xff] (!%p2628_p2)  }
  0x98   : > { %s2627_s11 = sshll.u32 %s925_s21, 1  ;;  %1185 = vst [vmem:[#allocation2 + $0x60] sm:$0xf0] (!%p2628_p2), %v3335_v20  ;;  %1186 = vst [vmem:[#allocation2 + $0x68] sm:$0xf0] (!%p2628_p2), %v3335_v20  ;;  %v2808_v21 = vunpack.c.l.bf16 (!%p2628_p2), %v2807_v16  ;;  %v2809_v22 = vunpack.c.h.bf16 (!%p2628_p2), %v2807_v16  ;;  %v2820_v23 = vunpack.c.l.bf16 (!%p2628_p2), %v3771_v17  ;;  %v2821_v24 = vunpack.c.h.bf16 (!%p2628_p2), %v3771_v17  ;;  %v3780_v26 = vld [vmem:[%s916_s3 + $0x10] sm:$0xff] (!%p2628_p2)  }
  0x99   : > { %s3764_s27 = scalar_lea.vmem %s4138_s6, %s2627_s11  ;;  %1187 = vst [vmem:[#allocation2 + $0x70] sm:$0xf0] (!%p2628_p2), %v3335_v20  ;;  %v3787_v28 = vshrl.u32 (!%p2628_p2), %v979_v19, 7  ;;  %v2812_v29 = vunpack.c.l.bf16 (!%p2628_p2), %v2842_v25  ;;  %v2813_v30 = vunpack.c.h.bf16 (!%p2628_p2), %v2842_v25  ;;  %v2816_v31 = vunpack.c.l.bf16 (!%p2628_p2), %v3780_v26 }
  0x9a   : > { %v956_v32 = vmul.f32 (!%p2628_p2), %v2808_v21, %v3776_v18  ;;  %v957_v33 = vmul.f32 (!%p2628_p2), %v2809_v22, %v3776_v18  ;;  %v963_v34 = vmul.f32 (!%p2628_p2), %v2821_v24, %v3776_v18  ;;  %v2817_v35 = vunpack.c.h.bf16 (!%p2628_p2), %v3780_v26 }
  0x9b   : > { %v981_v36 = vadd.s32 (!%p2628_p2), 8, %v3787_v28  ;;  %v992_v37 = vand.u32 (!%p2628_p2), 7, %v3787_v28  ;;  %vm1100_vm0 = vcmp.lt.s32.totalorder (!%p2628_p2), %v3787_v28, 1  ;;  %v958_v38 = vmul.f32 (!%p2628_p2), %v2812_v29, %v3776_v18 }
  0x9c   : > { %v3799_v39 = vadd.f32 (!%p2628_p2), %v3785_v27, %v956_v32  ;;  %v972_v40 = vadd.f32 (!%p2628_p2), %v3785_v27, %v957_v33  ;;  %v3803_v41 = vadd.f32 (!%p2628_p2), %v3785_v27, %v963_v34  ;;  %vm1149_vm1 = vcmp.lt.s32.totalorder (!%p2628_p2), %v3787_v28, 7 }
  0x9d   : > { %v999_v42 = vand.u32 (!%p2628_p2), 7, %v981_v36  ;;  %vm3806_vm2 = vcmp.eq.s32.totalorder (!%p2628_p2), %v992_v37, 0  ;;  %v973_v44 = vadd.f32 (!%p2628_p2), %v3785_v27, %v958_v38  ;;  %vm3811_vm3 = vcmp.eq.s32.totalorder (!%p2628_p2), %v992_v37, 7 }
  0x9e   : > { %v1092_v46 = vrot.slane %v3799_v39, 7  ;;  %v1093_v47 = vrot.slane %v972_v40, 7  ;;  %v1099_v48 = vrot.slane %v3803_v41, 7  ;;  %v1189_v49 = vpack.c.bf16 %v972_v40, %v3799_v39 }
  0x9f   : > { %vm1085_vm5 = vcmp.eq.s32.totalorder %v999_v42, 0  ;;  %vm3818_vm6 = vcmp.eq.s32.totalorder %v999_v42, 7  ;;  %v1141_v51 = vrot.slane %v3799_v39, 1  ;;  %v1142_v52 = vrot.slane %v972_v40, 1 }
  0xa0   : > { %v1107_v53 = vsel %vm1100_vm0, %v1092_v46, %v1093_v47  ;;  %v1108_v54 = vsel %vm1100_vm0, %v1099_v48, %v1092_v46  ;;  %v1214_v55 = vrot.slane %v1189_v49, 4  ;;  %v1143_v56 = vrot.slane %v973_v44, 1 }
  0xa1   : > { %v1125_v57 = vsel %vm3806_vm2, 0.0, %v1108_v54  ;;  %v1126_v58 = vsel %vm1085_vm5, 0.0, %v1107_v53  ;;  %v1156_v59 = vsel %vm1149_vm1, %v1141_v51, %v1142_v52  ;;  %v959_v60 = vmul.f32 %v2813_v30, %v3776_v18 }
  0xa2   : > { %v1188_v61 = vpack.c.bf16 %v1126_v58, %v1125_v57  ;;  %1250 = vst [vmem:[#allocation2 + $0x8] sm:$0xf0] %v1214_v55  ;;  %v1155_v62 = vsel %vm1149_vm1, %v1142_v52, %v1143_v56  ;;  %v1174_v63 = vsel %vm3811_vm3, 0.0, %v1156_v59  ;;  %v982_v0 = vadd.s32 16, %v3787_v28 }
  0xa3   : > { %v1175_v1 = vsel %vm3818_vm6, 0.0, %v1155_v62  ;;  %v974_v2 = vadd.f32 %v3785_v27, %v959_v60  ;;  %v983_v3 = vadd.s32 24, %v3787_v28  ;;  %v1094_v4 = vrot.slane %v973_v44, 7 }
  0xa4   : > { %v1213_v5 = vrot.slane %v1188_v61, 4  ;;  %v1190_v6 = vpack.c.bf16 %v1175_v1, %v1174_v63  ;;  %v1006_v7 = vand.u32 7, %v982_v0  ;;  %v960_v8 = vmul.f32 %v2816_v31, %v3776_v18 }
  0xa5   : > { %v1013_v9 = vand.u32 7, %v983_v3  ;;  %v1095_v10 = vrot.slane %v974_v2, 7  ;;  %v1106_v11 = vsel %vm1100_vm0, %v1093_v47, %v1094_v4  ;;  %v1192_v12 = vpack.c.bf16 %v974_v2, %v973_v44 }
  0xa6   : > { %1249 = vst [vmem:[#allocation2] sm:$0xf0] %v1213_v5  ;;  %v1215_v13 = vrot.slane %v1190_v6, 4  ;;  %vm1086_vm7 = vcmp.eq.s32.totalorder %v1006_v7, 0  ;;  %v975_v14 = vadd.f32 %v3785_v27, %v960_v8  ;;  %vm3849_vm8 = vcmp.eq.s32.totalorder %v1006_v7, 7 }
  0xa7   : > { %vm1087_vm9 = vcmp.eq.s32.totalorder %v1013_v9, 0  ;;  %v1105_v16 = vsel %vm1100_vm0, %v1094_v4, %v1095_v10  ;;  %v1127_v19 = vsel %vm1086_vm7, 0.0, %v1106_v11  ;;  %v1218_v20 = vrot.slane %v1192_v12, 4 }
  0xa8   : > { %1251 = vst [vmem:[#allocation2 + $0x10] sm:$0xf0] %v1215_v13  ;;  %v1128_v21 = vsel %vm1087_vm9, 0.0, %v1105_v16  ;;  %vm3855_vm10 = vcmp.eq.s32.totalorder %v1013_v9, 7  ;;  %v1144_v24 = vrot.slane %v974_v2, 1  ;;  %v1145_v25 = vrot.slane %v975_v14, 1 }
  0xa9   : > { %v1191_v29 = vpack.c.bf16 %v1128_v21, %v1127_v19  ;;  %v1219_v30 = vsel %vm1212_vm4, %v1214_v55, %v1218_v20  ;;  %v961_v31 = vmul.f32 %v2817_v35, %v3776_v18  ;;  %v984_v32 = vadd.s32 32, %v3787_v28 }
  0xaa   : > { %1253 = vst [vmem:[#allocation2 + $0x20] sm:$0xff] %v1219_v30  ;;  %v1153_v33 = vsel %vm1149_vm1, %v1144_v24, %v1145_v25  ;;  %v1154_v34 = vsel %vm1149_vm1, %v1143_v56, %v1144_v24  ;;  %v985_v36 = vadd.s32 40, %v3787_v28  ;;  %v1096_v37 = vrot.slane %v975_v14, 7 }
  0xab   : > { %v1216_v38 = vrot.slane %v1191_v29, 4  ;;  %v1176_v40 = vsel %vm3849_vm8, 0.0, %v1154_v34  ;;  %v1177_v26 = vsel %vm3855_vm10, 0.0, %v1153_v33  ;;  %v976_v35 = vadd.f32 %v3785_v27, %v961_v31 }
  0xac   : > { %v1193_v42 = vpack.c.bf16 %v1177_v26, %v1176_v40  ;;  %v1020_v43 = vand.u32 7, %v984_v32  ;;  %v1027_v44 = vand.u32 7, %v985_v36  ;;  %v1104_v45 = vsel %vm1100_vm0, %v1095_v10, %v1096_v37 }
  0xad   : > { %v1217_v46 = vsel %vm1212_vm4, %v1213_v5, %v1216_v38  ;;  %v1097_v47 = vrot.slane %v976_v35, 7  ;;  %v1195_v49 = vpack.c.bf16 %v976_v35, %v975_v14  ;;  %v962_v50 = vmul.f32 %v2820_v23, %v3776_v18 }
  0xae   : > { %1252 = vst [vmem:[#allocation2 + $0x18] sm:$0xff] %v1217_v46  ;;  %v1220_v52 = vrot.slane %v1193_v42, 4  ;;  %vm1088_vm11 = vcmp.eq.s32.totalorder %v1020_v43, 0  ;;  %vm1089_vm12 = vcmp.eq.s32.totalorder %v1027_v44, 0  ;;  %vm3880_vm13 = vcmp.eq.s32.totalorder %v1020_v43, 7 }
  0xaf   : > { %v1103_v54 = vsel %vm1100_vm0, %v1096_v37, %v1097_v47  ;;  %v1129_v55 = vsel %vm1088_vm11, 0.0, %v1104_v45  ;;  %v1224_v56 = vrot.slane %v1195_v49, 4  ;;  %v977_v57 = vadd.f32 %v3785_v27, %v962_v50 }
  0xb0   : > { %v1221_v58 = vsel %vm1212_vm4, %v1215_v13, %v1220_v52  ;;  %v1130_v59 = vsel %vm1089_vm12, 0.0, %v1103_v54  ;;  %vm3888_vm14 = vcmp.eq.s32.totalorder %v1027_v44, 7  ;;  %v1146_v18 = vrot.slane %v976_v35, 1 }
  0xb1   : > { %1254 = vst [vmem:[#allocation2 + $0x28] sm:$0xff] %v1221_v58  ;;  %v1194_v23 = vpack.c.bf16 %v1130_v59, %v1129_v55  ;;  %v1225_v60 = vsel %vm1212_vm4, %v1218_v20, %v1224_v56  ;;  %v1147_v61 = vrot.slane %v977_v57, 1  ;;  %v986_v62 = vadd.s32 48, %v3787_v28 }
  0xb2   : > { %1256 = vst [vmem:[#allocation2 + $0x38] sm:$0xff] %v1225_v60  ;;  %v1152_v63 = vsel %vm1149_vm1, %v1145_v25, %v1146_v18  ;;  %v987_v27 = vadd.s32 56, %v3787_v28  ;;  %v1098_v0 = vrot.slane %v977_v57, 7  ;;  %v1198_v1 = vpack.c.bf16 %v3803_v41, %v977_v57 }
  0xb3   : > { %v1222_v2 = vrot.slane %v1194_v23, 4  ;;  %v1151_v3 = vsel %vm1149_vm1, %v1146_v18, %v1147_v61  ;;  %v1178_v4 = vsel %vm3880_vm13, 0.0, %v1152_v63  ;;  %v1034_v5 = vand.u32 7, %v986_v62 }
  0xb4   : > { %v1179_v6 = vsel %vm3888_vm14, 0.0, %v1151_v3  ;;  %v1041_v7 = vand.u32 7, %v987_v27  ;;  %v1101_v8 = vsel %vm1100_vm0, %v1098_v0, %v1099_v48  ;;  %v1102_v9 = vsel %vm1100_vm0, %v1097_v47, %v1098_v0 }
  0xb5   : > { %v1223_v10 = vsel %vm1212_vm4, %v1216_v38, %v1222_v2  ;;  %v1196_v11 = vpack.c.bf16 %v1179_v6, %v1178_v4  ;;  %vm1090_vm15 = vcmp.eq.s32.totalorder %v1034_v5, 0  ;;  %v1230_v12 = vrot.slane %v1198_v1, 4 }
  0xb6   : > { %1255 = vst [vmem:[#allocation2 + $0x30] sm:$0xff] %v1223_v10  ;;  %vm1091_vm2 = vcmp.eq.s32.totalorder %v1041_v7, 0  ;;  %v1131_v13 = vsel %vm1090_vm15, 0.0, %v1102_v9  ;;  %vm3911_vm3 = vcmp.eq.s32.totalorder %v1034_v5, 7  ;;  %vm1140_vm5 = vcmp.eq.s32.totalorder %v1041_v7, 7 }
  0xb7   : > { %v1226_v15 = vrot.slane %v1196_v11, 4  ;;  %v1132_v16 = vsel %vm1091_vm2, 0.0, %v1101_v8  ;;  %v1231_v48 = vsel %vm1212_vm4, %v1224_v56, %v1230_v12  ;;  %1262 = vst [vmem:[#allocation2 + $0x68] sm:$0xf] %v1230_v12  ;;  %v1148_v19 = vrot.slane %v3803_v41, 1 }
  0xb8   : > { %v1197_v20 = vpack.c.bf16 %v1132_v16, %v1131_v13  ;;  %1259 = vst [vmem:[#allocation2 + $0x50] sm:$0xff] %v1231_v48 }
  0xb9   : > { %v1227_v21 = vsel %vm1212_vm4, %v1220_v52, %v1226_v15  ;;  %v1150_v22 = vsel %vm1149_vm1, %v1147_v61, %v1148_v19  ;;  %v1157_v24 = vsel %vm1149_vm1, %v1148_v19, %v1141_v51 }
  0xba   : > { %1257 = vst [vmem:[#allocation2 + $0x40] sm:$0xff] %v1227_v21  ;;  %v1228_v25 = vrot.slane %v1197_v20, 4  ;;  %v1180_v29 = vsel %vm3911_vm3, 0.0, %v1150_v22  ;;  %v1181_v30 = vsel %vm1140_vm5, 0.0, %v1157_v24 }
  0xbb   : > { %v1199_v31 = vpack.c.bf16 %v1181_v30, %v1180_v29 }
  0xbc   : > { %v1229_v41 = vsel %vm1212_vm4, %v1222_v2, %v1228_v25  ;;  %1261 = vst [vmem:[#allocation2 + $0x60] sm:$0xf] %v1228_v25 }
  0xbd   : > { %1258 = vst [vmem:[#allocation2 + $0x48] sm:$0xff] %v1229_v41  ;;  %v1232_v32 = vrot.slane %v1199_v31, 4 }
  0xbf   : > { %v1233_v33 = vsel %vm1212_vm4, %v1226_v15, %v1232_v32  ;;  %1263 = vst [vmem:[#allocation2 + $0x70] sm:$0xf] %v1232_v32 }
  0xc0   : > { %1260 = vst [vmem:[#allocation2 + $0x58] sm:$0xff] %v1233_v33 }
  0xc1 PF: > { %v3191_v28 = vld [vmem:[%s3766_s12 + $0x100] sm:$0xff]   ;;  %v3194_v34 = vld [vmem:[%s3766_s12 + $0x108] sm:$0xff]   ;;  %v3197_v38 = vld [vmem:[%s3766_s12 + $0x110] sm:$0xff]   ;;  %vm1403_vm0 = vcmask 1043456   ;;  %vm2398_vm1 = vcmask 1040384   ;;  %s2801_s14 = sshll.u32 (%p3438_p9), %s3321_s26, 4 }
  0xc2   : > { %v3192_v39 = vld [vmem:[%s3766_s12 + $0x140] sm:$0xff]   ;;  %2848 = vmatprep.subr.bf16.mxu0 %v3191_v28  ;;  %v3195_v36 = vld [vmem:[%s3766_s12 + $0x148] sm:$0xff]   ;;  %v3198_v40 = vld [vmem:[%s3766_s12 + $0x150] sm:$0xff]   ;;  %s2417_s17 = sadd.s32 (%p3438_p9), %s3317_s25, %s2801_s14 }
  0xc3   : > { %v3193_v51 = vld [vmem:[%s3766_s12 + $0xc0] sm:$0xff]   ;;  %3004 = vmatprep.subr.bf16.mxu1 %v3192_v39  ;;  %v3196_v37 = vld [vmem:[%s3766_s12 + $0xc8] sm:$0xff]   ;;  %v3199_v26 = vld [vmem:[%s3766_s12 + $0xd0] sm:$0xff]  }
  0xc4   : > { %2849 = vmatpush3.bf16.msra.mxu0 %v3193_v51  ;;  %3005 = vmatpush3.bf16.msra.mxu1 %v3192_v39  ;;  %v3200_v35 = vld [vmem:[%s3766_s12 + $0x118] sm:$0xff]   ;;  %v3203_v44 = vld [vmem:[%s3766_s12 + $0x120] sm:$0xff]   ;;  %v3206_v47 = vld [vmem:[%s3766_s12 + $0x128] sm:$0xff]  }
  0xc5   : > { %2850 = vmatprep.subr.bf16.mxu0 %v3194_v34  ;;  %3006 = vmatprep.subr.bf16.mxu1 %v3195_v36  ;;  %v3201_v42 = vld [vmem:[%s3766_s12 + $0x158] sm:$0xff]   ;;  %v3204_v45 = vld [vmem:[%s3766_s12 + $0x160] sm:$0xff]   ;;  %v3207_v49 = vld [vmem:[%s3766_s12 + $0x168] sm:$0xff]  }
  0xc6   : > { %v3202_v43 = vld [vmem:[%s3766_s12 + $0xd8] sm:$0xff]   ;;  %v3205_v46 = vld [vmem:[%s3766_s12 + $0xe0] sm:$0xff]   ;;  %v3208_v50 = vld [vmem:[%s3766_s12 + $0xe8] sm:$0xff]  }
  0xc7   : > { %v3209_v52 = vld [vmem:[%s3766_s12 + $0x130] sm:$0xff]   ;;  %v3212_v55 = vld [vmem:[%s3766_s12 + $0x138] sm:$0xff]   ;;  %v3950_v57 = vld [vmem:[#allocation2 + $0x20] sm:$0xff] }
  0xc8   : > { %2851 = vmatpush3.bf16.msra.mxu0 %v3196_v37  ;;  %3007 = vmatpush3.bf16.msra.mxu1 %v3195_v36  ;;  %v3210_v53 = vld [vmem:[%s3766_s12 + $0x170] sm:$0xff]   ;;  %v1324_v58 = vld [vmem:[#allocation2] sm:$0xf0]  ;;  %v3213_v59 = vld [vmem:[%s3766_s12 + $0x178] sm:$0xff]   ;;  %v1408_v18 = vrot.slane %v3950_v57, 4 }
  0xc9   : > { %2852 = vmatprep.subr.bf16.mxu0 %v3197_v38  ;;  %3008 = vmatprep.subr.bf16.mxu1 %v3198_v40  ;;  %v3211_v54 = vld [vmem:[%s3766_s12 + $0xf0] sm:$0xff]   ;;  %v3954_v23 = vld [vmem:[#allocation2 + $0x18] sm:$0xff]  ;;  %v1326_v60 = vld [vmem:[#allocation2 + $0x10] sm:$0xf0]  ;;  %v1404_v62 = vrot.slane %v1324_v58, 4 }
  0xca   : > { %v1325_v56 = vld [vmem:[#allocation2 + $0x8] sm:$0xf0]  ;;  %v3214_v61 = vld [vmem:[%s3766_s12 + $0xf8] sm:$0xff]   ;;  %v1410_v27 = vrot.slane %v1326_v60, 4  ;;  %v3215_v2 = vld [vmem:[%s3766_s12 + $0x40] sm:$0xff]   ;;  %v1405_v3 = vrot.slane %v3954_v23, 4 }
  0xcb   : > { %v1407_v17 = vrot.slane %v1325_v56, 4  ;;  %v3957_v63 = vld [vmem:[#allocation2 + $0x28] sm:$0xff]  ;;  %v3963_v4 = vld [vmem:[#allocation2 + $0x40] sm:$0xff]  ;;  %v3216_v6 = vld [vmem:[%s3766_s12 + $0x80] sm:$0xff]  }
  0xcc   : > { %2853 = vmatpush3.bf16.msra.mxu0 %v3199_v26  ;;  %3009 = vmatpush3.bf16.msra.mxu1 %v3198_v40  ;;  %v1411_v1 = vrot.slane %v3957_v63, 4  ;;  %v1417_v7 = vrot.slane %v3963_v4, 4  ;;  %v3217_v8 = vld [vmem:[%s3766_s12] sm:$0xff]   ;;  %v3218_v9 = vld [vmem:[%s3766_s12 + $0x48] sm:$0xff]   ;;  %v1406_v10 = vsel %vm1403_vm0, %v1404_v62, %v1405_v3  ;;  %v3978_v15 = vld [vmem:[#allocation2 + $0x30] sm:$0xff] }
  0xcd   : > { %2854 = vmatprep.subr.bf16.mxu0 %v3200_v35  ;;  %3010 = vmatprep.subr.bf16.mxu1 %v3201_v42  ;;  %v1409_v0 = vsel %vm1403_vm0, %v1407_v17, %v1408_v18  ;;  %v3219_v12 = vld [vmem:[%s3766_s12 + $0x88] sm:$0xff]   ;;  %v3975_v13 = vld [vmem:[#allocation2 + $0x38] sm:$0xff]  ;;  %v1413_v19 = vrot.slane %v3978_v15, 4  ;;  %v3221_v20 = vld [vmem:[%s3766_s12 + $0x50] sm:$0xff]  }
  0xce   : > { %v1412_v5 = vsel %vm1403_vm0, %v1410_v27, %v1411_v1  ;;  %1619 = vmatprep.mubr.bf16.mxu0 %v1409_v0  ;;  %v1418_v11 = vsel %vm1403_vm0, %v1411_v1, %v1417_v7  ;;  %v1415_v14 = vrot.slane %v3975_v13, 4  ;;  %v3220_v16 = vld [vmem:[%s3766_s12 + $0x8] sm:$0xff]   ;;  %v3222_v21 = vld [vmem:[%s3766_s12 + $0x90] sm:$0xff]   ;;  %v3224_v24 = vld [vmem:[%s3766_s12 + $0x58] sm:$0xff]  }
  0xcf   : > { %3020 = vmatprep.mubr.bf16.mxu1 %v1412_v5  ;;  %v3223_v22 = vld [vmem:[%s3766_s12 + $0x10] sm:$0xff]   ;;  %v3987_v25 = vld [vmem:[#allocation2 + $0x50] sm:$0xff]  ;;  %v1414_v29 = vsel %vm1403_vm0, %v1405_v3, %v1413_v19  ;;  %v3227_v39 = vld [vmem:[%s3766_s12 + $0x60] sm:$0xff]  }
  0xd0   : > { %2855 = vmatpush3.bf16.msra.mxu0 %v3202_v43  ;;  %3011 = vmatpush3.bf16.msra.mxu1 %v3201_v42  ;;  %v1416_v48 = vsel %vm1403_vm0, %v1408_v18, %v1415_v14  ;;  %v3225_v30 = vld [vmem:[%s3766_s12 + $0x98] sm:$0xff]   ;;  %v1421_v31 = vrot.slane %v3987_v25, 4  ;;  %v3992_v41 = vld [vmem:[#allocation2 + $0x48] sm:$0xff]  ;;  %v3228_v51 = vld [vmem:[%s3766_s12 + $0xa0] sm:$0xff]  }
  0xd1   : > { %2856 = vmatprep.subr.bf16.mxu0 %v3203_v44  ;;  %3012 = vmatprep.subr.bf16.mxu1 %v3204_v45  ;;  %v3226_v32 = vld [vmem:[%s3766_s12 + $0x18] sm:$0xff]   ;;  %v1419_v28 = vrot.slane %v3992_v41, 4  ;;  %v3229_v34 = vld [vmem:[%s3766_s12 + $0x20] sm:$0xff]   ;;  %v1337_v36 = vld [vmem:[#allocation2 + $0x68] sm:$0xf] }
  0xd2   : > { %v1422_v33 = vsel %vm1403_vm0, %v1415_v14, %v1421_v31  ;;  %v3230_v37 = vld [vmem:[%s3766_s12 + $0x68] sm:$0xff]   ;;  %v1427_v38 = vrot.slane %v1337_v36, 4  ;;  %v4001_v26 = vld [vmem:[#allocation2 + $0x58] sm:$0xff]  ;;  %v1338_v44 = vld [vmem:[#allocation2 + $0x70] sm:$0xf] }
  0xd3   : > { %v1336_v40 = vld [vmem:[#allocation2 + $0x60] sm:$0xf]  ;;  %v1420_v35 = vsel %vm1403_vm0, %v1413_v19, %v1419_v28  ;;  %v1423_v43 = vrot.slane %v4001_v26, 4  ;;  %v3235_v56 = vld [vmem:[%s3766_s12 + $0x30] sm:$0xff]   ;;  %v3237_v17 = vld [vmem:[%s3766_s12 + $0xb8] sm:$0xff]  }
  0xd4   : > { %2857 = vmatpush3.bf16.msra.mxu0 %v3205_v46  ;;  %3013 = vmatpush3.bf16.msra.mxu1 %v3204_v45  ;;  %v3231_v42 = vld [vmem:[%s3766_s12 + $0xa8] sm:$0xff]   ;;  %v1429_v46 = vrot.slane %v1338_v44, 4  ;;  %v3238_v18 = vld [vmem:[%s3766_s12 + $0x38] sm:$0xff]   ;;  %v1265_v60 = vld [vmem:[#allocation2 + $0x8] sm:$0xff] }
  0xd5   : > { %2858 = vmatprep.subr.bf16.mxu0 %v3206_v47  ;;  %3014 = vmatprep.subr.bf16.mxu1 %v3207_v49  ;;  %v1424_v45 = vsel %vm1403_vm0, %v1417_v7, %v1423_v43  ;;  %v1428_v47 = vsel %vm1403_vm0, %v1421_v31, %v1427_v38  ;;  %v3240_v62 = vld [vmem:[%s3766_s12 + $0x200] sm:$0xff]   ;;  %v1264_v27 = vld [vmem:[#allocation2] sm:$0xff]  ;;  %v3245_v5 = vld [vmem:[%s3766_s12 + $0x1d0] sm:$0xff]  }
  0xd6   : > { %v3241_v0 = vld [vmem:[%s3766_s12 + $0x180] sm:$0xff]   ;;  %v3242_v1 = vld [vmem:[%s3766_s12 + $0x1c8] sm:$0xff]   ;;  %v3247_v7 = vld [vmem:[%s3766_s12 + $0x190] sm:$0xff]  }
  0xd7   : > { %v3244_v3 = vld [vmem:[%s3766_s12 + $0x188] sm:$0xff]   ;;  %v3253_v14 = vld [vmem:[%s3766_s12 + $0x1a0] sm:$0xff]   ;;  %v1992_v31 = vld [vmem:[#allocation2 + $0x68] sm:$0xff] }
  0xd8   : > { %2859 = vmatpush3.bf16.msra.mxu0 %v3208_v50  ;;  %3015 = vmatpush3.bf16.msra.mxu1 %v3207_v49  ;;  %v3232_v49 = vld [vmem:[%s3766_s12 + $0x28] sm:$0xff]   ;;  %v1425_v50 = vrot.slane %v1336_v40, 4 }
  0xd9   : > { %2860 = vmatprep.subr.bf16.mxu0 %v3209_v52  ;;  %3016 = vmatprep.subr.bf16.mxu1 %v3210_v53  ;;  %v1430_v52 = vsel %vm1403_vm0, %v1423_v43, %v1429_v46  ;;  %v3256_v19 = vld [vmem:[%s3766_s12 + $0x1a8] sm:$0xff]  }
  0xda   : > { %v1426_v58 = vsel %vm1403_vm0, %v1419_v28, %v1425_v50 }
  0xdc   : > { %2861 = vmatpush3.bf16.msra.mxu0 %v3211_v54  ;;  %3017 = vmatpush3.bf16.msra.mxu1 %v3210_v53  ;;  %v3233_v53 = vld [vmem:[%s3766_s12 + $0x70] sm:$0xff]  }
  0xdd   : > { %2862 = vmatprep.subr.bf16.mxu0 %v3212_v55  ;;  %3018 = vmatprep.subr.bf16.mxu1 %v3213_v59  ;;  %v3234_v54 = vld [vmem:[%s3766_s12 + $0xb0] sm:$0xff]   ;;  %v1266_v55 = vld [vmem:[#allocation2 + $0x10] sm:$0xff] }
  0xe0   : > { %2863 = vmatpush3.bf16.msra.mxu0 %v3214_v61  ;;  %3019 = vmatpush3.bf16.msra.mxu1 %v3213_v59  ;;  %v3236_v59 = vld [vmem:[%s3766_s12 + $0x78] sm:$0xff]   ;;  %v3239_v61 = vld [vmem:[%s3766_s12 + $0x1c0] sm:$0xff]  }
  0xe1   : > { %2900 = vmatprep.subr.bf16.mxu0 %v3215_v2  ;;  %3028 = vmatprep.subr.bf16.mxu1 %v3216_v6  ;;  %v3243_v2 = vld [vmem:[%s3766_s12 + $0x208] sm:$0xff]  }
  0xe3   : > { %1620 = vmatmul.mubr.bf16.vlgmr.msra.gmra.mrb[0].mxu0 %v1406_v10  ;;  %3021 = vmatmul.mubr.bf16.vlgmr.msra.gmra.mrb[0].mxu1 %v1418_v11  ;;  %v3250_v10 = vld [vmem:[%s3766_s12 + $0x198] sm:$0xff]   ;;  %v3251_v11 = vld [vmem:[%s3766_s12 + $0x1e0] sm:$0xff]  }
  0xe4   : > { %2901 = vmatpush3.bf16.msra.mxu0 %v3217_v8  ;;  %3029 = vmatpush3.bf16.msra.mxu1 %v3216_v6  ;;  %v3246_v6 = vld [vmem:[%s3766_s12 + $0x210] sm:$0xff]   ;;  %v3248_v8 = vld [vmem:[%s3766_s12 + $0x1d8] sm:$0xff]  }
  0xe5   : > { %2902 = vmatprep.subr.bf16.mxu0 %v3218_v9  ;;  %3030 = vmatprep.subr.bf16.mxu1 %v3219_v12  ;;  %v3249_v9 = vld [vmem:[%s3766_s12 + $0x218] sm:$0xff]  }
  0xe6   : > { %1627 = vmatprep.mubr.bf16.mxu0 %v1416_v48  ;;  %3024 = vmatprep.mubr.bf16.mxu1 %v1424_v45  ;;  %v3255_v48 = vld [vmem:[%s3766_s12 + $0x228] sm:$0xff]  }
  0xe8   : > { %2903 = vmatpush3.bf16.msra.mxu0 %v3220_v16  ;;  %3031 = vmatpush3.bf16.msra.mxu1 %v3219_v12  ;;  %v3252_v12 = vld [vmem:[%s3766_s12 + $0x220] sm:$0xff]   ;;  %v3254_v16 = vld [vmem:[%s3766_s12 + $0x1e8] sm:$0xff]  }
  0xe9   : > { %2904 = vmatprep.subr.bf16.mxu0 %v3221_v20  ;;  %3032 = vmatprep.subr.bf16.mxu1 %v3222_v21  ;;  %v3257_v20 = vld [vmem:[%s3766_s12 + $0x1f0] sm:$0xff]  }
  0xeb   : > { %1628 = vmatmul.mubr.bf16.gmra.mrb[4].mxu0 %v1414_v29  ;;  %3025 = vmatmul.mubr.bf16.gmra.mrb[4].mxu1 %v1430_v52  ;;  %v3262_v29 = vld [vmem:[%s3766_s12 + $0x1b8] sm:$0xff]  }
  0xec   : > { %2905 = vmatpush3.bf16.msra.mxu0 %v3223_v22  ;;  %3033 = vmatpush3.bf16.msra.mxu1 %v3222_v21  ;;  %v3259_v21 = vld [vmem:[%s3766_s12 + $0x1b0] sm:$0xff]   ;;  %v3260_v22 = vld [vmem:[%s3766_s12 + $0x1f8] sm:$0xff]  }
  0xed   : > { %2906 = vmatprep.subr.bf16.mxu0 %v3224_v24  ;;  %3034 = vmatprep.subr.bf16.mxu1 %v3225_v30  ;;  %v3261_v24 = vld [vmem:[%s3766_s12 + $0x238] sm:$0xff]  }
  0xee   : > { %1635 = vmatprep.mubr.bf16.mxu0 %v1422_v33  ;;  %3044 = vmatprep.mubr.bf16.mxu1 %v1266_v55 }
  0xf0   : > { %2907 = vmatpush3.bf16.msra.mxu0 %v3226_v32  ;;  %3035 = vmatpush3.bf16.msra.mxu1 %v3225_v30  ;;  %v1993_v30 = vld [vmem:[#allocation2 + $0x70] sm:$0xff] }
  0xf1   : > { %2908 = vmatprep.subr.bf16.mxu0 %v3227_v39  ;;  %3036 = vmatprep.subr.bf16.mxu1 %v3228_v51 }
  0xf3   : > { %1636 = vmatmul.mubr.bf16.gmra.mrb[8].mxu0 %v1420_v35 }
  0xf4   : > { %2909 = vmatpush3.bf16.msra.mxu0 %v3229_v34  ;;  %3037 = vmatpush3.bf16.msra.mxu1 %v3228_v51 }
  0xf5   : > { %2910 = vmatprep.subr.bf16.mxu0 %v3230_v37  ;;  %3038 = vmatprep.subr.bf16.mxu1 %v3231_v42 }
  0xf6   : > { %1643 = vmatprep.mubr.bf16.mxu0 %v1428_v47 }
  0xf8   : > { %2911 = vmatpush3.bf16.msra.mxu0 %v3232_v49  ;;  %3039 = vmatpush3.bf16.msra.mxu1 %v3231_v42 }
  0xf9   : > { %2912 = vmatprep.subr.bf16.mxu0 %v3233_v53  ;;  %3040 = vmatprep.subr.bf16.mxu1 %v3234_v54 }
  0xfb   : > { %1644 = vmatmul.mubr.bf16.gmra.mrb[12].mxu0 %v1426_v58 }
  0xfc   : > { %2913 = vmatpush3.bf16.msra.mxu0 %v3235_v56  ;;  %3041 = vmatpush3.bf16.msra.mxu1 %v3234_v54 }
  0xfd   : > { %2914 = vmatprep.subr.bf16.mxu0 %v3236_v59  ;;  %3042 = vmatprep.subr.bf16.mxu1 %v3237_v17 }
  0xfe   : > { %1893 = vmatprep.mubr.bf16.mxu0 %v1265_v60 }
 0x100   : > { %2915 = vmatpush3.bf16.msra.mxu0 %v3238_v18  ;;  %3043 = vmatpush3.bf16.msra.mxu1 %v3237_v17 }
 0x101   : > { %2952 = vmatprep.subr.bf16.mxu0 %v3239_v61  ;;  %3052 = vmatprep.subr.bf16.mxu1 %v3240_v62 }
 0x103   : > { %1894 = vmatmul.mubr.bf16.vlgmr.msra.gmra.mrb[16].mxu0 %v1264_v27  ;;  %3045 = vmatmul.mubr.bf16.vlgmr.msra.gmra.mrb[0].mxu1 %v3957_v63 }
 0x104   : > { %2953 = vmatpush3.bf16.msra.mxu0 %v3241_v0  ;;  %3053 = vmatpush3.bf16.msra.mxu1 %v3240_v62 }
 0x105   : > { %2954 = vmatprep.subr.bf16.mxu0 %v3242_v1  ;;  %3054 = vmatprep.subr.bf16.mxu1 %v3243_v2 }
 0x106   : > { %1901 = vmatprep.mubr.bf16.mxu0 %v3950_v57  ;;  %3048 = vmatprep.mubr.bf16.mxu1 %v3963_v4 }
 0x108   : > { %2955 = vmatpush3.bf16.msra.mxu0 %v3244_v3  ;;  %3055 = vmatpush3.bf16.msra.mxu1 %v3243_v2 }
 0x109   : > { %2956 = vmatprep.subr.bf16.mxu0 %v3245_v5  ;;  %3056 = vmatprep.subr.bf16.mxu1 %v3246_v6 }
 0x10b   : > { %1902 = vmatmul.mubr.bf16.gmra.mrb[20].mxu0 %v3954_v23  ;;  %3049 = vmatmul.mubr.bf16.gmra.mrb[4].mxu1 %v4001_v26 }
 0x10c   : > { %2957 = vmatpush3.bf16.msra.mxu0 %v3247_v7  ;;  %3057 = vmatpush3.bf16.msra.mxu1 %v3246_v6 }
 0x10d   : > { %2958 = vmatprep.subr.bf16.mxu0 %v3248_v8  ;;  %3058 = vmatprep.subr.bf16.mxu1 %v3249_v9 }
 0x10e   : > { %1909 = vmatprep.mubr.bf16.mxu0 %v3975_v13  ;;  %3068 = vmatprep.mubr.bf16.mxu1 %v3957_v63  ;;  %v3258_v63 = vld [vmem:[%s3766_s12 + $0x230] sm:$0xff]  }
 0x110   : > { %2959 = vmatpush3.bf16.msra.mxu0 %v3250_v10  ;;  %3059 = vmatpush3.bf16.msra.mxu1 %v3249_v9 }
 0x111   : > { %2960 = vmatprep.subr.bf16.mxu0 %v3251_v11  ;;  %3060 = vmatprep.subr.bf16.mxu1 %v3252_v12 }
 0x113   : > { %1910 = vmatmul.mubr.bf16.gmra.mrb[24].mxu0 %v3978_v15 }
 0x114   : > { %2961 = vmatpush3.bf16.msra.mxu0 %v3253_v14  ;;  %3061 = vmatpush3.bf16.msra.mxu1 %v3252_v12 }
 0x115   : > { %2962 = vmatprep.subr.bf16.mxu0 %v3254_v16  ;;  %3062 = vmatprep.subr.bf16.mxu1 %v3255_v48 }
 0x116   : > { %1917 = vmatprep.mubr.bf16.mxu0 %v3987_v25 }
 0x118   : > { %2963 = vmatpush3.bf16.msra.mxu0 %v3256_v19  ;;  %3063 = vmatpush3.bf16.msra.mxu1 %v3255_v48 }
 0x119   : > { %2964 = vmatprep.subr.bf16.mxu0 %v3257_v20  ;;  %3064 = vmatprep.subr.bf16.mxu1 %v3258_v63 }
 0x11b   : > { %1918 = vmatmul.mubr.bf16.gmra.mrb[28].mxu0 %v3992_v41 }
 0x11c   : > { %2965 = vmatpush3.bf16.msra.mxu0 %v3259_v21  ;;  %3065 = vmatpush3.bf16.msra.mxu1 %v3258_v63 }
 0x11d   : > { %2966 = vmatprep.subr.bf16.mxu0 %v3260_v22  ;;  %3066 = vmatprep.subr.bf16.mxu1 %v3261_v24 }
 0x11e   : > { %2219 = vmatprep.mubr.bf16.mxu0 %v3950_v57  ;;  %v1991_v57 = vld [vmem:[#allocation2 + $0x60] sm:$0xff] }
 0x120   : > { %2967 = vmatpush3.bf16.msra.mxu0 %v3262_v29  ;;  %3067 = vmatpush3.bf16.msra.mxu1 %v3261_v24 }
 0x123   : > { %2220 = vmatmul.mubr.bf16.vlgmr.msra.gmra.mrb[32].mxu0 %v3954_v23  ;;  %3069 = vmatmul.mubr.bf16.vlgmr.msra.gmra.mrb[0].mxu1 %v3963_v4 }
 0x124   : > { %2227 = vmatprep.mubr.bf16.mxu0 %v3975_v13  ;;  %3072 = vmatprep.mubr.bf16.mxu1 %v4001_v26 }
 0x12b   : > { %2228 = vmatmul.mubr.bf16.gmra.mrb[36].mxu0 %v3978_v15  ;;  %3073 = vmatmul.mubr.bf16.gmra.mrb[4].mxu1 %v1993_v30 }
 0x12c   : > { %2235 = vmatprep.mubr.bf16.mxu0 %v3987_v25 }
 0x133   : > { %2236 = vmatmul.mubr.bf16.gmra.mrb[40].mxu0 %v3992_v41 }
 0x134   : > { %2243 = vmatprep.mubr.bf16.mxu0 %v1992_v31 }
 0x13b   : > { %2244 = vmatmul.mubr.bf16.gmra.mrb[44].mxu0 %v1991_v57 }
 0x1b6   : > { %v2864_v32 = vpop.f32.mrb[0].mxu0 }
 0x1b7   : > { %v2865_v23 = vpop.f32.mrb[1].mxu0 }
 0x1b8   : > { %v2866_v33 = vadd.f32 %v2865_v23, %v2864_v32  ;;  %v2867_v4 = vpop.f32.mrb[2].mxu0 }
 0x1b9   : > { %v2868_v28 = vpop.f32.mrb[3].mxu0 }
 0x1ba   : > { %v2869_v13 = vadd.f32 %v2868_v28, %v2867_v4  ;;  %v4072_v4 = vld [vmem:[%s919_s23] ss:$0 sm:$0xff] }
 0x1be   : > { %v2870_v39 = vpop.f32.mrb[4].mxu0 }
 0x1bf   : > { %v2871_v51 = vpop.f32.mrb[5].mxu0 }
 0x1c0   : > { %v2872_v34 = vadd.f32 %v2871_v51, %v2870_v39  ;;  %v2873_v36 = vpop.f32.mrb[6].mxu0 }
 0x1c1   : > { %v2874_v15 = vpop.f32.mrb[7].mxu0 }
 0x1c2   : > { %v2875_v37 = vadd.f32 %v2874_v15, %v2873_v36 }
 0x1c6   : > { %v2876_v38 = vpop.f32.mrb[8].mxu0 }
 0x1c7   : > { %v2877_v25 = vpop.f32.mrb[9].mxu0 }
 0x1c8   : > { %v2878_v40 = vadd.f32 %v2877_v25, %v2876_v38  ;;  %v2879_v26 = vpop.f32.mrb[10].mxu0 }
 0x1c9   : > { %v2880_v41 = vpop.f32.mrb[11].mxu0 }
 0x1ca   : > { %v2881_v35 = vadd.f32 %v2880_v41, %v2879_v26 }
 0x1ce   : > { %v2882_v42 = vpop.f32.mrb[12].mxu0 }
 0x1cf   : > { %v2883_v43 = vpop.f32.mrb[13].mxu0 }
 0x1d0   : > { %v2884_v44 = vadd.f32 %v2883_v43, %v2882_v42  ;;  %v2885_v45 = vpop.f32.mrb[14].mxu0 }
 0x1d1   : > { %v2886_v46 = vpop.f32.mrb[15].mxu0 }
 0x1d2   : > { %v2887_v47 = vadd.f32 %v2886_v46, %v2885_v45 }
 0x1d6   : > { %v2916_v49 = vpop.f32.mrb[16].mxu0 }
 0x1d7   : > { %v2917_v50 = vpop.f32.mrb[17].mxu0 }
 0x1d8   : > { %v2918_v52 = vadd.f32 %v2917_v50, %v2916_v49  ;;  %v2919_v53 = vpop.f32.mrb[18].mxu0 }
 0x1d9   : > { %v2920_v54 = vpop.f32.mrb[19].mxu0 }
 0x1da   : > { %v3079_v55 = vadd.f32 %v2918_v52, %v2866_v33  ;;  %v2921_v56 = vadd.f32 %v2920_v54, %v2919_v53 }
 0x1dc   : > { %v3085_v58 = vadd.f32 %v2921_v56, %v2869_v13 }
 0x1de   : > { %v2922_v59 = vpop.f32.mrb[20].mxu0 }
 0x1df   : > { %v2923_v17 = vpop.f32.mrb[21].mxu0 }
 0x1e0   : > { %v2924_v18 = vadd.f32 %v2923_v17, %v2922_v59  ;;  %v2925_v60 = vpop.f32.mrb[22].mxu0 }
 0x1e1   : > { %v2926_v61 = vpop.f32.mrb[23].mxu0 }
 0x1e2   : > { %v3076_v62 = vadd.f32 %v2924_v18, %v2872_v34  ;;  %v2927_v27 = vadd.f32 %v2926_v61, %v2925_v60 }
 0x1e4   : > { %v3082_v0 = vadd.f32 %v2927_v27, %v2875_v37 }
 0x1e6   : > { %v2928_v1 = vpop.f32.mrb[24].mxu0 }
 0x1e7   : > { %v2929_v2 = vpop.f32.mrb[25].mxu0 }
 0x1e8   : > { %v2930_v3 = vadd.f32 %v2929_v2, %v2928_v1  ;;  %v2931_v5 = vpop.f32.mrb[26].mxu0 }
 0x1e9   : > { %v2932_v6 = vpop.f32.mrb[27].mxu0 }
 0x1ea   : > { %v3091_v7 = vadd.f32 %v2930_v3, %v2878_v40  ;;  %v2933_v8 = vadd.f32 %v2932_v6, %v2931_v5 }
 0x1ec   : > { %v4061_v9 = vadd.f32 %v2933_v8, %v2881_v35 }
 0x1ee   : > { %v2934_v10 = vpop.f32.mrb[28].mxu0 }
 0x1ef   : > { %v2935_v11 = vpop.f32.mrb[29].mxu0 }
 0x1f0   : > { %v2936_v12 = vadd.f32 %v2935_v11, %v2934_v10  ;;  %v2937_v14 = vpop.f32.mrb[30].mxu0 }
 0x1f1   : > { %v2938_v16 = vpop.f32.mrb[31].mxu0 }
 0x1f2   : > { %v4063_v48 = vadd.f32 %v2936_v12, %v2884_v44  ;;  %v2939_v19 = vadd.f32 %v2938_v16, %v2937_v14 }
 0x1f4   : > { %v4065_v20 = vadd.f32 %v2939_v19, %v2887_v47 }
 0x1f6   : > { %v2968_v63 = vpop.f32.mrb[32].mxu0  ;;  %v3070_v21 = vpop.f32.mrb[0].mxu1 }
 0x1f7   : > { %v2969_v22 = vpop.f32.mrb[33].mxu0  ;;  %v2286_v24 = vpop.f32.mrb[1].mxu1 }
 0x1f8   : > { %v2970_v29 = vadd.f32 %v2969_v22, %v2968_v63  ;;  %v2971_v30 = vpop.f32.mrb[34].mxu0  ;;  %v3071_v31 = vpop.f32.mrb[2].mxu1 }
 0x1f9   : > { %v2972_v57 = vpop.f32.mrb[35].mxu0  ;;  %v2289_v32 = vpop.f32.mrb[3].mxu1 }
 0x1fa   : > { %v3080_v23 = vadd.f32 %v3079_v55, %v2970_v29  ;;  %v2973_v33 = vadd.f32 %v2972_v57, %v2971_v30 }
 0x1fc   : > { %v3081_v28 = vadd.f32 %v3080_v23, %v2286_v24  ;;  %v3086_v13 = vadd.f32 %v3085_v58, %v2973_v33 }
 0x1fe   : > { %v2332_v39 = vadd.f32 %v3081_v28, %v4072_v4  ;;  %v3087_v51 = vadd.f32 %v3086_v13, %v2289_v32  ;;  %v2974_v34 = vpop.f32.mrb[36].mxu0  ;;  %v3074_v36 = vpop.f32.mrb[4].mxu1 }
 0x1ff   : > { %v2975_v15 = vpop.f32.mrb[37].mxu0  ;;  %v2302_v37 = vpop.f32.mrb[5].mxu1 }
 0x200   : > { %v2340_v38 = vmax.f32 %v2332_v39, 0.0  ;;  %v2333_v25 = vadd.f32 %v3087_v51, %v4072_v4  ;;  %v2976_v40 = vadd.f32 %v2975_v15, %v2974_v34  ;;  %v2977_v26 = vpop.f32.mrb[38].mxu0  ;;  %v3075_v41 = vpop.f32.mrb[6].mxu1 }
 0x201   : > { %v2978_v35 = vpop.f32.mrb[39].mxu0  ;;  %v2305_v42 = vpop.f32.mrb[7].mxu1 }
 0x202   : > { %v2341_v43 = vmax.f32 %v2333_v25, 0.0  ;;  %v3077_v44 = vadd.f32 %v3076_v62, %v2976_v40  ;;  %v2979_v45 = vadd.f32 %v2978_v35, %v2977_v26  ;;  %v2377_v46 = vmul.f32 %v2340_v38, %v2340_v38 }
 0x204   : > { %v2825_v47 = vpack.c.bf16 %v2341_v43, %v2340_v38  ;;  %v2364_v49 = vadd.f32 %v2341_v43, %v2340_v38  ;;  %v2378_v50 = vmul.f32 %v2341_v43, %v2341_v43  ;;  %v3078_v52 = vadd.f32 %v3077_v44, %v3070_v21 }
 0x205   : > { %v3083_v53 = vadd.f32 %v3082_v0, %v2979_v45 }
 0x206   : > { %2826 = vst [vmem:[%s3768_s24] sm:$0xff] %v2825_v47   ;;  %v2385_v54 = vadd.f32 %v2378_v50, %v2377_v46  ;;  %v2334_v55 = vadd.f32 %v3078_v52, %v4072_v4  ;;  %v2980_v56 = vpop.f32.mrb[40].mxu0 }
 0x207   : > { %v3084_v58 = vadd.f32 %v3083_v53, %v3071_v31  ;;  %v2981_v59 = vpop.f32.mrb[41].mxu0 }
 0x208   : > { %v2342_v17 = vmax.f32 %v2334_v55, 0.0  ;;  %v2982_v18 = vadd.f32 %v2981_v59, %v2980_v56  ;;  %v2983_v60 = vpop.f32.mrb[42].mxu0 }
 0x209   : > { %v2335_v61 = vadd.f32 %v3084_v58, %v4072_v4  ;;  %v2984_v62 = vpop.f32.mrb[43].mxu0 }
 0x20a   : > { %v2365_v27 = vadd.f32 %v2364_v49, %v2342_v17  ;;  %v2379_v1 = vmul.f32 %v2342_v17, %v2342_v17  ;;  %v3092_v2 = vadd.f32 %v3091_v7, %v2982_v18  ;;  %v2985_v3 = vadd.f32 %v2984_v62, %v2983_v60 }
 0x20b   : > { %v2343_v5 = vmax.f32 %v2335_v61, 0.0 }
 0x20c   : > { %v2386_v0 = vadd.f32 %v2385_v54, %v2379_v1  ;;  %v3093_v6 = vadd.f32 %v3092_v2, %v2302_v37  ;;  %v3098_v8 = vadd.f32 %v4061_v9, %v2985_v3 }
 0x20d   : > { %v2830_v10 = vpack.c.bf16 %v2343_v5, %v2342_v17  ;;  %v2366_v11 = vadd.f32 %v2365_v27, %v2343_v5  ;;  %v2380_v12 = vmul.f32 %v2343_v5, %v2343_v5  ;;  %v2435_v59 = vld [vmem:[%s3768_s24] sm:$0xf] (%p3438_p9)  ;;  %v2437_v17 = vld [vmem:[%s3768_s24 + $0x4] sm:$0xf] (%p3438_p9) }
 0x20e   : > { %v2336_v14 = vadd.f32 %v3093_v6, %v4072_v4  ;;  %v3099_v16 = vadd.f32 %v3098_v8, %v2305_v42  ;;  %v2986_v19 = vpop.f32.mrb[44].mxu0 }
 0x20f   : > { %2845 = vst [vmem:[%s3768_s24 + $0x8] sm:$0xff] %v2830_v10   ;;  %v2387_v63 = vadd.f32 %v2386_v0, %v2380_v12  ;;  %v2987_v21 = vpop.f32.mrb[45].mxu0 }
 0x210   : > { %v2344_v22 = vmax.f32 %v2336_v14, 0.0  ;;  %v2337_v7 = vadd.f32 %v3099_v16, %v4072_v4  ;;  %v2988_v24 = vadd.f32 %v2987_v21, %v2986_v19  ;;  %v2989_v29 = vpop.f32.mrb[46].mxu0 }
 0x211   : > { %v2990_v30 = vpop.f32.mrb[47].mxu0 }
 0x212   : > { %v2367_v31 = vadd.f32 %v2366_v11, %v2344_v22  ;;  %v2381_v57 = vmul.f32 %v2344_v22, %v2344_v22  ;;  %v2345_v9 = vmax.f32 %v2337_v7, 0.0  ;;  %v3089_v32 = vadd.f32 %v4063_v48, %v2988_v24 }
 0x213   : > { %v2991_v23 = vadd.f32 %v2990_v30, %v2989_v29 }
 0x214   : > { %v2388_v33 = vadd.f32 %v2387_v63, %v2381_v57  ;;  %v2835_v28 = vpack.c.bf16 %v2345_v9, %v2344_v22  ;;  %v2368_v13 = vadd.f32 %v2367_v31, %v2345_v9  ;;  %v2382_v39 = vmul.f32 %v2345_v9, %v2345_v9 }
 0x215   : > { %v3090_v51 = vadd.f32 %v3089_v32, %v3074_v36  ;;  %v3095_v34 = vadd.f32 %v4065_v20, %v2991_v23 }
 0x216   : > { %2846 = vst [vmem:[%s3768_s24 + $0x10] sm:$0xff] %v2835_v28   ;;  %v2389_v15 = vadd.f32 %v2388_v33, %v2382_v39  ;;  %v2439_v18 = vld [vmem:[%s3768_s24 + $0x8] sm:$0xf] (%p3438_p9)  ;;  %v2441_v60 = vld [vmem:[%s3768_s24 + $0xc] sm:$0xf] (%p3438_p9) }
 0x217   : > { %v2338_v37 = vadd.f32 %v3090_v51, %v4072_v4  ;;  %v3096_v38 = vadd.f32 %v3095_v34, %v3075_v41 }
 0x219   : > { %v2346_v25 = vmax.f32 %v2338_v37, 0.0  ;;  %v2339_v40 = vadd.f32 %v3096_v38, %v4072_v4 }
 0x21b   : > { %v2369_v26 = vadd.f32 %v2368_v13, %v2346_v25  ;;  %v2383_v35 = vmul.f32 %v2346_v25, %v2346_v25  ;;  %v2347_v48 = vmax.f32 %v2339_v40, 0.0 }
 0x21d   : > { %v2390_v42 = vadd.f32 %v2389_v15, %v2383_v35  ;;  %v2840_v43 = vpack.c.bf16 %v2347_v48, %v2346_v25  ;;  %v2370_v44 = vadd.f32 %v2369_v26, %v2347_v48  ;;  %v2384_v45 = vmul.f32 %v2347_v48, %v2347_v48  ;;  %v2443_v61 = vld [vmem:[%s3768_s24 + $0x10] sm:$0xf] (%p3438_p9)  ;;  %v2445_v62 = vld [vmem:[%s3768_s24 + $0x14] sm:$0xf] (%p3438_p9) }
 0x21f   : > { %2847 = vst [vmem:[%s3768_s24 + $0x18] sm:$0xff] %v2840_v43   ;;  %v2371_v36 = vrot.slane %v2370_v44, 4  ;;  %v2391_v46 = vadd.f32 %v2390_v42, %v2384_v45 }
 0x221   : > { %v2372_v20 = vadd.f32 %v2371_v36, %v2370_v44  ;;  %v2392_v47 = vrot.slane %v2391_v46, 4 }
 0x223   : > { %v2373_v49 = vrot.slane %v2372_v20, 2  ;;  %v2393_v50 = vadd.f32 %v2392_v47, %v2391_v46 }
 0x225   : > { %v2374_v52 = vadd.f32 %v2373_v49, %v2372_v20  ;;  %v2394_v41 = vrot.slane %v2393_v50, 2 }
 0x226   : > { %v2447_v27 = vld [vmem:[%s3768_s24 + $0x18] sm:$0xf] (%p3438_p9)  ;;  %v2449_v1 = vld [vmem:[%s3768_s24 + $0x1c] sm:$0xf] (%p3438_p9) }
 0x227   : > { %v2375_v53 = vrot.slane %v2374_v52, 1  ;;  %v2395_v54 = vadd.f32 %v2394_v41, %v2393_v50 }
 0x228   : > { %2415 = sbr.rel (!%p3438_p9) target bundleno = 564 (0x234), region = 89 }
 0x229   : > { %v2396_v4 = vrot.slane %v2395_v54, 1  ;;  %v2376_v55 = vadd.f32 %v2375_v53, %v2374_v52 }
 0x22b   : > { %v2397_v56 = vadd.f32 %v2396_v4, %v2395_v54 }
 0x22d   : > { %v2399_v58 = vsel %vm2398_vm1, %v2376_v55, %v2397_v56 }
 0x22e   : > { %2400 = vst [vmem:[%s3764_s27] sm:$0x3] %v2399_v58  ;;  %s2802_s27 = sshll.u32 (%p3438_p9), %s2417_s17, 2 }
 0x22f   : > { %s2419_s20 = scalar_lea.vmem %s4137_s5, %s2802_s27 }
 0x230   : > { %2436 = vst [vmem:[%s2419_s20] sm:$0xf] %v2435_v59  ;;  %2438 = vst [vmem:[%s2419_s20 + $0x8] sm:$0xf] %v2437_v17 }
 0x231   : > { %2440 = vst [vmem:[%s2419_s20 + $0x10] sm:$0xf] %v2439_v18  ;;  %2442 = vst [vmem:[%s2419_s20 + $0x18] sm:$0xf] %v2441_v60 }
 0x232   : > { %2444 = vst [vmem:[%s2419_s20 + $0x20] sm:$0xf] %v2443_v61  ;;  %2446 = vst [vmem:[%s2419_s20 + $0x28] sm:$0xf] %v2445_v62 }
 0x233   : > { %2448 = vst [vmem:[%s2419_s20 + $0x30] sm:$0xf] %v2447_v27  ;;  %2450 = vst [vmem:[%s2419_s20 + $0x38] sm:$0xf] %v2449_v1 }
 0x234 PF: > { %s17_s29 = sadd.s32 1, %s3333_s29   ;;  %s4169_s23 = sld [smem:[#allocation5_spill]] }
 0x235   : > { %p14_p3 = scmp.ge.s32.totalorder %s17_s29, 6   ;;  %s4170_s24 = sld [smem:[#allocation10_spill]] }
 0x236   : > { %s4171_s25 = sld [smem:[#allocation6_spill]]  ;;  %s4172_s26 = sld [smem:[#allocation7_spill]] }
 0x237   : > { %s4173_s27 = sld [smem:[#allocation8_spill]]  ;;  %s4174_s28 = sld [smem:[#allocation9_spill]] }
 0x238   : > { %s4175_s21 = smov %s3305_s22  ;;  %s4176_s22 = smov %s3443_s16 }
 0x239   :  { %16 = sbr.rel (!%p14_p3) target bundleno = 7 (0x7), region = 181 }

// kernel: qnet_spatial_forward.9
= control target key start
LH: loop header
LB: loop body
LE: loop exit
PB: predicated region body
PF: predicated region fallthrough
CT: control target
= control target key end

     0   :  { %v690_v3 = vmov 0.0   ;;  %v80_v10 = vlaneseq  ;;  %s1048_s0 = inlined_call_operand.vmem [shape: bf16[2,8,8,256], index: 0, kind: input, shape index: {}]   ;;  %s1049_s1 = inlined_call_operand.vmem [shape: f32[2,1,256], index: 1, kind: input, shape index: {}]   ;;  %s1050_s2 = inlined_call_operand.vmem [shape: f32[2,1,256], index: 2, kind: input, shape index: {}]   ;;  %s1051_s3 = inlined_call_operand.vmem [shape: bf16[256,128], index: 3, kind: input, shape index: {}]   ;;  %s1052_s4 = inlined_call_operand.vmem [shape: f32[1,128], index: 4, kind: input, shape index: {}]   ;;  %s1053_s5 = inlined_call_operand.vmem [shape: bf16[128,128], index: 5, kind: input, shape index: {}]   ;;  %s1054_s6 = inlined_call_operand.vmem [shape: f32[1,128], index: 6, kind: input, shape index: {}]   ;;  %s1055_s7 = inlined_call_operand.hbm [shape: f32[2,128], index: 7, kind: output, shape index: {}]  }
   0x1   :  { %v642_v0 = vld [vmem:[%s1051_s3 + $0x40] sm:$0xff]   ;;  %v644_v2 = vld [vmem:[%s1051_s3 + $0x48] sm:$0xff]   ;;  %619 = vmatprep.subr.bf16.mxu1 %v690_v3  ;;  %v646_v5 = vld [vmem:[%s1051_s3 + $0x50] sm:$0xff]  }
   0x2   :  { %v643_v1 = vld [vmem:[%s1051_s3] sm:$0xff]   ;;  %588 = vmatprep.subr.bf16.mxu0 %v642_v0  ;;  %v645_v4 = vld [vmem:[%s1051_s3 + $0x8] sm:$0xff]   ;;  %v647_v6 = vld [vmem:[%s1051_s3 + $0x10] sm:$0xff]   ;;  %v81_v13 = vshrl.u32 %v80_v10, 7 }
   0x3   :  { %589 = vmatpush3.bf16.msra.mxu0 %v643_v1  ;;  %v648_v7 = vld [vmem:[%s1051_s3 + $0x58] sm:$0xff]   ;;  %v650_v9 = vld [vmem:[%s1051_s3 + $0x60] sm:$0xff]   ;;  %v652_v12 = vld [vmem:[%s1051_s3 + $0x68] sm:$0xff]  }
   0x4   :  { %590 = vmatprep.subr.bf16.mxu0 %v644_v2  ;;  %v649_v8 = vld [vmem:[%s1051_s3 + $0x18] sm:$0xff]   ;;  %v651_v11 = vld [vmem:[%s1051_s3 + $0x20] sm:$0xff]   ;;  %v653_v14 = vld [vmem:[%s1051_s3 + $0x28] sm:$0xff]   ;;  %v825_v28 = vsub.s32 0, %v81_v13  ;;  %v86_v29 = vsub.s32 1, %v81_v13 }
   0x5   :  { %v773_v15 = vld [vmem:[%s1048_s0] sm:$0xff]  ;;  %v654_v16 = vld [vmem:[%s1051_s3 + $0x70] sm:$0xff]   ;;  %v781_v17 = vld [vmem:[%s1048_s0 + $0x8] sm:$0xff] }
   0x6   :  { %v786_v18 = vld [vmem:[%s1048_s0 + $0x10] sm:$0xff]  ;;  %v791_v19 = vld [vmem:[%s1048_s0 + $0x18] sm:$0xff]  ;;  %v796_v20 = vld [vmem:[%s1048_s0 + $0x20] sm:$0xff]  ;;  %v44_v26 = vunpack.c.l.bf16 %v773_v15  ;;  %v45_v27 = vunpack.c.h.bf16 %v773_v15  ;;  %v46_v33 = vunpack.c.l.bf16 %v781_v17  ;;  %v47_v34 = vunpack.c.h.bf16 %v781_v17 }
   0x7   :  { %591 = vmatpush3.bf16.msra.mxu0 %v645_v4  ;;  %v801_v21 = vld [vmem:[%s1048_s0 + $0x28] sm:$0xff]  ;;  %v806_v22 = vld [vmem:[%s1048_s0 + $0x30] sm:$0xff]  ;;  %v811_v23 = vld [vmem:[%s1048_s0 + $0x38] sm:$0xff]  ;;  %v48_v35 = vunpack.c.l.bf16 %v786_v18  ;;  %v49_v36 = vunpack.c.h.bf16 %v786_v18  ;;  %v50_v40 = vunpack.c.l.bf16 %v791_v19  ;;  %v51_v41 = vunpack.c.h.bf16 %v791_v19 }
   0x8   :  { %592 = vmatprep.subr.bf16.mxu0 %v646_v5  ;;  %v816_v24 = vld [vmem:[%s1048_s0 + $0x40] sm:$0xff]  ;;  %v821_v25 = vld [vmem:[%s1048_s0 + $0x48] sm:$0xff]  ;;  %v655_v30 = vld [vmem:[%s1051_s3 + $0x30] sm:$0xff]   ;;  %v53_v43 = vunpack.c.h.bf16 %v796_v20  ;;  %v55_v48 = vunpack.c.h.bf16 %v801_v21  ;;  %v57_v50 = vunpack.c.h.bf16 %v806_v22  ;;  %v59_v53 = vunpack.c.h.bf16 %v811_v23 }
   0x9   :  { %v833_v31 = vld [vmem:[%s1048_s0 + $0x50] sm:$0xff]  ;;  %v838_v32 = vld [vmem:[%s1048_s0 + $0x58] sm:$0xff]  ;;  %v847_v37 = vld [vmem:[%s1049_s1] sm:$0x3]  ;;  %v60_v54 = vunpack.c.l.bf16 %v816_v24  ;;  %v61_v55 = vunpack.c.h.bf16 %v816_v24  ;;  %v63_v58 = vunpack.c.h.bf16 %v821_v25  ;;  %v62_v0 = vunpack.c.l.bf16 %v821_v25 }
   0xa   :  { %v656_v38 = vld [vmem:[%s1051_s3 + $0x78] sm:$0xff]   ;;  %v855_v39 = vld [vmem:[%s1048_s0 + $0x60] sm:$0xff]  ;;  %v872_v46 = vld [vmem:[%s1048_s0 + $0x68] sm:$0xff]  ;;  %v65_v59 = vunpack.c.h.bf16 %v833_v31  ;;  %v87_v60 = vrot.slane %v847_v37, %v86_v29  ;;  %v64_v1 = vunpack.c.l.bf16 %v833_v31  ;;  %v66_v2 = vunpack.c.l.bf16 %v838_v32 }
   0xb   :  { %593 = vmatpush3.bf16.msra.mxu0 %v647_v6  ;;  %v77_v44 = vld [vmem:[%s1049_s1 + $0x2] sm:$0x3]  ;;  %v867_v45 = vld [vmem:[%s1050_s2] sm:$0x3]  ;;  %v657_v57 = vld [vmem:[%s1051_s3 + $0x38] sm:$0xff]   ;;  %v67_v4 = vunpack.c.h.bf16 %v838_v32  ;;  %v69_v10 = vunpack.c.h.bf16 %v855_v39 }
   0xc   :  { %594 = vmatprep.subr.bf16.mxu0 %v648_v7  ;;  %v658_v51 = vld [vmem:[%s1053_s5] sm:$0xff]   ;;  %v95_v61 = vrot.slane %v77_v44, %v86_v29  ;;  %v659_v62 = vld [vmem:[%s1053_s5 + $0x8] sm:$0xff]   ;;  %v900_v63 = vld [vmem:[%s1048_s0 + $0x70] sm:$0xff]  ;;  %v101_v7 = vmul.f32 %v87_v60, %v45_v27 }
   0xd   :  { %v133_v56 = vld [vmem:[%s1050_s2 + $0x2] sm:$0x3]  ;;  %620 = vmatpush3.bf16.msra.mxu1 %v658_v51  ;;  %v910_v5 = vld [vmem:[%s1048_s0 + $0x78] sm:$0xff] }
   0xe   :  { %621 = vmatprep.subr.bf16.mxu1 %v690_v3  ;;  %v151_v13 = vrot.slane %v133_v56, %v86_v29  ;;  %v119_v51 = vmul.f32 %v95_v61, %v63_v58  ;;  %v121_v52 = vmul.f32 %v95_v61, %v65_v59  ;;  %v75_v49 = vunpack.c.h.bf16 %v910_v5 }
   0xf   :  { %595 = vmatpush3.bf16.msra.mxu0 %v649_v8  ;;  %v103_v8 = vmul.f32 %v87_v60, %v47_v34  ;;  %v73_v34 = vunpack.c.h.bf16 %v900_v63 }
  0x10   :  { %596 = vmatprep.subr.bf16.mxu0 %v650_v9  ;;  %v143_v9 = vrot.slane %v867_v45, %v86_v29 }
  0x11   :  { %622 = vmatpush3.bf16.msra.mxu1 %v659_v62 }
  0x12   :  { %623 = vmatprep.subr.bf16.mxu1 %v690_v3 }
  0x13   :  { %597 = vmatpush3.bf16.msra.mxu0 %v651_v11 }
  0x14   :  { %598 = vmatprep.subr.bf16.mxu0 %v652_v12  ;;  %v71_v12 = vunpack.c.h.bf16 %v872_v46 }
  0x17   :  { %599 = vmatpush3.bf16.msra.mxu0 %v653_v14  ;;  %v660_v14 = vld [vmem:[%s1053_s5 + $0x10] sm:$0xff]  }
  0x18   :  { %600 = vmatprep.subr.bf16.mxu0 %v654_v16  ;;  %v105_v16 = vmul.f32 %v87_v60, %v49_v36 }
  0x1b   :  { %601 = vmatpush3.bf16.msra.mxu0 %v655_v30  ;;  %v117_v30 = vmul.f32 %v95_v61, %v61_v55 }
  0x1c   :  { %602 = vmatprep.subr.bf16.mxu0 %v656_v38 }
  0x1d   :  { %12 = vsyncpa [#allocation3], 0  ;;  %v107_v29 = vmul.f32 %v87_v60, %v51_v41  ;;  %v123_v11 = vmul.f32 %v95_v61, %v67_v4  ;;  %v157_v47 = vadd.f32 %v143_v9, %v101_v7  ;;  %v159_v36 = vadd.f32 %v143_v9, %v103_v8  ;;  %624 = vmatpush3.bf16.msra.mxu1 %v660_v14  ;;  %v661_v41 = vld [vmem:[%s1053_s5 + $0x18] sm:$0xff]   ;;  %v663_v25 = vld [vmem:[%s1053_s5 + $0x28] sm:$0xff]  }
  0x1e   :  { %v927_v55 = vrot.slane %v847_v37, %v825_v28  ;;  %v930_v58 = vrot.slane %v77_v44, %v825_v28  ;;  %v109_v59 = vmul.f32 %v87_v60, %v53_v43  ;;  %v125_v62 = vmul.f32 %v95_v61, %v69_v10  ;;  %625 = vmatprep.subr.bf16.mxu1 %v690_v3 }
  0x1f   :  { %603 = vmatpush3.bf16.msra.mxu0 %v657_v57  ;;  %v161_v38 = vadd.f32 %v143_v9, %v105_v16  ;;  %v173_v27 = vadd.f32 %v151_v13, %v117_v30  ;;  %v175_v6 = vadd.f32 %v151_v13, %v119_v51  ;;  %v177_v42 = vadd.f32 %v151_v13, %v121_v52 }
  0x20   :  { %v111_v57 = vmul.f32 %v87_v60, %v55_v48  ;;  %v127_v4 = vmul.f32 %v95_v61, %v71_v12  ;;  %v937_v37 = vrot.slane %v867_v45, %v825_v28  ;;  %v940_v44 = vrot.slane %v133_v56, %v825_v28  ;;  %v662_v28 = vld [vmem:[%s1053_s5 + $0x20] sm:$0xff]  }
  0x21   :  { %v163_v43 = vadd.f32 %v143_v9, %v107_v29  ;;  %v179_v7 = vadd.f32 %v151_v13, %v123_v11  ;;  %v201_v8 = vmax.f32 %v157_v47, %v159_v36  ;;  %v227_v52 = vmax.f32 %v173_v27, %v175_v6  ;;  %626 = vmatpush3.bf16.msra.mxu1 %v661_v41 }
  0x22   :  { %v113_v10 = vmul.f32 %v87_v60, %v57_v50  ;;  %v115_v48 = vmul.f32 %v87_v60, %v59_v53  ;;  %v129_v12 = vmul.f32 %v95_v61, %v73_v34  ;;  %v131_v14 = vmul.f32 %v95_v61, %v75_v49  ;;  %627 = vmatprep.subr.bf16.mxu1 %v690_v3 }
  0x23   :  { %v165_v16 = vadd.f32 %v143_v9, %v109_v59  ;;  %v181_v45 = vadd.f32 %v151_v13, %v125_v62  ;;  %v202_v30 = vmax.f32 %v201_v8, %v161_v38  ;;  %v228_v51 = vmax.f32 %v227_v52, %v177_v42 }
  0x24   :  { %v167_v56 = vadd.f32 %v143_v9, %v111_v57  ;;  %v183_v47 = vadd.f32 %v151_v13, %v127_v4  ;;  %v100_v50 = vmul.f32 %v927_v55, %v44_v26  ;;  %v102_v53 = vmul.f32 %v927_v55, %v46_v33 }
  0x25   :  { %v203_v49 = vmax.f32 %v202_v30, %v163_v43  ;;  %v229_v60 = vmax.f32 %v228_v51, %v179_v7  ;;  %v116_v42 = vmul.f32 %v930_v58, %v60_v54  ;;  %v118_v61 = vmul.f32 %v930_v58, %v62_v0  ;;  %628 = vmatpush3.bf16.msra.mxu1 %v662_v28 }
  0x26   :  { %v169_v6 = vadd.f32 %v143_v9, %v113_v10  ;;  %v171_v15 = vadd.f32 %v143_v9, %v115_v48  ;;  %v104_v17 = vmul.f32 %v927_v55, %v48_v35  ;;  %v120_v26 = vmul.f32 %v930_v58, %v64_v1  ;;  %629 = vmatprep.subr.bf16.mxu1 %v690_v3 }
  0x27   :  { %v185_v33 = vadd.f32 %v151_v13, %v129_v12  ;;  %v187_v11 = vadd.f32 %v151_v13, %v131_v14  ;;  %v204_v27 = vmax.f32 %v203_v49, %v165_v16  ;;  %v230_v24 = vmax.f32 %v229_v60, %v181_v45 }
  0x28   :  { %v106_v54 = vmul.f32 %v927_v55, %v50_v40  ;;  %v122_v18 = vmul.f32 %v930_v58, %v66_v2  ;;  %v156_v31 = vadd.f32 %v937_v37, %v100_v50  ;;  %v158_v35 = vadd.f32 %v937_v37, %v102_v53 }
  0x29   :  { %v205_v0 = vmax.f32 %v204_v27, %v167_v56  ;;  %v231_v1 = vmax.f32 %v230_v24, %v183_v47  ;;  %v172_v9 = vadd.f32 %v940_v44, %v116_v42  ;;  %v174_v13 = vadd.f32 %v940_v44, %v118_v61  ;;  %630 = vmatpush3.bf16.msra.mxu1 %v663_v25 }
  0x2a   :  { %v1056_v19 = vunpack.c.l.bf16 %v796_v20  ;;  %v1057_v32 = vunpack.c.l.bf16 %v855_v39  ;;  %v160_v34 = vadd.f32 %v937_v37, %v104_v17  ;;  %v176_v38 = vadd.f32 %v940_v44, %v120_v26  ;;  %631 = vmatprep.subr.bf16.mxu1 %v690_v3 }
  0x2b   :  { %v206_v29 = vmax.f32 %v205_v0, %v169_v6  ;;  %v232_v36 = vmax.f32 %v231_v1, %v185_v33  ;;  %v1058_v59 = vunpack.c.l.bf16 %v801_v21  ;;  %v1059_v41 = vunpack.c.l.bf16 %v872_v46 }
  0x2c   :  { %v108_v40 = vmul.f32 %v927_v55, %v1056_v19  ;;  %v124_v2 = vmul.f32 %v930_v58, %v1057_v32  ;;  %v162_v57 = vadd.f32 %v937_v37, %v106_v54  ;;  %v178_v39 = vadd.f32 %v940_v44, %v122_v18 }
  0x2d   :  { %v110_v62 = vmul.f32 %v927_v55, %v1058_v59  ;;  %v126_v20 = vmul.f32 %v930_v58, %v1059_v41  ;;  %v188_v4 = vmax.f32 %v156_v31, %v158_v35  ;;  %v214_v43 = vmax.f32 %v172_v9, %v174_v13 }
  0x2e   :  { %v207_v7 = vmax.f32 %v206_v29, %v171_v15  ;;  %v233_v8 = vmax.f32 %v232_v36, %v187_v11  ;;  %v1060_v52 = vunpack.c.l.bf16 %v806_v22  ;;  %v1061_v10 = vunpack.c.l.bf16 %v900_v63 }
  0x2f   :  { %v164_v48 = vadd.f32 %v937_v37, %v108_v40  ;;  %v180_v12 = vadd.f32 %v940_v44, %v124_v2  ;;  %v189_v14 = vmax.f32 %v188_v4, %v160_v34  ;;  %v215_v16 = vmax.f32 %v214_v43, %v176_v38 }
  0x30   :  { %v112_v21 = vmul.f32 %v927_v55, %v1060_v52  ;;  %v128_v46 = vmul.f32 %v930_v58, %v1061_v10  ;;  %v208_v45 = vrot.slane %v207_v7, 4  ;;  %v234_v30 = vrot.slane %v233_v8, 4  ;;  %v665_v10 = vld [vmem:[%s1053_s5 + $0x38] sm:$0xff]  }
  0x31   :  { %v1062_v51 = vunpack.c.l.bf16 %v811_v23  ;;  %v1063_v22 = vunpack.c.l.bf16 %v910_v5  ;;  %v166_v63 = vadd.f32 %v937_v37, %v110_v62  ;;  %v182_v47 = vadd.f32 %v940_v44, %v126_v20 }
  0x32   :  { %v190_v50 = vmax.f32 %v189_v14, %v162_v57  ;;  %v216_v53 = vmax.f32 %v215_v16, %v178_v39  ;;  %v209_v49 = vmax.f32 %v207_v7, %v208_v45  ;;  %v235_v60 = vmax.f32 %v233_v8, %v234_v30 }
  0x33   :  { %v114_v28 = vmul.f32 %v927_v55, %v1062_v51  ;;  %v130_v56 = vmul.f32 %v930_v58, %v1063_v22  ;;  %v168_v42 = vadd.f32 %v937_v37, %v112_v21  ;;  %v184_v61 = vadd.f32 %v940_v44, %v128_v46  ;;  %v664_v21 = vld [vmem:[%s1053_s5 + $0x30] sm:$0xff]   ;;  %v579_v22 = vld [vmem:[%s1054_s6] ss:$0 sm:$0xff]  ;;  %s692_s5 = smov [#allocation2]  }
  0x34   :  { %v191_v6 = vmax.f32 %v190_v50, %v164_v48  ;;  %v217_v23 = vmax.f32 %v216_v53, %v180_v12  ;;  %v210_v15 = vrot.slane %v209_v49, 2  ;;  %v236_v55 = vrot.slane %v235_v60, 2  ;;  %632 = vmatpush3.bf16.msra.mxu1 %v664_v21  ;;  %v562_v48 = vld [vmem:[%s1052_s4] ss:$0 sm:$0xff]  ;;  %s554_s19 = sshll.u32 %s692_s5, 4  ;;  %s555_s19 = int_to_ptr.vmem [resolvable:$true] %s554_s19 }
  0x35   :  { %v170_v5 = vadd.f32 %v937_v37, %v114_v28  ;;  %v186_v58 = vadd.f32 %v940_v44, %v130_v56  ;;  %vm291_vm0 = vcmask 1041409   ;;  %633 = vmatprep.subr.bf16.mxu1 %v690_v3  ;;  %vm691_vm1 = vmmov 0   ;;  %s666_s4 = scalar_lea.vmem %s555_s19, 32  ;;  %p671_p1 = scmp.lt.s32.totalorder %s555_s19, %s555_s19 }
  0x36   :  { %v192_v17 = vmax.f32 %v191_v6, %v166_v63  ;;  %v218_v26 = vmax.f32 %v217_v23, %v182_v47  ;;  %v211_v33 = vmax.f32 %v209_v49, %v210_v15  ;;  %v237_v11 = vmax.f32 %v235_v60, %v236_v55  ;;  %635 = vmatprep.mubr.msk.bf16.mxu1 %vm691_vm1, %v690_v3  ;;  %p667_p0 = scmp.ne.s32.totalorder %s555_s19, %s666_s4  ;;  %p672_p2 = scmp.lt.s32.totalorder %s666_s4, %s666_s4 }
  0x38   :  { %v193_v27 = vmax.f32 %v192_v17, %v168_v42  ;;  %v219_v24 = vmax.f32 %v218_v26, %v184_v61  ;;  %v212_v25 = vrot.slane %v211_v33, 1  ;;  %v238_v54 = vrot.slane %v237_v11, 1  ;;  %634 = vmatpush3.bf16.msra.mxu1 %v665_v10  ;;  %p673_p3 = por %p672_p2, %p671_p1 }
  0x3a   :  { %v194_v18 = vmax.f32 %v193_v27, %v170_v5  ;;  %v220_v31 = vmax.f32 %v219_v24, %v186_v58  ;;  %v213_v35 = vmax.f32 %v211_v33, %v212_v25  ;;  %v239_v0 = vmax.f32 %v237_v11, %v238_v54  ;;  %p674_p4 = pnand %p673_p3, %p667_p0 }
  0x3c   :  { %v195_v1 = vrot.slane %v194_v18, 4  ;;  %v221_v9 = vrot.slane %v220_v31, 4  ;;  %v241_v13 = vpack.c.bf16 %v213_v35, %v213_v35  ;;  %v243_v19 = vpack.c.bf16 %v239_v0, %v239_v0 }
  0x3e   :  { %v196_v37 = vmax.f32 %v194_v18, %v195_v1  ;;  %v222_v40 = vmax.f32 %v220_v31, %v221_v9  ;;  %v288_v44 = vunpack.c.l.b16 %v241_v13  ;;  %v290_v32 = vunpack.c.l.b16 %v243_v19 }
  0x40   :  { %v197_v2 = vrot.slane %v196_v37, 2  ;;  %v223_v34 = vrot.slane %v222_v40, 2  ;;  %v293_v38 = vsel %vm291_vm0, %v290_v32, %v288_v44 }
  0x41   :  { %v295_v29 = vpack.c.b16 %v293_v38, %v293_v38 }
  0x42   :  { %v198_v36 = vmax.f32 %v196_v37, %v197_v2  ;;  %v224_v59 = vmax.f32 %v222_v40, %v223_v34 }
  0x43   :  { %426 = vmatprep.mubr.bf16.mxu0 %v295_v29 }
  0x44   :  { %v199_v62 = vrot.slane %v198_v36, 1  ;;  %v225_v41 = vrot.slane %v224_v59, 1 }
  0x46   :  { %v200_v20 = vmax.f32 %v198_v36, %v199_v62  ;;  %v226_v57 = vmax.f32 %v224_v59, %v225_v41 }
  0x48   :  { %v240_v39 = vpack.c.bf16 %v200_v20, %v200_v20  ;;  %v242_v4 = vpack.c.bf16 %v226_v57, %v226_v57 }
  0x4a   :  { %v287_v43 = vunpack.c.l.b16 %v240_v39  ;;  %v289_v7 = vunpack.c.l.b16 %v242_v4 }
  0x4c   :  { %v292_v8 = vsel %vm291_vm0, %v289_v7, %v287_v43 }
  0x4d   :  { %v294_v52 = vpack.c.b16 %v292_v8, %v292_v8 }
  0x4f   :  { %427 = vmatmul.mubr.bf16.vlgmr.msra.gmra.mrb[0].mxu0 %v294_v52 }
 0x122   :  { %v604_v46 = vpop.f32.mrb[0].mxu0 }
 0x123   :  { %v605_v12 = vpop.f32.mrb[1].mxu0 }
 0x124   :  { %v606_v14 = vadd.f32 %v605_v12, %v604_v46  ;;  %v607_v16 = vpop.f32.mrb[2].mxu0 }
 0x125   :  { %v608_v45 = vpop.f32.mrb[3].mxu0 }
 0x126   :  { %v429_v30 = vadd.f32 %v606_v14, %v562_v48 }
 0x128   :  { %v434_v51 = vmax.f32 %v429_v30, 0.0 }
 0x12a   :  { %v435_v28 = vpack.c.bf16 %v434_v51, %v434_v51 }
 0x12c   :  { %636 = vmatmul.mubr.bf16.vlgmr.msra.gmra.mrb[0].mxu1 %v435_v28 }
 0x1ff   :  { %v541_v3 = vpop.f32.mrb[0].mxu1 }
 0x200   :  { %v542_v56 = vadd.f32 %v579_v22, %v541_v3  ;;  %v637_v63 = vpop.f32.mrb[1].mxu1 }
 0x201   :  { %v544_v47 = vpop.f32.mrb[2].mxu1 }
 0x202   :  { %547 = vst [vmem:[#allocation2] sm:$0x3] %v542_v56  ;;  %v638_v50 = vpop.f32.mrb[3].mxu1 }
 0x203   :  { %677 = shalt.err (!%p674_p4)
}
 0x204   :  { %s678_s6 = scalar_lea.hbm %s1055_s7, 32 }
 0x205   :  { %p679_p5 = scmp.ne.s32.totalorder %s1055_s7, %s678_s6  ;;  %p682_p6 = scmp.lt.u32.totalorder %s678_s6, %s1055_s7 }
 0x207   :  { %p684_p7 = pnand %p682_p6, %p679_p5 }
 0x209   :  { %687 = shalt.err (!%p684_p7)
}
 0x20a   :  { %557 = dma.vmem_to_hbm [thread:$0]  %s555_s19, 32, %s1055_s7, [#allocation3]  }
 0x20b   :  { %688 = dma.done.wait [#allocation3], 32  }
 0x20c   :  { %689 = vsyncadd [#allocation3], 4294967264 }
 0x20d   :  { %561 = vsyncpa [#allocation3], 1 }

</bundles_post_ra>
